<compile_context>
chip_gen: v7x
topology: tpu7x:2x2x1
jax: 0.10.0
libtpu: 0.0.40
codegen_flags: <defaults>
</compile_context>

<pallas_src>
import jax
import jax.numpy as jnp
import numpy as np
from jax import lax
from jax.experimental import pallas as pl
from jax.experimental.pallas import tpu as pltpu


# ----------------------------- Pallas kernel ---------------------------------
def _make_fused_kernel(*, K, tile_h, H, W, C, has_prev):
    """Build the fused state+out kernel for a static configuration."""
    pad = K // 2
    kk = K * K
    ext_h = tile_h + 2 * pad          # state rows computed per tile (with halo)
    band_h = tile_h + 4 * pad         # input rows needed per tile
    m_ext = ext_h * W
    m_out = tile_h * W
    n_conv = 2 if has_prev else 1

    def kernel(*refs):
        if has_prev:
            (x_ref, p_ref, wcat_ref, wout_ref, bsum_ref, bout_ref, leak_ref,
             out_ref, state_ref, patch1_ref, patch2_ref, spad_ref,
             pband_ref) = refs
        else:
            (x_ref, wcat_ref, wout_ref, bsum_ref, bout_ref, leak_ref,
             out_ref, state_ref, patch1_ref, patch2_ref, spad_ref) = refs
            p_ref = pband_ref = None

        t = pl.program_id(1)
        r0 = pl.multiple_of(t * tile_h, tile_h)   # first padded row of the band

        if has_prev:
            # cast the prev band to bf16 once (conv operand only);
            # the leak/tanh path below reads the f32 center directly.
            pband_ref[...] = p_ref[0, pl.ds(r0, band_h), :, :].astype(jnp.bfloat16)

        # ---- state convs: one deep im2col matmul over x (+ prev) taps --------
        for tap in range(n_conv * kk):
            kh, kw = divmod(tap % kk, K)
            if tap < kk:
                win = x_ref[0, pl.ds(r0 + kh, ext_h), kw:kw + W, :]     # bf16
            else:
                win = pband_ref[kh:kh + ext_h, kw:kw + W, :]            # bf16
            patch1_ref[:, tap * C:(tap + 1) * C] = win.reshape(m_ext, C)

        acc = jnp.dot(patch1_ref[...], wcat_ref[...],
                      preferred_element_type=jnp.float32) + bsum_ref[...]

        # ---- leaky recurrent update (f32 elementwise / EUP tanh) --------------
        leak = leak_ref[...]
        if has_prev:
            prev_c = p_ref[0, pl.ds(r0 + pad, ext_h), pad:pad + W, :]   # f32
            acc = prev_c.reshape(m_ext, C) * leak + (1.0 - leak) * acc
        else:
            acc = (1.0 - leak) * acc
        state3 = jnp.tanh(acc).reshape(ext_h, W, C)

        # Zero the halo rows that fall outside the image: conv_out() sees
        # zero-padded state there, while the computed halo value would not be 0.
        row = lax.broadcasted_iota(jnp.int32, (ext_h, W, C), 0) + (r0 - pad)
        state3 = jnp.where(jnp.logical_and(row >= 0, row < H), state3, 0.0)

        # Lane-dense store of this tile's state: (C, tile_h*W), unmasked vst.
        state_c = state3[pad:pad + tile_h].reshape(m_out, C)
        state_ref[0, 0] = state_c.T.astype(state_ref.dtype)

        # ---- fused out conv: out = relu(conv_out(state)) ----------------------
        zc = jnp.zeros((ext_h, pad, C), jnp.bfloat16)
        spad_ref[:, 0:pad, :] = zc                        # zero column padding
        spad_ref[:, pad + W:pad + W + pad, :] = zc
        spad_ref[:, pad:pad + W, :] = state3.astype(jnp.bfloat16)

        for tap in range(kk):
            kh, kw = divmod(tap, K)
            win = spad_ref[kh:kh + tile_h, kw:kw + W, :]
            patch2_ref[:, tap * C:(tap + 1) * C] = win.reshape(m_out, C)

        y = jnp.dot(patch2_ref[...], wout_ref[...],
                    preferred_element_type=jnp.float32) + bout_ref[...]
        out_ref[0, 0] = jnp.maximum(y, 0.0).T.astype(out_ref.dtype)

    return kernel


# ------------------------------- JAX glue ------------------------------------
def _conv_weight_matrix(w_oihw):
    """(Cout, Cin, K, K) -> (K*K*Cin, Cout); row = (kh*K + kw)*Cin + cin."""
    cout, cin, k, _ = w_oihw.shape
    return jnp.transpose(w_oihw, (2, 3, 1, 0)).reshape(k * k * cin, cout)


def _pick_tile_h(H, W, C, K, n_conv, budget):
    """Largest row tile dividing H (respecting the (8,128) layout rule) whose
    per-step scratch fits the budget, preferring >=2 row tiles (v7x dual TC)."""
    pad = K // 2
    wp = W + 2 * pad

    def step_bytes(th):
        ext = th + 2 * pad
        return (ext * W * n_conv * K * K * C * 2      # state im2col (bf16)
                + th * W * K * K * C * 2              # out-conv im2col (bf16)
                + ext * wp * C * 2                    # padded-state scratch
                + (th + 4 * pad) * wp * C * 2         # prev band scratch
                + 2 * 2 * C * th * W * 4)             # 2 outputs, double-buffered

    cands = [d for d in range(1, H + 1)
             if H % d == 0 and (d % 8 == 0 or d == H)]
    good = [d for d in cands if step_bytes(d) <= budget] or [min(cands)]
    multi = [d for d in good if H // d >= 2]
    return max(multi) if multi else max(good)


def conv_leaky_recurrent_forward(x_nchw, prev_state_nchw, params, tile_h=None):
    """ConvLeakyRecurrent.forward.  Inputs/outputs in NCHW (PyTorch layout)."""
    w_ff, b_ff, w_rec, b_rec, w_out, b_out, leak_param = params
    n, cin, h, w = x_nchw.shape
    cout, cin_w, k, _ = w_ff.shape
    assert cin == cin_w
    # The PyTorch module applies `rec`/`out` (declared with input_size in-channels)
    # to hidden-sized tensors, so it only works when input_size == hidden_size.
    assert cin == cout, "ConvLeakyRecurrent requires input_size == hidden_size"
    c = cout
    pad = k // 2
    kk = k * k
    wp = w + 2 * pad
    hp = h + 4 * pad
    has_prev = prev_state_nchw is not None
    n_conv = 2 if has_prev else 1

    try:
        vmem_cap = int(pltpu.get_tpu_info().vmem_capacity_bytes)
    except Exception:
        vmem_cap = 64 * 2 ** 20

    if tile_h is None:
        tile_h = _pick_tile_h(h, w, c, k, n_conv, budget=vmem_cap // 4)
    assert h % tile_h == 0, "tile_h must divide H"
    assert tile_h % 8 == 0 or tile_h == h, "tile_h must be a multiple of 8 (or H)"
    nt = h // tile_h
    ext_h = tile_h + 2 * pad
    band_h = tile_h + 4 * pad
    m_ext = ext_h * w
    m_out = tile_h * w

    # ---- wrapper glue: one transpose+pad+cast per stream (no band copies) ----
    x_pad = jnp.pad(jnp.transpose(x_nchw, (0, 2, 3, 1)).astype(jnp.bfloat16),
                    ((0, 0), (2 * pad, 2 * pad), (pad, pad), (0, 0)))

    # hoisted parameters (bf16 MXU operands, f32 elementwise operands)
    sig_leak = jax.nn.sigmoid(leak_param.reshape(1, c).astype(jnp.float32))
    bias_sum = (b_ff + b_rec).reshape(1, c).astype(jnp.float32)  # rec(0) == b_rec
    bias_out = b_out.reshape(1, c).astype(jnp.float32)
    w_ff_m = _conv_weight_matrix(w_ff).astype(jnp.bfloat16)
    w_out_m = _conv_weight_matrix(w_out).astype(jnp.bfloat16)

    img_spec = pl.BlockSpec((1, hp, wp, c), lambda b, t: (b, 0, 0, 0))
    wcat_spec = pl.BlockSpec((n_conv * kk * c, c), lambda b, t: (0, 0))
    wout_spec = pl.BlockSpec((kk * c, c), lambda b, t: (0, 0))
    vec_spec = pl.BlockSpec((1, c), lambda b, t: (0, 0))
    out_spec = pl.BlockSpec((1, 1, c, m_out), lambda b, t: (b, t, 0, 0))
    out_struct = jax.ShapeDtypeStruct((n, nt, c, m_out), jnp.float32)

    in_specs = [img_spec]
    args = [x_pad]
    scratch = [pltpu.VMEM((m_ext, n_conv * kk * c), jnp.bfloat16),   # state im2col
               pltpu.VMEM((m_out, kk * c), jnp.bfloat16),            # out-conv im2col
               pltpu.VMEM((ext_h, wp, c), jnp.bfloat16)]             # padded state halo
    if has_prev:
        p_pad = jnp.pad(
            jnp.transpose(prev_state_nchw, (0, 2, 3, 1)).astype(jnp.float32),
            ((0, 0), (2 * pad, 2 * pad), (pad, pad), (0, 0)))
        w_cat = jnp.concatenate(
            [w_ff_m, _conv_weight_matrix(w_rec).astype(jnp.bfloat16)], axis=0)
        in_specs.append(img_spec)
        args.append(p_pad)
        scratch.append(pltpu.VMEM((band_h, wp, c), jnp.bfloat16))    # bf16 prev band
    else:
        w_cat = w_ff_m
    in_specs += [wcat_spec, wout_spec, vec_spec, vec_spec, vec_spec]
    args += [w_cat, w_out_m, bias_sum, bias_out, sig_leak]

    kernel = _make_fused_kernel(K=k, tile_h=tile_h, H=h, W=w, C=c,
                                has_prev=has_prev)

    # VMEM usage estimate -> explicit limit (kept below physical VMEM on v7x)
    img_bytes = hp * wp * c
    scratch_bytes = (m_ext * n_conv * kk * c * 2 + m_out * kk * c * 2
                     + ext_h * wp * c * 2
                     + (band_h * wp * c * 2 if has_prev else 0))
    est = (2 * img_bytes * 2 + (2 * img_bytes * 4 if has_prev else 0)
           + scratch_bytes + 2 * 2 * c * m_out * 4
           + (n_conv + 1) * kk * c * c * 2)
    vmem_limit = int(min(vmem_cap * 3 // 4, max(32 * 2 ** 20, 2 * est)))

    cost = pl.CostEstimate(
        flops=int(2 * n * nt * (m_ext * n_conv * kk * c * c
                                + m_out * kk * c * c)),
        transcendentals=int(n * nt * m_ext * c),
        bytes_accessed=int(n * img_bytes * (2 + (4 if has_prev else 0))
                           + 2 * n * h * w * c * 4
                           + (n_conv + 1) * kk * c * c * 2))

    out_t, state_t = pl.pallas_call(
        kernel,
        out_shape=(out_struct, out_struct),
        grid=(n, nt),
        in_specs=in_specs,
        out_specs=(out_spec, out_spec),
        scratch_shapes=scratch,
        compiler_params=pltpu.CompilerParams(
            dimension_semantics=("parallel", "parallel"),
            vmem_limit_bytes=vmem_limit),
        cost_estimate=cost,
    )(*args)

    def to_nchw(a):   # (N, nt, C, tile_h*W) -> (N, C, H, W)
        a = a.reshape(n, nt, c, tile_h, w)
        return jnp.transpose(a, (0, 2, 1, 3, 4)).reshape(n, c, h, w)

    return to_nchw(out_t), to_nchw(state_t)


# ------------------------------ pure-JAX reference ---------------------------
def reference_forward(x_nchw, prev_state_nchw, params):
    w_ff, b_ff, w_rec, b_rec, w_out, b_out, leak_param = params
    cout, _, k, _ = w_ff.shape
    pad = k // 2

    def conv(inp, wgt, bias):
        return lax.conv_general_dilated(
            inp, wgt, window_strides=(1, 1), padding=[(pad, pad), (pad, pad)],
            dimension_numbers=("NCHW", "OIHW", "NCHW")) + bias.reshape(1, cout, 1, 1)

    ff = conv(x_nchw, w_ff, b_ff)
    if prev_state_nchw is None:
        prev_state_nchw = jnp.zeros_like(ff)
    rec = conv(prev_state_nchw, w_rec, b_rec)
    leak = jax.nn.sigmoid(leak_param).reshape(1, cout, 1, 1)
    state = jnp.tanh(prev_state_nchw * leak + (1.0 - leak) * (ff + rec))
    out = jnp.maximum(conv(state, w_out, b_out), 0.0)
    return out, state


# ----------------------------------- main ------------------------------------
if __name__ == "__main__":
    key = jax.random.PRNGKey(0)
    ks = jax.random.split(key, 9)

    # input_size == hidden_size is required by the module structure
    N, C, H, W, K = 2, 32, 16, 16, 3

    x = jax.random.normal(ks[0], (N, C, H, W), jnp.float32)
    prev_state = jax.random.normal(ks[1], (N, C, H, W), jnp.float32)

    w_ff = jax.random.normal(ks[2], (C, C, K, K), jnp.float32) * 0.1
    b_ff = jax.random.normal(ks[3], (C,), jnp.float32) * 0.1
    w_rec = jax.random.normal(ks[4], (C, C, K, K), jnp.float32) * 0.1
    b_rec = jax.random.normal(ks[5], (C,), jnp.float32) * 0.1
    w_out = jax.random.normal(ks[6], (C, C, K, K), jnp.float32) * 0.1
    b_out = jax.random.normal(ks[7], (C,), jnp.float32) * 0.1
    # leak parameter initialized like the module: randn(hidden,1,1)*0.1 - 4.0
    leak_param = jax.random.normal(ks[8], (C, 1, 1), jnp.float32) * 0.1 - 4.0

    params = (w_ff, b_ff, w_rec, b_rec, w_out, b_out, leak_param)

    # warm path (prev_state given); tile_h=8 -> two row tiles per image
    out, state = conv_leaky_recurrent_forward(x, prev_state, params, tile_h=8)
    out, state = jax.block_until_ready((out, state))
    out_r, state_r = reference_forward(x, prev_state, params)
    np.testing.assert_allclose(np.asarray(state), np.asarray(state_r),
                               rtol=3e-2, atol=3e-2)
    np.testing.assert_allclose(np.asarray(out), np.asarray(out_r),
                               rtol=3e-2, atol=3e-2)

    # cold-start path (prev_state=None), auto-picked tile size
    out0, state0 = conv_leaky_recurrent_forward(x, None, params)
    out0, state0 = jax.block_until_ready((out0, state0))
    out0_r, state0_r = reference_forward(x, None, params)
    np.testing.assert_allclose(np.asarray(state0), np.asarray(state0_r),
                               rtol=3e-2, atol=3e-2)
    np.testing.assert_allclose(np.asarray(out0), np.asarray(out0_r),
                               rtol=3e-2, atol=3e-2)

    print("KERNEL_OK")
</pallas_src>

<mosaic_0001>
module attributes {stable_mosaic.version = 11 : i64} {
  func.func @kernel(%arg0: i32, %arg1: i32, %arg2: memref<1x20x18x32xbf16, #tpu.memory_space<vmem>>, %arg3: memref<1x20x18x32xf32, #tpu.memory_space<vmem>>, %arg4: memref<576x32xbf16, #tpu.memory_space<vmem>>, %arg5: memref<288x32xbf16, #tpu.memory_space<vmem>>, %arg6: memref<1x32xf32, #tpu.memory_space<vmem>>, %arg7: memref<1x32xf32, #tpu.memory_space<vmem>>, %arg8: memref<1x32xf32, #tpu.memory_space<vmem>>, %arg9: memref<1x1x32x128xf32, #tpu.memory_space<vmem>>, %arg10: memref<1x1x32x128xf32, #tpu.memory_space<vmem>>, %arg11: memref<160x576xbf16, #tpu.memory_space<vmem>>, %arg12: memref<128x288xbf16, #tpu.memory_space<vmem>>, %arg13: memref<10x18x32xbf16, #tpu.memory_space<vmem>>, %arg14: memref<12x18x32xbf16, #tpu.memory_space<vmem>>) attributes {dimension_semantics = [#tpu.dimension_semantics<parallel>, #tpu.dimension_semantics<parallel>], iteration_bounds = array<i64: 2, 2>, scalar_prefetch = 0 : i64, scratch_operands = 4 : i64, tpu.core_type = #tpu.core_type<tc>, window_params = [{transform_indices = @transform_0, window_bounds = array<i64: 1, 20, 18, 32>}, {transform_indices = @transform_1, window_bounds = array<i64: 1, 20, 18, 32>}, {pipeline_mode = #tpu.pipeline_mode<synchronous>, transform_indices = @transform_2, window_bounds = array<i64: 576, 32>}, {pipeline_mode = #tpu.pipeline_mode<synchronous>, transform_indices = @transform_3, window_bounds = array<i64: 288, 32>}, {pipeline_mode = #tpu.pipeline_mode<synchronous>, transform_indices = @transform_4, window_bounds = array<i64: 1, 32>}, {pipeline_mode = #tpu.pipeline_mode<synchronous>, transform_indices = @transform_5, window_bounds = array<i64: 1, 32>}, {pipeline_mode = #tpu.pipeline_mode<synchronous>, transform_indices = @transform_6, window_bounds = array<i64: 1, 32>}, {transform_indices = @transform_7, window_bounds = array<i64: 1, 1, 32, 128>}, {transform_indices = @transform_8, window_bounds = array<i64: 1, 1, 32, 128>}]} {
    %c8_i32 = arith.constant 8 : i32
    %0 = arith.muli %arg1, %c8_i32 : i32
    %1 = tpu.assume_multiple %0, 8 : i32
    %c0 = arith.constant 0 : index
    %2 = arith.index_cast %1 : i32 to index
    %c0_0 = arith.constant 0 : index
    %c0_1 = arith.constant 0 : index
    %3 = vector.load %arg3[%c0, %2, %c0_0, %c0_1] : memref<1x20x18x32xf32, #tpu.memory_space<vmem>>, vector<1x12x18x32xf32>
    %4 = vector.shape_cast %3 : vector<1x12x18x32xf32> to vector<12x18x32xf32>
    %5 = arith.truncf %4 : vector<12x18x32xf32> to vector<12x18x32xbf16>
    %c0_2 = arith.constant 0 : index
    %c0_3 = arith.constant 0 : index
    %c0_4 = arith.constant 0 : index
    %6 = vector.load %arg14[%c0_2, %c0_3, %c0_4] : memref<12x18x32xbf16, #tpu.memory_space<vmem>>, vector<12x18x32xbf16>
    tpu.vector_store %arg14[%c0_2, %c0_3, %c0_4], %5 {strides = array<i32>} : memref<12x18x32xbf16, #tpu.memory_space<vmem>>, vector<12x18x32xbf16>,
    %c0_i32 = arith.constant 0 : i32
    %7 = arith.addi %1, %c0_i32 : i32
    %c0_5 = arith.constant 0 : index
    %8 = arith.index_cast %7 : i32 to index
    %c0_6 = arith.constant 0 : index
    %c0_7 = arith.constant 0 : index
    %9 = vector.load %arg2[%c0_5, %8, %c0_6, %c0_7] : memref<1x20x18x32xbf16, #tpu.memory_space<vmem>>, vector<1x10x16x32xbf16>
    %10 = vector.shape_cast %9 : vector<1x10x16x32xbf16> to vector<10x16x32xbf16>
    %11 = vector.shape_cast %10 : vector<10x16x32xbf16> to vector<160x32xbf16>
    %c0_8 = arith.constant 0 : index
    %c0_9 = arith.constant 0 : index
    %12 = vector.load %arg11[%c0_8, %c0_9] : memref<160x576xbf16, #tpu.memory_space<vmem>>, vector<160x32xbf16>
    tpu.vector_store %arg11[%c0_8, %c0_9], %11 {strides = array<i32>} : memref<160x576xbf16, #tpu.memory_space<vmem>>, vector<160x32xbf16>,
    %c0_i32_10 = arith.constant 0 : i32
    %13 = arith.addi %1, %c0_i32_10 : i32
    %c0_11 = arith.constant 0 : index
    %14 = arith.index_cast %13 : i32 to index
    %c1 = arith.constant 1 : index
    %c0_12 = arith.constant 0 : index
    %15 = vector.load %arg2[%c0_11, %14, %c1, %c0_12] : memref<1x20x18x32xbf16, #tpu.memory_space<vmem>>, vector<1x10x16x32xbf16>
    %16 = vector.shape_cast %15 : vector<1x10x16x32xbf16> to vector<10x16x32xbf16>
    %17 = vector.shape_cast %16 : vector<10x16x32xbf16> to vector<160x32xbf16>
    %c0_13 = arith.constant 0 : index
    %c32 = arith.constant 32 : index
    %18 = vector.load %arg11[%c0_13, %c32] : memref<160x576xbf16, #tpu.memory_space<vmem>>, vector<160x32xbf16>
    tpu.vector_store %arg11[%c0_13, %c32], %17 {strides = array<i32>} : memref<160x576xbf16, #tpu.memory_space<vmem>>, vector<160x32xbf16>,
    %c0_i32_14 = arith.constant 0 : i32
    %19 = arith.addi %1, %c0_i32_14 : i32
    %c0_15 = arith.constant 0 : index
    %20 = arith.index_cast %19 : i32 to index
    %c2 = arith.constant 2 : index
    %c0_16 = arith.constant 0 : index
    %21 = vector.load %arg2[%c0_15, %20, %c2, %c0_16] : memref<1x20x18x32xbf16, #tpu.memory_space<vmem>>, vector<1x10x16x32xbf16>
    %22 = vector.shape_cast %21 : vector<1x10x16x32xbf16> to vector<10x16x32xbf16>
    %23 = vector.shape_cast %22 : vector<10x16x32xbf16> to vector<160x32xbf16>
    %c0_17 = arith.constant 0 : index
    %c64 = arith.constant 64 : index
    %24 = vector.load %arg11[%c0_17, %c64] : memref<160x576xbf16, #tpu.memory_space<vmem>>, vector<160x32xbf16>
    tpu.vector_store %arg11[%c0_17, %c64], %23 {strides = array<i32>} : memref<160x576xbf16, #tpu.memory_space<vmem>>, vector<160x32xbf16>,
    %c1_i32 = arith.constant 1 : i32
    %25 = arith.addi %1, %c1_i32 : i32
    %c0_18 = arith.constant 0 : index
    %26 = arith.index_cast %25 : i32 to index
    %c0_19 = arith.constant 0 : index
    %c0_20 = arith.constant 0 : index
    %27 = vector.load %arg2[%c0_18, %26, %c0_19, %c0_20] : memref<1x20x18x32xbf16, #tpu.memory_space<vmem>>, vector<1x10x16x32xbf16>
    %28 = vector.shape_cast %27 : vector<1x10x16x32xbf16> to vector<10x16x32xbf16>
    %29 = vector.shape_cast %28 : vector<10x16x32xbf16> to vector<160x32xbf16>
    %c0_21 = arith.constant 0 : index
    %c96 = arith.constant 96 : index
    %30 = vector.load %arg11[%c0_21, %c96] : memref<160x576xbf16, #tpu.memory_space<vmem>>, vector<160x32xbf16>
    tpu.vector_store %arg11[%c0_21, %c96], %29 {strides = array<i32>} : memref<160x576xbf16, #tpu.memory_space<vmem>>, vector<160x32xbf16>,
    %c1_i32_22 = arith.constant 1 : i32
    %31 = arith.addi %1, %c1_i32_22 : i32
    %c0_23 = arith.constant 0 : index
    %32 = arith.index_cast %31 : i32 to index
    %c1_24 = arith.constant 1 : index
    %c0_25 = arith.constant 0 : index
    %33 = vector.load %arg2[%c0_23, %32, %c1_24, %c0_25] : memref<1x20x18x32xbf16, #tpu.memory_space<vmem>>, vector<1x10x16x32xbf16>
    %34 = vector.shape_cast %33 : vector<1x10x16x32xbf16> to vector<10x16x32xbf16>
    %35 = vector.shape_cast %34 : vector<10x16x32xbf16> to vector<160x32xbf16>
    %c0_26 = arith.constant 0 : index
    %c128 = arith.constant 128 : index
    %36 = vector.load %arg11[%c0_26, %c128] : memref<160x576xbf16, #tpu.memory_space<vmem>>, vector<160x32xbf16>
    tpu.vector_store %arg11[%c0_26, %c128], %35 {strides = array<i32>} : memref<160x576xbf16, #tpu.memory_space<vmem>>, vector<160x32xbf16>,
    %c1_i32_27 = arith.constant 1 : i32
    %37 = arith.addi %1, %c1_i32_27 : i32
    %c0_28 = arith.constant 0 : index
    %38 = arith.index_cast %37 : i32 to index
    %c2_29 = arith.constant 2 : index
    %c0_30 = arith.constant 0 : index
    %39 = vector.load %arg2[%c0_28, %38, %c2_29, %c0_30] : memref<1x20x18x32xbf16, #tpu.memory_space<vmem>>, vector<1x10x16x32xbf16>
    %40 = vector.shape_cast %39 : vector<1x10x16x32xbf16> to vector<10x16x32xbf16>
    %41 = vector.shape_cast %40 : vector<10x16x32xbf16> to vector<160x32xbf16>
    %c0_31 = arith.constant 0 : index
    %c160 = arith.constant 160 : index
    %42 = vector.load %arg11[%c0_31, %c160] : memref<160x576xbf16, #tpu.memory_space<vmem>>, vector<160x32xbf16>
    tpu.vector_store %arg11[%c0_31, %c160], %41 {strides = array<i32>} : memref<160x576xbf16, #tpu.memory_space<vmem>>, vector<160x32xbf16>,
    %c2_i32 = arith.constant 2 : i32
    %43 = arith.addi %1, %c2_i32 : i32
    %c0_32 = arith.constant 0 : index
    %44 = arith.index_cast %43 : i32 to index
    %c0_33 = arith.constant 0 : index
    %c0_34 = arith.constant 0 : index
    %45 = vector.load %arg2[%c0_32, %44, %c0_33, %c0_34] : memref<1x20x18x32xbf16, #tpu.memory_space<vmem>>, vector<1x10x16x32xbf16>
    %46 = vector.shape_cast %45 : vector<1x10x16x32xbf16> to vector<10x16x32xbf16>
    %47 = vector.shape_cast %46 : vector<10x16x32xbf16> to vector<160x32xbf16>
    %c0_35 = arith.constant 0 : index
    %c192 = arith.constant 192 : index
    %48 = vector.load %arg11[%c0_35, %c192] : memref<160x576xbf16, #tpu.memory_space<vmem>>, vector<160x32xbf16>
    tpu.vector_store %arg11[%c0_35, %c192], %47 {strides = array<i32>} : memref<160x576xbf16, #tpu.memory_space<vmem>>, vector<160x32xbf16>,
    %c2_i32_36 = arith.constant 2 : i32
    %49 = arith.addi %1, %c2_i32_36 : i32
    %c0_37 = arith.constant 0 : index
    %50 = arith.index_cast %49 : i32 to index
    %c1_38 = arith.constant 1 : index
    %c0_39 = arith.constant 0 : index
    %51 = vector.load %arg2[%c0_37, %50, %c1_38, %c0_39] : memref<1x20x18x32xbf16, #tpu.memory_space<vmem>>, vector<1x10x16x32xbf16>
    %52 = vector.shape_cast %51 : vector<1x10x16x32xbf16> to vector<10x16x32xbf16>
    %53 = vector.shape_cast %52 : vector<10x16x32xbf16> to vector<160x32xbf16>
    %c0_40 = arith.constant 0 : index
    %c224 = arith.constant 224 : index
    %54 = vector.load %arg11[%c0_40, %c224] : memref<160x576xbf16, #tpu.memory_space<vmem>>, vector<160x32xbf16>
    tpu.vector_store %arg11[%c0_40, %c224], %53 {strides = array<i32>} : memref<160x576xbf16, #tpu.memory_space<vmem>>, vector<160x32xbf16>,
    %c2_i32_41 = arith.constant 2 : i32
    %55 = arith.addi %1, %c2_i32_41 : i32
    %c0_42 = arith.constant 0 : index
    %56 = arith.index_cast %55 : i32 to index
    %c2_43 = arith.constant 2 : index
    %c0_44 = arith.constant 0 : index
    %57 = vector.load %arg2[%c0_42, %56, %c2_43, %c0_44] : memref<1x20x18x32xbf16, #tpu.memory_space<vmem>>, vector<1x10x16x32xbf16>
    %58 = vector.shape_cast %57 : vector<1x10x16x32xbf16> to vector<10x16x32xbf16>
    %59 = vector.shape_cast %58 : vector<10x16x32xbf16> to vector<160x32xbf16>
    %c0_45 = arith.constant 0 : index
    %c256 = arith.constant 256 : index
    %60 = vector.load %arg11[%c0_45, %c256] : memref<160x576xbf16, #tpu.memory_space<vmem>>, vector<160x32xbf16>
    tpu.vector_store %arg11[%c0_45, %c256], %59 {strides = array<i32>} : memref<160x576xbf16, #tpu.memory_space<vmem>>, vector<160x32xbf16>,
    %c0_46 = arith.constant 0 : index
    %c0_47 = arith.constant 0 : index
    %c0_48 = arith.constant 0 : index
    %61 = vector.load %arg14[%c0_46, %c0_47, %c0_48] : memref<12x18x32xbf16, #tpu.memory_space<vmem>>, vector<10x16x32xbf16>
    %62 = vector.shape_cast %61 : vector<10x16x32xbf16> to vector<160x32xbf16>
    %c0_49 = arith.constant 0 : index
    %c288 = arith.constant 288 : index
    %63 = vector.load %arg11[%c0_49, %c288] : memref<160x576xbf16, #tpu.memory_space<vmem>>, vector<160x32xbf16>
    tpu.vector_store %arg11[%c0_49, %c288], %62 {strides = array<i32>} : memref<160x576xbf16, #tpu.memory_space<vmem>>, vector<160x32xbf16>,
    %c0_50 = arith.constant 0 : index
    %c1_51 = arith.constant 1 : index
    %c0_52 = arith.constant 0 : index
    %64 = vector.load %arg14[%c0_50, %c1_51, %c0_52] : memref<12x18x32xbf16, #tpu.memory_space<vmem>>, vector<10x16x32xbf16>
    %65 = vector.shape_cast %64 : vector<10x16x32xbf16> to vector<160x32xbf16>
    %c0_53 = arith.constant 0 : index
    %c320 = arith.constant 320 : index
    %66 = vector.load %arg11[%c0_53, %c320] : memref<160x576xbf16, #tpu.memory_space<vmem>>, vector<160x32xbf16>
    tpu.vector_store %arg11[%c0_53, %c320], %65 {strides = array<i32>} : memref<160x576xbf16, #tpu.memory_space<vmem>>, vector<160x32xbf16>,
    %c0_54 = arith.constant 0 : index
    %c2_55 = arith.constant 2 : index
    %c0_56 = arith.constant 0 : index
    %67 = vector.load %arg14[%c0_54, %c2_55, %c0_56] : memref<12x18x32xbf16, #tpu.memory_space<vmem>>, vector<10x16x32xbf16>
    %68 = vector.shape_cast %67 : vector<10x16x32xbf16> to vector<160x32xbf16>
    %c0_57 = arith.constant 0 : index
    %c352 = arith.constant 352 : index
    %69 = vector.load %arg11[%c0_57, %c352] : memref<160x576xbf16, #tpu.memory_space<vmem>>, vector<160x32xbf16>
    tpu.vector_store %arg11[%c0_57, %c352], %68 {strides = array<i32>} : memref<160x576xbf16, #tpu.memory_space<vmem>>, vector<160x32xbf16>,
    %c1_58 = arith.constant 1 : index
    %c0_59 = arith.constant 0 : index
    %c0_60 = arith.constant 0 : index
    %70 = vector.load %arg14[%c1_58, %c0_59, %c0_60] : memref<12x18x32xbf16, #tpu.memory_space<vmem>>, vector<10x16x32xbf16>
    %71 = vector.shape_cast %70 : vector<10x16x32xbf16> to vector<160x32xbf16>
    %c0_61 = arith.constant 0 : index
    %c384 = arith.constant 384 : index
    %72 = vector.load %arg11[%c0_61, %c384] : memref<160x576xbf16, #tpu.memory_space<vmem>>, vector<160x32xbf16>
    tpu.vector_store %arg11[%c0_61, %c384], %71 {strides = array<i32>} : memref<160x576xbf16, #tpu.memory_space<vmem>>, vector<160x32xbf16>,
    %c1_62 = arith.constant 1 : index
    %c1_63 = arith.constant 1 : index
    %c0_64 = arith.constant 0 : index
    %73 = vector.load %arg14[%c1_62, %c1_63, %c0_64] : memref<12x18x32xbf16, #tpu.memory_space<vmem>>, vector<10x16x32xbf16>
    %74 = vector.shape_cast %73 : vector<10x16x32xbf16> to vector<160x32xbf16>
    %c0_65 = arith.constant 0 : index
    %c416 = arith.constant 416 : index
    %75 = vector.load %arg11[%c0_65, %c416] : memref<160x576xbf16, #tpu.memory_space<vmem>>, vector<160x32xbf16>
    tpu.vector_store %arg11[%c0_65, %c416], %74 {strides = array<i32>} : memref<160x576xbf16, #tpu.memory_space<vmem>>, vector<160x32xbf16>,
    %c1_66 = arith.constant 1 : index
    %c2_67 = arith.constant 2 : index
    %c0_68 = arith.constant 0 : index
    %76 = vector.load %arg14[%c1_66, %c2_67, %c0_68] : memref<12x18x32xbf16, #tpu.memory_space<vmem>>, vector<10x16x32xbf16>
    %77 = vector.shape_cast %76 : vector<10x16x32xbf16> to vector<160x32xbf16>
    %c0_69 = arith.constant 0 : index
    %c448 = arith.constant 448 : index
    %78 = vector.load %arg11[%c0_69, %c448] : memref<160x576xbf16, #tpu.memory_space<vmem>>, vector<160x32xbf16>
    tpu.vector_store %arg11[%c0_69, %c448], %77 {strides = array<i32>} : memref<160x576xbf16, #tpu.memory_space<vmem>>, vector<160x32xbf16>,
    %c2_70 = arith.constant 2 : index
    %c0_71 = arith.constant 0 : index
    %c0_72 = arith.constant 0 : index
    %79 = vector.load %arg14[%c2_70, %c0_71, %c0_72] : memref<12x18x32xbf16, #tpu.memory_space<vmem>>, vector<10x16x32xbf16>
    %80 = vector.shape_cast %79 : vector<10x16x32xbf16> to vector<160x32xbf16>
    %c0_73 = arith.constant 0 : index
    %c480 = arith.constant 480 : index
    %81 = vector.load %arg11[%c0_73, %c480] : memref<160x576xbf16, #tpu.memory_space<vmem>>, vector<160x32xbf16>
    tpu.vector_store %arg11[%c0_73, %c480], %80 {strides = array<i32>} : memref<160x576xbf16, #tpu.memory_space<vmem>>, vector<160x32xbf16>,
    %c2_74 = arith.constant 2 : index
    %c1_75 = arith.constant 1 : index
    %c0_76 = arith.constant 0 : index
    %82 = vector.load %arg14[%c2_74, %c1_75, %c0_76] : memref<12x18x32xbf16, #tpu.memory_space<vmem>>, vector<10x16x32xbf16>
    %83 = vector.shape_cast %82 : vector<10x16x32xbf16> to vector<160x32xbf16>
    %c0_77 = arith.constant 0 : index
    %c512 = arith.constant 512 : index
    %84 = vector.load %arg11[%c0_77, %c512] : memref<160x576xbf16, #tpu.memory_space<vmem>>, vector<160x32xbf16>
    tpu.vector_store %arg11[%c0_77, %c512], %83 {strides = array<i32>} : memref<160x576xbf16, #tpu.memory_space<vmem>>, vector<160x32xbf16>,
    %c2_78 = arith.constant 2 : index
    %c2_79 = arith.constant 2 : index
    %c0_80 = arith.constant 0 : index
    %85 = vector.load %arg14[%c2_78, %c2_79, %c0_80] : memref<12x18x32xbf16, #tpu.memory_space<vmem>>, vector<10x16x32xbf16>
    %86 = vector.shape_cast %85 : vector<10x16x32xbf16> to vector<160x32xbf16>
    %c0_81 = arith.constant 0 : index
    %c544 = arith.constant 544 : index
    %87 = vector.load %arg11[%c0_81, %c544] : memref<160x576xbf16, #tpu.memory_space<vmem>>, vector<160x32xbf16>
    tpu.vector_store %arg11[%c0_81, %c544], %86 {strides = array<i32>} : memref<160x576xbf16, #tpu.memory_space<vmem>>, vector<160x32xbf16>,
    %c0_82 = arith.constant 0 : index
    %c0_83 = arith.constant 0 : index
    %88 = vector.load %arg11[%c0_82, %c0_83] : memref<160x576xbf16, #tpu.memory_space<vmem>>, vector<160x576xbf16>
    %c0_84 = arith.constant 0 : index
    %c0_85 = arith.constant 0 : index
    %89 = vector.load %arg4[%c0_84, %c0_85] : memref<576x32xbf16, #tpu.memory_space<vmem>>, vector<576x32xbf16>
    %cst = arith.constant dense<0.000000e+00> : vector<160x32xf32>
    %90 = tpu.matmul %88, %89, %cst {dimension_numbers = #tpu.dot_dimension_numbers<[1], [0], [0], [1], [0, 0, 1, 1], [], []>} : vector<160x576xbf16>, vector<576x32xbf16>, vector<160x32xf32> -> vector<160x32xf32>
    %c0_86 = arith.constant 0 : index
    %c0_87 = arith.constant 0 : index
    %91 = vector.load %arg6[%c0_86, %c0_87] : memref<1x32xf32, #tpu.memory_space<vmem>>, vector<1x32xf32>
    %92 = vector.broadcast %91 : vector<1x32xf32> to vector<160x32xf32>
    %93 = arith.addf %90, %92 : vector<160x32xf32>
    %c0_88 = arith.constant 0 : index
    %c0_89 = arith.constant 0 : index
    %94 = vector.load %arg8[%c0_88, %c0_89] : memref<1x32xf32, #tpu.memory_space<vmem>>, vector<1x32xf32>
    %c1_i32_90 = arith.constant 1 : i32
    %95 = arith.addi %1, %c1_i32_90 : i32
    %c0_91 = arith.constant 0 : index
    %96 = arith.index_cast %95 : i32 to index
    %c1_92 = arith.constant 1 : index
    %c0_93 = arith.constant 0 : index
    %97 = vector.load %arg3[%c0_91, %96, %c1_92, %c0_93] : memref<1x20x18x32xf32, #tpu.memory_space<vmem>>, vector<1x10x16x32xf32>
    %98 = vector.shape_cast %97 : vector<1x10x16x32xf32> to vector<10x16x32xf32>
    %99 = vector.shape_cast %98 : vector<10x16x32xf32> to vector<160x32xf32>
    %100 = vector.broadcast %94 : vector<1x32xf32> to vector<160x32xf32>
    %101 = arith.mulf %99, %100 : vector<160x32xf32>
    %cst_94 = arith.constant 1.000000e+00 : f32
    %102 = vector.broadcast %cst_94 : f32 to vector<1x32xf32>
    %103 = arith.subf %102, %94 : vector<1x32xf32>
    %104 = vector.broadcast %103 : vector<1x32xf32> to vector<160x32xf32>
    %105 = arith.mulf %104, %93 : vector<160x32xf32>
    %106 = arith.addf %101, %105 : vector<160x32xf32>
    %107 = math.tanh %106 : vector<160x32xf32>
    %108 = vector.shape_cast %107 : vector<160x32xf32> to vector<10x16x32xf32>
    %109 = tpu.iota {dimensions = array<i32: 0>} : vector<10x16x32xi32>
    %c1_i32_95 = arith.constant 1 : i32
    %110 = arith.subi %1, %c1_i32_95 : i32
    %111 = vector.broadcast %110 : i32 to vector<10x16x32xi32>
    %112 = arith.addi %109, %111 : vector<10x16x32xi32>
    %c0_i32_96 = arith.constant 0 : i32
    %113 = vector.broadcast %c0_i32_96 : i32 to vector<10x16x32xi32>
    %114 = arith.cmpi sge, %112, %113 : vector<10x16x32xi32>
    %c16_i32 = arith.constant 16 : i32
    %115 = vector.broadcast %c16_i32 : i32 to vector<10x16x32xi32>
    %116 = arith.cmpi slt, %112, %115 : vector<10x16x32xi32>
    %117 = arith.andi %114, %116 : vector<10x16x32xi1>
    %cst_97 = arith.constant 0.000000e+00 : f32
    %118 = vector.broadcast %cst_97 : f32 to vector<10x16x32xf32>
    %119 = arith.select %117, %108, %118 : vector<10x16x32xi1>, vector<10x16x32xf32>
    %120 = vector.extract_strided_slice %119 {offsets = [1, 0, 0], sizes = [8, 16, 32], strides = [1, 1, 1]} : vector<10x16x32xf32> to vector<8x16x32xf32>
    %121 = vector.shape_cast %120 : vector<8x16x32xf32> to vector<128x32xf32>
    %122 = tpu.transpose %121, [1, 0] : vector<128x32xf32> -> vector<32x128xf32>
    %c0_98 = arith.constant 0 : index
    %c0_99 = arith.constant 0 : index
    %c0_100 = arith.constant 0 : index
    %c0_101 = arith.constant 0 : index
    %123 = vector.load %arg10[%c0_98, %c0_99, %c0_100, %c0_101] : memref<1x1x32x128xf32, #tpu.memory_space<vmem>>, vector<1x1x32x128xf32>
    %124 = vector.shape_cast %123 : vector<1x1x32x128xf32> to vector<32x128xf32>
    %125 = vector.shape_cast %122 : vector<32x128xf32> to vector<1x1x32x128xf32>
    tpu.vector_store %arg10[%c0_98, %c0_99, %c0_100, %c0_101], %125 {strides = array<i32>} : memref<1x1x32x128xf32, #tpu.memory_space<vmem>>, vector<1x1x32x128xf32>,
    %cst_102 = arith.constant 0.000000e+00 : bf16
    %126 = vector.broadcast %cst_102 : bf16 to vector<10x1x32xbf16>
    %c0_103 = arith.constant 0 : index
    %c0_104 = arith.constant 0 : index
    %c0_105 = arith.constant 0 : index
    %127 = vector.load %arg13[%c0_103, %c0_104, %c0_105] : memref<10x18x32xbf16, #tpu.memory_space<vmem>>, vector<10x1x32xbf16>
    tpu.vector_store %arg13[%c0_103, %c0_104, %c0_105], %126 {strides = array<i32>} : memref<10x18x32xbf16, #tpu.memory_space<vmem>>, vector<10x1x32xbf16>,
    %c0_106 = arith.constant 0 : index
    %c17 = arith.constant 17 : index
    %c0_107 = arith.constant 0 : index
    %128 = vector.load %arg13[%c0_106, %c17, %c0_107] : memref<10x18x32xbf16, #tpu.memory_space<vmem>>, vector<10x1x32xbf16>
    tpu.vector_store %arg13[%c0_106, %c17, %c0_107], %126 {strides = array<i32>} : memref<10x18x32xbf16, #tpu.memory_space<vmem>>, vector<10x1x32xbf16>,
    %129 = arith.truncf %119 : vector<10x16x32xf32> to vector<10x16x32xbf16>
    %c0_108 = arith.constant 0 : index
    %c1_109 = arith.constant 1 : index
    %c0_110 = arith.constant 0 : index
    %130 = vector.load %arg13[%c0_108, %c1_109, %c0_110] : memref<10x18x32xbf16, #tpu.memory_space<vmem>>, vector<10x16x32xbf16>
    tpu.vector_store %arg13[%c0_108, %c1_109, %c0_110], %129 {strides = array<i32>} : memref<10x18x32xbf16, #tpu.memory_space<vmem>>, vector<10x16x32xbf16>,
    %c0_111 = arith.constant 0 : index
    %c0_112 = arith.constant 0 : index
    %c0_113 = arith.constant 0 : index
    %131 = vector.load %arg13[%c0_111, %c0_112, %c0_113] : memref<10x18x32xbf16, #tpu.memory_space<vmem>>, vector<8x16x32xbf16>
    %132 = vector.shape_cast %131 : vector<8x16x32xbf16> to vector<128x32xbf16>
    %c0_114 = arith.constant 0 : index
    %c0_115 = arith.constant 0 : index
    %133 = vector.load %arg12[%c0_114, %c0_115] : memref<128x288xbf16, #tpu.memory_space<vmem>>, vector<128x32xbf16>
    tpu.vector_store %arg12[%c0_114, %c0_115], %132 {strides = array<i32>} : memref<128x288xbf16, #tpu.memory_space<vmem>>, vector<128x32xbf16>,
    %c0_116 = arith.constant 0 : index
    %c1_117 = arith.constant 1 : index
    %c0_118 = arith.constant 0 : index
    %134 = vector.load %arg13[%c0_116, %c1_117, %c0_118] : memref<10x18x32xbf16, #tpu.memory_space<vmem>>, vector<8x16x32xbf16>
    %135 = vector.shape_cast %134 : vector<8x16x32xbf16> to vector<128x32xbf16>
    %c0_119 = arith.constant 0 : index
    %c32_120 = arith.constant 32 : index
    %136 = vector.load %arg12[%c0_119, %c32_120] : memref<128x288xbf16, #tpu.memory_space<vmem>>, vector<128x32xbf16>
    tpu.vector_store %arg12[%c0_119, %c32_120], %135 {strides = array<i32>} : memref<128x288xbf16, #tpu.memory_space<vmem>>, vector<128x32xbf16>,
    %c0_121 = arith.constant 0 : index
    %c2_122 = arith.constant 2 : index
    %c0_123 = arith.constant 0 : index
    %137 = vector.load %arg13[%c0_121, %c2_122, %c0_123] : memref<10x18x32xbf16, #tpu.memory_space<vmem>>, vector<8x16x32xbf16>
    %138 = vector.shape_cast %137 : vector<8x16x32xbf16> to vector<128x32xbf16>
    %c0_124 = arith.constant 0 : index
    %c64_125 = arith.constant 64 : index
    %139 = vector.load %arg12[%c0_124, %c64_125] : memref<128x288xbf16, #tpu.memory_space<vmem>>, vector<128x32xbf16>
    tpu.vector_store %arg12[%c0_124, %c64_125], %138 {strides = array<i32>} : memref<128x288xbf16, #tpu.memory_space<vmem>>, vector<128x32xbf16>,
    %c1_126 = arith.constant 1 : index
    %c0_127 = arith.constant 0 : index
    %c0_128 = arith.constant 0 : index
    %140 = vector.load %arg13[%c1_126, %c0_127, %c0_128] : memref<10x18x32xbf16, #tpu.memory_space<vmem>>, vector<8x16x32xbf16>
    %141 = vector.shape_cast %140 : vector<8x16x32xbf16> to vector<128x32xbf16>
    %c0_129 = arith.constant 0 : index
    %c96_130 = arith.constant 96 : index
    %142 = vector.load %arg12[%c0_129, %c96_130] : memref<128x288xbf16, #tpu.memory_space<vmem>>, vector<128x32xbf16>
    tpu.vector_store %arg12[%c0_129, %c96_130], %141 {strides = array<i32>} : memref<128x288xbf16, #tpu.memory_space<vmem>>, vector<128x32xbf16>,
    %c1_131 = arith.constant 1 : index
    %c1_132 = arith.constant 1 : index
    %c0_133 = arith.constant 0 : index
    %143 = vector.load %arg13[%c1_131, %c1_132, %c0_133] : memref<10x18x32xbf16, #tpu.memory_space<vmem>>, vector<8x16x32xbf16>
    %144 = vector.shape_cast %143 : vector<8x16x32xbf16> to vector<128x32xbf16>
    %c0_134 = arith.constant 0 : index
    %c128_135 = arith.constant 128 : index
    %145 = vector.load %arg12[%c0_134, %c128_135] : memref<128x288xbf16, #tpu.memory_space<vmem>>, vector<128x32xbf16>
    tpu.vector_store %arg12[%c0_134, %c128_135], %144 {strides = array<i32>} : memref<128x288xbf16, #tpu.memory_space<vmem>>, vector<128x32xbf16>,
    %c1_136 = arith.constant 1 : index
    %c2_137 = arith.constant 2 : index
    %c0_138 = arith.constant 0 : index
    %146 = vector.load %arg13[%c1_136, %c2_137, %c0_138] : memref<10x18x32xbf16, #tpu.memory_space<vmem>>, vector<8x16x32xbf16>
    %147 = vector.shape_cast %146 : vector<8x16x32xbf16> to vector<128x32xbf16>
    %c0_139 = arith.constant 0 : index
    %c160_140 = arith.constant 160 : index
    %148 = vector.load %arg12[%c0_139, %c160_140] : memref<128x288xbf16, #tpu.memory_space<vmem>>, vector<128x32xbf16>
    tpu.vector_store %arg12[%c0_139, %c160_140], %147 {strides = array<i32>} : memref<128x288xbf16, #tpu.memory_space<vmem>>, vector<128x32xbf16>,
    %c2_141 = arith.constant 2 : index
    %c0_142 = arith.constant 0 : index
    %c0_143 = arith.constant 0 : index
    %149 = vector.load %arg13[%c2_141, %c0_142, %c0_143] : memref<10x18x32xbf16, #tpu.memory_space<vmem>>, vector<8x16x32xbf16>
    %150 = vector.shape_cast %149 : vector<8x16x32xbf16> to vector<128x32xbf16>
    %c0_144 = arith.constant 0 : index
    %c192_145 = arith.constant 192 : index
    %151 = vector.load %arg12[%c0_144, %c192_145] : memref<128x288xbf16, #tpu.memory_space<vmem>>, vector<128x32xbf16>
    tpu.vector_store %arg12[%c0_144, %c192_145], %150 {strides = array<i32>} : memref<128x288xbf16, #tpu.memory_space<vmem>>, vector<128x32xbf16>,
    %c2_146 = arith.constant 2 : index
    %c1_147 = arith.constant 1 : index
    %c0_148 = arith.constant 0 : index
    %152 = vector.load %arg13[%c2_146, %c1_147, %c0_148] : memref<10x18x32xbf16, #tpu.memory_space<vmem>>, vector<8x16x32xbf16>
    %153 = vector.shape_cast %152 : vector<8x16x32xbf16> to vector<128x32xbf16>
    %c0_149 = arith.constant 0 : index
    %c224_150 = arith.constant 224 : index
    %154 = vector.load %arg12[%c0_149, %c224_150] : memref<128x288xbf16, #tpu.memory_space<vmem>>, vector<128x32xbf16>
    tpu.vector_store %arg12[%c0_149, %c224_150], %153 {strides = array<i32>} : memref<128x288xbf16, #tpu.memory_space<vmem>>, vector<128x32xbf16>,
    %c2_151 = arith.constant 2 : index
    %c2_152 = arith.constant 2 : index
    %c0_153 = arith.constant 0 : index
    %155 = vector.load %arg13[%c2_151, %c2_152, %c0_153] : memref<10x18x32xbf16, #tpu.memory_space<vmem>>, vector<8x16x32xbf16>
    %156 = vector.shape_cast %155 : vector<8x16x32xbf16> to vector<128x32xbf16>
    %c0_154 = arith.constant 0 : index
    %c256_155 = arith.constant 256 : index
    %157 = vector.load %arg12[%c0_154, %c256_155] : memref<128x288xbf16, #tpu.memory_space<vmem>>, vector<128x32xbf16>
    tpu.vector_store %arg12[%c0_154, %c256_155], %156 {strides = array<i32>} : memref<128x288xbf16, #tpu.memory_space<vmem>>, vector<128x32xbf16>,
    %c0_156 = arith.constant 0 : index
    %c0_157 = arith.constant 0 : index
    %158 = vector.load %arg12[%c0_156, %c0_157] : memref<128x288xbf16, #tpu.memory_space<vmem>>, vector<128x288xbf16>
    %c0_158 = arith.constant 0 : index
    %c0_159 = arith.constant 0 : index
    %159 = vector.load %arg5[%c0_158, %c0_159] : memref<288x32xbf16, #tpu.memory_space<vmem>>, vector<288x32xbf16>
    %cst_160 = arith.constant dense<0.000000e+00> : vector<128x32xf32>
    %160 = tpu.matmul %158, %159, %cst_160 {dimension_numbers = #tpu.dot_dimension_numbers<[1], [0], [0], [1], [0, 0, 1, 1], [], []>} : vector<128x288xbf16>, vector<288x32xbf16>, vector<128x32xf32> -> vector<128x32xf32>
    %c0_161 = arith.constant 0 : index
    %c0_162 = arith.constant 0 : index
    %161 = vector.load %arg7[%c0_161, %c0_162] : memref<1x32xf32, #tpu.memory_space<vmem>>, vector<1x32xf32>
    %162 = vector.broadcast %161 : vector<1x32xf32> to vector<128x32xf32>
    %163 = arith.addf %160, %162 : vector<128x32xf32>
    %cst_163 = arith.constant 0.000000e+00 : f32
    %164 = vector.broadcast %cst_163 : f32 to vector<128x32xf32>
    %165 = arith.maximumf %163, %164 : vector<128x32xf32>
    %166 = tpu.transpose %165, [1, 0] : vector<128x32xf32> -> vector<32x128xf32>
    %c0_164 = arith.constant 0 : index
    %c0_165 = arith.constant 0 : index
    %c0_166 = arith.constant 0 : index
    %c0_167 = arith.constant 0 : index
    %167 = vector.load %arg9[%c0_164, %c0_165, %c0_166, %c0_167] : memref<1x1x32x128xf32, #tpu.memory_space<vmem>>, vector<1x1x32x128xf32>
    %168 = vector.shape_cast %167 : vector<1x1x32x128xf32> to vector<32x128xf32>
    %169 = vector.shape_cast %166 : vector<32x128xf32> to vector<1x1x32x128xf32>
    tpu.vector_store %arg9[%c0_164, %c0_165, %c0_166, %c0_167], %169 {strides = array<i32>} : memref<1x1x32x128xf32, #tpu.memory_space<vmem>>, vector<1x1x32x128xf32>,
    return
  }
  func.func @transform_0(%arg0: i32, %arg1: i32) -> (i32, i32, i32, i32) {
    %c0_i32 = arith.constant 0 : i32
    %c0_i32_0 = arith.constant 0 : i32
    %c0_i32_1 = arith.constant 0 : i32
    %c0_i32_2 = arith.constant 0 : i32
    return %arg0, %c0_i32, %c0_i32_0, %c0_i32_1 : i32, i32, i32, i32
  }
  func.func @transform_1(%arg0: i32, %arg1: i32) -> (i32, i32, i32, i32) {
    %c0_i32 = arith.constant 0 : i32
    %c0_i32_0 = arith.constant 0 : i32
    %c0_i32_1 = arith.constant 0 : i32
    %c0_i32_2 = arith.constant 0 : i32
    return %arg0, %c0_i32, %c0_i32_0, %c0_i32_1 : i32, i32, i32, i32
  }
  func.func @transform_2(%arg0: i32, %arg1: i32) -> (i32, i32) {
    %c0_i32 = arith.constant 0 : i32
    %c0_i32_0 = arith.constant 0 : i32
    %c0_i32_1 = arith.constant 0 : i32
    return %c0_i32, %c0_i32_0 : i32, i32
  }
  func.func @transform_3(%arg0: i32, %arg1: i32) -> (i32, i32) {
    %c0_i32 = arith.constant 0 : i32
    %c0_i32_0 = arith.constant 0 : i32
    %c0_i32_1 = arith.constant 0 : i32
    return %c0_i32, %c0_i32_0 : i32, i32
  }
  func.func @transform_4(%arg0: i32, %arg1: i32) -> (i32, i32) {
    %c0_i32 = arith.constant 0 : i32
    %c0_i32_0 = arith.constant 0 : i32
    %c0_i32_1 = arith.constant 0 : i32
    return %c0_i32, %c0_i32_0 : i32, i32
  }
  func.func @transform_5(%arg0: i32, %arg1: i32) -> (i32, i32) {
    %c0_i32 = arith.constant 0 : i32
    %c0_i32_0 = arith.constant 0 : i32
    %c0_i32_1 = arith.constant 0 : i32
    return %c0_i32, %c0_i32_0 : i32, i32
  }
  func.func @transform_6(%arg0: i32, %arg1: i32) -> (i32, i32) {
    %c0_i32 = arith.constant 0 : i32
    %c0_i32_0 = arith.constant 0 : i32
    %c0_i32_1 = arith.constant 0 : i32
    return %c0_i32, %c0_i32_0 : i32, i32
  }
  func.func @transform_7(%arg0: i32, %arg1: i32) -> (i32, i32, i32, i32) {
    %c0_i32 = arith.constant 0 : i32
    %c0_i32_0 = arith.constant 0 : i32
    %c0_i32_1 = arith.constant 0 : i32
    return %arg0, %arg1, %c0_i32, %c0_i32_0 : i32, i32, i32, i32
  }
  func.func @transform_8(%arg0: i32, %arg1: i32) -> (i32, i32, i32, i32) {
    %c0_i32 = arith.constant 0 : i32
    %c0_i32_0 = arith.constant 0 : i32
    %c0_i32_1 = arith.constant 0 : i32
    return %arg0, %arg1, %c0_i32, %c0_i32_0 : i32, i32, i32, i32
  }
}

</mosaic_0001>

<bundles_post_ra>
// kernel: tpu_custom_call.1
= control target key start
LH: loop header
LB: loop body
LE: loop exit
PB: predicated region body
PF: predicated region fallthrough
CT: control target
= control target key end

     0   :  { %s12187_s0 = inlined_call_operand.vmem [shape: bf16[2,20,18,32], index: 0, kind: input, shape index: {}]   ;;  %s12188_s1 = inlined_call_operand.vmem [shape: f32[2,20,18,32], index: 1, kind: input, shape index: {}]   ;;  %s12189_s2 = inlined_call_operand.vmem [shape: bf16[576,32], index: 2, kind: input, shape index: {}]   ;;  %s12190_s3 = inlined_call_operand.vmem [shape: bf16[288,32], index: 3, kind: input, shape index: {}]   ;;  %s12191_s4 = inlined_call_operand.vmem [shape: f32[1,32], index: 4, kind: input, shape index: {}]   ;;  %s12192_s5 = inlined_call_operand.vmem [shape: f32[1,32], index: 5, kind: input, shape index: {}]   ;;  %s12193_s6 = inlined_call_operand.vmem [shape: f32[1,32], index: 6, kind: input, shape index: {}]   ;;  %s12194_s7 = inlined_call_operand.hbm [shape: f32[2,2,32,128], index: 7, kind: output, shape index: {0}]   ;;  %s12195_s8 = inlined_call_operand.hbm [shape: f32[2,2,32,128], index: 8, kind: output, shape index: {1}]  }
   0x1   :  { %12207 = sst [smem:[#allocation15_spill]] %s12187_s0 }
   0x2   :  { %14 = vsyncpa [#allocation7], 0 }
   0x3   :  { %16 = vsyncpa [#allocation7 + $0x1], 0 }
   0x4   :  { %17 = vsyncpa [#allocation9], 0 }
   0x5   :  { %19 = vsyncpa [#allocation9 + $0x1], 0  ;;  %s9334_s27 = smov 0   ;;  %s9336_s28 = smov 0  }
   0x6   :  { %s9338_s29 = smov 0   ;;  %s9340_s30 = smov 0  }
   0x7   :  { %s9342_s9 = smov 0   ;;  %s9344_s10 = smov 0  }
   0x8   :  { %s9346_s11 = smov 0   ;;  %s9348_s12 = smov 0  }
   0x9 LB: > { %s7872_s13 = sadd.s32 4294967295, %s9280_s12   ;;  %s7873_s14 = sadd.s32 4294967294, %s9280_s12   ;;  %s9280_s12 = sphi %s9348_s12, %s25_s12   ;;  %s9276_s11 = sphi %s9346_s11, %s12334_s11   ;;  %s9272_s10 = sphi %s9344_s10, %s12333_s10   ;;  %s9268_s9 = sphi %s9342_s9, %s12332_s9   ;;  %s9264_s30 = sphi %s9340_s30, %s12331_s30   ;;  %s9260_s29 = sphi %s9338_s29, %s12330_s29   ;;  %s9256_s28 = sphi %s9336_s28, %s12329_s28   ;;  %s9252_s27 = sphi %s9334_s27, %s12328_s27  }
   0xa   : > { %s34_s15 = sadd.s32 1, %s9272_s10  ;;  %s37_s16 = sadd.s32 1, %s9276_s11 }
   0xb   : > { %p35_p0 = scmp.ge.s32.totalorder %s34_s15, 2  ;;  %p213_p1 = scmp.ne.s32.totalorder %s9260_s29, %s9256_s28 }
   0xc   : > { %p214_p2 = scmp.eq.s32.totalorder %s7872_s13, 3  ;;  %p219_p5 = scmp.ne.s32.totalorder %s9256_s28, %s9252_s27 }
   0xd   : > { %s12336_s15 = smov (%p35_p0, %s34_s15), 0  ;;  %s12338_s16 = smov (!%p35_p0, %s37_s16), %s9276_s11 }
   0xe   : > { %s199_s17 = ssub.s32 %s9272_s10, %s12336_s15  ;;  %p9385_p3 = por %p214_p2, %p213_p1 }
   0xf   : > { %p39_p4 = scmp.ge.s32.totalorder %s12338_s16, 2  ;;  %p220_p6 = scmp.eq.s32.totalorder %s7873_s14, 3 }
  0x10   : > { %p7876_p7 = scmp.ge.s32.totalorder %s9280_s12, 1  ;;  %p297_p9 = scmp.lt.s32.totalorder %s9280_s12, 5 }
  0x11   : > { %s12340_s16 = smov (%p39_p4, %s12338_s16), 0  ;;  %p9394_p8 = por %p220_p6, %p219_p5 }
  0x12   : > { %s198_s20 = ssub.s32 %s9276_s11, %s12340_s16  ;;  %s203_s21 = sadd.s32 1, %s9260_s29 }
  0x13   : > { %s200_s22 = sor.u32 %s199_s17, %s198_s20  ;;  %p298_p10 = pnand %p7876_p7, %p297_p9 }
  0x14   : > { %p201_p11 = scmp.eq.s32.totalorder %s200_s22, 0 }
  0x15   : > { %301 = sbr.rel (%p298_p10) target bundleno = 1257 (0x4e9), region = 48 }
  0x16   : > { %s9403_s23 = scalar_select %p201_p11, %s9260_s29, %s203_s21  }
  0x1c   : > { %p341_p12 = scmp.lt.s32.totalorder %s9268_s9, 1  ;;  %vm1083_vm0 = vcmask 1042432   ;;  %vm1084_vm1 = vcmask 1046532   ;;  %s8584_s25 = smul.u32 96, %s9264_s30  ;;  %v8994_v0 = vld [vmem:[%s12189_s2 + $0x40] sm:$0xff]   ;;  %vm547_vm6 = vcmask 257024  }
  0x1d   : > { %vm9414_vm2 = vmor %vm1083_vm0, %vm1084_vm1  ;;  %8605 = vmatprep.subr.bf16.mxu0 %v8994_v0  ;;  %s12212_s0 = sld [smem:[#allocation15_spill]]  ;;  %s9282_s26 = smov 64   ;;  %vm709_vm3 = vsmask.f32 3328  ;;  %vm710_vm4 = vsmask.f32 7440 }
  0x1e   : > { %s9407_s24 = scalar_select %p341_p12, %s9268_s9, 1  ;;  %vm9465_vm5 = vmor %vm709_vm3, %vm710_vm4  ;;  %vm550_vm7 = vcmask 253952   ;;  %vm12199_vm8 = vcmask 261120   ;;  %vm12198_vm9 = vcmask 523520   ;;  %vm12197_vm10 = vcmask 785920  }
  0x1f   : > { %s9284_s13 = smov 32   ;;  %vm12196_vm11 = vcmask 1048320   ;;  %vm4753_vm12 = vcmask 523264   ;;  %vm5337_vm13 = vsmask.f32 256 }
  0x20   : > { %s8893_s14 = smul.u32 240, %s9407_s24  ;;  %vm10951_vm14 = vmand %vm550_vm7, %vm5337_vm13  ;;  %vm5369_vm15 = vsmask.f32 7938 }
  0x21   : > { %s8894_s20 = smul.u32 480, %s9407_s24  ;;  %vm10959_vm0 = vmand %vm550_vm7, %vm5369_vm15 }
  0x22   : > { %s7882_s24 = smul.u32 192, %s9264_s30 }
  0x23   : > { %s345_s21 = scalar_lea.vmem %s12212_s0, %s8893_s14  ;;  %s350_s17 = scalar_lea.vmem %s12188_s1, %s8894_s20 }
  0x24   : > { %s9421_s22 = scalar_lea.vmem %s345_s21, %s8584_s25  ;;  %s9283_s25 = smov 96  }
  0x25   : > { %v8976_v2 = vld [vmem:[%s9421_s22 + $0x18] sm:$0xff]   ;;  %v8977_v3 = vld [vmem:[%s9421_s22 + $0x24] sm:$0xff]   ;;  %v8978_v4 = vld [vmem:[%s9421_s22 + $0xc] sm:$0xff]   ;;  %s9784_s20 = scalar_lea.vmem %s350_s17, %s7882_s24  ;;  %s7881_s14 = sshll.u32 %s9264_s30, 3 }
  0x26   : > { %1936 = vrot.lane.b32.xlu1 %v8976_v2, %s9282_s26  ;;  %1938 = vrot.lane.b32.xlu0 %v8977_v3, %s9282_s26  ;;  %v8033_v5 = vld [vmem:[%s9421_s22 + $0xc] sm:$0xe]  ;;  %v8034_v6 = vld [vmem:[%s9421_s22 + $0x10] sm:$0xf]  ;;  %s8394_s17 = sadd.s32 4294967295, %s7881_s14 }
  0x27   : > { %v8035_v7 = vld [vmem:[%s9421_s22 + $0x14] sm:$0x1]  ;;  %v8063_v8 = vrot.slane %v8033_v5, 9  ;;  %v1724_v9 = vrot.slane %v8034_v6, 5  ;;  %v8036_v11 = vld [vmem:[%s9421_s22 + $0x18] sm:$0xe] }
  0x28   : > { %v1727_v10 = vrot.slane %v8035_v7, 5  ;;  %v8037_v12 = vld [vmem:[%s9421_s22 + $0x1c] sm:$0xf]  ;;  %v8038_v16 = vld [vmem:[%s9421_s22 + $0x20] sm:$0x1]  ;;  %v8064_v17 = vrot.slane %v8036_v11, 9 }
  0x29   : > { %v1725_v13 = vsel %vm9414_vm2, %v8063_v8, %v1724_v9  ;;  %v1726_v14 = vrot.slane %v1724_v9, 4  ;;  %v8979_v15 = vld [vmem:[%s9421_s22 + $0x18] sm:$0xff]   ;;  %v1731_v18 = vrot.slane %v8037_v12, 5  ;;  %v1734_v19 = vrot.slane %v8038_v16, 5  ;;  %v1023_v20 = vld [vmem:[%s9421_s22] sm:$0xe] }
  0x2a   : > { %1301 = vrot.lane.b32.xlu1 %v8978_v4, %s9283_s25  ;;  %v1024_v21 = vld [vmem:[%s9421_s22 + $0x4] sm:$0xf]  ;;  %v1025_v25 = vld [vmem:[%s9421_s22 + $0x8] sm:$0x1]  ;;  %v7941_v26 = vrot.slane %v1023_v20, 9 }
  0x2b   : > { %v1728_v22 = vsel %vm9414_vm2, %v1726_v14, %v1727_v10  ;;  %v1732_v23 = vsel %vm9414_vm2, %v8064_v17, %v1731_v18  ;;  %v1733_v24 = vrot.slane %v1731_v18, 4  ;;  %v679_v27 = vld [vmem:[%s9421_s22] sm:$0xf]  ;;  %v1088_v29 = vrot.slane %v1024_v21, 5  ;;  %v680_v31 = vld [vmem:[%s9421_s22 + $0x4] sm:$0xf] }
  0x2c   : > { %v8073_v28 = vcombine.low %v1725_v13, %v1728_v22  ;;  %v1091_v30 = vrot.slane %v1025_v25, 5  ;;  %v681_v32 = vld [vmem:[%s9421_s22 + $0x8] sm:$0x1]  ;;  %v713_v34 = vshrl.u32 %v679_v27, 16  ;;  %v716_v35 = vshll.u32 %v679_v27, 16 }
  0x2d   : > { %v1735_v33 = vsel %vm9414_vm2, %v1733_v24, %v1734_v19  ;;  %v722_v36 = vshll.u32 %v680_v31, 16  ;;  %v1026_v37 = vld [vmem:[%s9421_s22 + $0xc] sm:$0xe]  ;;  %v1089_v39 = vsel %vm9414_vm2, %v7941_v26, %v1088_v29  ;;  %v1090_v40 = vrot.slane %v1088_v29, 4  ;;  %v1027_v42 = vld [vmem:[%s9421_s22 + $0x10] sm:$0xf] }
  0x2e   : > { %1303 = vrot.lane.b32.xlu1 %v8979_v15, %s9283_s25  ;;  %1822 = vrot.lane.b32.xlu0 %v8073_v28, %s9284_s13  ;;  %v8074_v38 = vcombine.low %v1732_v23, %v1735_v33  ;;  %v726_v41 = vshrl.u32 %v680_v31, 16  ;;  %v1028_v43 = vld [vmem:[%s9421_s22 + $0x14] sm:$0x1]  ;;  %v715_v44 = vrot.slane %v713_v34, 4  ;;  %v718_v45 = vrot.slane %v716_v35, 5 }
  0x2f   : > { %v724_v46 = vrot.slane %v722_v36, 5  ;;  %v732_v47 = vshll.u32 %v681_v32, 16  ;;  %v8115_v48 = vld [vmem:[%s9421_s22 + $0x18] sm:$0xf]  ;;  %v1092_v49 = vsel %vm9414_vm2, %v1090_v40, %v1091_v30  ;;  %v7942_v51 = vrot.slane %v1026_v37, 9 }
  0x30   : > { %v728_v50 = vrot.slane %v726_v41, 4  ;;  %v1095_v52 = vrot.slane %v1027_v42, 5  ;;  %v8116_v53 = vld [vmem:[%s9421_s22 + $0x1c] sm:$0xf]  ;;  %v7951_v54 = vcombine.low %v1089_v39, %v1092_v49  ;;  %v719_v55 = vor.u32 %v718_v45, %v715_v44  ;;  %v8117_v58 = vld [vmem:[%s9421_s22 + $0x20] sm:$0x1] }
  0x31   : > { %v734_v56 = vrot.slane %v732_v47, 5  ;;  %v1098_v57 = vrot.slane %v1028_v43, 5  ;;  %v2007_v63 = vshrl.u32 %v8115_v48, 16  ;;  %v2010_v2 = vshll.u32 %v8115_v48, 16  ;;  %v682_v5 = vld [vmem:[%s9421_s22 + $0xc] sm:$0xf] }
  0x32   : > { %1824 = vrot.lane.b32.xlu0 %v8074_v38, %s9284_s13  ;;  %v729_v60 = vor.u32 %v728_v50, %v724_v46  ;;  %v1096_v61 = vsel %vm9414_vm2, %v7942_v51, %v1095_v52  ;;  %v1097_v62 = vrot.slane %v1095_v52, 4  ;;  %1186 = vrot.lane.b32.xlu1 %v7951_v54, %s9282_s26  ;;  %v720_v0 = vrot.slane %v719_v55, 4  ;;  %v683_v10 = vld [vmem:[%s9421_s22 + $0x10] sm:$0xf]  ;;  %v684_v15 = vld [vmem:[%s9421_s22 + $0x14] sm:$0x1] }
  0x33   : > { %v2016_v3 = vshll.u32 %v8116_v53, 16  ;;  %v2020_v4 = vshrl.u32 %v8116_v53, 16  ;;  %v2009_v8 = vrot.slane %v2007_v63, 4  ;;  %v2026_v9 = vshll.u32 %v8117_v58, 16  ;;  %v8118_v20 = vld [vmem:[%s9421_s22 + $0x24] sm:$0xf] }
  0x34   : > { %v730_v6 = vrot.slane %v729_v60, 4  ;;  %v1099_v7 = vsel %vm9414_vm2, %v1097_v62, %v1098_v57  ;;  %v725_v11 = vsel %vm9465_vm5, %v720_v0, %v724_v46  ;;  %v2012_v13 = vrot.slane %v2010_v2, 5  ;;  %v8119_v29 = vld [vmem:[%s9421_s22 + $0x28] sm:$0xf]  ;;  %v8120_v33 = vld [vmem:[%s9421_s22 + $0x2c] sm:$0x1] }
  0x35   : > { %v7952_v12 = vcombine.low %v1096_v61, %v1099_v7  ;;  %v2018_v14 = vrot.slane %v2016_v3, 5  ;;  %v2022_v17 = vrot.slane %v2020_v4, 4  ;;  %v2028_v18 = vrot.slane %v2026_v9, 5  ;;  %v8039_v43 = vld [vmem:[%s9421_s22 + $0x24] sm:$0xe] }
  0x36   : > { %v735_v16 = vsel %vm9465_vm5, %v730_v6, %v734_v56  ;;  %v737_v19 = vshrl.u32 %v682_v5, 16  ;;  %v2013_v22 = vor.u32 %v2012_v13, %v2009_v8  ;;  %v740_v23 = vshll.u32 %v682_v5, 16  ;;  %v8040_v48 = vld [vmem:[%s9421_s22 + $0x28] sm:$0xf]  ;;  %v8041_v49 = vld [vmem:[%s9421_s22 + $0x2c] sm:$0x1] }
  0x37   : > { %v7931_v21 = vcombine.low %v725_v11, %v735_v16  ;;  %1188 = vrot.lane.b32.xlu1 %v7952_v12, %s9282_s26  ;;  %v746_v24 = vshll.u32 %v683_v10, 16  ;;  %v2023_v25 = vor.u32 %v2022_v17, %v2018_v14  ;;  %v750_v27 = vshrl.u32 %v683_v10, 16  ;;  %v685_v54 = vld [vmem:[%s9421_s22 + $0x18] sm:$0xf]  ;;  %v686_v60 = vld [vmem:[%s9421_s22 + $0x1c] sm:$0xf] }
  0x38   : > { %v739_v26 = vrot.slane %v737_v19, 4  ;;  %v756_v28 = vshll.u32 %v684_v15, 16  ;;  %v2014_v30 = vrot.slane %v2013_v22, 4  ;;  %v742_v31 = vrot.slane %v740_v23, 5  ;;  %v687_v2 = vld [vmem:[%s9421_s22 + $0x20] sm:$0x1] }
  0x39   : > { %982 = vrot.lane.b32.xlu0 %v7931_v21, %s9284_s13  ;;  %v748_v32 = vrot.slane %v746_v24, 5  ;;  %v2031_v34 = vshrl.u32 %v8118_v20, 16  ;;  %v2024_v35 = vrot.slane %v2023_v25, 4  ;;  %v752_v36 = vrot.slane %v750_v27, 4  ;;  %v1029_v11 = vld [vmem:[%s9421_s22 + $0x18] sm:$0xe] }
  0x3a   : > { %v758_v37 = vrot.slane %v756_v28, 5  ;;  %v2034_v38 = vshll.u32 %v8118_v20, 16  ;;  %v2019_v39 = vsel %vm9465_vm5, %v2014_v30, %v2018_v14  ;;  %v743_v40 = vor.u32 %v742_v31, %v739_v26  ;;  %v1030_v12 = vld [vmem:[%s9421_s22 + $0x1c] sm:$0xf]  ;;  %v1031_v17 = vld [vmem:[%s9421_s22 + $0x20] sm:$0x1] }
  0x3b   : > { %v2033_v41 = vrot.slane %v2031_v34, 4  ;;  %v2040_v42 = vshll.u32 %v8119_v29, 16  ;;  %v2029_v44 = vsel %vm9465_vm5, %v2024_v35, %v2028_v18  ;;  %v753_v45 = vor.u32 %v752_v36, %v748_v32  ;;  %v8121_v22 = vld [vmem:[%s9421_s22 + $0x30] sm:$0xf]  ;;  %v8122_v27 = vld [vmem:[%s9421_s22 + $0x34] sm:$0xf] }
  0x3c   : > { %v2036_v46 = vrot.slane %v2034_v38, 5  ;;  %v2044_v47 = vshrl.u32 %v8119_v29, 16  ;;  %v8145_v50 = vcombine.low %v2019_v39, %v2029_v44  ;;  %v744_v51 = vrot.slane %v743_v40, 4  ;;  %v8123_v34 = vld [vmem:[%s9421_s22 + $0x38] sm:$0x1] }
  0x3d   : > { %v2042_v52 = vrot.slane %v2040_v42, 5  ;;  %v2050_v53 = vshll.u32 %v8120_v33, 16  ;;  %v754_v55 = vrot.slane %v753_v45, 4  ;;  %v8065_v58 = vrot.slane %v8039_v43, 9 }
  0x3e   : > { %v2037_v56 = vor.u32 %v2036_v46, %v2033_v41  ;;  %v2046_v57 = vrot.slane %v2044_v47, 4  ;;  %2276 = vrot.lane.b32.xlu0 %v8145_v50, %s9283_s25  ;;  %v749_v61 = vsel %vm9465_vm5, %v744_v51, %v748_v32  ;;  %v1738_v63 = vrot.slane %v8040_v48, 5  ;;  %v8042_v41 = vld [vmem:[%s9421_s22 + $0x30] sm:$0xe]  ;;  %v8043_v46 = vld [vmem:[%s9421_s22 + $0x34] sm:$0xf] }
  0x3f   : > { %v2052_v62 = vrot.slane %v2050_v53, 5  ;;  %v1741_v0 = vrot.slane %v8041_v49, 5  ;;  %v759_v3 = vsel %vm9465_vm5, %v754_v55, %v758_v37  ;;  %v761_v6 = vshrl.u32 %v685_v54, 16  ;;  %v8044_v51 = vld [vmem:[%s9421_s22 + $0x38] sm:$0x1] }
  0x40   : > { %v2038_v4 = vrot.slane %v2037_v56, 4  ;;  %v2047_v5 = vor.u32 %v2046_v57, %v2042_v52  ;;  %v7932_v7 = vcombine.low %v749_v61, %v759_v3  ;;  %v1739_v8 = vsel %vm9414_vm2, %v8065_v58, %v1738_v63  ;;  %v688_v56 = vld [vmem:[%s9421_s22 + $0x24] sm:$0xf]  ;;  %v689_v57 = vld [vmem:[%s9421_s22 + $0x28] sm:$0xf] }
  0x41   : > { %v1740_v9 = vrot.slane %v1738_v63, 4  ;;  %v764_v10 = vshll.u32 %v685_v54, 16  ;;  %v763_v15 = vrot.slane %v761_v6, 4  ;;  %v770_v16 = vshll.u32 %v686_v60, 16  ;;  %v8995_v6 = vld [vmem:[%s12189_s2] sm:$0xff]  }
  0x42   : > { %v2043_v13 = vsel %vm9465_vm5, %v2038_v4, %v2042_v52  ;;  %v2048_v14 = vrot.slane %v2047_v5, 4  ;;  %984 = vrot.lane.b32.xlu1 %v7932_v7, %s9284_s13  ;;  %v774_v20 = vshrl.u32 %v686_v60, 16  ;;  %v780_v21 = vshll.u32 %v687_v2, 16  ;;  %v8980_v60 = vld [vmem:[%s9421_s22 + $0x30] sm:$0xff]   ;;  %v690_v5 = vld [vmem:[%s9421_s22 + $0x2c] sm:$0x1]  ;;  %8606 = vmatpush3.bf16.msra.mxu0 %v8995_v6 }
  0x43   : > { %v1742_v18 = vsel %vm9414_vm2, %v1740_v9, %v1741_v0  ;;  %v766_v19 = vrot.slane %v764_v10, 5  ;;  %v772_v25 = vrot.slane %v770_v16, 5  ;;  %v7943_v26 = vrot.slane %v1029_v11, 9  ;;  %v1032_v11 = vld [vmem:[%s9421_s22 + $0x24] sm:$0xe] }
  0x44   : > { %v2053_v23 = vsel %vm9465_vm5, %v2048_v14, %v2052_v62  ;;  %v8075_v24 = vcombine.low %v1739_v8, %v1742_v18  ;;  %v776_v30 = vrot.slane %v774_v20, 4  ;;  %v782_v31 = vrot.slane %v780_v21, 5  ;;  %v1033_v16 = vld [vmem:[%s9421_s22 + $0x28] sm:$0xf]  ;;  %v1034_v21 = vld [vmem:[%s9421_s22 + $0x2c] sm:$0x1] }
  0x45   : > { %v8146_v28 = vcombine.low %v2043_v13, %v2053_v23  ;;  %v767_v29 = vor.u32 %v766_v19, %v763_v15  ;;  %v1102_v32 = vrot.slane %v1030_v12, 5  ;;  %v1105_v33 = vrot.slane %v1031_v17, 5 }
  0x46   : > { %v2055_v35 = vshrl.u32 %v8121_v22, 16  ;;  %v2058_v36 = vshll.u32 %v8121_v22, 16  ;;  %v777_v38 = vor.u32 %v776_v30, %v772_v25  ;;  %v2064_v39 = vshll.u32 %v8122_v27, 16  ;;  %v8124_v22 = vld [vmem:[%s9421_s22 + $0x3c] sm:$0xf] }
  0x47   : > { %2278 = vrot.lane.b32.xlu0 %v8146_v28, %s9283_s25  ;;  %v768_v37 = vrot.slane %v767_v29, 4  ;;  %v2068_v40 = vshrl.u32 %v8122_v27, 16  ;;  %v1103_v42 = vsel %vm9414_vm2, %v7943_v26, %v1102_v32  ;;  %v1104_v43 = vrot.slane %v1102_v32, 4  ;;  %v8125_v28 = vld [vmem:[%s9421_s22 + $0x40] sm:$0xf] }
  0x48   : > { %v2057_v44 = vrot.slane %v2055_v35, 4  ;;  %v2060_v45 = vrot.slane %v2058_v36, 5  ;;  %v778_v48 = vrot.slane %v777_v38, 4  ;;  %v2066_v49 = vrot.slane %v2064_v39, 5  ;;  %v8126_v35 = vld [vmem:[%s9421_s22 + $0x44] sm:$0x1] }
  0x49   : > { %v773_v47 = vsel %vm9465_vm5, %v768_v37, %v772_v25  ;;  %v2070_v50 = vrot.slane %v2068_v40, 4  ;;  %v1106_v52 = vsel %vm9414_vm2, %v1104_v43, %v1105_v33  ;;  %v2074_v54 = vshll.u32 %v8123_v34, 16  ;;  %v8997_v38 = vld [vmem:[%s12189_s2 + $0x48] sm:$0xff]   ;;  %v8045_v43 = vld [vmem:[%s9421_s22 + $0x3c] sm:$0xe] }
  0x4a   : > { %v2061_v53 = vor.u32 %v2060_v45, %v2057_v44  ;;  %v8066_v55 = vrot.slane %v8042_v41, 9  ;;  %v783_v58 = vsel %vm9465_vm5, %v778_v48, %v782_v31  ;;  %v7953_v61 = vcombine.low %v1103_v42, %v1106_v52  ;;  %v8046_v44 = vld [vmem:[%s9421_s22 + $0x40] sm:$0xf]  ;;  %8607 = vmatprep.subr.bf16.mxu0 %v8997_v38  ;;  %v8129_v38 = vld [vmem:[%s9421_s22 + $0x50] sm:$0x1] }
  0x4b   : > { %1826 = vrot.lane.b32.xlu0 %v8075_v24, %s9284_s13  ;;  %v2071_v62 = vor.u32 %v2070_v50, %v2066_v49  ;;  %v1745_v63 = vrot.slane %v8043_v46, 5  ;;  %v7933_v0 = vcombine.low %v773_v47, %v783_v58  ;;  %v2076_v3 = vrot.slane %v2074_v54, 5  ;;  %v8981_v24 = vld [vmem:[%s9421_s22 + $0x24] sm:$0xff]   ;;  %v691_v54 = vld [vmem:[%s9421_s22 + $0x30] sm:$0xf] }
  0x4c   : > { %v2062_v2 = vrot.slane %v2061_v53, 4  ;;  %v1748_v4 = vrot.slane %v8044_v51, 5  ;;  %v785_v10 = vshrl.u32 %v688_v56, 16  ;;  %v788_v13 = vshll.u32 %v688_v56, 16 }
  0x4d   : > { %v2072_v7 = vrot.slane %v2071_v62, 4  ;;  %v1746_v8 = vsel %vm9414_vm2, %v8066_v55, %v1745_v63  ;;  %v1747_v9 = vrot.slane %v1745_v63, 4  ;;  %986 = vrot.lane.b32.xlu1 %v7933_v0, %s9284_s13  ;;  %v794_v14 = vshll.u32 %v689_v57, 16  ;;  %v8998_v55 = vld [vmem:[%s12189_s2 + $0x8] sm:$0xff]   ;;  %v8999_v62 = vld [vmem:[%s12189_s2 + $0x50] sm:$0xff]   ;;  %v8982_v0 = vld [vmem:[%s9421_s22 + $0x3c] sm:$0xff]  }
  0x4e   : > { %v2067_v12 = vsel %vm9465_vm5, %v2062_v2, %v2066_v49  ;;  %v798_v15 = vshrl.u32 %v689_v57, 16  ;;  %v787_v19 = vrot.slane %v785_v10, 4  ;;  %v804_v20 = vshll.u32 %v690_v5, 16  ;;  %v8047_v49 = vld [vmem:[%s9421_s22 + $0x44] sm:$0x1]  ;;  %8608 = vmatpush3.bf16.msra.mxu0 %v8998_v55 }
  0x4f   : > { %1940 = vrot.lane.b32.xlu0 %v8980_v60, %s9282_s26  ;;  %v2077_v17 = vsel %vm9465_vm5, %v2072_v7, %v2076_v3  ;;  %v1749_v18 = vsel %vm9414_vm2, %v1747_v9, %v1748_v4  ;;  %v790_v26 = vrot.slane %v788_v13, 5  ;;  %v796_v27 = vrot.slane %v794_v14, 5  ;;  %v693_v9 = vld [vmem:[%s9421_s22 + $0x38] sm:$0x1]  ;;  %v1035_v10 = vld [vmem:[%s9421_s22 + $0x30] sm:$0xe]  ;;  %8609 = vmatprep.subr.bf16.mxu0 %v8999_v62 }
  0x50   : > { %v8147_v23 = vcombine.low %v2067_v12, %v2077_v17  ;;  %v8076_v25 = vcombine.low %v1746_v8, %v1749_v18  ;;  %v800_v29 = vrot.slane %v798_v15, 4  ;;  %v806_v30 = vrot.slane %v804_v20, 5  ;;  %v1036_v15 = vld [vmem:[%s9421_s22 + $0x34] sm:$0xf]  ;;  %v1037_v20 = vld [vmem:[%s9421_s22 + $0x38] sm:$0x1] }
  0x51   : > { %v7944_v31 = vrot.slane %v1032_v11, 9  ;;  %v1109_v32 = vrot.slane %v1033_v16, 5  ;;  %1190 = vrot.lane.b32.xlu1 %v7953_v61, %s9282_s26  ;;  %v791_v33 = vor.u32 %v790_v26, %v787_v19  ;;  %v1112_v34 = vrot.slane %v1034_v21, 5  ;;  %v692_v61 = vld [vmem:[%s9421_s22 + $0x34] sm:$0xf]  ;;  %v9004_v55 = vld [vmem:[%s12189_s2 + $0x60] sm:$0xff]  }
  0x52   : > { %v2079_v36 = vshrl.u32 %v8124_v22, 16  ;;  %v2082_v37 = vshll.u32 %v8124_v22, 16  ;;  %v801_v39 = vor.u32 %v800_v29, %v796_v27  ;;  %v2088_v42 = vshll.u32 %v8125_v28, 16  ;;  %v9001_v21 = vld [vmem:[%s12189_s2 + $0x10] sm:$0xff]   ;;  %v8127_v26 = vld [vmem:[%s9421_s22 + $0x48] sm:$0xf] }
  0x53   : > { %2280 = vrot.lane.b32.xlu0 %v8147_v23, %s9283_s25  ;;  %v9560_v40 = vsel %vm9414_vm2, %v7944_v31, %v1109_v32  ;;  %v1111_v41 = vrot.slane %v1109_v32, 4  ;;  %v792_v45 = vrot.slane %v791_v33, 4  ;;  %v2092_v48 = vshrl.u32 %v8125_v28, 16  ;;  %v8983_v29 = vld [vmem:[%s9421_s22 + $0x30] sm:$0xff]   ;;  %v8128_v33 = vld [vmem:[%s9421_s22 + $0x4c] sm:$0xf]  ;;  %8610 = vmatpush3.bf16.msra.mxu0 %v9001_v21 }
  0x54   : > { %v2081_v46 = vrot.slane %v2079_v36, 4  ;;  %v2084_v47 = vrot.slane %v2082_v37, 5  ;;  %v802_v50 = vrot.slane %v801_v39, 4  ;;  %v2090_v52 = vrot.slane %v2088_v42, 5 }
  0x55   : > { %v1113_v51 = vsel %vm9414_vm2, %v1111_v41, %v1112_v34  ;;  %v2098_v53 = vshll.u32 %v8126_v35, 16  ;;  %1305 = vrot.lane.b32.xlu1 %v8981_v24, %s9283_s25  ;;  %v797_v56 = vsel %vm9465_vm5, %v792_v45, %v796_v27  ;;  %v2094_v60 = vrot.slane %v2092_v48, 4  ;;  %v9002_v27 = vld [vmem:[%s12189_s2 + $0x58] sm:$0xff]  }
  0x56   : > { %v7954_v57 = vcombine.low %v9560_v40, %v1113_v51  ;;  %v2085_v58 = vor.u32 %v2084_v47, %v2081_v46  ;;  %v807_v63 = vsel %vm9465_vm5, %v802_v50, %v806_v30  ;;  %v8067_v3 = vrot.slane %v8045_v43, 9  ;;  %8611 = vmatprep.subr.bf16.mxu0 %v9002_v27  ;;  %v8048_v43 = vld [vmem:[%s9421_s22 + $0x48] sm:$0xe] }
  0x57   : > { %1828 = vrot.lane.b32.xlu0 %v8076_v25, %s9284_s13  ;;  %v2100_v2 = vrot.slane %v2098_v53, 5  ;;  %v1752_v4 = vrot.slane %v8046_v44, 5  ;;  %v7934_v5 = vcombine.low %v797_v56, %v807_v63  ;;  %v2095_v7 = vor.u32 %v2094_v60, %v2090_v52  ;;  %v9003_v44 = vld [vmem:[%s12189_s2 + $0x18] sm:$0xff]  }
  0x58   : > { %v2086_v6 = vrot.slane %v2085_v58, 4  ;;  %v1755_v8 = vrot.slane %v8047_v49, 5  ;;  %v809_v13 = vshrl.u32 %v691_v54, 16  ;;  %v812_v14 = vshll.u32 %v691_v54, 16  ;;  %v8049_v49 = vld [vmem:[%s9421_s22 + $0x4c] sm:$0xf]  ;;  %8612 = vmatpush3.bf16.msra.mxu0 %v9003_v44 }
  0x59   : > { %v9587_v11 = vsel %vm9414_vm2, %v8067_v3, %v1752_v4  ;;  %v1754_v12 = vrot.slane %v1752_v4, 4  ;;  %988 = vrot.lane.b32.xlu1 %v7934_v5, %s9284_s13  ;;  %v2096_v17 = vrot.slane %v2095_v7, 4  ;;  %v818_v18 = vshll.u32 %v692_v61, 16  ;;  %v8050_v54 = vld [vmem:[%s9421_s22 + $0x50] sm:$0x1]  ;;  %8613 = vmatprep.subr.bf16.mxu0 %v9004_v55  ;;  %v8984_v5 = vld [vmem:[%s9421_s22 + $0x48] sm:$0xff]  }
  0x5a   : > { %v2091_v16 = vsel %vm9465_vm5, %v2086_v6, %v2090_v52  ;;  %v822_v19 = vshrl.u32 %v692_v61, 16  ;;  %v811_v23 = vrot.slane %v809_v13, 4  ;;  %v814_v24 = vrot.slane %v812_v14, 5  ;;  %v694_v61 = vld [vmem:[%s9421_s22 + $0x3c] sm:$0xf] }
  0x5b   : > { %1942 = vrot.lane.b32.xlu0 %v8982_v0, %s9282_s26  ;;  %v1756_v22 = vsel %vm9414_vm2, %v1754_v12, %v1755_v8  ;;  %v828_v25 = vshll.u32 %v693_v9, 16  ;;  %v2101_v28 = vsel %vm9465_vm5, %v2096_v17, %v2100_v2  ;;  %v820_v31 = vrot.slane %v818_v18, 5  ;;  %v695_v3 = vld [vmem:[%s9421_s22 + $0x40] sm:$0xf]  ;;  %v696_v9 = vld [vmem:[%s9421_s22 + $0x44] sm:$0x1] }
  0x5c   : > { %v8077_v30 = vcombine.low %v9587_v11, %v1756_v22  ;;  %v824_v32 = vrot.slane %v822_v19, 4  ;;  %v8148_v34 = vcombine.low %v2091_v16, %v2101_v28  ;;  %v815_v35 = vor.u32 %v814_v24, %v811_v23  ;;  %v1038_v14 = vld [vmem:[%s9421_s22 + $0x3c] sm:$0xe]  ;;  %v1039_v19 = vld [vmem:[%s9421_s22 + $0x40] sm:$0xf] }
  0x5d   : > { %v830_v36 = vrot.slane %v828_v25, 5  ;;  %v7945_v37 = vrot.slane %v1035_v10, 9  ;;  %1192 = vrot.lane.b32.xlu1 %v7954_v57, %s9282_s26  ;;  %v1116_v40 = vrot.slane %v1036_v15, 5  ;;  %v1119_v41 = vrot.slane %v1037_v20, 5  ;;  %v1040_v24 = vld [vmem:[%s9421_s22 + $0x44] sm:$0x1] }
  0x5e   : > { %v825_v39 = vor.u32 %v824_v32, %v820_v31  ;;  %v2103_v42 = vshrl.u32 %v8127_v26, 16  ;;  %v816_v45 = vrot.slane %v815_v35, 4  ;;  %v2106_v46 = vshll.u32 %v8127_v26, 16  ;;  %v9006_v25 = vld [vmem:[%s12189_s2 + $0x20] sm:$0xff]  }
  0x5f   : > { %2282 = vrot.lane.b32.xlu0 %v8148_v34, %s9283_s25  ;;  %v2112_v47 = vshll.u32 %v8128_v33, 16  ;;  %v2116_v48 = vshrl.u32 %v8128_v33, 16  ;;  %v1117_v51 = vsel %vm9414_vm2, %v7945_v37, %v1116_v40  ;;  %v1118_v52 = vrot.slane %v1116_v40, 4  ;;  %8614 = vmatpush3.bf16.msra.mxu0 %v9006_v25  ;;  %v8132_v40 = vld [vmem:[%s9421_s22 + $0x5c] sm:$0x1] }
  0x60   : > { %v826_v50 = vrot.slane %v825_v39, 4  ;;  %v2105_v53 = vrot.slane %v2103_v42, 4  ;;  %v821_v56 = vsel %vm9465_vm5, %v816_v45, %v820_v31  ;;  %v2108_v57 = vrot.slane %v2106_v46, 5  ;;  %v8131_v39 = vld [vmem:[%s9421_s22 + $0x58] sm:$0xf] }
  0x61   : > { %v2114_v58 = vrot.slane %v2112_v47, 5  ;;  %v2118_v60 = vrot.slane %v2116_v48, 4  ;;  %1307 = vrot.lane.b32.xlu1 %v8983_v29, %s9283_s25  ;;  %v1120_v63 = vsel %vm9414_vm2, %v1118_v52, %v1119_v41  ;;  %v2122_v0 = vshll.u32 %v8129_v38, 16  ;;  %v8985_v41 = vld [vmem:[%s9421_s22 + $0x3c] sm:$0xff]   ;;  %v8051_v46 = vld [vmem:[%s9421_s22 + $0x54] sm:$0xe] }
  0x62   : > { %v831_v62 = vsel %vm9465_vm5, %v826_v50, %v830_v36  ;;  %v8068_v2 = vrot.slane %v8048_v43, 9  ;;  %v7955_v6 = vcombine.low %v1117_v51, %v1120_v63  ;;  %v2109_v7 = vor.u32 %v2108_v57, %v2105_v53  ;;  %v8052_v51 = vld [vmem:[%s9421_s22 + $0x58] sm:$0xf]  ;;  %v8053_v52 = vld [vmem:[%s9421_s22 + $0x5c] sm:$0x1]  ;;  %v9008_v53 = vld [vmem:[%s12189_s2 + $0x68] sm:$0xff]  }
  0x63   : > { %1830 = vrot.lane.b32.xlu0 %v8077_v30, %s9284_s13  ;;  %v7935_v4 = vcombine.low %v821_v56, %v831_v62  ;;  %v2119_v8 = vor.u32 %v2118_v60, %v2114_v58  ;;  %v2124_v10 = vrot.slane %v2122_v0, 5  ;;  %v1759_v11 = vrot.slane %v8049_v49, 5  ;;  %v8130_v30 = vld [vmem:[%s9421_s22 + $0x54] sm:$0xf]  ;;  %8615 = vmatprep.subr.bf16.mxu0 %v9008_v53 }
  0x64   : > { %v1762_v12 = vrot.slane %v8050_v54, 5  ;;  %v833_v13 = vshrl.u32 %v694_v61, 16  ;;  %v2110_v15 = vrot.slane %v2109_v7, 4  ;;  %v836_v17 = vshll.u32 %v694_v61, 16  ;;  %v8986_v7 = vld [vmem:[%s9421_s22 + $0x54] sm:$0xff]  }
  0x65   : > { %v2120_v16 = vrot.slane %v2119_v8, 4  ;;  %v842_v18 = vshll.u32 %v695_v3, 16  ;;  %990 = vrot.lane.b32.xlu1 %v7935_v4, %s9284_s13  ;;  %v1760_v20 = vsel %vm9414_vm2, %v8068_v2, %v1759_v11  ;;  %v1761_v21 = vrot.slane %v1759_v11, 4  ;;  %v699_v11 = vld [vmem:[%s9421_s22 + $0x50] sm:$0x1] }
  0x66   : > { %v835_v22 = vrot.slane %v833_v13, 4  ;;  %v846_v23 = vshrl.u32 %v695_v3, 16  ;;  %v2115_v26 = vsel %vm9465_vm5, %v2110_v15, %v2114_v58  ;;  %v838_v28 = vrot.slane %v836_v17, 5  ;;  %v697_v58 = vld [vmem:[%s9421_s22 + $0x48] sm:$0xf] }
  0x67   : > { %1944 = vrot.lane.b32.xlu0 %v8984_v5, %s9282_s26  ;;  %v2125_v27 = vsel %vm9465_vm5, %v2120_v16, %v2124_v10  ;;  %v844_v29 = vrot.slane %v842_v18, 5  ;;  %v1763_v32 = vsel %vm9414_vm2, %v1761_v21, %v1762_v12  ;;  %v852_v34 = vshll.u32 %v696_v9, 16  ;;  %v698_v5 = vld [vmem:[%s9421_s22 + $0x4c] sm:$0xf]  ;;  %v1041_v16 = vld [vmem:[%s9421_s22 + $0x48] sm:$0xe] }
  0x68   : > { %v8149_v31 = vcombine.low %v2115_v26, %v2125_v27  ;;  %v848_v33 = vrot.slane %v846_v23, 4  ;;  %v8078_v35 = vcombine.low %v1760_v20, %v1763_v32  ;;  %v839_v36 = vor.u32 %v838_v28, %v835_v22  ;;  %v9009_v17 = vld [vmem:[%s12189_s2 + $0x28] sm:$0xff]   ;;  %v1043_v23 = vld [vmem:[%s9421_s22 + $0x50] sm:$0x1] }
  0x69   : > { %v7946_v37 = vrot.slane %v1038_v14, 9  ;;  %v1123_v38 = vrot.slane %v1039_v19, 5  ;;  %1194 = vrot.lane.b32.xlu1 %v7955_v6, %s9282_s26  ;;  %v854_v43 = vrot.slane %v852_v34, 5  ;;  %v1126_v44 = vrot.slane %v1040_v24, 5  ;;  %v1042_v22 = vld [vmem:[%s9421_s22 + $0x4c] sm:$0xf]  ;;  %8616 = vmatpush3.bf16.msra.mxu0 %v9009_v17 }
  0x6a   : > { %v849_v42 = vor.u32 %v848_v33, %v844_v29  ;;  %v2127_v45 = vshrl.u32 %v8130_v30, 16  ;;  %v840_v47 = vrot.slane %v839_v36, 4  ;;  %v2130_v50 = vshll.u32 %v8130_v30, 16  ;;  %v8133_v24 = vld [vmem:[%s9421_s22 + $0x60] sm:$0xf]  ;;  %v9011_v33 = vld [vmem:[%s12189_s2 + $0x70] sm:$0xff]  }
  0x6b   : > { %2284 = vrot.lane.b32.xlu0 %v8149_v31, %s9283_s25  ;;  %v9660_v48 = vsel %vm9414_vm2, %v7946_v37, %v1123_v38  ;;  %v1125_v49 = vrot.slane %v1123_v38, 4  ;;  %v2136_v56 = vshll.u32 %v8131_v39, 16  ;;  %v2140_v57 = vshrl.u32 %v8131_v39, 16  ;;  %v8134_v38 = vld [vmem:[%s9421_s22 + $0x64] sm:$0xf]  ;;  %8617 = vmatprep.subr.bf16.mxu0 %v9011_v33 }
  0x6c   : > { %v850_v54 = vrot.slane %v849_v42, 4  ;;  %v2129_v55 = vrot.slane %v2127_v45, 4  ;;  %v845_v60 = vsel %vm9465_vm5, %v840_v47, %v844_v29  ;;  %v2132_v62 = vrot.slane %v2130_v50, 5  ;;  %v8055_v50 = vld [vmem:[%s9421_s22 + $0x64] sm:$0xf] }
  0x6d   : > { %v1127_v61 = vsel %vm9414_vm2, %v1125_v49, %v1126_v44  ;;  %v2146_v63 = vshll.u32 %v8132_v40, 16  ;;  %1309 = vrot.lane.b32.xlu1 %v8985_v41, %s9283_s25  ;;  %v2138_v3 = vrot.slane %v2136_v56, 5  ;;  %v2142_v4 = vrot.slane %v2140_v57, 4  ;;  %v8987_v40 = vld [vmem:[%s9421_s22 + $0x48] sm:$0xff]   ;;  %v8054_v49 = vld [vmem:[%s9421_s22 + $0x60] sm:$0xe] }
  0x6e   : > { %v855_v0 = vsel %vm9465_vm5, %v850_v54, %v854_v43  ;;  %v7956_v2 = vcombine.low %v9660_v48, %v1127_v61  ;;  %v2133_v8 = vor.u32 %v2132_v62, %v2129_v55  ;;  %v8069_v10 = vrot.slane %v8051_v46, 9  ;;  %v8135_v44 = vld [vmem:[%s9421_s22 + $0x68] sm:$0x1] }
  0x6f   : > { %1832 = vrot.lane.b32.xlu0 %v8078_v35, %s9284_s13  ;;  %v7936_v6 = vcombine.low %v845_v60, %v855_v0  ;;  %v2148_v9 = vrot.slane %v2146_v63, 5  ;;  %v2143_v12 = vor.u32 %v2142_v4, %v2138_v3  ;;  %v1766_v13 = vrot.slane %v8052_v51, 5  ;;  %v9012_v60 = vld [vmem:[%s12189_s2 + $0x30] sm:$0xff]  }
  0x70   : > { %v1769_v14 = vrot.slane %v8053_v52, 5  ;;  %v857_v15 = vshrl.u32 %v697_v58, 16  ;;  %v2134_v18 = vrot.slane %v2133_v8, 4  ;;  %v860_v19 = vshll.u32 %v697_v58, 16  ;;  %8618 = vmatpush3.bf16.msra.mxu0 %v9012_v60 }
  0x71   : > { %v866_v20 = vshll.u32 %v698_v5, 16  ;;  %v870_v21 = vshrl.u32 %v698_v5, 16  ;;  %992 = vrot.lane.b32.xlu1 %v7936_v6, %s9284_s13  ;;  %v2144_v25 = vrot.slane %v2143_v12, 4  ;;  %v1767_v26 = vsel %vm9414_vm2, %v8069_v10, %v1766_v13  ;;  %v8988_v5 = vld [vmem:[%s9421_s22 + $0x60] sm:$0xff]  }
  0x72   : > { %v1768_v27 = vrot.slane %v1766_v13, 4  ;;  %v859_v28 = vrot.slane %v857_v15, 4  ;;  %v2139_v29 = vsel %vm9465_vm5, %v2134_v18, %v2138_v3  ;;  %v862_v30 = vrot.slane %v860_v19, 5  ;;  %v700_v3 = vld [vmem:[%s9421_s22 + $0x54] sm:$0xf] }
  0x73   : > { %1946 = vrot.lane.b32.xlu0 %v8986_v7, %s9282_s26  ;;  %v868_v31 = vrot.slane %v866_v20, 5  ;;  %v872_v32 = vrot.slane %v870_v21, 4  ;;  %v2149_v34 = vsel %vm9465_vm5, %v2144_v25, %v2148_v9  ;;  %v876_v36 = vshll.u32 %v699_v11, 16  ;;  %v701_v13 = vld [vmem:[%s9421_s22 + $0x58] sm:$0xf] }
  0x74   : > { %v1770_v35 = vsel %vm9414_vm2, %v1768_v27, %v1769_v14  ;;  %v7947_v37 = vrot.slane %v1041_v16, 9  ;;  %v8150_v39 = vcombine.low %v2139_v29, %v2149_v34  ;;  %v863_v42 = vor.u32 %v862_v30, %v859_v28  ;;  %v702_v14 = vld [vmem:[%s9421_s22 + $0x5c] sm:$0x1]  ;;  %v1044_v19 = vld [vmem:[%s9421_s22 + $0x54] sm:$0xe] }
  0x75   : > { %v8079_v41 = vcombine.low %v1767_v26, %v1770_v35  ;;  %v873_v43 = vor.u32 %v872_v32, %v868_v31  ;;  %1196 = vrot.lane.b32.xlu1 %v7956_v2, %s9282_s26  ;;  %v878_v45 = vrot.slane %v876_v36, 5  ;;  %v1130_v46 = vrot.slane %v1042_v22, 5  ;;  %v8056_v2 = vld [vmem:[%s9421_s22 + $0x68] sm:$0x1]  ;;  %v1045_v29 = vld [vmem:[%s9421_s22 + $0x58] sm:$0xf] }
  0x76   : > { %v1133_v47 = vrot.slane %v1043_v23, 5  ;;  %v2151_v48 = vshrl.u32 %v8133_v24, 16  ;;  %v864_v51 = vrot.slane %v863_v42, 4  ;;  %v2154_v53 = vshll.u32 %v8133_v24, 16  ;;  %v9015_v24 = vld [vmem:[%s12189_s2 + $0x78] sm:$0xff]  }
  0x77   : > { %2286 = vrot.lane.b32.xlu0 %v8150_v39, %s9283_s25  ;;  %v874_v52 = vrot.slane %v873_v43, 4  ;;  %v2160_v54 = vshll.u32 %v8134_v38, 16  ;;  %v1131_v55 = vsel %vm9414_vm2, %v7947_v37, %v1130_v46  ;;  %v1132_v56 = vrot.slane %v1130_v46, 4  ;;  %v1046_v34 = vld [vmem:[%s9421_s22 + $0x5c] sm:$0x1]  ;;  %8619 = vmatprep.subr.bf16.mxu0 %v9015_v24  ;;  %v8989_v37 = vld [vmem:[%s9421_s22 + $0x54] sm:$0xff]  }
  0x78   : > { %v2153_v57 = vrot.slane %v2151_v48, 4  ;;  %v2164_v58 = vshrl.u32 %v8134_v38, 16  ;;  %v869_v61 = vsel %vm9465_vm5, %v864_v51, %v868_v31  ;;  %v2156_v63 = vrot.slane %v2154_v53, 5  ;;  %v8136_v35 = vld [vmem:[%s9421_s22 + $0x6c] sm:$0xf] }
  0x79   : > { %v879_v62 = vsel %vm9465_vm5, %v874_v52, %v878_v45  ;;  %v2162_v0 = vrot.slane %v2160_v54, 5  ;;  %1311 = vrot.lane.b32.xlu1 %v8987_v40, %s9283_s25  ;;  %v1134_v6 = vsel %vm9414_vm2, %v1132_v56, %v1133_v47  ;;  %v2170_v8 = vshll.u32 %v8135_v44, 16  ;;  %v8138_v46 = vld [vmem:[%s9421_s22 + $0x74] sm:$0x1]  ;;  %v8057_v47 = vld [vmem:[%s9421_s22 + $0x6c] sm:$0xe] }
  0x7a   : > { %v7937_v4 = vcombine.low %v869_v61, %v879_v62  ;;  %v2166_v7 = vrot.slane %v2164_v58, 4  ;;  %v7957_v9 = vcombine.low %v1131_v55, %v1134_v6  ;;  %v2157_v10 = vor.u32 %v2156_v63, %v2153_v57  ;;  %v9016_v52 = vld [vmem:[%s12189_s2 + $0x38] sm:$0xff]   ;;  %v8058_v57 = vld [vmem:[%s9421_s22 + $0x70] sm:$0xf]  ;;  %v8059_v63 = vld [vmem:[%s9421_s22 + $0x74] sm:$0x1] }
  0x7b   : > { %1834 = vrot.lane.b32.xlu0 %v8079_v41, %s9284_s13  ;;  %v8070_v11 = vrot.slane %v8054_v49, 9  ;;  %v1773_v12 = vrot.slane %v8055_v50, 5  ;;  %v2172_v16 = vrot.slane %v2170_v8, 5  ;;  %v1776_v17 = vrot.slane %v8056_v2, 5  ;;  %v8137_v41 = vld [vmem:[%s9421_s22 + $0x70] sm:$0xf]  ;;  %8620 = vmatpush3.bf16.msra.mxu0 %v9016_v52 }
  0x7c   : > { %v2167_v15 = vor.u32 %v2166_v7, %v2162_v0  ;;  %v881_v18 = vshrl.u32 %v700_v3, 16  ;;  %v2158_v20 = vrot.slane %v2157_v10, 4  ;;  %v884_v23 = vshll.u32 %v700_v3, 16  ;;  %v704_v10 = vld [vmem:[%s9421_s22 + $0x64] sm:$0xf] }
  0x7d   : > { %v1774_v21 = vsel %vm9414_vm2, %v8070_v11, %v1773_v12  ;;  %v1775_v22 = vrot.slane %v1773_v12, 4  ;;  %994 = vrot.lane.b32.xlu1 %v7937_v4, %s9284_s13  ;;  %v890_v27 = vshll.u32 %v701_v13, 16  ;;  %v894_v28 = vshrl.u32 %v701_v13, 16  ;;  %v8990_v12 = vld [vmem:[%s9421_s22 + $0x6c] sm:$0xff]  }
  0x7e   : > { %v2168_v25 = vrot.slane %v2167_v15, 4  ;;  %v883_v26 = vrot.slane %v881_v18, 4  ;;  %v2163_v30 = vsel %vm9465_vm5, %v2158_v20, %v2162_v0  ;;  %v886_v32 = vrot.slane %v884_v23, 5 }
  0x7f   : > { %1948 = vrot.lane.b32.xlu0 %v8988_v5, %s9282_s26  ;;  %v1777_v31 = vsel %vm9414_vm2, %v1775_v22, %v1776_v17  ;;  %v900_v33 = vshll.u32 %v702_v14, 16  ;;  %v892_v39 = vrot.slane %v890_v27, 5  ;;  %v896_v40 = vrot.slane %v894_v28, 4  ;;  %v703_v5 = vld [vmem:[%s9421_s22 + $0x60] sm:$0xf] }
  0x80   : > { %v2173_v36 = vsel %vm9465_vm5, %v2168_v25, %v2172_v16  ;;  %v8080_v38 = vcombine.low %v1774_v21, %v1777_v31  ;;  %v887_v43 = vor.u32 %v886_v32, %v883_v26  ;;  %v7948_v45 = vrot.slane %v1044_v19, 9  ;;  %v705_v16 = vld [vmem:[%s9421_s22 + $0x68] sm:$0x1]  ;;  %v1047_v21 = vld [vmem:[%s9421_s22 + $0x60] sm:$0xe] }
  0x81   : > { %v8151_v42 = vcombine.low %v2163_v30, %v2173_v36  ;;  %v902_v44 = vrot.slane %v900_v33, 5  ;;  %1198 = vrot.lane.b32.xlu1 %v7957_v9, %s9282_s26  ;;  %v897_v48 = vor.u32 %v896_v40, %v892_v39  ;;  %v1137_v49 = vrot.slane %v1045_v29, 5  ;;  %v1048_v22 = vld [vmem:[%s9421_s22 + $0x64] sm:$0xf]  ;;  %v8139_v36 = vld [vmem:[%s9421_s22 + $0x78] sm:$0xf] }
  0x82   : > { %v1140_v50 = vrot.slane %v1046_v34, 5  ;;  %v2175_v51 = vshrl.u32 %v8136_v35, 16  ;;  %v888_v53 = vrot.slane %v887_v43, 4  ;;  %v2178_v54 = vshll.u32 %v8136_v35, 16  ;;  %v1049_v35 = vld [vmem:[%s9421_s22 + $0x68] sm:$0x1] }
  0x83   : > { %2288 = vrot.lane.b32.xlu0 %v8151_v42, %s9283_s25  ;;  %v2184_v55 = vshll.u32 %v8137_v41, 16  ;;  %v2188_v56 = vshrl.u32 %v8137_v41, 16  ;;  %v898_v58 = vrot.slane %v897_v48, 4  ;;  %v1138_v60 = vsel %vm9414_vm2, %v7948_v45, %v1137_v49  ;;  %v8140_v45 = vld [vmem:[%s9421_s22 + $0x7c] sm:$0xf] }
  0x84   : > { %v1139_v61 = vrot.slane %v1137_v49, 4  ;;  %v2177_v62 = vrot.slane %v2175_v51, 4  ;;  %v893_v0 = vsel %vm9465_vm5, %v888_v53, %v892_v39  ;;  %v2180_v2 = vrot.slane %v2178_v54, 5  ;;  %v358_v51 = vld [vmem:[%s9784_s20 + $0x18] sm:$0xff] }
  0x85   : > { %v2186_v3 = vrot.slane %v2184_v55, 5  ;;  %v2190_v4 = vrot.slane %v2188_v56, 4  ;;  %1313 = vrot.lane.b32.xlu1 %v8989_v37, %s9283_s25  ;;  %v903_v6 = vsel %vm9465_vm5, %v898_v58, %v902_v44  ;;  %v2194_v8 = vshll.u32 %v8138_v46, 16  ;;  %v8141_v46 = vld [vmem:[%s9421_s22 + $0x80] sm:$0x1] }
  0x86   : > { %v1141_v7 = vsel %vm9414_vm2, %v1139_v61, %v1140_v50  ;;  %v8071_v9 = vrot.slane %v8057_v47, 9  ;;  %v7938_v11 = vcombine.low %v893_v0, %v903_v6  ;;  %v2181_v14 = vor.u32 %v2180_v2, %v2177_v62  ;;  %v359_v56 = vld [vmem:[%s9784_s20 + $0x20] sm:$0xff]  ;;  %v356_v0 = vld [vmem:[%s9784_s20 + $0x8] sm:$0xff]  ;;  %v357_v2 = vld [vmem:[%s9784_s20 + $0x10] sm:$0x3] }
  0x87   : > { %1836 = vrot.lane.b32.xlu0 %v8080_v38, %s9284_s13  ;;  %v7958_v13 = vcombine.low %v1138_v60, %v1141_v7  ;;  %v2191_v15 = vor.u32 %v2190_v4, %v2186_v3  ;;  %v2196_v17 = vrot.slane %v2194_v8, 5  ;;  %v1780_v18 = vrot.slane %v8058_v57, 5  ;;  %v8991_v38 = vld [vmem:[%s9421_s22 + $0x60] sm:$0xff]   ;;  %v360_v57 = vld [vmem:[%s9784_s20 + $0x28] sm:$0x3] }
  0x88   : > { %v1783_v19 = vrot.slane %v8059_v63, 5  ;;  %v905_v20 = vshrl.u32 %v703_v5, 16  ;;  %v2182_v23 = vrot.slane %v2181_v14, 4  ;;  %v908_v25 = vshll.u32 %v703_v5, 16  ;;  %v355_v58 = vld [vmem:[%s9784_s20] sm:$0xff]  ;;  %v8992_v5 = vld [vmem:[%s9421_s22 + $0x78] sm:$0xff]  }
  0x89   : > { %v2192_v24 = vrot.slane %v2191_v15, 4  ;;  %v914_v26 = vshll.u32 %v704_v10, 16  ;;  %996 = vrot.lane.b32.xlu1 %v7938_v11, %s9284_s13  ;;  %v1781_v27 = vsel %vm9414_vm2, %v8071_v9, %v1780_v18  ;;  %v1782_v28 = vrot.slane %v1780_v18, 4  ;;  %v362_v9 = vld [vmem:[%s9784_s20 + $0x38] sm:$0xff]  ;;  %v9014_v11 = vld [vmem:[%s9421_s22 + $0xc] sm:$0xff]  }
  0x8a   : > { %v907_v29 = vrot.slane %v905_v20, 4  ;;  %v918_v30 = vshrl.u32 %v704_v10, 16  ;;  %v2187_v31 = vsel %vm9465_vm5, %v2182_v23, %v2186_v3  ;;  %v910_v33 = vrot.slane %v908_v25, 5  ;;  %v361_v3 = vld [vmem:[%s9784_s20 + $0x30] sm:$0xff]  ;;  %v9007_v10 = vld [vmem:[%s9421_s22] sm:$0xff]   ;;  %670 = vst.msk [vmem:[#allocation2 + $0x28] sm:$0xff] %vm12199_vm8, %v9014_v11 }
  0x8b   : > { %1950 = vrot.lane.b32.xlu0 %v8990_v12, %s9282_s26  ;;  %v2197_v32 = vsel %vm9465_vm5, %v2192_v24, %v2196_v17  ;;  %v916_v34 = vrot.slane %v914_v26, 5  ;;  %v1784_v39 = vsel %vm9414_vm2, %v1782_v28, %v1783_v19  ;;  %v924_v41 = vshll.u32 %v705_v16, 16  ;;  %v9017_v12 = vld [vmem:[%s9421_s22 + $0x18] sm:$0xff]   ;;  %v7993_v17 = vld [vmem:[%s9421_s22 + $0xc] sm:$0xf]  ;;  %v9020_v25 = vld [vmem:[%s9421_s22 + $0x24] sm:$0xff]  }
  0x8c   : > { %v8152_v37 = vcombine.low %v2187_v31, %v2197_v32  ;;  %v920_v40 = vrot.slane %v918_v30, 4  ;;  %v911_v42 = vor.u32 %v910_v33, %v907_v29  ;;  %v7949_v43 = vrot.slane %v1047_v21, 9  ;;  %v7994_v18 = vld [vmem:[%s9421_s22 + $0x10] sm:$0xf]  ;;  %v7995_v23 = vld [vmem:[%s9421_s22 + $0x14] sm:$0x1] }
  0x8d   : > { %v1144_v44 = vrot.slane %v1048_v22, 5  ;;  %1200 = vrot.lane.b32.xlu1 %v7958_v13, %s9282_s26  ;;  %v926_v48 = vrot.slane %v924_v41, 5  ;;  %v1147_v49 = vrot.slane %v1049_v35, 5  ;;  %v2199_v50 = vshrl.u32 %v8139_v36, 16  ;;  %v9821_v24 = vld [vmem:[%s9421_s22 + $0x78] sm:$0xe] }
  0x8e   : > { %v921_v47 = vor.u32 %v920_v40, %v916_v34  ;;  %v8081_v52 = vcombine.low %v1781_v27, %v1784_v39  ;;  %v912_v53 = vrot.slane %v911_v42, 4  ;;  %v2202_v55 = vshll.u32 %v8139_v36, 16  ;;  %v9835_v39 = vld [vmem:[%s9421_s22 + $0x6c] sm:$0xf]  ;;  %669 = vst.msk [vmem:[#allocation2] sm:$0xff] %vm12199_vm8, %v9007_v10  ;;  %671 = vst.msk [vmem:[#allocation2 + $0x50] sm:$0xff] %vm12199_vm8, %v9017_v12 }
  0x8f   : > { %2290 = vrot.lane.b32.xlu0 %v8152_v37, %s9283_s25  ;;  %v1146_v54 = vrot.slane %v1144_v44, 4  ;;  %v2201_v61 = vrot.slane %v2199_v50, 4  ;;  %v2208_v62 = vshll.u32 %v8140_v45, 16  ;;  %v2212_v63 = vshrl.u32 %v8140_v45, 16  ;;  %v9846_v45 = vld [vmem:[%s9421_s22 + $0x70] sm:$0xf] }
  0x90   : > { %v922_v60 = vrot.slane %v921_v47, 4  ;;  %v917_v4 = vsel %vm9465_vm5, %v912_v53, %v916_v34  ;;  %v9805_v6 = vsel %vm9414_vm2, %v7949_v43, %v1144_v44  ;;  %v2204_v7 = vrot.slane %v2202_v55, 5  ;;  %v8061_v34 = vld [vmem:[%s9421_s22 + $0x7c] sm:$0xf]  ;;  %672 = vst.msk [vmem:[#allocation2 + $0x78] sm:$0xff] %vm12199_vm8, %v9020_v25 }
  0x91   : > { %v2218_v8 = vshll.u32 %v8141_v46, 16  ;;  %1315 = vrot.lane.b32.xlu1 %v8991_v38, %s9283_s25  ;;  %v1148_v14 = vsel %vm9414_vm2, %v1146_v54, %v1147_v49  ;;  %v2210_v15 = vrot.slane %v2208_v62, 5  ;;  %v2214_v16 = vrot.slane %v2212_v63, 4  ;;  %v9832_v38 = vld [vmem:[%s9421_s22 + $0x80] sm:$0x1]  ;;  %v9022_v46 = vld [vmem:[%s9421_s22 + $0x30] sm:$0xff]  }
  0x92   : > { %v927_v13 = vsel %vm9465_vm5, %v922_v60, %v926_v48  ;;  %v2205_v20 = vor.u32 %v2204_v7, %v2201_v61  ;;  %v8551_v22 = vpack.c.bf16 %v358_v51, %v358_v51  ;;  %v8552_v27 = vpack.c.bf16 %v359_v56, %v359_v56  ;;  %v8993_v48 = vld [vmem:[%s9421_s22 + $0x6c] sm:$0xff]   ;;  %v9025_v53 = vld [vmem:[%s9421_s22 + $0x3c] sm:$0xff]   ;;  %673 = vst.msk [vmem:[#allocation2 + $0xa0] sm:$0xff] %vm12199_vm8, %v9022_v46 }
  0x93   : > { %1838 = vrot.lane.b32.xlu0 %v8081_v52, %s9284_s13  ;;  %v7939_v19 = vcombine.low %v917_v4, %v927_v13  ;;  %v2220_v21 = vrot.slane %v2218_v8, 5  ;;  %v2215_v26 = vor.u32 %v2214_v16, %v2210_v15  ;;  %v8553_v28 = vpack.c.bf16 %v360_v57, %v360_v57  ;;  %v364_v52 = vld [vmem:[%s9784_s20 + $0x48] sm:$0xff]  ;;  %674 = vst.msk [vmem:[#allocation2 + $0xc8] sm:$0xff] %vm12199_vm8, %v9025_v53 }
  0x94   : > { %v8548_v29 = vpack.c.bf16 %v355_v58, %v355_v58  ;;  %v2206_v30 = vrot.slane %v2205_v20, 4  ;;  %552 = vst.msk [vmem:[#allocation5 + $0xc] sm:$0xf] %vm547_vm6, %v8551_v22  ;;  %v8549_v31 = vpack.c.bf16 %v356_v0, %v356_v0  ;;  %v8550_v32 = vpack.c.bf16 %v357_v2, %v357_v2  ;;  %553 = vst.msk [vmem:[#allocation5 + $0x10] sm:$0xf] %vm547_vm6, %v8552_v27  ;;  %v365_v58 = vld [vmem:[%s9784_s20 + $0x50] sm:$0xff] }
  0x95   : > { %v8554_v33 = vpack.c.bf16 %v361_v3, %v361_v3  ;;  %998 = vrot.lane.b32.xlu1 %v7939_v19, %s9284_s13  ;;  %v7959_v35 = vcombine.low %v9805_v6, %v1148_v14  ;;  %v2216_v36 = vrot.slane %v2215_v26, 4  ;;  %554 = vst.msk [vmem:[#allocation5 + $0x14] sm:$0x1] %vm550_vm7, %v8553_v28  ;;  %v8555_v37 = vpack.c.bf16 %v362_v9, %v362_v9  ;;  %v367_v6 = vld [vmem:[%s9784_s20 + $0x60] sm:$0xff]  ;;  %v368_v13 = vld [vmem:[%s9784_s20 + $0x68] sm:$0xff] }
  0x96   : > { %548 = vst.msk [vmem:[#allocation5] sm:$0xf] %vm547_vm6, %v8548_v29  ;;  %v2211_v40 = vsel %vm9465_vm5, %v2206_v30, %v2210_v15  ;;  %549 = vst.msk [vmem:[#allocation5 + $0x4] sm:$0xf] %vm547_vm6, %v8549_v31  ;;  %v1373_v42 = vshrl.u32 %v7993_v17, 16  ;;  %v1376_v43 = vshll.u32 %v7993_v17, 16  ;;  %v8557_v19 = vpack.c.bf16 %v364_v52, %v364_v52 }
  0x97   : > { %1952 = vrot.lane.b32.xlu0 %v8992_v5, %s9282_s26  ;;  %551 = vst.msk [vmem:[#allocation5 + $0x8] sm:$0x1] %vm550_vm7, %v8550_v32  ;;  %v1382_v44 = vshll.u32 %v7994_v18, 16  ;;  %v2221_v47 = vsel %vm9465_vm5, %v2216_v36, %v2220_v21  ;;  %v1386_v49 = vshrl.u32 %v7994_v18, 16  ;;  %v1392_v50 = vshll.u32 %v7995_v23, 16 }
  0x98   : > { %v9841_v41 = vpop.permute.xlu1 %1936  ;;  %555 = vst.msk [vmem:[#allocation5 + $0x18] sm:$0xf] %vm547_vm6, %v8554_v33  ;;  %556 = vst.msk [vmem:[#allocation5 + $0x1c] sm:$0xf] %vm547_vm6, %v8555_v37  ;;  %v8072_v51 = vrot.slane %v9821_v24, 9  ;;  %v8153_v54 = vcombine.low %v2211_v40, %v2221_v47  ;;  %v9860_v55 = vrot.slane %v1373_v42, 4  ;;  %v9869_v60 = vpop.permute.xlu0 %1938  ;;  %v8558_v20 = vpack.c.bf16 %v365_v58, %v365_v58 }
  0x99   : > { %v9862_v56 = vrot.slane %v1376_v43, 5  ;;  %v9864_v57 = vrot.slane %v1382_v44, 5  ;;  %1202 = vrot.lane.b32.xlu1 %v7959_v35, %s9282_s26  ;;  %v9871_v61 = vrot.slane %v1386_v49, 4  ;;  %v9873_v62 = vrot.slane %v1392_v50, 5  ;;  %558 = vst.msk [vmem:[#allocation5 + $0x24] sm:$0xf] %vm547_vm6, %v8557_v19 }
  0x9a   : > { %v1787_v63 = vrot.slane %v8061_v34, 5  ;;  %v1790_v0 = vrot.slane %v9832_v38, 5  ;;  %v929_v3 = vshrl.u32 %v9835_v39, 16  ;;  %v932_v4 = vshll.u32 %v9835_v39, 16  ;;  %559 = vst.msk [vmem:[#allocation5 + $0x28] sm:$0xf] %vm547_vm6, %v8558_v20 }
  0x9b   : > { %2292 = vrot.lane.b32.xlu0 %v8153_v54, %s9283_s25  ;;  %v1379_v2 = vor.u32 %v9862_v56, %v9860_v55  ;;  %v938_v5 = vshll.u32 %v9846_v45, 16  ;;  %v3237_v7 = vld [vmem:[#allocation5 + $0xc] sm:$0xf]  ;;  %v1389_v9 = vor.u32 %v9871_v61, %v9864_v57  ;;  %v942_v12 = vshrl.u32 %v9846_v45, 16  ;;  %v3238_v14 = vld [vmem:[#allocation5 + $0x10] sm:$0xf] }
  0x9c   : > { %v3577_v8 = vld [vmem:[#allocation5 + $0xc] sm:$0xe]  ;;  %v9888_v10 = vsel %vm9414_vm2, %v8072_v51, %v1787_v63  ;;  %v1789_v11 = vrot.slane %v1787_v63, 4  ;;  %v3239_v15 = vld [vmem:[#allocation5 + $0x14] sm:$0x1]  ;;  %v3268_v16 = vshrl.u32 %v3237_v7, 16  ;;  %v9892_v18 = vpop.permute.xlu1 %1301  ;;  %v8560_v30 = vpack.c.bf16 %v367_v6, %v367_v6 }
  0x9d   : > { %v3271_v17 = vshll.u32 %v3237_v7, 16  ;;  %1317 = vrot.lane.b32.xlu1 %v8993_v48, %s9283_s25  ;;  %v3277_v21 = vshll.u32 %v3238_v14, 16  ;;  %v3281_v22 = vshrl.u32 %v3238_v14, 16  ;;  %v3287_v23 = vshll.u32 %v3239_v15, 16  ;;  %v8996_v24 = vld [vmem:[#allocation5] sm:$0xff]  }
  0x9e   : > { %v9897_v25 = vsel %vm9414_vm2, %v1789_v11, %v1790_v0  ;;  %v3270_v26 = vrot.slane %v3268_v16, 4  ;;  %v3578_v28 = vld [vmem:[#allocation5 + $0x10] sm:$0xf]  ;;  %v3579_v34 = vld [vmem:[#allocation5 + $0x14] sm:$0x1]  ;;  %v8265_v35 = vrot.slane %v3577_v8, 9  ;;  %v8561_v44 = vpack.c.bf16 %v368_v13, %v368_v13 }
  0x9f   : > { %v3273_v27 = vrot.slane %v3271_v17, 5  ;;  %v8082_v29 = vcombine.low %v9888_v10, %v9897_v25  ;;  %v3279_v31 = vrot.slane %v3277_v21, 5  ;;  %v3283_v32 = vrot.slane %v3281_v22, 4  ;;  %v2606_v42 = vld [vmem:[#allocation5] sm:$0xf] }
  0xa0   : > { %v3289_v33 = vrot.slane %v3287_v23, 5  ;;  %v9903_v36 = vpop.permute.xlu0 %1822  ;;  %v3639_v38 = vrot.slane %v3578_v28, 5  ;;  %v3642_v40 = vrot.slane %v3579_v34, 5  ;;  %v2607_v43 = vld [vmem:[#allocation5 + $0x4] sm:$0xf]  ;;  %v2637_v48 = vshrl.u32 %v2606_v42, 16  ;;  %v9909_v58 = vpop.permute.xlu1 %1303 }
  0xa1   : > { %v3274_v37 = vor.u32 %v3273_v27, %v3270_v26  ;;  %561 = vst.msk [vmem:[#allocation5 + $0x30] sm:$0xf] %vm547_vm6, %v8560_v30  ;;  %v3284_v46 = vor.u32 %v3283_v32, %v3279_v31  ;;  %2566 = vrot.lane.b32.xlu1 %v8996_v24, %s9284_s13  ;;  %v2608_v47 = vld [vmem:[#allocation5 + $0x8] sm:$0x1]  ;;  %v2640_v49 = vshll.u32 %v2606_v42, 16  ;;  %v2646_v50 = vshll.u32 %v2607_v43, 16 }
  0xa2   : > { %v3640_v52 = vsel %vm9414_vm2, %v8265_v35, %v3639_v38  ;;  %v3641_v53 = vrot.slane %v3639_v38, 4  ;;  %v2650_v54 = vshrl.u32 %v2607_v43, 16  ;;  %562 = vst.msk [vmem:[#allocation5 + $0x34] sm:$0xf] %vm547_vm6, %v8561_v44  ;;  %v2639_v0 = vrot.slane %v2637_v48, 4 }
  0xa3   : > { %v3275_v51 = vrot.slane %v3274_v37, 4  ;;  %v3285_v63 = vrot.slane %v3284_v46, 4  ;;  %v2642_v6 = vrot.slane %v2640_v49, 5  ;;  %v2648_v7 = vrot.slane %v2646_v50, 5  ;;  %v2946_v15 = vld [vmem:[#allocation5] sm:$0xe] }
  0xa4   : > { %v3643_v11 = vsel %vm9414_vm2, %v3641_v53, %v3642_v40  ;;  %v2652_v13 = vrot.slane %v2650_v54, 4  ;;  %v2656_v14 = vshll.u32 %v2608_v47, 16  ;;  %v2947_v16 = vld [vmem:[#allocation5 + $0x4] sm:$0xf]  ;;  %v9916_v17 = vpop.permute.xlu0 %1824  ;;  %v2948_v22 = vld [vmem:[#allocation5 + $0x8] sm:$0x1]  ;;  %v1187_v55 = vpop.permute.xlu1 %1186 }
  0xa5   : > { %v3280_v8 = vsel %vm9465_vm5, %v3275_v51, %v3279_v31  ;;  %v3290_v19 = vsel %vm9465_vm5, %v3285_v63, %v3289_v33  ;;  %v8275_v20 = vcombine.low %v3640_v52, %v3643_v11  ;;  %v2643_v21 = vor.u32 %v2642_v6, %v2639_v0  ;;  %v708_v33 = vld [vmem:[%s9421_s22 + $0x74] sm:$0x1]  ;;  %v7996_v35 = vld [vmem:[%s9421_s22 + $0x18] sm:$0xf]  ;;  %v7997_v37 = vld [vmem:[%s9421_s22 + $0x1c] sm:$0xf] }
  0xa6   : > { %v8225_v23 = vrot.slane %v2946_v15, 9  ;;  %v8255_v24 = vcombine.low %v3280_v8, %v3290_v19  ;;  %v2653_v26 = vor.u32 %v2652_v13, %v2648_v7  ;;  %v2658_v27 = vrot.slane %v2656_v14, 5  ;;  %v7998_v44 = vld [vmem:[%s9421_s22 + $0x20] sm:$0x1]  ;;  %v1050_v39 = vld [vmem:[%s9421_s22 + $0x6c] sm:$0xe] }
  0xa7   : > { %v3008_v28 = vrot.slane %v2947_v16, 5  ;;  %v2644_v30 = vrot.slane %v2643_v21, 4  ;;  %v3011_v31 = vrot.slane %v2948_v22, 5  ;;  %v1380_v32 = vrot.slane %v1379_v2, 4  ;;  %v1052_v53 = vld [vmem:[%s9421_s22 + $0x74] sm:$0x1] }
  0xa8   : > { %v1390_v34 = vrot.slane %v1389_v9, 4  ;;  %3537 = vrot.lane.b32.xlu0 %v8255_v24, %s9284_s13  ;;  %v2654_v38 = vrot.slane %v2653_v26, 4  ;;  %v931_v43 = vrot.slane %v929_v3, 4  ;;  %v934_v9 = vrot.slane %v932_v4, 5  ;;  %v1051_v4 = vld [vmem:[%s9421_s22 + $0x70] sm:$0xf] }
  0xa9   : > { %v3009_v40 = vsel %vm9414_vm2, %v8225_v23, %v3008_v28  ;;  %v3010_v42 = vrot.slane %v3008_v28, 4  ;;  %v2649_v56 = vsel %vm9465_vm5, %v2644_v30, %v2648_v7  ;;  %v1385_v61 = vsel %vm9465_vm5, %v1380_v32, %v9864_v57  ;;  %v9000_v57 = vld [vmem:[#allocation5 + $0x18] sm:$0xff]   ;;  %v9028_v8 = vld [vmem:[%s9421_s22 + $0x48] sm:$0xff]   ;;  %v1189_v19 = vpop.permute.xlu1 %1188 }
  0xaa   : > { %v1395_v2 = vsel %vm9465_vm5, %v1390_v34, %v9873_v62  ;;  %v2659_v3 = vsel %vm9465_vm5, %v2654_v38, %v2658_v27  ;;  %v940_v48 = vrot.slane %v938_v5, 5  ;;  %v935_v52 = vor.u32 %v934_v9, %v931_v43  ;;  %v8142_v16 = vld [vmem:[%s9421_s22 + $0x84] sm:$0xf]  ;;  %675 = vst.msk [vmem:[#allocation2 + $0xf0] sm:$0xff] %vm12199_vm8, %v9028_v8  ;;  %v8144_v34 = vld [vmem:[%s9421_s22 + $0x8c] sm:$0x1] }
  0xab   : > { %v3012_v46 = vsel %vm9414_vm2, %v3010_v42, %v3011_v31  ;;  %v8023_v47 = vcombine.low %v1385_v61, %v1395_v2  ;;  %v983_v49 = vpop.permute.xlu0 %982  ;;  %v8215_v50 = vcombine.low %v2649_v56, %v2659_v3  ;;  %v944_v62 = vrot.slane %v942_v12, 4  ;;  %v363_v42 = vld [vmem:[%s9784_s20 + $0x40] sm:$0x3]  ;;  %v3241_v9 = vld [vmem:[#allocation5 + $0x1c] sm:$0xf] }
  0xac   : > { %v8235_v51 = vcombine.low %v3009_v40, %v3012_v46  ;;  %1013 = vst.msk [vmem:[#allocation2] sm:$0xff] %vm12198_vm9, %v983_v49  ;;  %3737 = vrot.lane.b32.xlu0 %v8275_v20, %s9282_s26  ;;  %v948_v5 = vshll.u32 %v708_v33, 16  ;;  %v1397_v54 = vshrl.u32 %v7996_v35, 16  ;;  %v1400_v63 = vshll.u32 %v7996_v35, 16  ;;  %v3240_v43 = vld [vmem:[#allocation5 + $0x18] sm:$0xf] }
  0xad   : > { %1652 = vst.msk [vmem:[#allocation2 + $0x8] sm:$0xff] %vm12199_vm8, %v8023_v47  ;;  %v1406_v0 = vshll.u32 %v7997_v37, 16  ;;  %2906 = vrot.lane.b32.xlu1 %v8215_v50, %s9282_s26  ;;  %v936_v45 = vrot.slane %v935_v52, 4  ;;  %v945_v12 = vor.u32 %v944_v62, %v940_v48  ;;  %v1410_v6 = vshrl.u32 %v7997_v37, 16  ;;  %v9005_v37 = vld [vmem:[%s9421_s22 + $0x84] sm:$0xff]   ;;  %v9030_v62 = vld [vmem:[%s9421_s22 + $0x54] sm:$0xff]  }
  0xae   : > { %1852 = vst.msk [vmem:[#allocation2 + $0x8] sm:$0xff] %vm12198_vm9, %v9903_v36  ;;  %v1416_v7 = vshll.u32 %v7998_v44, 16  ;;  %v950_v11 = vrot.slane %v948_v5, 5  ;;  %v1399_v13 = vrot.slane %v1397_v54, 4  ;;  %v1402_v14 = vrot.slane %v1400_v63, 5 }
  0xaf   : > { %v1408_v15 = vrot.slane %v1406_v0, 5  ;;  %v941_v20 = vsel %vm9465_vm5, %v936_v45, %v940_v48  ;;  %v946_v21 = vrot.slane %v945_v12, 4  ;;  %v1412_v22 = vrot.slane %v1410_v6, 4  ;;  %v8143_v36 = vld [vmem:[%s9421_s22 + $0x88] sm:$0xf]  ;;  %1217 = vst.msk [vmem:[#allocation2] sm:$0xff] %vm12197_vm10, %v1187_v55 }
  0xb0   : > { %v1418_v23 = vrot.slane %v1416_v7, 5  ;;  %3848 = vrot.lane.b32.xlu0 %v9000_v57, %s9283_s25  ;;  %v1403_v24 = vor.u32 %v1402_v14, %v1399_v13  ;;  %v7950_v26 = vrot.slane %v1050_v39, 9  ;;  %v1151_v27 = vrot.slane %v1051_v4, 5  ;;  %v2277_v30 = vpop.permute.xlu0 %2276  ;;  %1966 = vst.msk [vmem:[#allocation2 + $0x8] sm:$0xff] %vm12197_vm10, %v9841_v41  ;;  %v3580_v47 = vld [vmem:[#allocation5 + $0x18] sm:$0xe] }
  0xb1   : > { %v1154_v28 = vrot.slane %v1052_v53, 5  ;;  %3106 = vrot.lane.b32.xlu1 %v8235_v51, %s9283_s25  ;;  %v951_v31 = vsel %vm9465_vm5, %v946_v21, %v950_v11  ;;  %v1413_v32 = vor.u32 %v1412_v22, %v1408_v15  ;;  %1332 = vst.msk [vmem:[#allocation2] sm:$0xff] %vm12196_vm11, %v9892_v18  ;;  %v2223_v56 = vshrl.u32 %v8142_v16, 16  ;;  %2306 = vst.msk [vmem:[#allocation2 + $0x8] sm:$0xff] %vm12196_vm11, %v2277_v30  ;;  %v3581_v48 = vld [vmem:[#allocation5 + $0x1c] sm:$0xf] }
  0xb2   : > { %v7940_v33 = vcombine.low %v941_v20, %v951_v31  ;;  %v1404_v35 = vrot.slane %v1403_v24, 4  ;;  %v1152_v38 = vsel %vm9414_vm2, %v7950_v26, %v1151_v27  ;;  %v1153_v40 = vrot.slane %v1151_v27, 4  ;;  %v9010_v4 = vld [vmem:[%s9421_s22 + $0x78] sm:$0xff]   ;;  %v2609_v63 = vld [vmem:[#allocation5 + $0xc] sm:$0xf]  ;;  %676 = vst.msk [vmem:[#allocation2 + $0x118] sm:$0xff] %vm12199_vm8, %v9030_v62 }
  0xb3   : > { %v1414_v44 = vrot.slane %v1413_v32, 4  ;;  %v2226_v61 = vshll.u32 %v8142_v16, 16  ;;  %v2232_v2 = vshll.u32 %v8143_v36, 16  ;;  %v2236_v3 = vshrl.u32 %v8143_v36, 16  ;;  %v2610_v8 = vld [vmem:[#allocation5 + $0x10] sm:$0xf] }
  0xb4   : > { %1840 = vrot.lane.b32.xlu0 %v8082_v29, %s9284_s13  ;;  %v1409_v41 = vsel %vm9465_vm5, %v1404_v35, %v1408_v15  ;;  %v1155_v55 = vsel %vm9414_vm2, %v1153_v40, %v1154_v28  ;;  %v2242_v18 = vshll.u32 %v8144_v34, 16  ;;  %v985_v46 = vpop.permute.xlu1 %984  ;;  %v2225_v25 = vrot.slane %v2223_v56, 4  ;;  %v9033_v11 = vld [vmem:[%s12189_s2 + $0xc0] sm:$0xff]   ;;  %v2611_v16 = vld [vmem:[#allocation5 + $0x14] sm:$0x1]  ;;  %v9013_v32 = vld [vmem:[#allocation5 + $0xc] sm:$0xff]  }
  0xb5   : > { %1000 = vrot.lane.b32.xlu1 %v7940_v33, %s9284_s13  ;;  %v1419_v49 = vsel %vm9465_vm5, %v1414_v44, %v1418_v23  ;;  %v7960_v10 = vcombine.low %v1152_v38, %v1155_v55  ;;  %v2228_v29 = vrot.slane %v2226_v61, 5  ;;  %1014 = vst.msk [vmem:[#allocation2 + $0x28] sm:$0xff] %vm12198_vm9, %v985_v46  ;;  %v2234_v57 = vrot.slane %v2232_v2, 5  ;;  %8681 = vmatprep.subr.bf16.mxu1 %v9033_v11  ;;  %v7999_v27 = vld [vmem:[%s9421_s22 + $0x24] sm:$0xf] }
  0xb6   : > { %v8024_v50 = vcombine.low %v1409_v41, %v1419_v49  ;;  %v2238_v51 = vrot.slane %v2236_v3, 4  ;;  %v2244_v52 = vrot.slane %v2242_v18, 5  ;;  %1218 = vst.msk [vmem:[#allocation2 + $0x28] sm:$0xff] %vm12197_vm10, %v1189_v19  ;;  %v8556_v53 = vpack.c.bf16 %v363_v42, %v363_v42  ;;  %v9034_v28 = vld [vmem:[%s12189_s2 + $0x80] sm:$0xff]   ;;  %v8001_v46 = vld [vmem:[%s9421_s22 + $0x2c] sm:$0x1] }
  0xb7   : > { %v2229_v39 = vor.u32 %v2228_v29, %v2225_v25  ;;  %v3292_v5 = vshrl.u32 %v3240_v43, 16  ;;  %v3295_v54 = vshll.u32 %v3240_v43, 16  ;;  %1333 = vst.msk [vmem:[#allocation2 + $0x28] sm:$0xff] %vm12196_vm11, %v9909_v58  ;;  %v3301_v45 = vshll.u32 %v3241_v9, 16  ;;  %v366_v43 = vld [vmem:[%s9784_s20 + $0x58] sm:$0x3]  ;;  %8682 = vmatpush3.bf16.msra.mxu1 %v9034_v28 }
  0xb8   : > { %1653 = vst.msk [vmem:[#allocation2 + $0x30] sm:$0xff] %vm12199_vm8, %v8024_v50  ;;  %1954 = vrot.lane.b32.xlu0 %v9005_v37, %s9282_s26  ;;  %v2239_v0 = vor.u32 %v2238_v51, %v2234_v57  ;;  %v3305_v12 = vshrl.u32 %v3241_v9, 16  ;;  %v8266_v7 = vrot.slane %v3580_v47, 9  ;;  %v3646_v15 = vrot.slane %v3581_v48, 5  ;;  %v4409_v23 = vld [vmem:[#allocation2 + $0x8] sm:$0xff]  ;;  %v9035_v44 = vld [vmem:[%s9421_s22 + $0x60] sm:$0xff]  }
  0xb9   : > { %v2279_v6 = vpop.permute.xlu0 %2278  ;;  %1853 = vst.msk [vmem:[#allocation2 + $0x30] sm:$0xff] %vm12198_vm9, %v9916_v17  ;;  %1204 = vrot.lane.b32.xlu1 %v7960_v10, %s9282_s26  ;;  %v2230_v58 = vrot.slane %v2229_v39, 4  ;;  %v3294_v13 = vrot.slane %v3292_v5, 4  ;;  %v3297_v14 = vrot.slane %v3295_v54, 5  ;;  %v10012_v20 = vrot.slane %v3301_v45, 5  ;;  %4816 = vmatprep.mubr.bf16.mxu0 %v4409_v23  ;;  %v9036_v5 = vld [vmem:[%s12189_s2 + $0xc8] sm:$0xff]  }
  0xba   : > { %557 = vst.msk [vmem:[#allocation5 + $0x20] sm:$0x1] %vm550_vm7, %v8556_v53  ;;  %v2240_v19 = vrot.slane %v2239_v0, 4  ;;  %v3307_v21 = vrot.slane %v3305_v12, 4  ;;  %v2661_v22 = vshrl.u32 %v2609_v63, 16  ;;  %v10019_v24 = vsel %vm9414_vm2, %v8266_v7, %v3646_v15  ;;  %8683 = vmatprep.subr.bf16.mxu1 %v9036_v5 }
  0xbb   : > { %1967 = vst.msk [vmem:[#allocation2 + $0x30] sm:$0xff] %vm12197_vm10, %v9869_v60  ;;  %v2235_v17 = vsel %vm9465_vm5, %v2230_v58, %v2234_v57  ;;  %v3298_v36 = vor.u32 %v3297_v14, %v3294_v13  ;;  %v3648_v26 = vrot.slane %v3646_v15, 4  ;;  %v4408_v60 = vld [vmem:[#allocation2] sm:$0xff]  ;;  %v2664_v33 = vshll.u32 %v2609_v63, 16  ;;  %v8000_v9 = vld [vmem:[%s9421_s22 + $0x28] sm:$0xf] }
  0xbc   : > { %2307 = vst.msk [vmem:[#allocation2 + $0x30] sm:$0xff] %vm12196_vm11, %v2279_v6  ;;  %v2245_v30 = vsel %vm9465_vm5, %v2240_v19, %v2244_v52  ;;  %v3308_v31 = vor.u32 %v3307_v21, %v10012_v20  ;;  %v2663_v34 = vrot.slane %v2661_v22, 4  ;;  %4817 = vmatmul.mubr.bf16.vlgmr.msra.gmra.mrb[0].mxu0 %v4408_v60  ;;  %v2670_v40 = vshll.u32 %v2610_v8, 16  ;;  %v2949_v53 = vld [vmem:[#allocation5 + $0xc] sm:$0xe] }
  0xbd   : > { %v10028_v35 = vpop.permute.xlu0 %1826  ;;  %v8154_v37 = vcombine.low %v2235_v17, %v2245_v30  ;;  %1319 = vrot.lane.b32.xlu1 %v9010_v4, %s9283_s25  ;;  %v10031_v38 = vrot.slane %v3298_v36, 4  ;;  %v2674_v42 = vshrl.u32 %v2610_v8, 16  ;;  %v2666_v61 = vrot.slane %v2664_v33, 5  ;;  %677 = vst.msk [vmem:[#allocation2 + $0x140] sm:$0xff] %vm12199_vm8, %v9035_v44  ;;  %v2950_v12 = vld [vmem:[#allocation5 + $0x10] sm:$0xf] }
  0xbe   : > { %v3309_v56 = vrot.slane %v3308_v31, 4  ;;  %v2680_v2 = vshll.u32 %v2611_v16, 16  ;;  %v1421_v41 = vshrl.u32 %v7999_v27, 16  ;;  %v2672_v3 = vrot.slane %v2670_v40, 5  ;;  %v2951_v6 = vld [vmem:[#allocation5 + $0x14] sm:$0x1] }
  0xbf   : > { %2294 = vrot.lane.b32.xlu0 %v8154_v37, %s9283_s25  ;;  %v3304_v55 = vsel %vm9465_vm5, %v10031_v38, %v10012_v20  ;;  %v2676_v18 = vrot.slane %v2674_v42, 4  ;;  %v1424_v47 = vshll.u32 %v7999_v27, 16  ;;  %v987_v48 = vpop.permute.xlu1 %986  ;;  %v2667_v25 = vor.u32 %v2666_v61, %v2663_v34  ;;  %v4208_v8 = vld [vmem:[#allocation5 + $0x18] sm:$0xe]  ;;  %v4413_v11 = vld [vmem:[#allocation2 + $0x28] sm:$0xff]  ;;  %v370_v37 = vld [vmem:[%s9784_s20 + $0x78] sm:$0xff] }
  0xc0   : > { %v2682_v29 = vrot.slane %v2680_v2, 5  ;;  %v1423_v50 = vrot.slane %v1421_v41, 4  ;;  %1015 = vst.msk [vmem:[#allocation2 + $0x50] sm:$0xff] %vm12198_vm9, %v987_v48  ;;  %v8559_v51 = vpack.c.bf16 %v366_v43, %v366_v43  ;;  %v1430_v63 = vshll.u32 %v8000_v9, 16  ;;  %v4209_v23 = vld [vmem:[#allocation5 + $0x1c] sm:$0xf] }
  0xc1   : > { %v3242_v49 = vld [vmem:[#allocation5 + $0x20] sm:$0x1]  ;;  %v10044_v57 = vpop.permute.xlu0 %1940  ;;  %2568 = vrot.lane.b32.xlu1 %v9013_v32, %s9284_s13  ;;  %v2677_v39 = vor.u32 %v2676_v18, %v2672_v3  ;;  %v1426_v4 = vrot.slane %v1424_v47, 5  ;;  %v2668_v54 = vrot.slane %v2667_v25, 4  ;;  %v1434_v0 = vshrl.u32 %v8000_v9, 16  ;;  %v9018_v25 = vld [vmem:[#allocation5 + $0x24] sm:$0xff]  }
  0xc2   : > { %v3582_v10 = vld [vmem:[#allocation5 + $0x20] sm:$0x1]  ;;  %v3311_v52 = vshll.u32 %v3242_v49, 16  ;;  %v1440_v45 = vshll.u32 %v8001_v46, 16  ;;  %560 = vst.msk [vmem:[#allocation5 + $0x2c] sm:$0x1] %vm550_vm7, %v8559_v51  ;;  %v8563_v49 = vpack.c.bf16 %v370_v37, %v370_v37 }
  0xc3   : > { %v3649_v62 = vrot.slane %v3582_v10, 5  ;;  %v4414_v7 = vld [vmem:[#allocation2 + $0x30] sm:$0xff]  ;;  %v2678_v14 = vrot.slane %v2677_v39, 4  ;;  %v1427_v15 = vor.u32 %v1426_v4, %v1423_v50  ;;  %v1191_v16 = vpop.permute.xlu1 %1190  ;;  %v2673_v20 = vsel %vm9465_vm5, %v2668_v54, %v2672_v3  ;;  %v4211_v17 = vld [vmem:[#allocation5 + $0x24] sm:$0xe] }
  0xc4   : > { %v3313_v58 = vrot.slane %v3311_v52, 5  ;;  %4824 = vmatprep.mubr.bf16.mxu0 %v4414_v7  ;;  %v1432_v21 = vrot.slane %v1430_v63, 5  ;;  %v1436_v22 = vrot.slane %v1434_v0, 4  ;;  %1219 = vst.msk [vmem:[#allocation2 + $0x50] sm:$0xff] %vm12197_vm10, %v1191_v16  ;;  %v1442_v60 = vrot.slane %v1440_v45, 5  ;;  %v9039_v63 = vld [vmem:[%s12189_s2 + $0xd0] sm:$0xff]  }
  0xc5   : > { %v3650_v13 = vsel %vm9414_vm2, %v3648_v26, %v3649_v62  ;;  %v10057_v36 = vpop.permute.xlu0 %2280  ;;  %4825 = vmatmul.mubr.bf16.gmra.mrb[4].mxu0 %v4413_v11  ;;  %v2683_v27 = vsel %vm9465_vm5, %v2678_v14, %v2682_v29  ;;  %v4210_v28 = vld [vmem:[#allocation5 + $0x20] sm:$0x1]  ;;  %v8226_v34 = vrot.slane %v2949_v53, 9  ;;  %v4212_v33 = vld [vmem:[#allocation5 + $0x28] sm:$0xf]  ;;  %v3015_v40 = vrot.slane %v2950_v12, 5 }
  0xc6   : > { %v8276_v19 = vcombine.low %v10019_v24, %v3650_v13  ;;  %v3314_v26 = vsel %vm9465_vm5, %v3309_v56, %v3313_v58  ;;  %v1428_v24 = vrot.slane %v1427_v15, 4  ;;  %v8216_v31 = vcombine.low %v2673_v20, %v2683_v27  ;;  %v9038_v56 = vld [vmem:[%s12189_s2 + $0x88] sm:$0xff]   ;;  %v3244_v52 = vld [vmem:[#allocation5 + $0x28] sm:$0xf]  ;;  %564 = vst.msk [vmem:[#allocation5 + $0x3c] sm:$0xf] %vm547_vm6, %v8563_v49 }
  0xc7   : > { %v8256_v30 = vcombine.low %v3304_v55, %v3314_v26  ;;  %v1437_v32 = vor.u32 %v1436_v22, %v1432_v21  ;;  %v3018_v42 = vrot.slane %v2951_v6, 5  ;;  %v8305_v43 = vrot.slane %v4208_v8, 9  ;;  %v1306_v44 = vpop.permute.xlu1 %1305  ;;  %v3243_v48 = vld [vmem:[#allocation5 + $0x24] sm:$0xf]  ;;  %8684 = vmatpush3.bf16.msra.mxu1 %v9038_v56  ;;  %v8002_v7 = vld [vmem:[%s9421_s22 + $0x30] sm:$0xf] }
  0xc8   : > { %v1433_v38 = vsel %vm9465_vm5, %v1428_v24, %v1432_v21  ;;  %2908 = vrot.lane.b32.xlu1 %v8216_v31, %s9282_s26  ;;  %v4270_v2 = vrot.slane %v4209_v23, 5  ;;  %v4273_v9 = vrot.slane %v4210_v28, 5  ;;  %v8306_v41 = vrot.slane %v4211_v17, 9  ;;  %1334 = vst.msk [vmem:[#allocation2 + $0x50] sm:$0xff] %vm12196_vm11, %v1306_v44  ;;  %v8003_v15 = vld [vmem:[%s9421_s22 + $0x34] sm:$0xf]  ;;  %8685 = vmatprep.subr.bf16.mxu1 %v9039_v63 }
  0xc9   : > { %3539 = vrot.lane.b32.xlu0 %v8256_v30, %s9284_s13  ;;  %v1438_v61 = vrot.slane %v1437_v32, 4  ;;  %v10072_v55 = vpop.permute.xlu0 %1828  ;;  %v3016_v3 = vsel %vm9414_vm2, %v8226_v34, %v3015_v40  ;;  %v3017_v18 = vrot.slane %v3015_v40, 4  ;;  %v4213_v46 = vld [vmem:[#allocation5 + $0x2c] sm:$0x1]  ;;  %v4277_v47 = vrot.slane %v4212_v33, 5  ;;  %v9041_v44 = vld [vmem:[%s12189_s2 + $0xd8] sm:$0xff]  }
  0xca   : > { %v10080_v29 = vsel %vm9414_vm2, %v8305_v43, %v4270_v2  ;;  %v4272_v50 = vrot.slane %v4270_v2, 4  ;;  %v4280_v51 = vrot.slane %v4213_v46, 5  ;;  %v3245_v5 = vld [vmem:[#allocation5 + $0x2c] sm:$0x1]  ;;  %v3316_v12 = vshrl.u32 %v3243_v48, 16  ;;  %v9019_v56 = vld [vmem:[#allocation5 + $0x18] sm:$0xff]  }
  0xcb   : > { %v1443_v10 = vsel %vm9465_vm5, %v1438_v61, %v1442_v60  ;;  %v3019_v39 = vsel %vm9414_vm2, %v3017_v18, %v3018_v42  ;;  %v4278_v4 = vsel %vm9414_vm2, %v8306_v41, %v4277_v47  ;;  %v4279_v53 = vrot.slane %v4277_v47, 4  ;;  %v989_v54 = vpop.permute.xlu1 %988  ;;  %v8004_v16 = vld [vmem:[%s9421_s22 + $0x38] sm:$0x1]  ;;  %v3583_v23 = vld [vmem:[#allocation5 + $0x24] sm:$0xe]  ;;  %v9040_v17 = vld [vmem:[%s12189_s2 + $0x90] sm:$0xff]  }
  0xcc   : > { %v8025_v62 = vcombine.low %v1433_v38, %v1443_v10  ;;  %v8236_v0 = vcombine.low %v3016_v3, %v3019_v39  ;;  %v4274_v45 = vsel %vm9414_vm2, %v4272_v50, %v4273_v9  ;;  %v3319_v6 = vshll.u32 %v3243_v48, 16  ;;  %1016 = vst.msk [vmem:[#allocation2 + $0x78] sm:$0xff] %vm12198_vm9, %v989_v54  ;;  %v3584_v28 = vld [vmem:[#allocation5 + $0x28] sm:$0xf]  ;;  %v2612_v33 = vld [vmem:[#allocation5 + $0x18] sm:$0xf]  ;;  %8686 = vmatpush3.bf16.msra.mxu1 %v9040_v17 }
  0xcd   : > { %3739 = vrot.lane.b32.xlu0 %v8276_v19, %s9282_s26  ;;  %v10095_v8 = vpop.permute.xlu0 %1942  ;;  %v8315_v11 = vcombine.low %v10080_v29, %v4274_v45  ;;  %v4281_v58 = vsel %vm9414_vm2, %v4279_v53, %v4280_v51  ;;  %v3325_v13 = vshll.u32 %v3244_v52, 16  ;;  %v3329_v14 = vshrl.u32 %v3244_v52, 16  ;;  %v3585_v43 = vld [vmem:[#allocation5 + $0x2c] sm:$0x1]  ;;  %v2613_v47 = vld [vmem:[#allocation5 + $0x1c] sm:$0xf]  ;;  %8687 = vmatprep.subr.bf16.mxu1 %v9041_v44 }
  0xce   : > { %1654 = vst.msk [vmem:[#allocation2 + $0x58] sm:$0xff] %vm12199_vm8, %v8025_v62  ;;  %3108 = vrot.lane.b32.xlu1 %v8236_v0, %s9283_s25  ;;  %v8316_v19 = vcombine.low %v4278_v4, %v4281_v58  ;;  %v3318_v20 = vrot.slane %v3316_v12, 4  ;;  %v3321_v21 = vrot.slane %v3319_v6, 5  ;;  %v3335_v22 = vshll.u32 %v3245_v5, 16  ;;  %v9042_v49 = vld [vmem:[%s12189_s2 + $0x98] sm:$0xff]   ;;  %v9045_v17 = vld [vmem:[%s12189_s2 + $0x100] sm:$0xff]  }
  0xcf   : > { %1854 = vst.msk [vmem:[#allocation2 + $0x58] sm:$0xff] %vm12198_vm9, %v10028_v35  ;;  %v3327_v26 = vrot.slane %v3325_v13, 5  ;;  %v3331_v27 = vrot.slane %v3329_v14, 4  ;;  %v1445_v24 = vshrl.u32 %v8002_v7, 16  ;;  %v1448_v60 = vshll.u32 %v8002_v7, 16  ;;  %v1193_v35 = vpop.permute.xlu1 %1192  ;;  %v4418_v54 = vld [vmem:[#allocation2 + $0x50] sm:$0xff]  ;;  %8845 = vmatprep.subr.bf16.mxu0 %v9045_v17 }
  0xd0   : > { %1968 = vst.msk [vmem:[#allocation2 + $0x58] sm:$0xff] %vm12197_vm10, %v10044_v57  ;;  %v3322_v30 = vor.u32 %v3321_v21, %v3318_v20  ;;  %v3337_v31 = vrot.slane %v3335_v22, 5  ;;  %v1454_v32 = vshll.u32 %v8003_v15, 16  ;;  %v1458_v34 = vshrl.u32 %v8003_v15, 16  ;;  %1220 = vst.msk [vmem:[#allocation2 + $0x78] sm:$0xff] %vm12197_vm10, %v1193_v35  ;;  %8688 = vmatpush3.bf16.msra.mxu1 %v9042_v49  ;;  %v9044_v13 = vld [vmem:[#allocation5 + $0xc] sm:$0xff]   ;;  %8846 = vmatpush3.bf16.msra.mxu0 %v9045_v17 }
  0xd1   : > { %3850 = vrot.lane.b32.xlu0 %v9018_v25, %s9283_s25  ;;  %2308 = vst.msk [vmem:[#allocation2 + $0x58] sm:$0xff] %vm12196_vm11, %v10057_v36  ;;  %v10115_v37 = vpop.permute.xlu0 %2282  ;;  %v3332_v57 = vor.u32 %v3331_v27, %v3327_v26  ;;  %v1447_v38 = vrot.slane %v1445_v24, 4  ;;  %v1450_v40 = vrot.slane %v1448_v60, 5  ;;  %v1464_v42 = vshll.u32 %v8004_v16, 16  ;;  %v2614_v50 = vld [vmem:[#allocation5 + $0x20] sm:$0x1] }
  0xd2   : > { %4370 = vrot.lane.b32.xlu1 %v8316_v19, %s9284_s13  ;;  %v3323_v36 = vrot.slane %v3322_v30, 4  ;;  %v1456_v61 = vrot.slane %v1454_v32, 5  ;;  %v1460_v2 = vrot.slane %v1458_v34, 4  ;;  %v8267_v9 = vrot.slane %v3583_v23, 9  ;;  %v10127_v52 = vld [vmem:[#allocation5 + $0x18] sm:$0xe] }
  0xd3   : > { %v3333_v41 = vrot.slane %v3332_v57, 4  ;;  %v1451_v3 = vor.u32 %v1450_v40, %v1447_v38  ;;  %v1466_v18 = vrot.slane %v1464_v42, 5  ;;  %v3653_v46 = vrot.slane %v3584_v28, 5  ;;  %v1308_v48 = vpop.permute.xlu1 %1307  ;;  %v2953_v63 = vld [vmem:[#allocation5 + $0x1c] sm:$0xf]  ;;  %3227 = vst.msk [vmem:[#allocation2 + $0x18] sm:$0xff] %vm12199_vm8, %v9044_v13 }
  0xd4   : > { %v3328_v10 = vsel %vm9465_vm5, %v3323_v36, %v3327_v26  ;;  %v1461_v25 = vor.u32 %v1460_v2, %v1456_v61  ;;  %v3656_v29 = vrot.slane %v3585_v43, 5  ;;  %v2685_v51 = vshrl.u32 %v2612_v33, 16  ;;  %1335 = vst.msk [vmem:[#allocation2 + $0x78] sm:$0xff] %vm12196_vm11, %v1308_v48  ;;  %v10136_v0 = vld [vmem:[#allocation5 + $0x20] sm:$0x1]  ;;  %v371_v22 = vld [vmem:[%s9784_s20 + $0x80] sm:$0xff] }
  0xd5   : > { %4368 = vrot.lane.b32.xlu0 %v8315_v11, %s9284_s13  ;;  %v10130_v62 = vpop.permute.xlu0 %1830  ;;  %v3338_v39 = vsel %vm9465_vm5, %v3333_v41, %v3337_v31  ;;  %v1452_v4 = vrot.slane %v1451_v3, 4  ;;  %v3654_v53 = vsel %vm9414_vm2, %v8267_v9, %v3653_v46  ;;  %v3655_v5 = vrot.slane %v3653_v46, 4  ;;  %v369_v11 = vld [vmem:[%s9784_s20 + $0x70] sm:$0x3]  ;;  %v4214_v58 = vld [vmem:[#allocation5 + $0x30] sm:$0xe] }
  0xd6   : > { %v8257_v45 = vcombine.low %v3328_v10, %v3338_v39  ;;  %2570 = vrot.lane.b32.xlu1 %v9019_v56, %s9284_s13  ;;  %v1462_v12 = vrot.slane %v1461_v25, 4  ;;  %v2687_v6 = vrot.slane %v2685_v51, 4  ;;  %v2688_v7 = vshll.u32 %v2612_v33, 16  ;;  %v4215_v21 = vld [vmem:[#allocation5 + $0x34] sm:$0xf]  ;;  %v9046_v33 = vld [vmem:[%s12189_s2 + $0xe0] sm:$0xff]  }
  0xd7   : > { %v1457_v14 = vsel %vm9465_vm5, %v1452_v4, %v1456_v61  ;;  %v3657_v15 = vsel %vm9414_vm2, %v3655_v5, %v3656_v29  ;;  %v2694_v16 = vshll.u32 %v2613_v47, 16  ;;  %v2698_v19 = vshrl.u32 %v2613_v47, 16  ;;  %v991_v23 = vpop.permute.xlu1 %990  ;;  %v372_v28 = vld [vmem:[%s9784_s20 + $0x88] sm:$0x3]  ;;  %v10161_v43 = vld [vmem:[#allocation5 + $0x3c] sm:$0xe]  ;;  %8689 = vmatprep.subr.bf16.mxu1 %v9046_v33 }
  0xd8   : > { %v4419_v20 = vld [vmem:[#allocation2 + $0x58] sm:$0xff]  ;;  %v1467_v26 = vsel %vm9465_vm5, %v1462_v12, %v1466_v18  ;;  %v8277_v27 = vcombine.low %v3654_v53, %v3657_v15  ;;  %v2690_v24 = vrot.slane %v2688_v7, 5  ;;  %v2704_v60 = vshll.u32 %v2614_v50, 16  ;;  %1017 = vst.msk [vmem:[#allocation2 + $0xa0] sm:$0xff] %vm12198_vm9, %v991_v23  ;;  %v9047_v44 = vld [vmem:[%s12189_s2 + $0xa0] sm:$0xff]   ;;  %v9048_v3 = vld [vmem:[%s12189_s2 + $0xe8] sm:$0xff]  }
  0xd9   : > { %3541 = vrot.lane.b32.xlu0 %v8257_v45, %s9284_s13  ;;  %4832 = vmatprep.mubr.bf16.mxu0 %v4419_v20  ;;  %v10153_v35 = vpop.permute.xlu0 %1944  ;;  %v8026_v30 = vcombine.low %v1457_v14, %v1467_v26  ;;  %v2696_v31 = vrot.slane %v2694_v16, 5  ;;  %v2700_v32 = vrot.slane %v2698_v19, 4  ;;  %v8227_v34 = vrot.slane %v10127_v52, 9  ;;  %v8005_v9 = vld [vmem:[%s9421_s22 + $0x3c] sm:$0xf]  ;;  %v9050_v15 = vld [vmem:[%s12189_s2 + $0xa8] sm:$0xff]  }
  0xda   : > { %4833 = vmatmul.mubr.bf16.gmra.mrb[8].mxu0 %v4418_v54  ;;  %v2691_v57 = vor.u32 %v2690_v24, %v2687_v6  ;;  %v2706_v38 = vrot.slane %v2704_v60, 5  ;;  %v3022_v40 = vrot.slane %v2953_v63, 5  ;;  %v3025_v42 = vrot.slane %v10136_v0, 5  ;;  %v9021_v46 = vld [vmem:[#allocation5 + $0x30] sm:$0xff]   ;;  %v8006_v10 = vld [vmem:[%s9421_s22 + $0x40] sm:$0xf]  ;;  %8690 = vmatpush3.bf16.msra.mxu1 %v9047_v44 }
  0xdb   : > { %1655 = vst.msk [vmem:[#allocation2 + $0x80] sm:$0xff] %vm12199_vm8, %v8026_v30  ;;  %v2701_v36 = vor.u32 %v2700_v32, %v2696_v31  ;;  %v8562_v56 = vpack.c.bf16 %v369_v11, %v369_v11  ;;  %v8307_v61 = vrot.slane %v4214_v58, 9  ;;  %v4284_v2 = vrot.slane %v4215_v21, 5  ;;  %v1195_v41 = vpop.permute.xlu1 %1194  ;;  %v8007_v52 = vld [vmem:[%s9421_s22 + $0x44] sm:$0x1]  ;;  %8691 = vmatprep.subr.bf16.mxu1 %v9048_v3  ;;  %v374_v23 = vld [vmem:[%s9784_s20 + $0x98] sm:$0xff] }
  0xdc   : > { %1855 = vst.msk [vmem:[#allocation2 + $0x80] sm:$0xff] %vm12198_vm9, %v10072_v55  ;;  %v2692_v18 = vrot.slane %v2691_v57, 4  ;;  %v10176_v47 = vsel %vm9414_vm2, %v8227_v34, %v3022_v40  ;;  %v3024_v48 = vrot.slane %v3022_v40, 4  ;;  %v8564_v49 = vpack.c.bf16 %v371_v22, %v371_v22  ;;  %v3246_v5 = vld [vmem:[#allocation5 + $0x30] sm:$0xf]  ;;  %v373_v22 = vld [vmem:[%s9784_s20 + $0x90] sm:$0xff] }
  0xdd   : > { %3741 = vrot.lane.b32.xlu0 %v8277_v27, %s9282_s26  ;;  %1221 = vst.msk [vmem:[#allocation2 + $0xa0] sm:$0xff] %vm12197_vm10, %v1195_v41  ;;  %v10180_v25 = vpop.permute.xlu0 %2284  ;;  %v2702_v29 = vrot.slane %v2701_v36, 4  ;;  %1969 = vst.msk [vmem:[#allocation2 + $0x80] sm:$0xff] %vm12197_vm10, %v10095_v8  ;;  %v10187_v55 = vsel %vm9414_vm2, %v8307_v61, %v4284_v2  ;;  %v10189_v50 = vrot.slane %v4284_v2, 4  ;;  %v8565_v51 = vpack.c.bf16 %v372_v28, %v372_v28  ;;  %v3247_v12 = vld [vmem:[#allocation5 + $0x34] sm:$0xf] }
  0xde   : > { %563 = vst.msk [vmem:[#allocation5 + $0x38] sm:$0x1] %vm550_vm7, %v8562_v56  ;;  %v2697_v39 = vsel %vm9465_vm5, %v2692_v18, %v2696_v31  ;;  %v3026_v4 = vsel %vm9414_vm2, %v3024_v48, %v3025_v42  ;;  %v8308_v8 = vrot.slane %v10161_v43, 9  ;;  %v1469_v53 = vshrl.u32 %v8005_v9, 16  ;;  %v10205_v13 = vld [vmem:[#allocation5 + $0x30] sm:$0xe]  ;;  %8692 = vmatpush3.bf16.msra.mxu1 %v9050_v15 }
  0xdf   : > { %2309 = vst.msk [vmem:[#allocation2 + $0x80] sm:$0xff] %vm12196_vm11, %v10115_v37  ;;  %v2707_v54 = vsel %vm9465_vm5, %v2702_v29, %v2706_v38  ;;  %v8237_v63 = vcombine.low %v10176_v47, %v3026_v4  ;;  %v1472_v0 = vshll.u32 %v8005_v9, 16  ;;  %v1478_v45 = vshll.u32 %v8006_v10, 16  ;;  %v1310_v6 = vpop.permute.xlu1 %1309  ;;  %v4423_v60 = vld [vmem:[#allocation2 + $0x78] sm:$0xff]  ;;  %v9051_v33 = vld [vmem:[%s12189_s2 + $0xf0] sm:$0xff]  }
  0xe0   : > { %565 = vst.msk [vmem:[#allocation5 + $0x40] sm:$0xf] %vm547_vm6, %v8564_v49  ;;  %v8217_v37 = vcombine.low %v2697_v39, %v2707_v54  ;;  %v1471_v7 = vrot.slane %v1469_v53, 4  ;;  %v1482_v11 = vshrl.u32 %v8006_v10, 16  ;;  %v1488_v58 = vshll.u32 %v8007_v52, 16  ;;  %8693 = vmatprep.subr.bf16.mxu1 %v9051_v33 }
  0xe1   : > { %566 = vst.msk [vmem:[#allocation5 + $0x44] sm:$0x1] %vm550_vm7, %v8565_v51  ;;  %3852 = vrot.lane.b32.xlu0 %v9021_v46, %s9283_s25  ;;  %v10208_v14 = vpop.permute.xlu0 %1832  ;;  %v1474_v16 = vrot.slane %v1472_v0, 5  ;;  %v1480_v19 = vrot.slane %v1478_v45, 5  ;;  %v3340_v20 = vshrl.u32 %v3246_v5, 16  ;;  %v3343_v21 = vshll.u32 %v3246_v5, 16 }
  0xe2   : > { %1336 = vst.msk [vmem:[#allocation2 + $0xa0] sm:$0xff] %vm12196_vm11, %v1310_v6  ;;  %2910 = vrot.lane.b32.xlu1 %v8217_v37, %s9282_s26  ;;  %v1484_v17 = vrot.slane %v1482_v11, 4  ;;  %v1490_v26 = vrot.slane %v1488_v58, 5  ;;  %v3349_v27 = vshll.u32 %v3247_v12, 16  ;;  %v3353_v24 = vshrl.u32 %v3247_v12, 16 }
  0xe3   : > { %v1475_v28 = vor.u32 %v1474_v16, %v1471_v7  ;;  %v3342_v30 = vrot.slane %v3340_v20, 4  ;;  %v3345_v31 = vrot.slane %v3343_v21, 5  ;;  %v8268_v32 = vrot.slane %v10205_v13, 9  ;;  %v993_v34 = vpop.permute.xlu1 %992  ;;  %v3587_v46 = vld [vmem:[#allocation5 + $0x34] sm:$0xf]  ;;  %v9052_v20 = vld [vmem:[%s12189_s2 + $0xb0] sm:$0xff]  }
  0xe4   : > { %v1485_v38 = vor.u32 %v1484_v17, %v1480_v19  ;;  %v3351_v42 = vrot.slane %v3349_v27, 5  ;;  %v3355_v44 = vrot.slane %v3353_v24, 4  ;;  %1018 = vst.msk [vmem:[#allocation2 + $0xc8] sm:$0xff] %vm12198_vm9, %v993_v34  ;;  %v8566_v56 = vpack.c.bf16 %v373_v22, %v373_v22  ;;  %v2615_v29 = vld [vmem:[#allocation5 + $0x24] sm:$0xf]  ;;  %8694 = vmatpush3.bf16.msra.mxu1 %v9052_v20 }
  0xe5   : > { %v4216_v57 = vld [vmem:[#allocation5 + $0x38] sm:$0x1]  ;;  %v10221_v36 = vpop.permute.xlu0 %1946  ;;  %v1476_v9 = vrot.slane %v1475_v28, 4  ;;  %v3346_v41 = vor.u32 %v3345_v31, %v3342_v30  ;;  %v8567_v51 = vpack.c.bf16 %v374_v23, %v374_v23  ;;  %v2617_v6 = vld [vmem:[#allocation5 + $0x2c] sm:$0x1]  ;;  %v3660_v15 = vrot.slane %v3587_v46, 5 }
  0xe6   : > { %v3248_v40 = vld [vmem:[#allocation5 + $0x38] sm:$0x1]  ;;  %v4287_v61 = vrot.slane %v4216_v57, 5  ;;  %3110 = vrot.lane.b32.xlu1 %v8237_v63, %s9283_s25  ;;  %v1486_v49 = vrot.slane %v1485_v38, 4  ;;  %v3356_v10 = vor.u32 %v3355_v44, %v3351_v42  ;;  %567 = vst.msk [vmem:[#allocation5 + $0x48] sm:$0xf] %vm547_vm6, %v8566_v56 }
  0xe7   : > { %v4218_v2 = vld [vmem:[#allocation5 + $0x40] sm:$0xf]  ;;  %v3359_v3 = vshll.u32 %v3248_v40, 16  ;;  %v4424_v18 = vld [vmem:[#allocation2 + $0x80] sm:$0xff]  ;;  %v1481_v4 = vsel %vm9465_vm5, %v1476_v9, %v1480_v19  ;;  %v3347_v53 = vrot.slane %v3346_v41, 4  ;;  %v1197_v54 = vpop.permute.xlu1 %1196  ;;  %v2709_v19 = vshrl.u32 %v2615_v29, 16 }
  0xe8   : > { %v4219_v47 = vld [vmem:[#allocation5 + $0x44] sm:$0x1]  ;;  %v4291_v48 = vrot.slane %v4218_v2, 5  ;;  %4840 = vmatprep.mubr.bf16.mxu0 %v4424_v18  ;;  %v4288_v52 = vsel %vm9414_vm2, %v10189_v50, %v4287_v61  ;;  %v3588_v5 = vld [vmem:[#allocation5 + $0x38] sm:$0x1]  ;;  %v1491_v12 = vsel %vm9465_vm5, %v1486_v49, %v1490_v26  ;;  %1222 = vst.msk [vmem:[#allocation2 + $0xc8] sm:$0xff] %vm12197_vm10, %v1197_v54  ;;  %v3661_v30 = vsel %vm9414_vm2, %v8268_v32, %v3660_v15 }
  0xe9   : > { %v4294_v39 = vrot.slane %v4219_v47, 5  ;;  %4841 = vmatmul.mubr.bf16.gmra.mrb[12].mxu0 %v4423_v60  ;;  %v8317_v63 = vcombine.low %v10187_v55, %v4288_v52  ;;  %v2616_v50 = vld [vmem:[#allocation5 + $0x28] sm:$0xf]  ;;  %v10238_v37 = vpop.permute.xlu0 %2286  ;;  %568 = vst.msk [vmem:[#allocation5 + $0x4c] sm:$0xf] %vm547_vm6, %v8567_v51  ;;  %v8027_v7 = vcombine.low %v1481_v4, %v1491_v12  ;;  %v3352_v55 = vsel %vm9465_vm5, %v3347_v53, %v3351_v42  ;;  %v9024_v52 = vld [vmem:[#allocation5 + $0x3c] sm:$0xff]  }
  0xea   : > { %v4292_v0 = vsel %vm9414_vm2, %v8308_v8, %v4291_v48  ;;  %v4293_v45 = vrot.slane %v4291_v48, 4  ;;  %v3357_v43 = vrot.slane %v3356_v10, 4  ;;  %v3361_v11 = vrot.slane %v3359_v3, 5  ;;  %v2955_v58 = vld [vmem:[#allocation5 + $0x24] sm:$0xe]  ;;  %v9055_v12 = vld [vmem:[%s12189_s2 + $0xf8] sm:$0xff]  }
  0xeb   : > { %4372 = vrot.lane.b32.xlu0 %v8317_v63, %s9284_s13  ;;  %v3663_v16 = vrot.slane %v3588_v5, 5  ;;  %1656 = vst.msk [vmem:[#allocation2 + $0xa8] sm:$0xff] %vm12199_vm8, %v8027_v7  ;;  %v2712_v23 = vshll.u32 %v2615_v29, 16  ;;  %v2718_v17 = vshll.u32 %v2616_v50, 16  ;;  %v2956_v26 = vld [vmem:[#allocation5 + $0x28] sm:$0xf]  ;;  %v1312_v24 = vpop.permute.xlu1 %1311  ;;  %8695 = vmatprep.subr.bf16.mxu1 %v9055_v12 }
  0xec   : > { %v4295_v8 = vsel %vm9414_vm2, %v4293_v45, %v4294_v39  ;;  %v3362_v22 = vsel %vm9465_vm5, %v3357_v43, %v3361_v11  ;;  %v2957_v27 = vld [vmem:[#allocation5 + $0x2c] sm:$0x1]  ;;  %1856 = vst.msk [vmem:[#allocation2 + $0xa8] sm:$0xff] %vm12198_vm9, %v10130_v62  ;;  %v9023_v28 = vld [vmem:[#allocation5 + $0x24] sm:$0xff]   ;;  %v3662_v31 = vrot.slane %v3660_v15, 4  ;;  %v2711_v34 = vrot.slane %v2709_v19, 4 }
  0xed   : > { %v8318_v21 = vcombine.low %v4292_v0, %v4295_v8  ;;  %v8258_v60 = vcombine.low %v3352_v55, %v3362_v22  ;;  %v8008_v33 = vld [vmem:[%s9421_s22 + $0x48] sm:$0xf]  ;;  %1337 = vst.msk [vmem:[#allocation2 + $0xc8] sm:$0xff] %vm12196_vm11, %v1312_v24  ;;  %v10260_v57 = vpop.permute.xlu0 %1834  ;;  %v2714_v62 = vrot.slane %v2712_v23, 5  ;;  %v2720_v13 = vrot.slane %v2718_v17, 5  ;;  %v9054_v9 = vld [vmem:[%s9421_s22 + $0x6c] sm:$0xff]  }
  0xee   : > { %1970 = vst.msk [vmem:[#allocation2 + $0xa8] sm:$0xff] %vm12197_vm10, %v10153_v35  ;;  %v2722_v38 = vshrl.u32 %v2616_v50, 16  ;;  %v2728_v40 = vshll.u32 %v2617_v6, 16  ;;  %v8009_v32 = vld [vmem:[%s9421_s22 + $0x4c] sm:$0xf]  ;;  %v3664_v42 = vsel %vm9414_vm2, %v3662_v31, %v3663_v16  ;;  %v8228_v44 = vrot.slane %v2955_v58, 9 }
  0xef   : > { %4374 = vrot.lane.b32.xlu1 %v8318_v21, %s9284_s13  ;;  %3543 = vrot.lane.b32.xlu0 %v8258_v60, %s9284_s13  ;;  %2310 = vst.msk [vmem:[#allocation2 + $0xa8] sm:$0xff] %vm12196_vm11, %v10180_v25  ;;  %v3029_v56 = vrot.slane %v2956_v26, 5  ;;  %v3032_v61 = vrot.slane %v2957_v27, 5  ;;  %v8010_v2 = vld [vmem:[%s9421_s22 + $0x50] sm:$0x1]  ;;  %v8278_v41 = vcombine.low %v3661_v30, %v3664_v42  ;;  %v2715_v35 = vor.u32 %v2714_v62, %v2711_v34  ;;  %v995_v46 = vpop.permute.xlu1 %994  ;;  %v4428_v21 = vld [vmem:[#allocation2 + $0xa0] sm:$0xff] }
  0xf0   : > { %v2724_v3 = vrot.slane %v2722_v38, 4  ;;  %v2730_v18 = vrot.slane %v2728_v40, 5  ;;  %v1493_v49 = vshrl.u32 %v8008_v33, 16  ;;  %v1496_v10 = vshll.u32 %v8008_v33, 16  ;;  %1019 = vst.msk [vmem:[#allocation2 + $0xf0] sm:$0xff] %vm12198_vm9, %v995_v46 }
  0xf1   : > { %v10275_v47 = vsel %vm9414_vm2, %v8228_v44, %v3029_v56  ;;  %v3031_v48 = vrot.slane %v3029_v56, 4  ;;  %v10278_v25 = vpop.permute.xlu0 %1948  ;;  %678 = vst.msk [vmem:[#allocation2 + $0x168] sm:$0xff] %vm12199_vm8, %v9054_v9  ;;  %v2716_v29 = vrot.slane %v2715_v35, 4  ;;  %v1502_v39 = vshll.u32 %v8009_v32, 16  ;;  %v3249_v53 = vld [vmem:[#allocation5 + $0x3c] sm:$0xf] }
  0xf2   : > { %v2725_v51 = vor.u32 %v2724_v3, %v2720_v13  ;;  %v1506_v4 = vshrl.u32 %v8009_v32, 16  ;;  %v1495_v54 = vrot.slane %v1493_v49, 4  ;;  %v1498_v63 = vrot.slane %v1496_v10, 5  ;;  %v3250_v45 = vld [vmem:[#allocation5 + $0x40] sm:$0xf]  ;;  %v9056_v9 = vld [vmem:[%s12189_s2 + $0xb8] sm:$0xff]  }
  0xf3   : > { %2572 = vrot.lane.b32.xlu1 %v9023_v28, %s9284_s13  ;;  %3743 = vrot.lane.b32.xlu0 %v8278_v41, %s9282_s26  ;;  %v10285_v5 = vsel %vm9414_vm2, %v3031_v48, %v3032_v61  ;;  %v1512_v0 = vshll.u32 %v8010_v2, 16  ;;  %v2721_v50 = vsel %vm9465_vm5, %v2716_v29, %v2720_v13  ;;  %v1504_v55 = vrot.slane %v1502_v39, 5  ;;  %v3251_v43 = vld [vmem:[#allocation5 + $0x44] sm:$0x1]  ;;  %v3589_v11 = vld [vmem:[#allocation5 + $0x3c] sm:$0xe]  ;;  %v1199_v58 = vpop.permute.xlu1 %1198 }
  0xf4   : > { %v2726_v6 = vrot.slane %v2725_v51, 4  ;;  %v8238_v7 = vcombine.low %v10275_v47, %v10285_v5  ;;  %v1499_v8 = vor.u32 %v1498_v63, %v1495_v54  ;;  %v1508_v15 = vrot.slane %v1506_v4, 4  ;;  %v3590_v20 = vld [vmem:[#allocation5 + $0x40] sm:$0xf]  ;;  %1223 = vst.msk [vmem:[#allocation2 + $0xf0] sm:$0xff] %vm12197_vm10, %v1199_v58  ;;  %8696 = vmatpush3.bf16.msra.mxu1 %v9056_v9  ;;  %v9026_v63 = vld [vmem:[#allocation5 + $0x30] sm:$0xff]  }
  0xf5   : > { %v1514_v16 = vrot.slane %v1512_v0, 5  ;;  %v3364_v19 = vshrl.u32 %v3249_v53, 16  ;;  %v10295_v22 = vpop.permute.xlu0 %2288  ;;  %v3367_v17 = vshll.u32 %v3249_v53, 16  ;;  %v3373_v26 = vshll.u32 %v3250_v45, 16  ;;  %v3591_v34 = vld [vmem:[#allocation5 + $0x44] sm:$0x1] }
  0xf6   : > { %v2731_v23 = vsel %vm9465_vm5, %v2726_v6, %v2730_v18  ;;  %v3377_v27 = vshrl.u32 %v3250_v45, 16  ;;  %v4429_v24 = vld [vmem:[#allocation2 + $0xa8] sm:$0xff]  ;;  %v1500_v28 = vrot.slane %v1499_v8, 4  ;;  %v1509_v30 = vor.u32 %v1508_v15, %v1504_v55  ;;  %v2618_v40 = vld [vmem:[#allocation5 + $0x30] sm:$0xf] }
  0xf7   : > { %v8218_v60 = vcombine.low %v2721_v50, %v2731_v23  ;;  %3854 = vrot.lane.b32.xlu0 %v9024_v52, %s9283_s25  ;;  %v3366_v31 = vrot.slane %v3364_v19, 4  ;;  %4848 = vmatprep.mubr.bf16.mxu0 %v4429_v24  ;;  %v3369_v33 = vrot.slane %v3367_v17, 5  ;;  %v3375_v62 = vrot.slane %v3373_v26, 5  ;;  %v1314_v32 = vpop.permute.xlu1 %1313  ;;  %v2619_v46 = vld [vmem:[#allocation5 + $0x34] sm:$0xf]  ;;  %v9058_v15 = vld [vmem:[%s12189_s2 + $0x108] sm:$0xff]  }
  0xf8   : > { %v3379_v13 = vrot.slane %v3377_v27, 4  ;;  %v3383_v38 = vshll.u32 %v3251_v43, 16  ;;  %4849 = vmatmul.mubr.bf16.gmra.mrb[16].mxu0 %v4428_v21  ;;  %v1505_v42 = vsel %vm9465_vm5, %v1500_v28, %v1504_v55  ;;  %v1510_v44 = vrot.slane %v1509_v30, 4  ;;  %1338 = vst.msk [vmem:[#allocation2 + $0xf0] sm:$0xff] %vm12196_vm11, %v1314_v32  ;;  %v2620_v47 = vld [vmem:[#allocation5 + $0x38] sm:$0x1]  ;;  %8847 = vmatprep.subr.bf16.mxu0 %v9058_v15 }
  0xf9   : > { %2912 = vrot.lane.b32.xlu1 %v8218_v60, %s9282_s26  ;;  %v8269_v56 = vrot.slane %v3589_v11, 9  ;;  %v3667_v61 = vrot.slane %v3590_v20, 5  ;;  %v10304_v2 = vpop.permute.xlu0 %1836  ;;  %v3370_v41 = vor.u32 %v3369_v33, %v3366_v31  ;;  %v3670_v18 = vrot.slane %v3591_v34, 5  ;;  %v2958_v51 = vld [vmem:[#allocation5 + $0x30] sm:$0xe]  ;;  %8848 = vmatpush3.bf16.msra.mxu0 %v9058_v15 }
  0xfa   : > { %v3380_v35 = vor.u32 %v3379_v13, %v3375_v62  ;;  %v3385_v3 = vrot.slane %v3383_v38, 5  ;;  %v1515_v48 = vsel %vm9465_vm5, %v1510_v44, %v1514_v16  ;;  %v2733_v29 = vshrl.u32 %v2618_v40, 16  ;;  %v2959_v52 = vld [vmem:[#allocation5 + $0x34] sm:$0xf]  ;;  %v2960_v6 = vld [vmem:[#allocation5 + $0x38] sm:$0x1] }
  0xfb   : > { %v10313_v49 = vsel %vm9414_vm2, %v8269_v56, %v3667_v61  ;;  %v3669_v10 = vrot.slane %v3667_v61, 4  ;;  %v8028_v39 = vcombine.low %v1505_v42, %v1515_v48  ;;  %v3371_v4 = vrot.slane %v3370_v41, 4  ;;  %v997_v54 = vpop.permute.xlu1 %996  ;;  %v8011_v8 = vld [vmem:[%s9421_s22 + $0x54] sm:$0xf]  ;;  %v8012_v23 = vld [vmem:[%s9421_s22 + $0x58] sm:$0xf] }
  0xfc   : > { %v3381_v53 = vrot.slane %v3380_v35, 4  ;;  %v2736_v5 = vshll.u32 %v2618_v40, 16  ;;  %v2735_v45 = vrot.slane %v2733_v29, 4  ;;  %v2742_v12 = vshll.u32 %v2619_v46, 16  ;;  %1020 = vst.msk [vmem:[#allocation2 + $0x118] sm:$0xff] %vm12198_vm9, %v997_v54  ;;  %v376_v42 = vld [vmem:[%s9784_s20 + $0xa8] sm:$0xff] }
  0xfd   : > { %3112 = vrot.lane.b32.xlu1 %v8238_v7, %s9283_s25  ;;  %v3671_v0 = vsel %vm9414_vm2, %v3669_v10, %v3670_v18  ;;  %v2746_v50 = vshrl.u32 %v2619_v46, 16  ;;  %v10319_v55 = vpop.permute.xlu0 %1950  ;;  %1657 = vst.msk [vmem:[#allocation2 + $0xd0] sm:$0xff] %vm12199_vm8, %v8028_v39  ;;  %v3376_v43 = vsel %vm9465_vm5, %v3371_v4, %v3375_v62  ;;  %v2752_v21 = vshll.u32 %v2620_v47, 16  ;;  %v8013_v60 = vld [vmem:[%s9421_s22 + $0x5c] sm:$0x1]  ;;  %v9059_v44 = vld [vmem:[#allocation5 + $0x18] sm:$0xff]  }
  0xfe   : > { %v3386_v7 = vsel %vm9465_vm5, %v3381_v53, %v3385_v3  ;;  %v8279_v11 = vcombine.low %v10313_v49, %v3671_v0  ;;  %v2738_v58 = vrot.slane %v2736_v5, 5  ;;  %1857 = vst.msk [vmem:[#allocation2 + $0xd0] sm:$0xff] %vm12198_vm9, %v10208_v14  ;;  %v2744_v19 = vrot.slane %v2742_v12, 5  ;;  %v4220_v33 = vld [vmem:[#allocation5 + $0x48] sm:$0xe]  ;;  %v4433_v5 = vld [vmem:[#allocation2 + $0xc8] sm:$0xff] }
  0xff   : > { %v8259_v16 = vcombine.low %v3376_v43, %v3386_v7  ;;  %v2748_v20 = vrot.slane %v2746_v50, 4  ;;  %1971 = vst.msk [vmem:[#allocation2 + $0xd0] sm:$0xff] %vm12197_vm10, %v10221_v36  ;;  %v8229_v26 = vrot.slane %v2958_v51, 9  ;;  %v3036_v27 = vrot.slane %v2959_v52, 5  ;;  %v1201_v28 = vpop.permute.xlu1 %1200  ;;  %v375_v36 = vld [vmem:[%s9784_s20 + $0xa0] sm:$0x3] }
 0x100   : > { %v2739_v17 = vor.u32 %v2738_v58, %v2735_v45  ;;  %v3039_v24 = vrot.slane %v2960_v6, 5  ;;  %v2754_v30 = vrot.slane %v2752_v21, 5  ;;  %2311 = vst.msk [vmem:[#allocation2 + $0xd0] sm:$0xff] %vm12196_vm11, %v10238_v37  ;;  %v1517_v31 = vshrl.u32 %v8011_v8, 16  ;;  %v4221_v32 = vld [vmem:[#allocation5 + $0x4c] sm:$0xf] }
 0x101   : > { %3545 = vrot.lane.b32.xlu0 %v8259_v16, %s9284_s13  ;;  %2574 = vrot.lane.b32.xlu1 %v9026_v63, %s9284_s13  ;;  %v2749_v14 = vor.u32 %v2748_v20, %v2744_v19  ;;  %v1520_v34 = vshll.u32 %v8011_v8, 16  ;;  %1224 = vst.msk [vmem:[#allocation2 + $0x118] sm:$0xff] %vm12197_vm10, %v1201_v28  ;;  %v10345_v13 = vsel %vm9414_vm2, %v8229_v26, %v3036_v27  ;;  %v3038_v38 = vrot.slane %v3036_v27, 4  ;;  %v9027_v56 = vld [vmem:[#allocation5 + $0x48] sm:$0xff]   ;;  %v378_v3 = vld [vmem:[%s9784_s20 + $0xb8] sm:$0x3]  ;;  %v10350_v18 = vpop.permute.xlu0 %2290 }
 0x102   : > { %v2740_v62 = vrot.slane %v2739_v17, 4  ;;  %v1526_v40 = vshll.u32 %v8012_v23, 16  ;;  %v1519_v61 = vrot.slane %v1517_v31, 4  ;;  %v1530_v41 = vshrl.u32 %v8012_v23, 16  ;;  %v377_v35 = vld [vmem:[%s9784_s20 + $0xb0] sm:$0xff]  ;;  %3228 = vst.msk [vmem:[#allocation2 + $0x40] sm:$0xff] %vm12199_vm8, %v9059_v44 }
 0x103   : > { %v2750_v37 = vrot.slane %v2749_v14, 4  ;;  %v1522_v9 = vrot.slane %v1520_v34, 5  ;;  %v3040_v47 = vsel %vm9414_vm2, %v3038_v38, %v3039_v24  ;;  %v1536_v49 = vshll.u32 %v8013_v60, 16  ;;  %v1316_v10 = vpop.permute.xlu1 %1315  ;;  %v3252_v4 = vld [vmem:[#allocation5 + $0x48] sm:$0xf] }
 0x104   : > { %v2745_v46 = vsel %vm9465_vm5, %v2740_v62, %v2744_v19  ;;  %v1528_v48 = vrot.slane %v1526_v40, 5  ;;  %v8239_v51 = vcombine.low %v10345_v13, %v3040_v47  ;;  %v1532_v39 = vrot.slane %v1530_v41, 4  ;;  %v3253_v53 = vld [vmem:[#allocation5 + $0x4c] sm:$0xf]  ;;  %1339 = vst.msk [vmem:[#allocation2 + $0x118] sm:$0xff] %vm12196_vm11, %v1316_v10  ;;  %v9063_v17 = vld [vmem:[#allocation5 + $0x24] sm:$0xff]  }
 0x105   : > { %3745 = vrot.lane.b32.xlu0 %v8279_v11, %s9282_s26  ;;  %v2755_v29 = vsel %vm9465_vm5, %v2750_v37, %v2754_v30  ;;  %v1523_v52 = vor.u32 %v1522_v9, %v1519_v61  ;;  %v9062_v54 = vld [vmem:[%s12189_s2 + $0x110] sm:$0xff]   ;;  %v1538_v0 = vrot.slane %v1536_v49, 5  ;;  %v8568_v45 = vpack.c.bf16 %v375_v36, %v375_v36  ;;  %v10365_v43 = vld [vmem:[#allocation5 + $0x3c] sm:$0xf]  ;;  %v10379_v28 = vpop.permute.xlu0 %1838  ;;  %3229 = vst.msk [vmem:[#allocation2 + $0x68] sm:$0xff] %vm12199_vm8, %v9063_v17  ;;  %v380_v61 = vld [vmem:[%s9784_s20 + $0xc8] sm:$0xff] }
 0x106   : > { %v8219_v63 = vcombine.low %v2745_v46, %v2755_v29  ;;  %v8309_v12 = vrot.slane %v4220_v33, 9  ;;  %v3592_v50 = vld [vmem:[#allocation5 + $0x48] sm:$0xe]  ;;  %v3593_v6 = vld [vmem:[#allocation5 + $0x4c] sm:$0xf]  ;;  %v1533_v11 = vor.u32 %v1532_v39, %v1528_v48  ;;  %v4298_v58 = vrot.slane %v4221_v32, 5  ;;  %8849 = vmatprep.subr.bf16.mxu0 %v9062_v54 }
 0x107   : > { %v1524_v7 = vrot.slane %v1523_v52, 4  ;;  %v8569_v8 = vpack.c.bf16 %v376_v42, %v376_v42  ;;  %569 = vst.msk [vmem:[#allocation5 + $0x50] sm:$0x1] %vm550_vm7, %v8568_v45  ;;  %v8570_v15 = vpack.c.bf16 %v377_v35, %v377_v35  ;;  %v8571_v16 = vpack.c.bf16 %v378_v3, %v378_v3  ;;  %v4434_v19 = vld [vmem:[#allocation2 + $0xd0] sm:$0xff]  ;;  %v999_v23 = vpop.permute.xlu1 %998  ;;  %8850 = vmatpush3.bf16.msra.mxu0 %v9062_v54  ;;  %v379_v36 = vld [vmem:[%s9784_s20 + $0xc0] sm:$0xff]  ;;  %v9064_v32 = vld [vmem:[%s12189_s2 + $0x118] sm:$0xff]  }
 0x108   : > { %2914 = vrot.lane.b32.xlu1 %v8219_v63, %s9282_s26  ;;  %v3388_v20 = vshrl.u32 %v3252_v4, 16  ;;  %v3391_v21 = vshll.u32 %v3252_v4, 16  ;;  %v1534_v27 = vrot.slane %v1533_v11, 4  ;;  %v10374_v24 = vsel %vm9414_vm2, %v8309_v12, %v4298_v58  ;;  %4856 = vmatprep.mubr.bf16.mxu0 %v4434_v19  ;;  %1021 = vst.msk [vmem:[#allocation2 + $0x140] sm:$0xff] %vm12198_vm9, %v999_v23  ;;  %v10388_v38 = vld [vmem:[#allocation5 + $0x40] sm:$0xf] }
 0x109   : > { %3856 = vrot.lane.b32.xlu0 %v9027_v56, %s9283_s25  ;;  %v1529_v26 = vsel %vm9465_vm5, %v1524_v7, %v1528_v48  ;;  %v10376_v60 = vrot.slane %v4298_v58, 4  ;;  %570 = vst.msk [vmem:[#allocation5 + $0x54] sm:$0xf] %vm547_vm6, %v8569_v8  ;;  %571 = vst.msk [vmem:[#allocation5 + $0x58] sm:$0xf] %vm547_vm6, %v8570_v15  ;;  %v3397_v31 = vshll.u32 %v3253_v53, 16  ;;  %4857 = vmatmul.mubr.bf16.gmra.mrb[20].mxu0 %v4433_v5  ;;  %v10416_v45 = vpop.permute.xlu0 %1952 }
 0x10a   : > { %572 = vst.msk [vmem:[#allocation5 + $0x5c] sm:$0x1] %vm550_vm7, %v8571_v16  ;;  %v3390_v14 = vrot.slane %v3388_v20, 4  ;;  %v3393_v30 = vrot.slane %v3391_v21, 5  ;;  %v3401_v34 = vshrl.u32 %v3253_v53, 16  ;;  %v1539_v33 = vsel %vm9465_vm5, %v1534_v27, %v1538_v0  ;;  %v382_v41 = vld [vmem:[%s9784_s20 + $0xd8] sm:$0xff]  ;;  %8851 = vmatprep.subr.bf16.mxu0 %v9064_v32 }
 0x10b   : > { %v8270_v62 = vrot.slane %v3592_v50, 9  ;;  %v3674_v13 = vrot.slane %v3593_v6, 5  ;;  %v2757_v40 = vshrl.u32 %v10365_v43, 16  ;;  %v8029_v42 = vcombine.low %v1529_v26, %v1539_v33  ;;  %v1203_v9 = vpop.permute.xlu1 %1202  ;;  %v383_v35 = vld [vmem:[%s9784_s20 + $0xe0] sm:$0xff]  ;;  %v385_v49 = vld [vmem:[%s9784_s20 + $0xf0] sm:$0xff]  ;;  %v386_v10 = vld [vmem:[%s9784_s20 + $0xf8] sm:$0xff]  ;;  %8852 = vmatpush3.bf16.msra.mxu0 %v9064_v32 }
 0x10c   : > { %3114 = vrot.lane.b32.xlu1 %v8239_v51, %s9283_s25  ;;  %v3394_v44 = vor.u32 %v3393_v30, %v3390_v14  ;;  %v10395_v37 = vrot.slane %v3397_v31, 5  ;;  %v3403_v56 = vrot.slane %v3401_v34, 4  ;;  %v2760_v48 = vshll.u32 %v10365_v43, 16  ;;  %1225 = vst.msk [vmem:[#allocation2 + $0x140] sm:$0xff] %vm12197_vm10, %v1203_v9  ;;  %v9065_v4 = vld [vmem:[#allocation5 + $0x30] sm:$0xff]   ;;  %v9066_v15 = vld [vmem:[#allocation5 + $0x3c] sm:$0xff]  }
 0x10d   : > { %v10402_v3 = vsel %vm9414_vm2, %v8270_v62, %v3674_v13  ;;  %v3676_v46 = vrot.slane %v3674_v13, 4  ;;  %v10404_v47 = vrot.slane %v2757_v40, 4  ;;  %1658 = vst.msk [vmem:[#allocation2 + $0xf8] sm:$0xff] %vm12199_vm8, %v8029_v42  ;;  %v2766_v52 = vshll.u32 %v10388_v38, 16  ;;  %v2623_v58 = vld [vmem:[#allocation5 + $0x44] sm:$0x1] }
 0x10e   : > { %v3395_v29 = vrot.slane %v3394_v44, 4  ;;  %v3404_v51 = vor.u32 %v3403_v56, %v10395_v37  ;;  %v2770_v39 = vshrl.u32 %v10388_v38, 16  ;;  %1858 = vst.msk [vmem:[#allocation2 + $0xf8] sm:$0xff] %vm12198_vm9, %v10260_v57  ;;  %v4222_v53 = vld [vmem:[#allocation5 + $0x50] sm:$0x1]  ;;  %v8572_v63 = vpack.c.bf16 %v379_v36, %v379_v36 }
 0x10f   : > { %v3254_v5 = vld [vmem:[#allocation5 + $0x50] sm:$0x1]  ;;  %v8573_v0 = vpack.c.bf16 %v380_v61, %v380_v61  ;;  %v8575_v12 = vpack.c.bf16 %v382_v41, %v382_v41  ;;  %v8576_v50 = vpack.c.bf16 %v383_v35, %v383_v35  ;;  %v4301_v6 = vrot.slane %v4222_v53, 5  ;;  %1972 = vst.msk [vmem:[#allocation2 + $0xf8] sm:$0xff] %vm12197_vm10, %v10278_v25  ;;  %v1318_v8 = vpop.permute.xlu1 %1317  ;;  %v8014_v23 = vld [vmem:[%s9421_s22 + $0x60] sm:$0xf]  ;;  %v10453_v61 = vpop.permute.xlu0 %2292 }
 0x110   : > { %v3594_v54 = vld [vmem:[#allocation5 + $0x50] sm:$0x1]  ;;  %v4223_v43 = vld [vmem:[#allocation5 + $0x54] sm:$0xe]  ;;  %v3400_v7 = vsel %vm9465_vm5, %v3395_v29, %v10395_v37  ;;  %v3405_v57 = vrot.slane %v3404_v51, 4  ;;  %v3407_v11 = vshll.u32 %v3254_v5, 16  ;;  %v8578_v25 = vpack.c.bf16 %v385_v49, %v385_v49 }
 0x111   : > { %3230 = vst.msk [vmem:[#allocation2 + $0x90] sm:$0xff] %vm12199_vm8, %v9065_v4  ;;  %v4224_v16 = vld [vmem:[#allocation5 + $0x58] sm:$0xf]  ;;  %v4225_v19 = vld [vmem:[#allocation5 + $0x5c] sm:$0x1]  ;;  %v8310_v20 = vrot.slane %v4223_v43, 9  ;;  %v8579_v17 = vpack.c.bf16 %v386_v10, %v386_v10  ;;  %v4302_v26 = vsel %vm9414_vm2, %v10376_v60, %v4301_v6 }
 0x112   : > { %2312 = vst.msk [vmem:[#allocation2 + $0xf8] sm:$0xff] %vm12196_vm11, %v10295_v22  ;;  %v3677_v21 = vrot.slane %v3594_v54, 5  ;;  %1340 = vst.msk [vmem:[#allocation2 + $0x140] sm:$0xff] %vm12196_vm11, %v1318_v8  ;;  %v4305_v22 = vrot.slane %v4224_v16, 5  ;;  %v4308_v27 = vrot.slane %v4225_v19, 5  ;;  %v3409_v14 = vrot.slane %v3407_v11, 5 }
 0x113   : > { %573 = vst.msk [vmem:[#allocation5 + $0x60] sm:$0xf] %vm547_vm6, %v8572_v63  ;;  %574 = vst.msk [vmem:[#allocation5 + $0x64] sm:$0xf] %vm547_vm6, %v8573_v0  ;;  %v8319_v30 = vcombine.low %v10374_v24, %v4302_v26  ;;  %v2762_v34 = vrot.slane %v2760_v48, 5  ;;  %v2768_v36 = vrot.slane %v2766_v52, 5  ;;  %v10462_v16 = vpop.permute.xlu1 %2566 }
 0x114   : > { %576 = vst.msk [vmem:[#allocation5 + $0x6c] sm:$0xf] %vm547_vm6, %v8575_v12  ;;  %577 = vst.msk [vmem:[#allocation5 + $0x70] sm:$0xf] %vm547_vm6, %v8576_v50  ;;  %v10439_v31 = vsel %vm9414_vm2, %v3676_v46, %v3677_v21  ;;  %v8015_v33 = vld [vmem:[%s9421_s22 + $0x64] sm:$0xf]  ;;  %v4306_v60 = vsel %vm9414_vm2, %v8310_v20, %v4305_v22  ;;  %v3410_v13 = vsel %vm9465_vm5, %v3405_v57, %v3409_v14 }
 0x115   : > { %3231 = vst.msk [vmem:[#allocation2 + $0xb8] sm:$0xff] %vm12199_vm8, %v9066_v15  ;;  %v4307_v62 = vrot.slane %v4305_v22, 4  ;;  %v8280_v24 = vcombine.low %v10402_v3, %v10439_v31  ;;  %v8016_v38 = vld [vmem:[%s9421_s22 + $0x68] sm:$0x1]  ;;  %4376 = vrot.lane.b32.xlu0 %v8319_v30, %s9284_s13  ;;  %v8260_v40 = vcombine.low %v3400_v7, %v3410_v13  ;;  %v2763_v32 = vor.u32 %v2762_v34, %v10404_v47  ;;  %v2961_v37 = vld [vmem:[#allocation5 + $0x3c] sm:$0xe] }
 0x116   : > { %579 = vst.msk [vmem:[#allocation5 + $0x78] sm:$0xf] %vm547_vm6, %v8578_v25  ;;  %580 = vst.msk [vmem:[#allocation5 + $0x7c] sm:$0xf] %vm547_vm6, %v8579_v17  ;;  %v2772_v42 = vrot.slane %v2770_v39, 4  ;;  %v2776_v44 = vshll.u32 %v2623_v58, 16 }
 0x117   : > { %v2962_v56 = vld [vmem:[#allocation5 + $0x40] sm:$0xf]  ;;  %v4309_v9 = vsel %vm9414_vm2, %v4307_v62, %v4308_v27  ;;  %v1541_v41 = vshrl.u32 %v8014_v23, 16  ;;  %v1544_v35 = vshll.u32 %v8014_v23, 16  ;;  %v1550_v46 = vshll.u32 %v8015_v33, 16  ;;  %v9067_v3 = vld [vmem:[#allocation5 + $0x48] sm:$0xff]  }
 0x118   : > { %v2963_v48 = vld [vmem:[#allocation5 + $0x44] sm:$0x1]  ;;  %v8320_v49 = vcombine.low %v4306_v60, %v4309_v9  ;;  %v2764_v10 = vrot.slane %v2763_v32, 4  ;;  %v2773_v29 = vor.u32 %v2772_v42, %v2768_v36  ;;  %v2778_v51 = vrot.slane %v2776_v44, 5  ;;  %v3255_v52 = vld [vmem:[#allocation5 + $0x54] sm:$0xf] }
 0x119   : > { %v1543_v47 = vrot.slane %v1541_v41, 4  ;;  %v1546_v39 = vrot.slane %v1544_v35, 5  ;;  %v1552_v4 = vrot.slane %v1550_v46, 5  ;;  %v1554_v53 = vshrl.u32 %v8015_v33, 16  ;;  %v4439_v5 = vld [vmem:[#allocation2 + $0xf8] sm:$0xff]  ;;  %v4438_v63 = vld [vmem:[#allocation2 + $0xf0] sm:$0xff]  ;;  %3547 = vrot.lane.b32.xlu0 %v8260_v40, %s9284_s13 }
 0x11a   : > { %v3256_v54 = vld [vmem:[#allocation5 + $0x58] sm:$0xf]  ;;  %3232 = vst.msk [vmem:[#allocation2 + $0xe0] sm:$0xff] %vm12199_vm8, %v9067_v3  ;;  %4378 = vrot.lane.b32.xlu1 %v8320_v49, %s9284_s13  ;;  %v9029_v0 = vld [vmem:[#allocation5 + $0x3c] sm:$0xff]   ;;  %v2769_v12 = vsel %vm9465_vm5, %v2764_v10, %v2768_v36  ;;  %v2774_v50 = vrot.slane %v2773_v29, 4  ;;  %v1560_v6 = vshll.u32 %v8016_v38, 16  ;;  %4864 = vmatprep.mubr.bf16.mxu0 %v4439_v5  ;;  %v3538_v25 = vpop.permute.xlu0 %3537 }
 0x11b   : > { %v8230_v43 = vrot.slane %v2961_v37, 9  ;;  %v3257_v7 = vld [vmem:[#allocation5 + $0x5c] sm:$0x1]  ;;  %v1547_v57 = vor.u32 %v1546_v39, %v1543_v47  ;;  %v1556_v11 = vrot.slane %v1554_v53, 4  ;;  %v3043_v58 = vrot.slane %v2962_v56, 5  ;;  %4865 = vmatmul.mubr.bf16.gmra.mrb[24].mxu0 %v4438_v63  ;;  %v9031_v27 = vld [vmem:[#allocation5 + $0x54] sm:$0xff]  }
 0x11c   : > { %v3046_v8 = vrot.slane %v2963_v48, 5  ;;  %v3595_v15 = vld [vmem:[#allocation5 + $0x54] sm:$0xe]  ;;  %v2779_v19 = vsel %vm9465_vm5, %v2774_v50, %v2778_v51  ;;  %v1562_v20 = vrot.slane %v1560_v6, 5  ;;  %v3412_v21 = vshrl.u32 %v3255_v52, 16  ;;  %3567 = vst.msk [vmem:[#allocation2 + $0x18] sm:$0xff] %vm12198_vm9, %v3538_v25 }
 0x11d   : > { %v3415_v23 = vshll.u32 %v3255_v52, 16  ;;  %v8220_v17 = vcombine.low %v2769_v12, %v2779_v19  ;;  %v1548_v26 = vrot.slane %v1547_v57, 4  ;;  %v1557_v22 = vor.u32 %v1556_v11, %v1552_v4  ;;  %v3596_v30 = vld [vmem:[#allocation5 + $0x58] sm:$0xf]  ;;  %3747 = vrot.lane.b32.xlu0 %v8280_v24, %s9282_s26  ;;  %v3597_v40 = vld [vmem:[#allocation5 + $0x5c] sm:$0x1] }
 0x11e   : > { %v3044_v14 = vsel %vm9414_vm2, %v8230_v43, %v3043_v58  ;;  %2576 = vrot.lane.b32.xlu1 %v9029_v0, %s9284_s13  ;;  %v3045_v31 = vrot.slane %v3043_v58, 4  ;;  %v3414_v34 = vrot.slane %v3412_v21, 4  ;;  %v3421_v33 = vshll.u32 %v3256_v54, 16  ;;  %v2624_v56 = vld [vmem:[#allocation5 + $0x48] sm:$0xf]  ;;  %v3738_v9 = vpop.permute.xlu0 %3737  ;;  %v9068_v47 = vld [vmem:[#allocation5 + $0x54] sm:$0xff]  }
 0x11f   : > { %v3417_v36 = vrot.slane %v3415_v23, 5  ;;  %v1553_v60 = vsel %vm9465_vm5, %v1548_v26, %v1552_v4  ;;  %v1558_v62 = vrot.slane %v1557_v22, 4  ;;  %v3425_v13 = vshrl.u32 %v3256_v54, 16  ;;  %v2625_v24 = vld [vmem:[#allocation5 + $0x4c] sm:$0xf]  ;;  %3767 = vst.msk [vmem:[#allocation2 + $0x18] sm:$0xff] %vm12197_vm10, %v3738_v9  ;;  %v10478_v3 = vpop.permute.xlu1 %2906 }
 0x120   : > { %v3431_v38 = vshll.u32 %v3257_v7, 16  ;;  %v3047_v32 = vsel %vm9414_vm2, %v3045_v31, %v3046_v8  ;;  %v3423_v44 = vrot.slane %v3421_v33, 5  ;;  %v8271_v37 = vrot.slane %v3595_v15, 9  ;;  %v8017_v52 = vld [vmem:[%s9421_s22 + $0x6c] sm:$0xf]  ;;  %3233 = vst.msk [vmem:[#allocation2 + $0x108] sm:$0xff] %vm12199_vm8, %v9068_v47 }
 0x121   : > { %v3418_v42 = vor.u32 %v3417_v36, %v3414_v34  ;;  %v1563_v41 = vsel %vm9465_vm5, %v1558_v62, %v1562_v20  ;;  %v8240_v35 = vcombine.low %v3044_v14, %v3047_v32  ;;  %v3427_v46 = vrot.slane %v3425_v13, 4  ;;  %3858 = vrot.lane.b32.xlu0 %v9031_v27, %s9283_s25  ;;  %v2626_v4 = vld [vmem:[#allocation5 + $0x50] sm:$0x1]  ;;  %v8018_v6 = vld [vmem:[%s9421_s22 + $0x70] sm:$0xf]  ;;  %v9037_v47 = vld [vmem:[#allocation5 + $0x60] sm:$0xff]  }
 0x122   : > { %v3433_v48 = vrot.slane %v3431_v38, 5  ;;  %2916 = vrot.lane.b32.xlu1 %v8220_v17, %s9282_s26  ;;  %v8030_v49 = vcombine.low %v1553_v60, %v1563_v41  ;;  %v3681_v29 = vrot.slane %v3596_v30, 5  ;;  %v3684_v51 = vrot.slane %v3597_v40, 5  ;;  %v3849_v43 = vpop.permute.xlu0 %3848  ;;  %v9032_v15 = vld [vmem:[#allocation5 + $0x48] sm:$0xff]   ;;  %v2966_v36 = vld [vmem:[#allocation5 + $0x50] sm:$0x1] }
 0x123   : > { %v3419_v10 = vrot.slane %v3418_v42, 4  ;;  %v3428_v39 = vor.u32 %v3427_v46, %v3423_v44  ;;  %v2781_v53 = vshrl.u32 %v2624_v56, 16  ;;  %v2784_v5 = vshll.u32 %v2624_v56, 16  ;;  %3878 = vst.msk [vmem:[#allocation2 + $0x18] sm:$0xff] %vm12196_vm11, %v3849_v43  ;;  %v10495_v8 = vpop.permute.xlu1 %3106  ;;  %v2965_v27 = vld [vmem:[#allocation5 + $0x4c] sm:$0xf] }
 0x124   : > { %v2790_v54 = vshll.u32 %v2625_v24, 16  ;;  %1659 = vst.msk [vmem:[#allocation2 + $0x120] sm:$0xff] %vm12199_vm8, %v8030_v49  ;;  %v10488_v0 = vsel %vm9414_vm2, %v8271_v37, %v3681_v29  ;;  %v3683_v12 = vrot.slane %v3681_v29, 4  ;;  %v2794_v50 = vshrl.u32 %v2625_v24, 16  ;;  %v381_v38 = vld [vmem:[%s9784_s20 + $0xd0] sm:$0x3] }
 0x125   : > { %v3424_v63 = vsel %vm9465_vm5, %v3419_v10, %v3423_v44  ;;  %1859 = vst.msk [vmem:[#allocation2 + $0x120] sm:$0xff] %vm12198_vm9, %v10304_v2  ;;  %v3429_v7 = vrot.slane %v3428_v39, 4  ;;  %v2783_v57 = vrot.slane %v2781_v53, 4  ;;  %v2786_v11 = vrot.slane %v2784_v5, 5  ;;  %v8019_v2 = vld [vmem:[%s9421_s22 + $0x74] sm:$0x1] }
 0x126   : > { %v2792_v58 = vrot.slane %v2790_v54, 5  ;;  %3116 = vrot.lane.b32.xlu1 %v8240_v35, %s9283_s25  ;;  %1973 = vst.msk [vmem:[#allocation2 + $0x120] sm:$0xff] %vm12197_vm10, %v10319_v55  ;;  %v3685_v19 = vsel %vm9414_vm2, %v3683_v12, %v3684_v51  ;;  %v2796_v20 = vrot.slane %v2794_v50, 4  ;;  %v2800_v21 = vshll.u32 %v2626_v4, 16  ;;  %v2964_v55 = vld [vmem:[#allocation5 + $0x48] sm:$0xe]  ;;  %v10516_v9 = vpop.permute.xlu0 %1840 }
 0x127   : > { %v1565_v23 = vshrl.u32 %v8017_v52, 16  ;;  %v3434_v25 = vsel %vm9465_vm5, %v3429_v7, %v3433_v48  ;;  %2313 = vst.msk [vmem:[#allocation2 + $0x120] sm:$0xff] %vm12196_vm11, %v10350_v18  ;;  %v8281_v17 = vcombine.low %v10488_v0, %v3685_v19  ;;  %v2787_v26 = vor.u32 %v2786_v11, %v2783_v57  ;;  %v10509_v40 = vld [vmem:[#allocation5 + $0x64] sm:$0xf]  ;;  %v1001_v18 = vpop.permute.xlu1 %1000  ;;  %v10513_v56 = vld [vmem:[#allocation5 + $0x60] sm:$0xe] }
 0x128   : > { %v1568_v22 = vshll.u32 %v8017_v52, 16  ;;  %v8261_v14 = vcombine.low %v3424_v63, %v3434_v25  ;;  %v2797_v30 = vor.u32 %v2796_v20, %v2792_v58  ;;  %v2802_v31 = vrot.slane %v2800_v21, 5  ;;  %v384_v24 = vld [vmem:[%s9784_s20 + $0xe8] sm:$0x3]  ;;  %1022 = vst.msk [vmem:[#allocation2 + $0x168] sm:$0xff] %vm12198_vm9, %v1001_v18  ;;  %v4443_v49 = vld [vmem:[#allocation2 + $0x118] sm:$0xff] }
 0x129   : > { %v1567_v34 = vrot.slane %v1565_v23, 4  ;;  %v2788_v33 = vrot.slane %v2787_v26, 4  ;;  %v1574_v62 = vshll.u32 %v8018_v6, 16  ;;  %v1578_v13 = vshrl.u32 %v8018_v6, 16  ;;  %v10521_v10 = vld [vmem:[#allocation5 + $0x6c] sm:$0xe] }
 0x12a   : > { %v1570_v60 = vrot.slane %v1568_v22, 5  ;;  %3549 = vrot.lane.b32.xlu0 %v8261_v14, %s9284_s13  ;;  %2578 = vrot.lane.b32.xlu1 %v9032_v15, %s9284_s13  ;;  %v2798_v32 = vrot.slane %v2797_v30, 4  ;;  %v1584_v42 = vshll.u32 %v8019_v2, 16  ;;  %v8231_v44 = vrot.slane %v2964_v55, 9  ;;  %v10523_v29 = vld [vmem:[#allocation5 + $0x70] sm:$0xf]  ;;  %v10545_v22 = vpop.permute.xlu0 %1954 }
 0x12b   : > { %v3050_v37 = vrot.slane %v2965_v27, 5  ;;  %v2793_v41 = vsel %vm9465_vm5, %v2788_v33, %v2792_v58  ;;  %v1576_v46 = vrot.slane %v1574_v62, 5  ;;  %v1580_v48 = vrot.slane %v1578_v13, 4  ;;  %v3258_v53 = vld [vmem:[#allocation5 + $0x60] sm:$0xf]  ;;  %v1205_v50 = vpop.permute.xlu1 %1204  ;;  %v4411_v11 = vld [vmem:[#allocation2 + $0x18] sm:$0xff] }
 0x12c   : > { %v1571_v35 = vor.u32 %v1570_v60, %v1567_v34  ;;  %v2803_v51 = vsel %vm9465_vm5, %v2798_v32, %v2802_v31  ;;  %v1586_v52 = vrot.slane %v1584_v42, 5  ;;  %v3259_v5 = vld [vmem:[#allocation5 + $0x64] sm:$0xf]  ;;  %v3053_v12 = vrot.slane %v2966_v36, 5  ;;  %1226 = vst.msk [vmem:[#allocation2 + $0x168] sm:$0xff] %vm12197_vm10, %v1205_v50  ;;  %4929 = vmatprep.mubr.bf16.mxu1 %v4411_v11  ;;  %v389_v27 = vld [vmem:[%s9784_s20 + $0x110] sm:$0xff] }
 0x12d   : > { %v3051_v39 = vsel %vm9414_vm2, %v8231_v44, %v3050_v37  ;;  %v3052_v4 = vrot.slane %v3050_v37, 4  ;;  %v8221_v54 = vcombine.low %v2793_v41, %v2803_v51  ;;  %v1581_v0 = vor.u32 %v1580_v48, %v1576_v46  ;;  %v8155_v21 = vld [vmem:[%s9421_s22 + $0x18] sm:$0xe]  ;;  %v8157_v26 = vld [vmem:[%s9421_s22 + $0x20] sm:$0x1]  ;;  %v388_v55 = vld [vmem:[%s9784_s20 + $0x108] sm:$0xff] }
 0x12e   : > { %v1572_v63 = vrot.slane %v1571_v35, 4  ;;  %3749 = vrot.lane.b32.xlu0 %v8281_v17, %s9282_s26  ;;  %v4444_v6 = vld [vmem:[#allocation2 + $0x120] sm:$0xff]  ;;  %v8574_v43 = vpack.c.bf16 %v381_v38, %v381_v38  ;;  %v4312_v7 = vrot.slane %v10509_v40, 5  ;;  %v8577_v57 = vpack.c.bf16 %v384_v24, %v384_v24  ;;  %v8156_v17 = vld [vmem:[%s9421_s22 + $0x1c] sm:$0xf]  ;;  %v9069_v33 = vld [vmem:[#allocation5 + $0x60] sm:$0xff]  }
 0x12f   : > { %2918 = vrot.lane.b32.xlu1 %v8221_v54, %s9282_s26  ;;  %v1582_v15 = vrot.slane %v1581_v0, 4  ;;  %v3054_v19 = vsel %vm9414_vm2, %v3052_v4, %v3053_v12  ;;  %4872 = vmatprep.mubr.bf16.mxu0 %v4444_v6  ;;  %v8311_v20 = vrot.slane %v10513_v56, 9  ;;  %v8312_v23 = vrot.slane %v10521_v10, 9  ;;  %v1320_v36 = vpop.permute.xlu1 %1319  ;;  %v3598_v38 = vld [vmem:[#allocation5 + $0x60] sm:$0xe]  ;;  %3234 = vst.msk [vmem:[#allocation2 + $0x130] sm:$0xff] %vm12199_vm8, %v9069_v33 }
 0x130   : > { %v1577_v58 = vsel %vm9465_vm5, %v1572_v63, %v1576_v46  ;;  %v8241_v2 = vcombine.low %v3051_v39, %v3054_v19  ;;  %575 = vst.msk [vmem:[#allocation5 + $0x68] sm:$0x1] %vm550_vm7, %v8574_v43  ;;  %4873 = vmatmul.mubr.bf16.gmra.mrb[28].mxu0 %v4443_v49  ;;  %578 = vst.msk [vmem:[#allocation5 + $0x74] sm:$0x1] %vm550_vm7, %v8577_v57  ;;  %v4319_v25 = vrot.slane %v10523_v29, 5  ;;  %v3436_v30 = vshrl.u32 %v3258_v53, 16 }
 0x131   : > { %v1587_v14 = vsel %vm9465_vm5, %v1582_v15, %v1586_v52  ;;  %v3439_v31 = vshll.u32 %v3258_v53, 16  ;;  %v3445_v34 = vshll.u32 %v3259_v5, 16  ;;  %v4314_v62 = vrot.slane %v4312_v7, 4  ;;  %1341 = vst.msk [vmem:[#allocation2 + $0x168] sm:$0xff] %vm12196_vm11, %v1320_v36  ;;  %v3599_v44 = vld [vmem:[#allocation5 + $0x64] sm:$0xf]  ;;  %v10563_v39 = vpop.permute.xlu0 %2294 }
 0x132   : > { %v8031_v60 = vcombine.low %v1577_v58, %v1587_v14  ;;  %3860 = vrot.lane.b32.xlu0 %v9037_v47, %s9283_s25  ;;  %v3449_v13 = vshrl.u32 %v3259_v5, 16  ;;  %v3438_v40 = vrot.slane %v3436_v30, 4  ;;  %v8185_v42 = vrot.slane %v8155_v21, 9  ;;  %v2627_v48 = vld [vmem:[#allocation5 + $0x54] sm:$0xf] }
 0x133   : > { %3118 = vrot.lane.b32.xlu1 %v8241_v2, %s9283_s25  ;;  %v3441_v18 = vrot.slane %v3439_v31, 5  ;;  %v10554_v32 = vrot.slane %v3445_v34, 5  ;;  %v4321_v37 = vrot.slane %v4319_v25, 4  ;;  %v2378_v24 = vrot.slane %v8156_v17, 5  ;;  %v2628_v63 = vld [vmem:[#allocation5 + $0x58] sm:$0xf]  ;;  %v10575_v57 = vpop.permute.xlu1 %2568 }
 0x134   : > { %1660 = vst.msk [vmem:[#allocation2 + $0x148] sm:$0xff] %vm12199_vm8, %v8031_v60  ;;  %v3451_v56 = vrot.slane %v3449_v13, 4  ;;  %v2381_v41 = vrot.slane %v8157_v26, 5  ;;  %v3688_v46 = vrot.slane %v3599_v44, 5  ;;  %v8581_v49 = vpack.c.bf16 %v388_v55, %v388_v55  ;;  %v9043_v26 = vld [vmem:[#allocation5 + $0x54] sm:$0xff]  }
 0x135   : > { %1860 = vst.msk [vmem:[#allocation2 + $0x148] sm:$0xff] %vm12198_vm9, %v10379_v28  ;;  %v3442_v35 = vor.u32 %v3441_v18, %v3438_v40  ;;  %v8582_v10 = vpack.c.bf16 %v389_v27, %v389_v27  ;;  %v2380_v51 = vrot.slane %v2378_v24, 4  ;;  %v8272_v52 = vrot.slane %v3598_v38, 9  ;;  %v4448_v31 = vld [vmem:[#allocation2 + $0x140] sm:$0xff]  ;;  %v2967_v34 = vld [vmem:[#allocation5 + $0x54] sm:$0xe] }
 0x136   : > { %1974 = vst.msk [vmem:[#allocation2 + $0x148] sm:$0xff] %vm12197_vm10, %v10416_v45  ;;  %v3452_v29 = vor.u32 %v3451_v56, %v10554_v32  ;;  %v2805_v47 = vshrl.u32 %v2627_v48, 16  ;;  %v4313_v53 = vsel %vm9414_vm2, %v8311_v20, %v4312_v7  ;;  %v4320_v5 = vsel %vm9414_vm2, %v8312_v23, %v4319_v25  ;;  %v2629_v7 = vld [vmem:[#allocation5 + $0x5c] sm:$0x1]  ;;  %v2968_v38 = vld [vmem:[#allocation5 + $0x58] sm:$0xf] }
 0x137   : > { %v4228_v4 = vld [vmem:[#allocation5 + $0x68] sm:$0x1]  ;;  %v4231_v28 = vld [vmem:[#allocation5 + $0x74] sm:$0x1]  ;;  %2314 = vst.msk [vmem:[#allocation2 + $0x148] sm:$0xff] %vm12196_vm11, %v10453_v61  ;;  %v2379_v45 = vsel %vm9414_vm2, %v8185_v42, %v2378_v24  ;;  %v3443_v50 = vrot.slane %v3442_v35, 4  ;;  %v2382_v61 = vsel %vm9414_vm2, %v2380_v51, %v2381_v41  ;;  %v3689_v55 = vsel %vm9414_vm2, %v8272_v52, %v3688_v46 }
 0x138   : > { %v3260_v54 = vld [vmem:[#allocation5 + $0x68] sm:$0x1]  ;;  %582 = vst.msk [vmem:[#allocation5 + $0x84] sm:$0xf] %vm547_vm6, %v8581_v49  ;;  %583 = vst.msk [vmem:[#allocation5 + $0x88] sm:$0xf] %vm547_vm6, %v8582_v10  ;;  %v8195_v21 = vcombine.low %v2379_v45, %v2382_v61 }
 0x139   : > { %v4315_v0 = vrot.slane %v4228_v4, 5  ;;  %v4322_v12 = vrot.slane %v4231_v28, 5  ;;  %v3453_v6 = vrot.slane %v3452_v29, 4  ;;  %v3600_v43 = vld [vmem:[#allocation5 + $0x68] sm:$0x1]  ;;  %v3455_v11 = vshll.u32 %v3260_v54, 16 }
 0x13a   : > { %v3690_v58 = vrot.slane %v3688_v46, 4  ;;  %v3691_v15 = vrot.slane %v3600_v43, 5  ;;  %v3448_v25 = vsel %vm9465_vm5, %v3443_v50, %v10554_v32  ;;  %2486 = vst.msk [vmem:[#allocation2 + $0x10] sm:$0xff] %vm12199_vm8, %v8195_v21  ;;  %v2807_v27 = vrot.slane %v2805_v47, 4  ;;  %v2969_v40 = vld [vmem:[#allocation5 + $0x5c] sm:$0x1]  ;;  %v10600_v56 = vpop.permute.xlu1 %2908 }
 0x13b   : > { %v4316_v19 = vsel %vm9414_vm2, %v4314_v62, %v4315_v0  ;;  %v4323_v20 = vsel %vm9414_vm2, %v4321_v37, %v4322_v12  ;;  %v3457_v17 = vrot.slane %v3455_v11, 5  ;;  %v2808_v14 = vshll.u32 %v2627_v48, 16  ;;  %v3540_v36 = vpop.permute.xlu0 %3539  ;;  %2596 = vst.msk [vmem:[#allocation2 + $0x10] sm:$0xff] %vm12198_vm9, %v10462_v16  ;;  %v3261_v48 = vld [vmem:[#allocation5 + $0x6c] sm:$0xf] }
 0x13c   : > { %v8321_v2 = vcombine.low %v4313_v53, %v4316_v19  ;;  %v8322_v23 = vcombine.low %v4320_v5, %v4323_v20  ;;  %v2814_v30 = vshll.u32 %v2628_v63, 16  ;;  %v3692_v60 = vsel %vm9414_vm2, %v3690_v58, %v3691_v15  ;;  %3568 = vst.msk [vmem:[#allocation2 + $0x40] sm:$0xff] %vm12198_vm9, %v3540_v36  ;;  %v3262_v49 = vld [vmem:[#allocation5 + $0x70] sm:$0xf]  ;;  %v3263_v10 = vld [vmem:[#allocation5 + $0x74] sm:$0x1] }
 0x13d   : > { %v3458_v33 = vsel %vm9465_vm5, %v3453_v6, %v3457_v17  ;;  %v2818_v62 = vshrl.u32 %v2628_v63, 16  ;;  %v2824_v13 = vshll.u32 %v2629_v7, 16  ;;  %v2810_v32 = vrot.slane %v2808_v14, 5  ;;  %2936 = vst.msk [vmem:[#allocation2 + $0x10] sm:$0xff] %vm12197_vm10, %v10478_v3  ;;  %v9049_v54 = vld [vmem:[#allocation5 + $0x6c] sm:$0xff]  }
 0x13e   : > { %4380 = vrot.lane.b32.xlu0 %v8321_v2, %s9284_s13  ;;  %4382 = vrot.lane.b32.xlu1 %v8322_v23, %s9284_s13  ;;  %v8262_v18 = vcombine.low %v3448_v25, %v3458_v33  ;;  %v2816_v42 = vrot.slane %v2814_v30, 5  ;;  %v4449_v44 = vld [vmem:[#allocation2 + $0x148] sm:$0xff]  ;;  %v8232_v37 = vrot.slane %v2967_v34, 9  ;;  %v3057_v41 = vrot.slane %v2968_v38, 5  ;;  %3136 = vst.msk [vmem:[#allocation2 + $0x10] sm:$0xff] %vm12196_vm11, %v10495_v8  ;;  %v9070_v23 = vld [vmem:[#allocation5 + $0x6c] sm:$0xff]  }
 0x13f   : > { %v2820_v16 = vrot.slane %v2818_v62, 4  ;;  %v2826_v24 = vrot.slane %v2824_v13, 5  ;;  %4880 = vmatprep.mubr.bf16.mxu0 %v4449_v44  ;;  %v3060_v35 = vrot.slane %v2969_v40, 5  ;;  %v2811_v46 = vor.u32 %v2810_v32, %v2807_v27  ;;  %v3740_v29 = vpop.permute.xlu0 %3739  ;;  %v8020_v7 = vld [vmem:[%s9421_s22 + $0x78] sm:$0xf]  ;;  %3235 = vst.msk [vmem:[#allocation2 + $0x158] sm:$0xff] %vm12199_vm8, %v9070_v23 }
 0x140   : > { %4881 = vmatmul.mubr.bf16.gmra.mrb[32].mxu0 %v4448_v31  ;;  %v8282_v3 = vcombine.low %v3689_v55, %v3692_v60  ;;  %v3059_v52 = vrot.slane %v3057_v41, 4  ;;  %v3460_v47 = vshrl.u32 %v3261_v48, 16  ;;  %3768 = vst.msk [vmem:[#allocation2 + $0x40] sm:$0xff] %vm12197_vm10, %v3740_v29  ;;  %v3463_v8 = vshll.u32 %v3261_v48, 16  ;;  %v8021_v11 = vld [vmem:[%s9421_s22 + $0x7c] sm:$0xf]  ;;  %v10615_v58 = vpop.permute.xlu1 %3108 }
 0x141   : > { %v2821_v51 = vor.u32 %v2820_v16, %v2816_v42  ;;  %v2812_v4 = vrot.slane %v2811_v46, 4  ;;  %v3469_v53 = vshll.u32 %v3262_v49, 16  ;;  %v3473_v28 = vshrl.u32 %v3262_v49, 16  ;;  %v8022_v21 = vld [vmem:[%s9421_s22 + $0x80] sm:$0x1] }
 0x142   : > { %3551 = vrot.lane.b32.xlu0 %v8262_v18, %s9284_s13  ;;  %2580 = vrot.lane.b32.xlu1 %v9043_v26, %s9284_s13  ;;  %v3058_v45 = vsel %vm9414_vm2, %v8232_v37, %v3057_v41  ;;  %v3462_v63 = vrot.slane %v3460_v47, 4  ;;  %v3479_v0 = vshll.u32 %v3263_v10, 16  ;;  %v3061_v50 = vsel %vm9414_vm2, %v3059_v52, %v3060_v35  ;;  %v3601_v18 = vld [vmem:[#allocation5 + $0x6c] sm:$0xe]  ;;  %v3602_v16 = vld [vmem:[#allocation5 + $0x70] sm:$0xf] }
 0x143   : > { %v2822_v5 = vrot.slane %v2821_v51, 4  ;;  %v2817_v12 = vsel %vm9465_vm5, %v2812_v4, %v2816_v42  ;;  %v3465_v6 = vrot.slane %v3463_v8, 5  ;;  %v3471_v43 = vrot.slane %v3469_v53, 5  ;;  %v3851_v61 = vpop.permute.xlu0 %3850  ;;  %v9053_v42 = vld [vmem:[#allocation5 + $0x60] sm:$0xff]  }
 0x144   : > { %v3475_v19 = vrot.slane %v3473_v28, 4  ;;  %v3481_v20 = vrot.slane %v3479_v0, 5  ;;  %v1589_v2 = vshrl.u32 %v8020_v7, 16  ;;  %3879 = vst.msk [vmem:[#allocation2 + $0x40] sm:$0xff] %vm12196_vm11, %v3851_v61  ;;  %v1592_v26 = vshll.u32 %v8020_v7, 16  ;;  %v10629_v35 = vpop.permute.xlu1 %4370 }
 0x145   : > { %v2827_v15 = vsel %vm9465_vm5, %v2822_v5, %v2826_v24  ;;  %v3466_v17 = vor.u32 %v3465_v6, %v3462_v63  ;;  %v1598_v55 = vshll.u32 %v8021_v11, 16  ;;  %v1602_v30 = vshrl.u32 %v8021_v11, 16  ;;  %v4410_v34 = vld [vmem:[#allocation2 + $0x10] sm:$0xff]  ;;  %v3603_v24 = vld [vmem:[#allocation5 + $0x74] sm:$0x1] }
 0x146   : > { %3751 = vrot.lane.b32.xlu0 %v8282_v3, %s9282_s26  ;;  %v8222_v25 = vcombine.low %v2817_v12, %v2827_v15  ;;  %v3476_v27 = vor.u32 %v3475_v19, %v3471_v43  ;;  %v1591_v14 = vrot.slane %v1589_v2, 4  ;;  %v1608_v31 = vshll.u32 %v8022_v21, 16  ;;  %4930 = vmatmul.mubr.bf16.vlgmr.msra.gmra.mrb[0].mxu1 %v4410_v34  ;;  %v2630_v51 = vld [vmem:[#allocation5 + $0x60] sm:$0xf]  ;;  %v2631_v52 = vld [vmem:[#allocation5 + $0x64] sm:$0xf] }
 0x147   : > { %v8242_v36 = vcombine.low %v3058_v45, %v3061_v50  ;;  %v3467_v33 = vrot.slane %v3466_v17, 4  ;;  %v1594_v60 = vrot.slane %v1592_v26, 5  ;;  %v1600_v62 = vrot.slane %v1598_v55, 5  ;;  %v10624_v13 = vpop.permute.xlu0 %4368  ;;  %v2632_v5 = vld [vmem:[#allocation5 + $0x68] sm:$0x1] }
 0x148   : > { %2920 = vrot.lane.b32.xlu1 %v8222_v25, %s9282_s26  ;;  %v3477_v38 = vrot.slane %v3476_v27, 4  ;;  %v1604_v40 = vrot.slane %v1602_v30, 4  ;;  %v1610_v37 = vrot.slane %v1608_v31, 5  ;;  %v8273_v41 = vrot.slane %v3601_v18, 9  ;;  %v2970_v11 = vld [vmem:[#allocation5 + $0x60] sm:$0xe]  ;;  %v10645_v23 = vpop.permute.xlu1 %2570 }
 0x149   : > { %v3472_v32 = vsel %vm9465_vm5, %v3467_v33, %v3471_v43  ;;  %v1595_v44 = vor.u32 %v1594_v60, %v1591_v14  ;;  %v3695_v49 = vrot.slane %v3602_v16, 5  ;;  %v3698_v10 = vrot.slane %v3603_v24, 5  ;;  %v2971_v21 = vld [vmem:[#allocation5 + $0x64] sm:$0xf]  ;;  %v2972_v2 = vld [vmem:[#allocation5 + $0x68] sm:$0x1] }
 0x14a   : > { %3862 = vrot.lane.b32.xlu0 %v9049_v54, %s9283_s25  ;;  %v3482_v46 = vsel %vm9465_vm5, %v3477_v38, %v3481_v20  ;;  %v1605_v48 = vor.u32 %v1604_v40, %v1600_v62  ;;  %v2829_v54 = vshrl.u32 %v2630_v51, 16  ;;  %v2832_v63 = vshll.u32 %v2630_v51, 16  ;;  %v9057_v14 = vld [vmem:[#allocation5 + $0x78] sm:$0xff]   ;;  %v4235_v16 = vld [vmem:[#allocation5 + $0x84] sm:$0xe] }
 0x14b   : > { %v8263_v29 = vcombine.low %v3472_v32, %v3482_v46  ;;  %v1596_v3 = vrot.slane %v1595_v44, 4  ;;  %v3542_v47 = vpop.permute.xlu0 %3541  ;;  %v4416_v4 = vld [vmem:[#allocation2 + $0x40] sm:$0xff]  ;;  %v3696_v53 = vsel %vm9414_vm2, %v8273_v41, %v3695_v49  ;;  %v3697_v28 = vrot.slane %v3695_v49, 4  ;;  %v390_v32 = vld [vmem:[%s9784_s20 + $0x118] sm:$0x3] }
 0x14c   : > { %3120 = vrot.lane.b32.xlu1 %v8242_v36, %s9283_s25  ;;  %v1606_v8 = vrot.slane %v1605_v48, 4  ;;  %3569 = vst.msk [vmem:[#allocation2 + $0x68] sm:$0xff] %vm12198_vm9, %v3542_v47  ;;  %4937 = vmatprep.mubr.bf16.mxu1 %v4416_v4  ;;  %v2838_v0 = vshll.u32 %v2631_v52, 16  ;;  %v2842_v12 = vshrl.u32 %v2631_v52, 16  ;;  %v2831_v43 = vrot.slane %v2829_v54, 4 }
 0x14d   : > { %v1601_v45 = vsel %vm9465_vm5, %v1596_v3, %v1600_v62  ;;  %v3699_v6 = vsel %vm9414_vm2, %v3697_v28, %v3698_v10  ;;  %v2848_v7 = vshll.u32 %v2632_v5, 16  ;;  %v2834_v19 = vrot.slane %v2832_v63, 5  ;;  %v387_v31 = vld [vmem:[%s9784_s20 + $0x100] sm:$0x3]  ;;  %v4233_v38 = vld [vmem:[#allocation5 + $0x7c] sm:$0xf] }
 0x14e   : > { %3553 = vrot.lane.b32.xlu0 %v8263_v29, %s9284_s13  ;;  %v1611_v50 = vsel %vm9465_vm5, %v1606_v8, %v1610_v37  ;;  %v8283_v15 = vcombine.low %v3696_v53, %v3699_v6  ;;  %v2840_v20 = vrot.slane %v2838_v0, 5  ;;  %v2844_v17 = vrot.slane %v2842_v12, 4  ;;  %v4232_v62 = vld [vmem:[#allocation5 + $0x78] sm:$0xe]  ;;  %v4236_v24 = vld [vmem:[#allocation5 + $0x88] sm:$0xf] }
 0x14f   : > { %v8032_v61 = vcombine.low %v1601_v45, %v1611_v50  ;;  %v3742_v25 = vpop.permute.xlu0 %3741  ;;  %v8233_v26 = vrot.slane %v2970_v11, 9  ;;  %v3064_v55 = vrot.slane %v2971_v21, 5  ;;  %v2835_v27 = vor.u32 %v2834_v19, %v2831_v43  ;;  %v8158_v3 = vld [vmem:[%s9421_s22 + $0x24] sm:$0xe]  ;;  %v8159_v51 = vld [vmem:[%s9421_s22 + $0x28] sm:$0xf] }
 0x150   : > { %2582 = vrot.lane.b32.xlu1 %v9053_v42, %s9284_s13  ;;  %3769 = vst.msk [vmem:[#allocation2 + $0x68] sm:$0xff] %vm12197_vm10, %v3742_v25  ;;  %v3067_v30 = vrot.slane %v2972_v2, 5  ;;  %v2845_v34 = vor.u32 %v2844_v17, %v2840_v20  ;;  %v2850_v36 = vrot.slane %v2848_v7, 5  ;;  %v8580_v60 = vpack.c.bf16 %v387_v31, %v387_v31  ;;  %v8160_v47 = vld [vmem:[%s9421_s22 + $0x2c] sm:$0x1]  ;;  %v9071_v0 = vld [vmem:[#allocation5 + $0x78] sm:$0xff]  }
 0x151   : > { %1661 = vst.msk [vmem:[#allocation2 + $0x170] sm:$0xff] %vm12199_vm8, %v8032_v61  ;;  %v3066_v33 = vrot.slane %v3064_v55, 4  ;;  %v2836_v40 = vrot.slane %v2835_v27, 4  ;;  %v4326_v18 = vrot.slane %v4233_v38, 5  ;;  %v3065_v37 = vsel %vm9414_vm2, %v8233_v26, %v3064_v55  ;;  %v3264_v53 = vld [vmem:[#allocation5 + $0x78] sm:$0xf] }
 0x152   : > { %3753 = vrot.lane.b32.xlu0 %v8283_v15, %s9282_s26  ;;  %1861 = vst.msk [vmem:[#allocation2 + $0x170] sm:$0xff] %vm12198_vm9, %v10516_v9  ;;  %v2846_v44 = vrot.slane %v2845_v34, 4  ;;  %v8583_v9 = vpack.c.bf16 %v390_v32, %v390_v32  ;;  %v8313_v46 = vrot.slane %v4232_v62, 9  ;;  %v8314_v10 = vrot.slane %v4235_v16, 9  ;;  %v3265_v45 = vld [vmem:[#allocation5 + $0x7c] sm:$0xf] }
 0x153   : > { %1975 = vst.msk [vmem:[#allocation2 + $0x170] sm:$0xff] %vm12197_vm10, %v10545_v22  ;;  %v3853_v42 = vpop.permute.xlu0 %3852  ;;  %v2841_v22 = vsel %vm9465_vm5, %v2836_v40, %v2840_v20  ;;  %v3068_v41 = vsel %vm9414_vm2, %v3066_v33, %v3067_v30  ;;  %v4333_v29 = vrot.slane %v4236_v24, 5  ;;  %v8186_v4 = vrot.slane %v8158_v3, 9  ;;  %v4453_v7 = vld [vmem:[#allocation2 + $0x168] sm:$0xff]  ;;  %v3604_v15 = vld [vmem:[#allocation5 + $0x78] sm:$0xe] }
 0x154   : > { %2315 = vst.msk [vmem:[#allocation2 + $0x170] sm:$0xff] %vm12196_vm11, %v10563_v39  ;;  %3880 = vst.msk [vmem:[#allocation2 + $0x68] sm:$0xff] %vm12196_vm11, %v3853_v42  ;;  %v4328_v39 = vrot.slane %v4326_v18, 4  ;;  %v10667_v48 = vpop.permute.xlu1 %2910  ;;  %v2851_v49 = vsel %vm9465_vm5, %v2846_v44, %v2850_v36  ;;  %v2385_v8 = vrot.slane %v8159_v51, 5  ;;  %v8243_v28 = vcombine.low %v3065_v37, %v3068_v41  ;;  %v3605_v34 = vld [vmem:[#allocation5 + $0x7c] sm:$0xf] }
 0x155   : > { %581 = vst.msk [vmem:[#allocation5 + $0x80] sm:$0x1] %vm550_vm7, %v8580_v60  ;;  %584 = vst.msk [vmem:[#allocation5 + $0x8c] sm:$0x1] %vm550_vm7, %v8583_v9  ;;  %v8223_v52 = vcombine.low %v2841_v22, %v2851_v49  ;;  %v4335_v5 = vrot.slane %v4333_v29, 4  ;;  %v2388_v54 = vrot.slane %v8160_v47, 5  ;;  %v4327_v21 = vsel %vm9414_vm2, %v8313_v46, %v4326_v18 }
 0x156   : > { %3864 = vrot.lane.b32.xlu0 %v9057_v14, %s9283_s25  ;;  %v3484_v63 = vshrl.u32 %v3264_v53, 16  ;;  %v2386_v12 = vsel %vm9414_vm2, %v8186_v4, %v2385_v8  ;;  %v2387_v50 = vrot.slane %v2385_v8, 4  ;;  %v3487_v6 = vshll.u32 %v3264_v53, 16  ;;  %3236 = vst.msk [vmem:[#allocation2 + $0x180] sm:$0xff] %vm12199_vm8, %v9071_v0  ;;  %v2633_v9 = vld [vmem:[#allocation5 + $0x6c] sm:$0xf] }
 0x157   : > { %2922 = vrot.lane.b32.xlu1 %v8223_v52, %s9282_s26  ;;  %v3493_v43 = vshll.u32 %v3265_v45, 16  ;;  %v3497_v61 = vshrl.u32 %v3265_v45, 16  ;;  %v4334_v33 = vsel %vm9414_vm2, %v8314_v10, %v4333_v29  ;;  %v8274_v38 = vrot.slane %v3604_v15, 9  ;;  %v2634_v16 = vld [vmem:[#allocation5 + $0x70] sm:$0xf] }
 0x158   : > { %v3486_v11 = vrot.slane %v3484_v63, 4  ;;  %v10678_v19 = vpop.permute.xlu1 %3110  ;;  %v2389_v2 = vsel %vm9414_vm2, %v2387_v50, %v2388_v54  ;;  %v3489_v17 = vrot.slane %v3487_v6, 5  ;;  %v3702_v40 = vrot.slane %v3605_v34, 5  ;;  %v2635_v49 = vld [vmem:[#allocation5 + $0x74] sm:$0x1]  ;;  %v9060_v50 = vld [vmem:[#allocation5 + $0x6c] sm:$0xff]  }
 0x159   : > { %v3495_v26 = vrot.slane %v3493_v43, 5  ;;  %v8196_v27 = vcombine.low %v2386_v12, %v2389_v2  ;;  %v3499_v14 = vrot.slane %v3497_v61, 4  ;;  %v2853_v3 = vshrl.u32 %v2633_v9, 16  ;;  %v2973_v8 = vld [vmem:[#allocation5 + $0x6c] sm:$0xe] }
 0x15a   : > { %v3490_v60 = vor.u32 %v3489_v17, %v3486_v11  ;;  %v3703_v41 = vsel %vm9414_vm2, %v8274_v38, %v3702_v40  ;;  %v3704_v46 = vrot.slane %v3702_v40, 4  ;;  %v2856_v47 = vshll.u32 %v2633_v9, 16  ;;  %v2974_v53 = vld [vmem:[#allocation5 + $0x70] sm:$0xf]  ;;  %v2975_v63 = vld [vmem:[#allocation5 + $0x74] sm:$0x1] }
 0x15b   : > { %v4454_v31 = vld [vmem:[#allocation2 + $0x170] sm:$0xff]  ;;  %3122 = vrot.lane.b32.xlu1 %v8243_v28, %s9283_s25  ;;  %2487 = vst.msk [vmem:[#allocation2 + $0x38] sm:$0xff] %vm12199_vm8, %v8196_v27  ;;  %v3500_v44 = vor.u32 %v3499_v14, %v3495_v26  ;;  %v2862_v4 = vshll.u32 %v2634_v16, 16  ;;  %v2855_v54 = vrot.slane %v2853_v3, 4  ;;  %v2866_v45 = vshrl.u32 %v2634_v16, 16  ;;  %v4421_v14 = vld [vmem:[#allocation2 + $0x68] sm:$0xff] }
 0x15c   : > { %v4234_v20 = vld [vmem:[#allocation5 + $0x80] sm:$0x1]  ;;  %v4237_v36 = vld [vmem:[#allocation5 + $0x8c] sm:$0x1]  ;;  %4888 = vmatprep.mubr.bf16.mxu0 %v4454_v31  ;;  %2597 = vst.msk [vmem:[#allocation2 + $0x38] sm:$0xff] %vm12198_vm9, %v10575_v57  ;;  %v3491_v22 = vrot.slane %v3490_v60, 4 }
 0x15d   : > { %v3266_v25 = vld [vmem:[#allocation5 + $0x80] sm:$0x1]  ;;  %v4329_v55 = vrot.slane %v4234_v20, 5  ;;  %v10688_v18 = vpop.permute.xlu0 %4372  ;;  %v4336_v42 = vrot.slane %v4237_v36, 5  ;;  %4889 = vmatmul.mubr.bf16.gmra.mrb[36].mxu0 %v4453_v7  ;;  %v3501_v10 = vrot.slane %v3500_v44, 4  ;;  %2937 = vst.msk [vmem:[#allocation2 + $0x38] sm:$0xff] %vm12197_vm10, %v10600_v56 }
 0x15e   : > { %v3503_v30 = vshll.u32 %v3266_v25, 16  ;;  %v3606_v62 = vld [vmem:[#allocation5 + $0x80] sm:$0x1]  ;;  %v3496_v52 = vsel %vm9465_vm5, %v3491_v22, %v3495_v26  ;;  %3137 = vst.msk [vmem:[#allocation2 + $0x38] sm:$0xff] %vm12196_vm11, %v10615_v58  ;;  %v3888_v0 = vld [vmem:[#allocation5 + $0x18] sm:$0xf] }
 0x15f   : > { %v4330_v32 = vsel %vm9414_vm2, %v4328_v39, %v4329_v55  ;;  %v4337_v39 = vsel %vm9414_vm2, %v4335_v5, %v4336_v42  ;;  %v3705_v29 = vrot.slane %v3606_v62, 5  ;;  %v2858_v6 = vrot.slane %v2856_v47, 5  ;;  %v3889_v7 = vld [vmem:[#allocation5 + $0x1c] sm:$0xf]  ;;  %v3891_v55 = vld [vmem:[#allocation5 + $0x24] sm:$0xf] }
 0x160   : > { %v3505_v37 = vrot.slane %v3503_v30, 5  ;;  %v8323_v24 = vcombine.low %v4327_v21, %v4330_v32  ;;  %v8324_v57 = vcombine.low %v4334_v33, %v4337_v39  ;;  %v2864_v43 = vrot.slane %v2862_v4, 5  ;;  %v3890_v21 = vld [vmem:[#allocation5 + $0x20] sm:$0x1]  ;;  %v3892_v33 = vld [vmem:[#allocation5 + $0x28] sm:$0xf] }
 0x161   : > { %v10701_v51 = vpop.permute.xlu1 %4374  ;;  %v3544_v28 = vpop.permute.xlu0 %3543  ;;  %v3706_v5 = vsel %vm9414_vm2, %v3704_v46, %v3705_v29  ;;  %v2868_v11 = vrot.slane %v2866_v45, 4  ;;  %v2872_v61 = vshll.u32 %v2635_v49, 16  ;;  %v8234_v15 = vrot.slane %v2973_v8, 9  ;;  %v3893_v32 = vld [vmem:[#allocation5 + $0x2c] sm:$0x1]  ;;  %v9061_v22 = vld [vmem:[#allocation5 + $0x84] sm:$0xff]  }
 0x162   : > { %4384 = vrot.lane.b32.xlu0 %v8323_v24, %s9284_s13  ;;  %v3506_v56 = vsel %vm9465_vm5, %v3501_v10, %v3505_v37  ;;  %3570 = vst.msk [vmem:[#allocation2 + $0x90] sm:$0xff] %vm12198_vm9, %v3544_v28  ;;  %4386 = vrot.lane.b32.xlu1 %v8324_v57, %s9284_s13  ;;  %v8284_v58 = vcombine.low %v3703_v41, %v3706_v5  ;;  %v3071_v20 = vrot.slane %v2974_v53, 5  ;;  %v3074_v25 = vrot.slane %v2975_v63, 5  ;;  %v8161_v39 = vld [vmem:[%s9421_s22 + $0x30] sm:$0xe] }
 0x163   : > { %v8264_v12 = vcombine.low %v3496_v52, %v3506_v56  ;;  %v2859_v2 = vor.u32 %v2858_v6, %v2855_v54  ;;  %v3919_v17 = vshrl.u32 %v3888_v0, 16  ;;  %v3922_v26 = vshll.u32 %v3888_v0, 16  ;;  %v8162_v47 = vld [vmem:[%s9421_s22 + $0x34] sm:$0xf]  ;;  %v8163_v56 = vld [vmem:[%s9421_s22 + $0x38] sm:$0x1] }
 0x164   : > { %v2869_v31 = vor.u32 %v2868_v11, %v2864_v43  ;;  %v2874_v34 = vrot.slane %v2872_v61, 5  ;;  %v3073_v36 = vrot.slane %v3071_v20, 4  ;;  %v3928_v40 = vshll.u32 %v3889_v7, 16 }
 0x165   : > { %v10715_v27 = vpop.permute.xlu1 %2572  ;;  %v3744_v30 = vpop.permute.xlu0 %3743  ;;  %v2860_v60 = vrot.slane %v2859_v2, 4  ;;  %v3921_v62 = vrot.slane %v3919_v17, 4  ;;  %v3924_v38 = vrot.slane %v3922_v26, 5  ;;  %v3072_v44 = vsel %vm9414_vm2, %v8234_v15, %v3071_v20  ;;  %v4415_v16 = vld [vmem:[#allocation2 + $0x38] sm:$0xff] }
 0x166   : > { %3555 = vrot.lane.b32.xlu0 %v8264_v12, %s9284_s13  ;;  %3770 = vst.msk [vmem:[#allocation2 + $0x90] sm:$0xff] %vm12197_vm10, %v3744_v30  ;;  %2584 = vrot.lane.b32.xlu1 %v9060_v50, %s9284_s13  ;;  %v2870_v42 = vrot.slane %v2869_v31, 4  ;;  %v3932_v37 = vshrl.u32 %v3889_v7, 16  ;;  %v3938_v9 = vshll.u32 %v3890_v21, 16  ;;  %v3075_v41 = vsel %vm9414_vm2, %v3073_v36, %v3074_v25  ;;  %v3894_v15 = vld [vmem:[#allocation5 + $0x30] sm:$0xf] }
 0x167   : > { %v2865_v24 = vsel %vm9465_vm5, %v2860_v60, %v2864_v43  ;;  %v3925_v46 = vor.u32 %v3924_v38, %v3921_v62  ;;  %v3930_v49 = vrot.slane %v3928_v40, 5  ;;  %4938 = vmatmul.mubr.bf16.gmra.mrb[4].mxu1 %v4415_v16  ;;  %v3943_v52 = vshrl.u32 %v3891_v55, 16  ;;  %v3895_v25 = vld [vmem:[#allocation5 + $0x34] sm:$0xf]  ;;  %v3896_v31 = vld [vmem:[#allocation5 + $0x38] sm:$0x1] }
 0x168   : > { %v2875_v29 = vsel %vm9465_vm5, %v2870_v42, %v2874_v34  ;;  %v3934_v3 = vrot.slane %v3932_v37, 4  ;;  %v3940_v57 = vrot.slane %v3938_v9, 5  ;;  %4945 = vmatprep.mubr.bf16.mxu1 %v4421_v14  ;;  %v3946_v53 = vshll.u32 %v3891_v55, 16  ;;  %v3897_v34 = vld [vmem:[#allocation5 + $0x3c] sm:$0xf] }
 0x169   : > { %v3855_v10 = vpop.permute.xlu0 %3854  ;;  %v8224_v4 = vcombine.low %v2865_v24, %v2875_v29  ;;  %v3926_v8 = vrot.slane %v3925_v46, 4  ;;  %v3952_v28 = vshll.u32 %v3892_v33, 16  ;;  %v3945_v45 = vrot.slane %v3943_v52, 4  ;;  %v3898_v40 = vld [vmem:[#allocation5 + $0x40] sm:$0xf] }
 0x16a   : > { %3755 = vrot.lane.b32.xlu0 %v8284_v58, %s9282_s26  ;;  %3881 = vst.msk [vmem:[#allocation2 + $0x90] sm:$0xff] %vm12196_vm11, %v3855_v10  ;;  %v3935_v54 = vor.u32 %v3934_v3, %v3930_v49  ;;  %v3956_v63 = vshrl.u32 %v3892_v33, 16  ;;  %v3962_v0 = vshll.u32 %v3893_v32, 16  ;;  %v8244_v12 = vcombine.low %v3072_v44, %v3075_v41  ;;  %v3899_v9 = vld [vmem:[#allocation5 + $0x44] sm:$0x1] }
 0x16b   : > { %v10732_v5 = vpop.permute.xlu1 %2912  ;;  %2924 = vrot.lane.b32.xlu1 %v8224_v4, %s9282_s26  ;;  %v3948_v50 = vrot.slane %v3946_v53, 5  ;;  %v3954_v58 = vrot.slane %v3952_v28, 5  ;;  %v8187_v6 = vrot.slane %v8161_v39, 9  ;;  %v3931_v43 = vsel %vm9465_vm5, %v3926_v8, %v3930_v49  ;;  %v8164_v46 = vld [vmem:[%s9421_s22 + $0x3c] sm:$0xe] }
 0x16c   : > { %v3936_v7 = vrot.slane %v3935_v54, 4  ;;  %v3958_v11 = vrot.slane %v3956_v63, 4  ;;  %v2392_v61 = vrot.slane %v8162_v47, 5  ;;  %v3964_v21 = vrot.slane %v3962_v0, 5  ;;  %v8166_v53 = vld [vmem:[%s9421_s22 + $0x44] sm:$0x1] }
 0x16d   : > { %v3949_v20 = vor.u32 %v3948_v50, %v3945_v45  ;;  %v2395_v2 = vrot.slane %v8163_v56, 5  ;;  %v3967_v17 = vshrl.u32 %v3894_v15, 16  ;;  %v3970_v38 = vshll.u32 %v3894_v15, 16 }
 0x16e   : > { %3866 = vrot.lane.b32.xlu0 %v9061_v22, %s9283_s25  ;;  %v3941_v26 = vsel %vm9465_vm5, %v3936_v7, %v3940_v57  ;;  %v3959_v55 = vor.u32 %v3958_v11, %v3954_v58  ;;  %v2393_v14 = vsel %vm9414_vm2, %v8187_v6, %v2392_v61  ;;  %v2394_v30 = vrot.slane %v2392_v61, 4  ;;  %v8165_v57 = vld [vmem:[%s9421_s22 + $0x40] sm:$0xf]  ;;  %v8168_v61 = vld [vmem:[%s9421_s22 + $0x4c] sm:$0xf] }
 0x16f   : > { %v10742_v36 = vpop.permute.xlu1 %3112  ;;  %3124 = vrot.lane.b32.xlu1 %v8244_v12, %s9283_s25  ;;  %v8295_v33 = vcombine.low %v3931_v43, %v3941_v26  ;;  %v3950_v60 = vrot.slane %v3949_v20, 4  ;;  %v3969_v62 = vrot.slane %v3967_v17, 4  ;;  %v3976_v44 = vshll.u32 %v3895_v25, 16 }
 0x170   : > { %v3960_v32 = vrot.slane %v3959_v55, 4  ;;  %v2396_v42 = vsel %vm9414_vm2, %v2394_v30, %v2395_v2  ;;  %v3980_v37 = vshrl.u32 %v3895_v25, 16  ;;  %v3972_v22 = vrot.slane %v3970_v38, 5  ;;  %v8169_v2 = vld [vmem:[%s9421_s22 + $0x50] sm:$0x1] }
 0x171   : > { %4198 = vst.msk [vmem:[#allocation2 + $0x20] sm:$0xff] %vm12199_vm8, %v8295_v33  ;;  %v3955_v16 = vsel %vm9465_vm5, %v3950_v60, %v3954_v58  ;;  %v8197_v24 = vcombine.low %v2393_v14, %v2396_v42  ;;  %v3986_v41 = vshll.u32 %v3896_v31, 16  ;;  %v3978_v10 = vrot.slane %v3976_v44, 5  ;;  %v8167_v58 = vld [vmem:[%s9421_s22 + $0x48] sm:$0xe] }
 0x172   : > { %4398 = vst.msk [vmem:[#allocation2 + $0x20] sm:$0xff] %vm12198_vm9, %v10624_v13  ;;  %v3965_v39 = vsel %vm9465_vm5, %v3960_v32, %v3964_v21  ;;  %v3982_v29 = vrot.slane %v3980_v37, 4  ;;  %v3991_v3 = vshrl.u32 %v3897_v34, 16  ;;  %v3973_v47 = vor.u32 %v3972_v22, %v3969_v62  ;;  %v3900_v25 = vld [vmem:[#allocation5 + $0x48] sm:$0xf] }
 0x173   : > { %v3546_v49 = vpop.permute.xlu0 %3545  ;;  %v8296_v52 = vcombine.low %v3955_v16, %v3965_v39  ;;  %2488 = vst.msk [vmem:[#allocation2 + $0x60] sm:$0xff] %vm12199_vm8, %v8197_v24  ;;  %v3988_v4 = vrot.slane %v3986_v41, 5  ;;  %v3994_v8 = vshll.u32 %v3897_v34, 16  ;;  %v4000_v56 = vshll.u32 %v3898_v40, 16  ;;  %v10761_v45 = vpop.permute.xlu1 %2574  ;;  %v3901_v55 = vld [vmem:[#allocation5 + $0x4c] sm:$0xf] }
 0x174   : > { %3571 = vst.msk [vmem:[#allocation2 + $0xb8] sm:$0xff] %vm12198_vm9, %v3546_v49  ;;  %2598 = vst.msk [vmem:[#allocation2 + $0x60] sm:$0xff] %vm12198_vm9, %v10645_v23  ;;  %v3983_v13 = vor.u32 %v3982_v29, %v3978_v10  ;;  %v3993_v28 = vrot.slane %v3991_v3, 4  ;;  %v4004_v54 = vshrl.u32 %v3898_v40, 16  ;;  %v3974_v63 = vrot.slane %v3973_v47, 4  ;;  %v4426_v39 = vld [vmem:[#allocation2 + $0x90] sm:$0xff] }
 0x175   : > { %4199 = vst.msk [vmem:[#allocation2 + $0x48] sm:$0xff] %vm12199_vm8, %v8296_v52  ;;  %v3996_v0 = vrot.slane %v3994_v8, 5  ;;  %v4010_v12 = vshll.u32 %v3899_v9, 16  ;;  %v8188_v50 = vrot.slane %v8164_v46, 9  ;;  %v4002_v43 = vrot.slane %v4000_v56, 5 }
 0x176   : > { %2938 = vst.msk [vmem:[#allocation2 + $0x60] sm:$0xff] %vm12197_vm10, %v10667_v48  ;;  %v3984_v23 = vrot.slane %v3983_v13, 4  ;;  %v4006_v7 = vrot.slane %v4004_v54, 4  ;;  %v2399_v11 = vrot.slane %v8165_v57, 5  ;;  %v3979_v48 = vsel %vm9465_vm5, %v3974_v63, %v3978_v10  ;;  %v3902_v14 = vld [vmem:[#allocation5 + $0x50] sm:$0x1] }
 0x177   : > { %v3746_v6 = vpop.permute.xlu0 %3745  ;;  %4399 = vst.msk [vmem:[#allocation2 + $0x48] sm:$0xff] %vm12198_vm9, %v10629_v35  ;;  %v3997_v15 = vor.u32 %v3996_v0, %v3993_v28  ;;  %v4012_v20 = vrot.slane %v4010_v12, 5  ;;  %v2402_v21 = vrot.slane %v8166_v53, 5  ;;  %v8189_v33 = vrot.slane %v8167_v58, 9  ;;  %v3903_v38 = vld [vmem:[#allocation5 + $0x54] sm:$0xf] }
 0x178   : > { %3138 = vst.msk [vmem:[#allocation2 + $0x60] sm:$0xff] %vm12196_vm11, %v10678_v19  ;;  %v3989_v35 = vsel %vm9465_vm5, %v3984_v23, %v3988_v4  ;;  %v4007_v17 = vor.u32 %v4006_v7, %v4002_v43  ;;  %v2400_v19 = vsel %vm9414_vm2, %v8188_v50, %v2399_v11  ;;  %v2401_v26 = vrot.slane %v2399_v11, 4  ;;  %v3904_v9 = vld [vmem:[#allocation5 + $0x58] sm:$0xf]  ;;  %v3905_v46 = vld [vmem:[#allocation5 + $0x5c] sm:$0x1] }
 0x179   : > { %3771 = vst.msk [vmem:[#allocation2 + $0xb8] sm:$0xff] %vm12197_vm10, %v3746_v6  ;;  %v4412_v30 = vld [vmem:[#allocation2 + $0x20] sm:$0xff]  ;;  %v8297_v31 = vcombine.low %v3979_v48, %v3989_v35  ;;  %v3998_v34 = vrot.slane %v3997_v15, 4  ;;  %v2406_v60 = vrot.slane %v8168_v61, 5  ;;  %v2409_v42 = vrot.slane %v8169_v2, 5 }
 0x17a   : > { %8853 = vmatprep.mubr.msk.bf16.mxu0 %vm4753_vm12, %v4412_v30  ;;  %v4008_v40 = vrot.slane %v4007_v17, 4  ;;  %v2403_v32 = vsel %vm9414_vm2, %v2401_v26, %v2402_v21  ;;  %v2915_v44 = vpop.permute.xlu1 %2914  ;;  %v4015_v37 = vshrl.u32 %v3900_v25, 16  ;;  %v4018_v29 = vshll.u32 %v3900_v25, 16  ;;  %v8170_v13 = vld [vmem:[%s9421_s22 + $0x54] sm:$0xe] }
 0x17b   : > { %v3857_v62 = vpop.permute.xlu0 %3856  ;;  %4200 = vst.msk [vmem:[#allocation2 + $0x70] sm:$0xff] %vm12199_vm8, %v8297_v31  ;;  %v4003_v16 = vsel %vm9465_vm5, %v3998_v34, %v4002_v43  ;;  %v8198_v24 = vcombine.low %v2400_v19, %v2403_v32  ;;  %v2407_v22 = vsel %vm9414_vm2, %v8189_v33, %v2406_v60  ;;  %v2408_v41 = vrot.slane %v2406_v60, 4  ;;  %v8171_v63 = vld [vmem:[%s9421_s22 + $0x58] sm:$0xf]  ;;  %v8172_v6 = vld [vmem:[%s9421_s22 + $0x5c] sm:$0x1] }
 0x17c   : > { %3882 = vst.msk [vmem:[#allocation2 + $0xb8] sm:$0xff] %vm12196_vm11, %v3857_v62  ;;  %v4013_v49 = vsel %vm9465_vm5, %v4008_v40, %v4012_v20  ;;  %v4017_v10 = vrot.slane %v4015_v37, 4  ;;  %v4024_v3 = vshll.u32 %v3901_v55, 16  ;;  %v4028_v8 = vshrl.u32 %v3901_v55, 16  ;;  %v8173_v2 = vld [vmem:[%s9421_s22 + $0x60] sm:$0xe] }
 0x17d   : > { %4400 = vst.msk [vmem:[#allocation2 + $0x70] sm:$0xff] %vm12198_vm9, %v10688_v18  ;;  %v8298_v52 = vcombine.low %v4003_v16, %v4013_v49  ;;  %v2410_v4 = vsel %vm9414_vm2, %v2408_v41, %v2409_v42  ;;  %v4034_v53 = vshll.u32 %v3902_v14, 16  ;;  %v4020_v28 = vrot.slane %v4018_v29, 5  ;;  %v8175_v34 = vld [vmem:[%s9421_s22 + $0x68] sm:$0x1] }
 0x17e   : > { %v4417_v57 = vld [vmem:[#allocation2 + $0x48] sm:$0xff]  ;;  %2489 = vst.msk [vmem:[#allocation2 + $0x88] sm:$0xff] %vm12199_vm8, %v8198_v24  ;;  %v8199_v18 = vcombine.low %v2407_v22, %v2410_v4  ;;  %v4026_v56 = vrot.slane %v4024_v3, 5  ;;  %v4039_v54 = vshrl.u32 %v3903_v38, 16  ;;  %v4030_v0 = vrot.slane %v4028_v8, 4 }
 0x17f   : > { %v4420_v47 = vld [vmem:[#allocation2 + $0x60] sm:$0xff]  ;;  %8854 = vmatmul.mubr.msk.bf16.vlgmr.msra.gmra.mrb[40].mxu0 %vm4753_vm12, %v4417_v57  ;;  %2599 = vst.msk [vmem:[#allocation2 + $0x88] sm:$0xff] %vm12198_vm9, %v10715_v27  ;;  %v4036_v12 = vrot.slane %v4034_v53, 5  ;;  %v4042_v50 = vshll.u32 %v3903_v38, 16  ;;  %v4048_v58 = vshll.u32 %v3904_v9, 16  ;;  %v3115_v27 = vpop.permute.xlu1 %3114  ;;  %v4021_v23 = vor.u32 %v4020_v28, %v4017_v10 }
 0x180   : > { %4946 = vmatmul.mubr.bf16.gmra.mrb[8].mxu1 %v4420_v47  ;;  %4201 = vst.msk [vmem:[#allocation2 + $0x98] sm:$0xff] %vm12199_vm8, %v8298_v52  ;;  %2490 = vst.msk [vmem:[#allocation2 + $0xb0] sm:$0xff] %vm12199_vm8, %v8199_v18  ;;  %v4041_v43 = vrot.slane %v4039_v54, 4  ;;  %v4052_v7 = vshrl.u32 %v3904_v9, 16  ;;  %v4031_v11 = vor.u32 %v4030_v0, %v4026_v56  ;;  %v8190_v15 = vrot.slane %v8170_v13, 9 }
 0x181   : > { %2939 = vst.msk [vmem:[#allocation2 + $0x88] sm:$0xff] %vm12197_vm10, %v10732_v5  ;;  %4953 = vmatprep.mubr.bf16.mxu1 %v4426_v39  ;;  %v4058_v5 = vshll.u32 %v3905_v46, 16  ;;  %v4044_v61 = vrot.slane %v4042_v50, 5  ;;  %v4050_v48 = vrot.slane %v4048_v58, 5  ;;  %v2413_v21 = vrot.slane %v8171_v63, 5 }
 0x182   : > { %4401 = vst.msk [vmem:[#allocation2 + $0x98] sm:$0xff] %vm12198_vm9, %v10701_v51  ;;  %2600 = vst.msk [vmem:[#allocation2 + $0xb0] sm:$0xff] %vm12198_vm9, %v10761_v45  ;;  %v4022_v51 = vrot.slane %v4021_v23, 4  ;;  %v4032_v35 = vrot.slane %v4031_v11, 4  ;;  %v2416_v19 = vrot.slane %v8172_v6, 5  ;;  %v8191_v26 = vrot.slane %v8173_v2, 9 }
 0x183   : > { %3139 = vst.msk [vmem:[#allocation2 + $0x88] sm:$0xff] %vm12196_vm11, %v10742_v36  ;;  %v4054_v36 = vrot.slane %v4052_v7, 4  ;;  %v4060_v20 = vrot.slane %v4058_v5, 5  ;;  %v4045_v17 = vor.u32 %v4044_v61, %v4041_v43  ;;  %v8174_v45 = vld [vmem:[%s9421_s22 + $0x64] sm:$0xf]  ;;  %v2414_v30 = vsel %vm9414_vm2, %v8190_v15, %v2413_v21  ;;  %v4431_v40 = vld [vmem:[#allocation2 + $0xb8] sm:$0xff] }
 0x184   : > { %2940 = vst.msk [vmem:[#allocation2 + $0xb0] sm:$0xff] %vm12197_vm10, %v2915_v44  ;;  %v4422_v25 = vld [vmem:[#allocation2 + $0x70] sm:$0xff]  ;;  %v4027_v55 = vsel %vm9465_vm5, %v4022_v51, %v4026_v56  ;;  %v2415_v31 = vrot.slane %v2413_v21, 4  ;;  %v3906_v33 = vld [vmem:[#allocation5 + $0x60] sm:$0xf]  ;;  %v4037_v60 = vsel %vm9465_vm5, %v4032_v35, %v4036_v12  ;;  %v2420_v32 = vrot.slane %v8174_v45, 5 }
 0x185   : > { %3140 = vst.msk [vmem:[#allocation2 + $0xb0] sm:$0xff] %vm12196_vm11, %v3115_v27  ;;  %8857 = vmatprep.mubr.msk.bf16.mxu0 %vm4753_vm12, %v4422_v25  ;;  %v4055_v14 = vor.u32 %v4054_v36, %v4050_v48  ;;  %v4046_v38 = vrot.slane %v4045_v17, 4  ;;  %v2423_v42 = vrot.slane %v8175_v34, 5  ;;  %v3907_v44 = vld [vmem:[#allocation5 + $0x64] sm:$0xf]  ;;  %v8299_v37 = vcombine.low %v4027_v55, %v4037_v60 }
 0x186   : > { %v2417_v16 = vsel %vm9414_vm2, %v2415_v31, %v2416_v19  ;;  %v3908_v24 = vld [vmem:[#allocation5 + $0x68] sm:$0x1]  ;;  %v4063_v22 = vshrl.u32 %v3906_v33, 16  ;;  %v3909_v41 = vld [vmem:[#allocation5 + $0x6c] sm:$0xf]  ;;  %v2421_v29 = vsel %vm9414_vm2, %v8191_v26, %v2420_v32  ;;  %v2422_v3 = vrot.slane %v2420_v32, 4 }
 0x187   : > { %v4377_v62 = vpop.permute.xlu0 %4376  ;;  %v4056_v9 = vrot.slane %v4055_v14, 4  ;;  %v4051_v39 = vsel %vm9465_vm5, %v4046_v38, %v4050_v48  ;;  %v8200_v10 = vcombine.low %v2414_v30, %v2417_v16  ;;  %v3910_v57 = vld [vmem:[#allocation5 + $0x70] sm:$0xf]  ;;  %4202 = vst.msk [vmem:[#allocation2 + $0xc0] sm:$0xff] %vm12199_vm8, %v8299_v37  ;;  %v4066_v4 = vshll.u32 %v3906_v33, 16 }
 0x188   : > { %v4065_v47 = vrot.slane %v4063_v22, 4  ;;  %v4072_v8 = vshll.u32 %v3907_v44, 16  ;;  %v3911_v53 = vld [vmem:[#allocation5 + $0x74] sm:$0x1]  ;;  %4402 = vst.msk [vmem:[#allocation2 + $0xc0] sm:$0xff] %vm12198_vm9, %v4377_v62  ;;  %v2424_v56 = vsel %vm9414_vm2, %v2422_v3, %v2423_v42  ;;  %v4076_v54 = vshrl.u32 %v3907_v44, 16 }
 0x189   : > { %v4427_v46 = vld [vmem:[#allocation2 + $0x98] sm:$0xff]  ;;  %v4061_v52 = vsel %vm9465_vm5, %v4056_v9, %v4060_v20  ;;  %2491 = vst.msk [vmem:[#allocation2 + $0xd8] sm:$0xff] %vm12199_vm8, %v8200_v10  ;;  %v4082_v63 = vshll.u32 %v3908_v24, 16  ;;  %v8201_v0 = vcombine.low %v2421_v29, %v2424_v56  ;;  %v4068_v12 = vrot.slane %v4066_v4, 5  ;;  %v8176_v6 = vld [vmem:[%s9421_s22 + $0x6c] sm:$0xe] }
 0x18a   : > { %v4425_v49 = vld [vmem:[#allocation2 + $0x88] sm:$0xff]  ;;  %8858 = vmatmul.mubr.msk.bf16.gmra.mrb[44].mxu0 %vm4753_vm12, %v4427_v46  ;;  %v8300_v13 = vcombine.low %v4051_v39, %v4061_v52  ;;  %v4074_v50 = vrot.slane %v4072_v8, 5  ;;  %v4087_v58 = vshrl.u32 %v3909_v41, 16  ;;  %v4078_v27 = vrot.slane %v4076_v54, 4  ;;  %v8177_v5 = vld [vmem:[%s9421_s22 + $0x70] sm:$0xf] }
 0x18b   : > { %4954 = vmatmul.mubr.bf16.gmra.mrb[12].mxu1 %v4425_v49  ;;  %v3548_v28 = vpop.permute.xlu0 %3547  ;;  %v4084_v23 = vrot.slane %v4082_v63, 5  ;;  %v4090_v43 = vshll.u32 %v3909_v41, 16  ;;  %v4096_v7 = vshll.u32 %v3910_v57, 16  ;;  %2492 = vst.msk [vmem:[#allocation2 + $0x100] sm:$0xff] %vm12199_vm8, %v8201_v0  ;;  %v4069_v11 = vor.u32 %v4068_v12, %v4065_v47  ;;  %v8178_v51 = vld [vmem:[%s9421_s22 + $0x74] sm:$0x1] }
 0x18c   : > { %v4379_v18 = vpop.permute.xlu1 %4378  ;;  %4961 = vmatprep.mubr.bf16.mxu1 %v4431_v40  ;;  %3572 = vst.msk [vmem:[#allocation2 + $0xe0] sm:$0xff] %vm12198_vm9, %v3548_v28  ;;  %v4089_v61 = vrot.slane %v4087_v58, 4  ;;  %v4100_v48 = vshrl.u32 %v3910_v57, 16  ;;  %v4106_v15 = vshll.u32 %v3911_v53, 16  ;;  %v4430_v20 = vld [vmem:[#allocation2 + $0xb0] sm:$0xff]  ;;  %v4079_v2 = vor.u32 %v4078_v27, %v4074_v50 }
 0x18d   : > { %4203 = vst.msk [vmem:[#allocation2 + $0xe8] sm:$0xff] %vm12199_vm8, %v8300_v13  ;;  %v4092_v25 = vrot.slane %v4090_v43, 5  ;;  %v4098_v35 = vrot.slane %v4096_v7, 5  ;;  %v8192_v17 = vrot.slane %v8176_v6, 9  ;;  %v4070_v19 = vrot.slane %v4069_v11, 4 }
 0x18e   : > { %4403 = vst.msk [vmem:[#allocation2 + $0xe8] sm:$0xff] %vm12198_vm9, %v4379_v18  ;;  %v4102_v45 = vrot.slane %v4100_v48, 4  ;;  %v4108_v26 = vrot.slane %v4106_v15, 5  ;;  %v2427_v55 = vrot.slane %v8177_v5, 5  ;;  %v4080_v14 = vrot.slane %v4079_v2, 4 }
 0x18f   : > { %v3748_v21 = vpop.permute.xlu0 %3747  ;;  %v4093_v30 = vor.u32 %v4092_v25, %v4089_v61  ;;  %v2430_v31 = vrot.slane %v8178_v51, 5  ;;  %v8179_v34 = vld [vmem:[%s9421_s22 + $0x78] sm:$0xe]  ;;  %v8180_v33 = vld [vmem:[%s9421_s22 + $0x7c] sm:$0xf]  ;;  %v4432_v60 = vld [vmem:[#allocation2 + $0xc0] sm:$0xff]  ;;  %v4075_v62 = vsel %vm9465_vm5, %v4070_v19, %v4074_v50 }
 0x190   : > { %v2577_v36 = vpop.permute.xlu1 %2576  ;;  %3772 = vst.msk [vmem:[#allocation2 + $0xe0] sm:$0xff] %vm12197_vm10, %v3748_v21  ;;  %v4103_v38 = vor.u32 %v4102_v45, %v4098_v35  ;;  %v2428_v40 = vsel %vm9414_vm2, %v8192_v17, %v2427_v55  ;;  %v2429_v32 = vrot.slane %v2427_v55, 4  ;;  %v8181_v42 = vld [vmem:[%s9421_s22 + $0x80] sm:$0x1]  ;;  %v8621_v44 = vpop.f32.mrb[0].mxu0  ;;  %8861 = vmatprep.mubr.msk.bf16.mxu0 %vm4753_vm12, %v4432_v60  ;;  %v4085_v16 = vsel %vm9465_vm5, %v4080_v14, %v4084_v23 }
 0x191   : > { %2601 = vst.msk [vmem:[#allocation2 + $0xd8] sm:$0xff] %vm12198_vm9, %v2577_v36  ;;  %v4094_v24 = vrot.slane %v4093_v30, 4  ;;  %v8193_v22 = vrot.slane %v8179_v34, 9  ;;  %v2434_v41 = vrot.slane %v8180_v33, 5  ;;  %v8301_v46 = vcombine.low %v4075_v62, %v4085_v16  ;;  %v8622_v29 = vpop.f32.mrb[1].mxu0 }
 0x192   : > { %v4104_v49 = vrot.slane %v4103_v38, 4  ;;  %v2431_v39 = vsel %vm9414_vm2, %v2429_v32, %v2430_v31  ;;  %v2437_v10 = vrot.slane %v8181_v42, 5  ;;  %v3912_v3 = vld [vmem:[#allocation5 + $0x78] sm:$0xf]  ;;  %v8624_v53 = vpop.f32.mrb[2].mxu0  ;;  %v10869_v28 = vadd.f32 %v8622_v29, %v8621_v44 }
 0x193   : > { %4962 = vmatmul.mubr.bf16.gmra.mrb[16].mxu1 %v4430_v20  ;;  %v3859_v9 = vpop.permute.xlu0 %3858  ;;  %v4099_v52 = vsel %vm9465_vm5, %v4094_v24, %v4098_v35  ;;  %v8202_v47 = vcombine.low %v2428_v40, %v2431_v39  ;;  %v2435_v4 = vsel %vm9414_vm2, %v8193_v22, %v2434_v41  ;;  %v2436_v8 = vrot.slane %v2434_v41, 4  ;;  %v3913_v13 = vld [vmem:[#allocation5 + $0x7c] sm:$0xf]  ;;  %4204 = vst.msk [vmem:[#allocation2 + $0x110] sm:$0xff] %vm12199_vm8, %v8301_v46  ;;  %v8625_v56 = vpop.f32.mrb[3].mxu0 }
 0x194   : > { %v2917_v37 = vpop.permute.xlu1 %2916  ;;  %3883 = vst.msk [vmem:[#allocation2 + $0xe0] sm:$0xff] %vm12196_vm11, %v3859_v9  ;;  %v4109_v18 = vsel %vm9465_vm5, %v4104_v49, %v4108_v26  ;;  %v3914_v54 = vld [vmem:[#allocation5 + $0x80] sm:$0x1]  ;;  %v4111_v63 = vshrl.u32 %v3912_v3, 16  ;;  %v4114_v0 = vshll.u32 %v3912_v3, 16  ;;  %v10874_v6 = vadd.f32 %v8625_v56, %v8624_v53 }
 0x195   : > { %2941 = vst.msk [vmem:[#allocation2 + $0xd8] sm:$0xff] %vm12197_vm10, %v2917_v37  ;;  %v4437_v57 = vld [vmem:[#allocation2 + $0xe8] sm:$0xff]  ;;  %v8302_v50 = vcombine.low %v4099_v52, %v4109_v18  ;;  %v2438_v58 = vsel %vm9414_vm2, %v2436_v8, %v2437_v10  ;;  %v4120_v27 = vshll.u32 %v3913_v13, 16  ;;  %v3916_v43 = vld [vmem:[#allocation5 + $0x88] sm:$0xf]  ;;  %v4124_v51 = vshrl.u32 %v3913_v13, 16 }
 0x196   : > { %8862 = vmatmul.mubr.msk.bf16.gmra.mrb[48].mxu0 %vm4753_vm12, %v4437_v57  ;;  %2493 = vst.msk [vmem:[#allocation2 + $0x128] sm:$0xff] %vm12199_vm8, %v8202_v47  ;;  %v3915_v23 = vld [vmem:[#allocation5 + $0x84] sm:$0xf]  ;;  %v8203_v7 = vcombine.low %v2435_v4, %v2438_v58  ;;  %v4113_v5 = vrot.slane %v4111_v63, 4  ;;  %v4116_v11 = vrot.slane %v4114_v0, 5  ;;  %v4130_v36 = vshll.u32 %v3914_v54, 16 }
 0x197   : > { %v3917_v61 = vld [vmem:[#allocation5 + $0x8c] sm:$0x1]  ;;  %4205 = vst.msk [vmem:[#allocation2 + $0x138] sm:$0xff] %vm12199_vm8, %v8302_v50  ;;  %v4122_v15 = vrot.slane %v4120_v27, 5  ;;  %v4135_v2 = vshrl.u32 %v3915_v23, 16  ;;  %v4138_v25 = vshll.u32 %v3915_v23, 16 }
 0x198   : > { %v3117_v12 = vpop.permute.xlu1 %3116  ;;  %v8627_v48 = vpop.f32.mrb[4].mxu0  ;;  %2494 = vst.msk [vmem:[#allocation2 + $0x150] sm:$0xff] %vm12199_vm8, %v8203_v7  ;;  %v4117_v21 = vor.u32 %v4116_v11, %v4113_v5  ;;  %v4144_v35 = vshll.u32 %v3916_v43, 16  ;;  %v4126_v55 = vrot.slane %v4124_v51, 4  ;;  %v4148_v14 = vshrl.u32 %v3916_v43, 16 }
 0x199   : > { %3141 = vst.msk [vmem:[#allocation2 + $0xd8] sm:$0xff] %vm12196_vm11, %v3117_v12  ;;  %v8628_v20 = vpop.f32.mrb[5].mxu0  ;;  %v4154_v30 = vshll.u32 %v3917_v61, 16  ;;  %v4137_v34 = vrot.slane %v4135_v2, 4  ;;  %v4140_v33 = vrot.slane %v4138_v25, 5  ;;  %v4132_v40 = vrot.slane %v4130_v36, 5 }
 0x19a   : > { %v8630_v17 = vpop.f32.mrb[6].mxu0  ;;  %v4118_v31 = vrot.slane %v4117_v21, 4  ;;  %v4146_v60 = vrot.slane %v4144_v35, 5  ;;  %v4127_v38 = vor.u32 %v4126_v55, %v4122_v15  ;;  %v4150_v32 = vrot.slane %v4148_v14, 4  ;;  %v8182_v44 = vld [vmem:[%s9421_s22 + $0x84] sm:$0xe] }
 0x19b   : > { %v4436_v26 = vld [vmem:[#allocation2 + $0xe0] sm:$0xff]  ;;  %v8631_v62 = vpop.f32.mrb[7].mxu0  ;;  %v10881_v42 = vadd.f32 %v8628_v20, %v8627_v48  ;;  %v8183_v37 = vld [vmem:[%s9421_s22 + $0x88] sm:$0xf]  ;;  %v4141_v9 = vor.u32 %v4140_v33, %v4137_v34  ;;  %v4156_v16 = vrot.slane %v4154_v30, 5  ;;  %v8194_v41 = vrot.slane %v8182_v44, 9 }
 0x19c   : > { %v3550_v19 = vpop.permute.xlu0 %3549  ;;  %v2579_v45 = vpop.permute.xlu1 %2578  ;;  %4969 = vmatprep.mubr.bf16.mxu1 %v4436_v26  ;;  %v10885_v24 = vadd.f32 %v8631_v62, %v8630_v17  ;;  %v8184_v22 = vld [vmem:[%s9421_s22 + $0x8c] sm:$0x1]  ;;  %v4123_v39 = vsel %vm9465_vm5, %v4118_v31, %v4122_v15  ;;  %v4128_v10 = vrot.slane %v4127_v38, 4  ;;  %v4151_v29 = vor.u32 %v4150_v32, %v4146_v60 }
 0x19d   : > { %3573 = vst.msk [vmem:[#allocation2 + $0x108] sm:$0xff] %vm12198_vm9, %v3550_v19  ;;  %2602 = vst.msk [vmem:[#allocation2 + $0x100] sm:$0xff] %vm12198_vm9, %v2579_v45  ;;  %v2441_v3 = vrot.slane %v8183_v37, 5  ;;  %v4142_v52 = vrot.slane %v4141_v9, 4  ;;  %v2444_v47 = vrot.slane %v8184_v22, 5 }
 0x19e   : > { %v4133_v4 = vsel %vm9465_vm5, %v4128_v10, %v4132_v40  ;;  %v4152_v8 = vrot.slane %v4151_v29, 4 }
 0x19f   : > { %v2442_v53 = vsel %vm9414_vm2, %v8194_v41, %v2441_v3  ;;  %v2443_v13 = vrot.slane %v2441_v3, 4  ;;  %v8303_v18 = vcombine.low %v4123_v39, %v4133_v4  ;;  %v4147_v56 = vsel %vm9465_vm5, %v4142_v52, %v4146_v60 }
 0x1a0   : > { %v3750_v46 = vpop.permute.xlu0 %3749  ;;  %v4435_v49 = vld [vmem:[#allocation2 + $0xd8] sm:$0xff]  ;;  %v4157_v63 = vsel %vm9465_vm5, %v4152_v8, %v4156_v16 }
 0x1a1   : > { %3773 = vst.msk [vmem:[#allocation2 + $0x108] sm:$0xff] %vm12197_vm10, %v3750_v46  ;;  %v2919_v57 = vpop.permute.xlu1 %2918  ;;  %4970 = vmatmul.mubr.bf16.gmra.mrb[20].mxu1 %v4435_v49  ;;  %v2445_v0 = vsel %vm9414_vm2, %v2443_v13, %v2444_v47  ;;  %v8304_v50 = vcombine.low %v4147_v56, %v4157_v63 }
 0x1a2   : > { %2942 = vst.msk [vmem:[#allocation2 + $0x100] sm:$0xff] %vm12197_vm10, %v2919_v57  ;;  %v8204_v58 = vcombine.low %v2442_v53, %v2445_v0 }
 0x1a3   : > { %4206 = vst.msk [vmem:[#allocation2 + $0x160] sm:$0xff] %vm12199_vm8, %v8303_v18  ;;  %4207 = vst.msk [vmem:[#allocation2 + $0x188] sm:$0xff] %vm12199_vm8, %v8304_v50 }
 0x1a4   : > { %v3861_v54 = vpop.permute.xlu0 %3860  ;;  %2495 = vst.msk [vmem:[#allocation2 + $0x178] sm:$0xff] %vm12199_vm8, %v8204_v58  ;;  %v5342_v58 = vld [vmem:[#allocation4 + $0xc] sm:$0x1] }
 0x1a5   : > { %3884 = vst.msk [vmem:[#allocation2 + $0x108] sm:$0xff] %vm12196_vm11, %v3861_v54  ;;  %v3119_v12 = vpop.permute.xlu1 %3118 }
 0x1a6   : > { %3142 = vst.msk [vmem:[#allocation2 + $0x100] sm:$0xff] %vm12196_vm11, %v3119_v12 }
 0x1ac   : > { %v4441_v27 = vld [vmem:[#allocation2 + $0x108] sm:$0xff] }
 0x1ad   : > { %4977 = vmatprep.mubr.bf16.mxu1 %v4441_v27  ;;  %v4440_v23 = vld [vmem:[#allocation2 + $0x100] sm:$0xff]  ;;  %v8633_v43 = vpop.f32.mrb[8].mxu0  ;;  %v5339_v27 = vld [vmem:[#allocation4] sm:$0x1] }
 0x1ae   : > { %4978 = vmatmul.mubr.bf16.gmra.mrb[24].mxu1 %v4440_v23  ;;  %v8634_v11 = vpop.f32.mrb[9].mxu0  ;;  %v5343_v23 = vsel %vm10951_vm14, 0, %v5342_v58  ;;  %v5386_v58 = vld [vmem:[#allocation4 + $0x44] sm:$0x1] }
 0x1af   : > { %v10909_v61 = vadd.f32 %v8634_v11, %v8633_v43  ;;  %v8636_v48 = vpop.f32.mrb[10].mxu0  ;;  %5344 = vst [vmem:[#allocation4 + $0xc] sm:$0x1] %v5343_v23  ;;  %v5374_v11 = vld [vmem:[#allocation4 + $0x14] sm:$0x1]  ;;  %v5387_v23 = vsel %vm10959_vm0, 0, %v5386_v58 }
 0x1b0   : > { %v4381_v7 = vpop.permute.xlu0 %4380  ;;  %v4383_v5 = vpop.permute.xlu1 %4382  ;;  %5388 = vst [vmem:[#allocation4 + $0x44] sm:$0x1] %v5387_v23  ;;  %v8374_v58 = vld [vmem:[%s9784_s20 + $0x19] sm:$0xff] }
 0x1b1   : > { %4404 = vst.msk [vmem:[#allocation2 + $0x110] sm:$0xff] %vm12198_vm9, %v4381_v7  ;;  %4405 = vst.msk [vmem:[#allocation2 + $0x138] sm:$0xff] %vm12198_vm9, %v4383_v5  ;;  %v8637_v15 = vpop.f32.mrb[11].mxu0  ;;  %v5340_v7 = vsel %vm10951_vm14, 0, %v5339_v27 }
 0x1b2   : > { %v10911_v20 = vadd.f32 %v8637_v15, %v8636_v48  ;;  %5341 = vst [vmem:[#allocation4] sm:$0x1] %v5340_v7  ;;  %v5375_v48 = vsel %vm10959_vm0, 0, %v5374_v11  ;;  %v5371_v15 = vld [vmem:[#allocation4 + $0x8] sm:$0x1] }
 0x1b3   : > { %5376 = vst [vmem:[#allocation4 + $0x14] sm:$0x1] %v5375_v48  ;;  %v5357_v48 = vld [vmem:[#allocation4 + $0x48] sm:$0x1] }
 0x1b4   : > { %v3552_v51 = vpop.permute.xlu0 %3551  ;;  %v2581_v36 = vpop.permute.xlu1 %2580 }
 0x1b5   : > { %3574 = vst.msk [vmem:[#allocation2 + $0x130] sm:$0xff] %vm12198_vm9, %v3552_v51  ;;  %2603 = vst.msk [vmem:[#allocation2 + $0x128] sm:$0xff] %vm12198_vm9, %v2581_v36  ;;  %v5372_v51 = vsel %vm10959_vm0, 0, %v5371_v15  ;;  %v5358_v15 = vsel %vm10951_vm14, 0, %v5357_v48  ;;  %v11051_v48 = vstv %s8394_s17  ;;  %s8540_s17 = sshll.u32 %s9264_s30, 2 }
 0x1b6   : > { %5373 = vst [vmem:[#allocation4 + $0x8] sm:$0x1] %v5372_v51  ;;  %5359 = vst [vmem:[#allocation4 + $0x48] sm:$0x1] %v5358_v15  ;;  %v8375_v15 = vld [vmem:[%s9784_s20 + $0x21] sm:$0xff]  ;;  %vm5250_vm4 = vcmp.ge.s32.totalorder %v11051_v48, 0 }
 0x1b7   : > { %vm5260_vm7 = vcmp.lt.s32.totalorder %v11051_v48, 16 }
 0x1b8   : > { %v3752_v21 = vpop.permute.xlu0 %3751  ;;  %v4442_v2 = vld [vmem:[#allocation2 + $0x110] sm:$0xff]  ;;  %v4447_v25 = vld [vmem:[#allocation2 + $0x138] sm:$0xff]  ;;  %vm11176_vm8 = vmand %vm5250_vm4, %vm5260_vm7 }
 0x1b9   : > { %3774 = vst.msk [vmem:[#allocation2 + $0x130] sm:$0xff] %vm12197_vm10, %v3752_v21  ;;  %8865 = vmatprep.mubr.msk.bf16.mxu0 %vm4753_vm12, %v4442_v2 }
 0x1ba   : > { %8866 = vmatmul.mubr.msk.bf16.gmra.mrb[52].mxu0 %vm4753_vm12, %v4447_v25  ;;  %v2921_v35 = vpop.permute.xlu1 %2920 }
 0x1bb   : > { %2943 = vst.msk [vmem:[#allocation2 + $0x128] sm:$0xff] %vm12197_vm10, %v2921_v35 }
 0x1bc   : > { %v3863_v17 = vpop.permute.xlu0 %3862  ;;  %v8639_v19 = vpop.f32.mrb[12].mxu0 }
 0x1bd   : > { %3885 = vst.msk [vmem:[#allocation2 + $0x130] sm:$0xff] %vm12196_vm11, %v3863_v17  ;;  %v8640_v45 = vpop.f32.mrb[13].mxu0 }
 0x1be   : > { %v3121_v26 = vpop.permute.xlu1 %3120  ;;  %v10920_v55 = vadd.f32 %v8640_v45, %v8639_v19  ;;  %v8642_v14 = vpop.f32.mrb[14].mxu0  ;;  %v5345_v45 = vld [vmem:[#allocation4 + $0x18] sm:$0x1] }
 0x1bf   : > { %3143 = vst.msk [vmem:[#allocation2 + $0x128] sm:$0xff] %vm12196_vm11, %v3121_v26  ;;  %v8643_v30 = vpop.f32.mrb[15].mxu0  ;;  %v5346_v26 = vsel %vm10951_vm14, 0, %v5345_v45 }
 0x1c0   : > { %v3554_v31 = vpop.permute.xlu0 %3553  ;;  %v10923_v34 = vadd.f32 %v8643_v30, %v8642_v14  ;;  %5347 = vst [vmem:[#allocation4 + $0x18] sm:$0x1] %v5346_v26  ;;  %v5377_v14 = vld [vmem:[#allocation4 + $0x20] sm:$0x1] }
 0x1c1   : > { %3575 = vst.msk [vmem:[#allocation2 + $0x158] sm:$0xff] %vm12198_vm9, %v3554_v31  ;;  %v5378_v30 = vsel %vm10959_vm0, 0, %v5377_v14  ;;  %v5348_v31 = vld [vmem:[#allocation4 + $0x24] sm:$0x1] }
 0x1c2   : > { %v2583_v33 = vpop.permute.xlu1 %2582  ;;  %5379 = vst [vmem:[#allocation4 + $0x20] sm:$0x1] %v5378_v30 }
 0x1c3   : > { %2604 = vst.msk [vmem:[#allocation2 + $0x150] sm:$0xff] %vm12198_vm9, %v2583_v33  ;;  %v5349_v33 = vsel %vm10951_vm14, 0, %v5348_v31 }
 0x1c4   : > { %v4446_v60 = vld [vmem:[#allocation2 + $0x130] sm:$0xff]  ;;  %v3754_v62 = vpop.permute.xlu0 %3753  ;;  %5350 = vst [vmem:[#allocation4 + $0x24] sm:$0x1] %v5349_v33  ;;  %v5392_v33 = vld [vmem:[#allocation4 + $0x5c] sm:$0x1] }
 0x1c5   : > { %4985 = vmatprep.mubr.bf16.mxu1 %v4446_v60  ;;  %3775 = vst.msk [vmem:[#allocation2 + $0x158] sm:$0xff] %vm12197_vm10, %v3754_v62  ;;  %v5380_v60 = vld [vmem:[#allocation4 + $0x2c] sm:$0x1] }
 0x1c6   : > { %v4445_v38 = vld [vmem:[#allocation2 + $0x128] sm:$0xff]  ;;  %v5381_v62 = vsel %vm10959_vm0, 0, %v5380_v60  ;;  %v5393_v60 = vsel %vm10959_vm0, 0, %v5392_v33 }
 0x1c7   : > { %4986 = vmatmul.mubr.bf16.gmra.mrb[28].mxu1 %v4445_v38  ;;  %5382 = vst [vmem:[#allocation4 + $0x2c] sm:$0x1] %v5381_v62  ;;  %5394 = vst [vmem:[#allocation4 + $0x5c] sm:$0x1] %v5393_v60  ;;  %v11068_v60 = vadd.s32 1, %v11051_v48 }
 0x1c8   : > { %v3865_v40 = vpop.permute.xlu0 %3864 }
 0x1c9   : > { %3886 = vst.msk [vmem:[#allocation2 + $0x158] sm:$0xff] %vm12196_vm11, %v3865_v40  ;;  %v2923_v32 = vpop.permute.xlu1 %2922  ;;  %vm5251_vm1 = vcmp.ge.s32.totalorder %v11068_v60, 0  ;;  %vm5261_vm3 = vcmp.lt.s32.totalorder %v11068_v60, 16 }
 0x1ca   : > { %2944 = vst.msk [vmem:[#allocation2 + $0x150] sm:$0xff] %vm12197_vm10, %v2923_v32 }
 0x1cb   : > { %v8645_v44 = vpop.f32.mrb[16].mxu0 }
 0x1cc   : > { %v8646_v37 = vpop.f32.mrb[17].mxu0 }
 0x1cd   : > { %v10930_v9 = vadd.f32 %v8646_v37, %v8645_v44  ;;  %v8648_v16 = vpop.f32.mrb[18].mxu0  ;;  %v3123_v41 = vpop.permute.xlu1 %3122 }
 0x1ce   : > { %v8649_v22 = vpop.f32.mrb[19].mxu0  ;;  %3144 = vst.msk [vmem:[#allocation2 + $0x150] sm:$0xff] %vm12196_vm11, %v3123_v41 }
 0x1cf   : > { %v10932_v49 = vadd.f32 %v8649_v22, %v8648_v16  ;;  %v5351_v16 = vld [vmem:[#allocation4 + $0x30] sm:$0x1] }
 0x1d0   : > { %v4451_v46 = vld [vmem:[#allocation2 + $0x158] sm:$0xff]  ;;  %v5352_v41 = vsel %vm10951_vm14, 0, %v5351_v16 }
 0x1d1   : > { %4993 = vmatprep.mubr.bf16.mxu1 %v4451_v46  ;;  %5353 = vst [vmem:[#allocation4 + $0x30] sm:$0x1] %v5352_v41  ;;  %v5383_v46 = vld [vmem:[#allocation4 + $0x38] sm:$0x1] }
 0x1d4   : > { %v4385_v39 = vpop.permute.xlu0 %4384  ;;  %v4387_v10 = vpop.permute.xlu1 %4386 }
 0x1d5   : > { %4406 = vst.msk [vmem:[#allocation2 + $0x160] sm:$0xff] %vm12198_vm9, %v4385_v39  ;;  %4407 = vst.msk [vmem:[#allocation2 + $0x188] sm:$0xff] %vm12198_vm9, %v4387_v10  ;;  %v4450_v3 = vld [vmem:[#allocation2 + $0x150] sm:$0xff]  ;;  %v5384_v39 = vsel %vm10959_vm0, 0, %v5383_v46 }
 0x1d6   : > { %4994 = vmatmul.mubr.bf16.gmra.mrb[32].mxu1 %v4450_v3  ;;  %5385 = vst [vmem:[#allocation4 + $0x38] sm:$0x1] %v5384_v39 }
 0x1d8   : > { %v3556_v29 = vpop.permute.xlu0 %3555  ;;  %v2585_v57 = vpop.permute.xlu1 %2584 }
 0x1d9   : > { %3576 = vst.msk [vmem:[#allocation2 + $0x180] sm:$0xff] %vm12198_vm9, %v3556_v29  ;;  %2605 = vst.msk [vmem:[#allocation2 + $0x178] sm:$0xff] %vm12198_vm9, %v2585_v57  ;;  %v5354_v29 = vld [vmem:[#allocation4 + $0x3c] sm:$0x1] }
 0x1da   : > { %v5355_v57 = vsel %vm10951_vm14, 0, %v5354_v29  ;;  %v5147_v29 = vlaneseq }
 0x1db   : > { %5356 = vst [vmem:[#allocation4 + $0x3c] sm:$0x1] %v5355_v57 }
 0x1dc   : > { %v3756_v52 = vpop.permute.xlu0 %3755  ;;  %v4452_v47 = vld [vmem:[#allocation2 + $0x160] sm:$0xff]  ;;  %v4457_v4 = vld [vmem:[#allocation2 + $0x188] sm:$0xff]  ;;  %v8651_v8 = vpop.f32.mrb[20].mxu0 }
 0x1dd   : > { %3776 = vst.msk [vmem:[#allocation2 + $0x180] sm:$0xff] %vm12197_vm10, %v3756_v52  ;;  %8869 = vmatprep.mubr.msk.bf16.mxu0 %vm4753_vm12, %v4452_v47  ;;  %v8652_v53 = vpop.f32.mrb[21].mxu0  ;;  %v2925_v13 = vpop.permute.xlu1 %2924 }
 0x1de   : > { %8870 = vmatmul.mubr.msk.bf16.gmra.mrb[56].mxu0 %vm4753_vm12, %v4457_v4  ;;  %v10942_v56 = vadd.f32 %v8652_v53, %v8651_v8  ;;  %2945 = vst.msk [vmem:[#allocation2 + $0x178] sm:$0xff] %vm12197_vm10, %v2925_v13  ;;  %v8654_v54 = vpop.f32.mrb[22].mxu0  ;;  %v10998_v53 = vld [vmem:[%s12191_s4] ss:$0 sm:$0xff]  ;;  %vm5461_vm12 = vsmask.f32 4368 }
 0x1df   : > { %v8655_v63 = vpop.f32.mrb[23].mxu0  ;;  %v4822_v7 = vadd.f32 %v10874_v6, %v10998_v53  ;;  %v9076_v6 = vld [vmem:[%s12190_s3 + $0x80] sm:$0xff]   ;;  %v4830_v41 = vadd.f32 %v10885_v24, %v10998_v53  ;;  %v4835_v23 = vadd.f32 %v10909_v61, %v10998_v53 }
 0x1e0   : > { %v3867_v18 = vpop.permute.xlu0 %3866  ;;  %v10946_v0 = vadd.f32 %v8655_v63, %v8654_v54  ;;  %v4819_v54 = vadd.f32 %v10869_v28, %v10998_v53  ;;  %v5389_v28 = vld [vmem:[#allocation4 + $0x50] sm:$0x1]  ;;  %8873 = vmatprep.subr.bf16.mxu0 %v9076_v6 }
 0x1e1   : > { %3887 = vst.msk [vmem:[#allocation2 + $0x180] sm:$0xff] %vm12196_vm11, %v3867_v18  ;;  %v3125_v12 = vpop.permute.xlu1 %3124  ;;  %8874 = vmatpush3.bf16.msra.mxu0 %v9076_v6  ;;  %v11060_v6 = vadd.f32 %v10923_v34, %v10998_v53 }
 0x1e2   : > { %3145 = vst.msk [vmem:[#allocation2 + $0x178] sm:$0xff] %vm12196_vm11, %v3125_v12  ;;  %vm11161_vm11 = vmand %vm5251_vm1, %vm5261_vm3 }
 0x1e8   : > { %v4456_v5 = vld [vmem:[#allocation2 + $0x180] sm:$0xff] }
 0x1e9   : > { %5001 = vmatprep.mubr.bf16.mxu1 %v4456_v5  ;;  %v4455_v36 = vld [vmem:[#allocation2 + $0x178] sm:$0xff] }
 0x1ea   : > { %5002 = vmatmul.mubr.bf16.gmra.mrb[36].mxu1 %v4455_v36  ;;  %v5390_v36 = vsel %vm10959_vm0, 0, %v5389_v28 }
 0x1eb   : > { %5391 = vst [vmem:[#allocation4 + $0x50] sm:$0x1] %v5390_v36  ;;  %v11056_v36 = vadd.f32 %v10920_v55, %v10998_v53 }
 0x1ee   : > { %v8657_v21 = vpop.f32.mrb[24].mxu0 }
 0x1ef   : > { %v8658_v2 = vpop.f32.mrb[25].mxu0 }
 0x1f0   : > { %v10969_v25 = vadd.f32 %v8658_v2, %v8657_v21  ;;  %v8660_v35 = vpop.f32.mrb[26].mxu0  ;;  %v9078_v21 = vld [vmem:[%s12190_s3 + $0x88] sm:$0xff]   ;;  %v5360_v2 = vld [vmem:[#allocation4 + $0x54] sm:$0x1] }
 0x1f1   : > { %v8661_v17 = vpop.f32.mrb[27].mxu0  ;;  %8875 = vmatprep.subr.bf16.mxu0 %v9078_v21 }
 0x1f2   : > { %v10971_v19 = vadd.f32 %v8661_v17, %v8660_v35  ;;  %8876 = vmatpush3.bf16.msra.mxu0 %v9078_v21  ;;  %v5361_v17 = vsel %vm10951_vm14, 0, %v5360_v2 }
 0x1f3   : > { %5362 = vst [vmem:[#allocation4 + $0x54] sm:$0x1] %v5361_v17 }
 0x203   : > { %v8663_v38 = vpop.f32.mrb[28].mxu0 }
 0x204   : > { %v8664_v40 = vpop.f32.mrb[29].mxu0 }
 0x205   : > { %v10981_v32 = vadd.f32 %v8664_v40, %v8663_v38  ;;  %v8666_v44 = vpop.f32.mrb[30].mxu0  ;;  %v4827_v40 = vadd.f32 %v10881_v42, %v10998_v53  ;;  %v5123_v42 = vld [vmem:[%s12193_s6] sm:$0x1] }
 0x206   : > { %v8667_v37 = vpop.f32.mrb[31].mxu0  ;;  %v5172_v24 = vsub.f32 1.0, %v5123_v42 }
 0x207   : > { %v10983_v22 = vadd.f32 %v8667_v37, %v8666_v44 }
 0x213   : > { %v8669_v10 = vpop.f32.mrb[32].mxu0 }
 0x214   : > { %v8670_v3 = vpop.f32.mrb[33].mxu0 }
 0x215   : > { %v10991_v52 = vadd.f32 %v8670_v3, %v8669_v10  ;;  %v8672_v47 = vpop.f32.mrb[34].mxu0  ;;  %v5363_v3 = vld [vmem:[#allocation4 + $0x60] sm:$0x1] }
 0x216   : > { %v8673_v4 = vpop.f32.mrb[35].mxu0  ;;  %v5364_v57 = vsel %vm10951_vm14, 0, %v5363_v3  ;;  %v11082_v3 = vadd.f32 %v10932_v49, %v10998_v53  ;;  %v11095_v49 = vadd.f32 %v10946_v0, %v10998_v53 }
 0x217   : > { %v10993_v8 = vadd.f32 %v8673_v4, %v8672_v47  ;;  %5365 = vst [vmem:[#allocation4 + $0x60] sm:$0x1] %v5364_v57  ;;  %v5148_v47 = vshrl.u32 %v5147_v29, 7 }
 0x219   : > { %v8697_v13 = vpop.f32.mrb[0].mxu1  ;;  %v5149_v4 = vsub.s32 0, %v5148_v47  ;;  %v8378_v47 = vld [vmem:[%s9784_s20 + $0x49] sm:$0xff] }
 0x21a   : > { %v8698_v18 = vpop.f32.mrb[1].mxu1 }
 0x21b   : > { %v8699_v63 = vadd.f32 %v8698_v18, %v8697_v13  ;;  %v8700_v12 = vpop.f32.mrb[2].mxu1  ;;  %v5395_v13 = vld [vmem:[#allocation4 + $0x68] sm:$0x1] }
 0x21c   : > { %v8701_v27 = vpop.f32.mrb[3].mxu1  ;;  %v5396_v18 = vsel %vm10959_vm0, 0, %v5395_v13 }
 0x21d   : > { %v8702_v5 = vadd.f32 %v8701_v27, %v8700_v12  ;;  %v11006_v11 = vadd.f32 %v8699_v63, %v4819_v54  ;;  %v11040_v54 = vrot.slane %v5123_v42, %v5149_v4  ;;  %5397 = vst [vmem:[#allocation4 + $0x68] sm:$0x1] %v5396_v18  ;;  %v8376_v63 = vld [vmem:[%s9784_s20 + $0x31] sm:$0xff]  ;;  %v11043_v12 = vrot.slane %v5172_v24, %v5149_v4  ;;  %v8377_v27 = vld [vmem:[%s9784_s20 + $0x39] sm:$0xff]  ;;  %v8380_v18 = vld [vmem:[%s9784_s20 + $0x61] sm:$0xff] }
 0x21e   : > { %v8379_v4 = vld [vmem:[%s9784_s20 + $0x51] sm:$0xff]  ;;  %v11091_v24 = vadd.f32 %v10942_v56, %v10998_v53  ;;  %v11105_v56 = vadd.f32 %v10969_v25, %v10998_v53  ;;  %v11118_v25 = vadd.s32 3, %v11051_v48 }
 0x21f   : > { %v11010_v51 = vadd.f32 %v8702_v5, %v4822_v7  ;;  %v4838_v7 = vadd.f32 %v10911_v20, %v10998_v53  ;;  %v5154_v2 = vmul.f32 %v8376_v63, %v11040_v54  ;;  %v5152_v17 = vmul.f32 %v8374_v58, %v11040_v54  ;;  %v8381_v63 = vld [vmem:[%s9784_s20 + $0x69] sm:$0xff] }
 0x220   : > { %v5156_v58 = vmul.f32 %v8378_v47, %v11040_v54  ;;  %vm5263_vm1 = vcmp.lt.s32.totalorder %v11118_v25, 16 }
 0x230   : > { %v8675_v35 = vpop.f32.mrb[36].mxu0 }
 0x231   : > { %v8676_v45 = vpop.f32.mrb[37].mxu0 }
 0x232   : > { %v11022_v26 = vadd.f32 %v8676_v45, %v8675_v35  ;;  %v8678_v14 = vpop.f32.mrb[38].mxu0 }
 0x233   : > { %v8679_v30 = vpop.f32.mrb[39].mxu0 }
 0x234   : > { %v11024_v31 = vadd.f32 %v8679_v30, %v8678_v14  ;;  %v5155_v14 = vmul.f32 %v8377_v27, %v11040_v54  ;;  %v8382_v27 = vld [vmem:[%s9784_s20 + $0x79] sm:$0xff] }
 0x23a   : > { %v8703_v62 = vpop.f32.mrb[4].mxu1 }
 0x23b   : > { %v8704_v38 = vpop.f32.mrb[5].mxu1 }
 0x23c   : > { %v8705_v44 = vadd.f32 %v8704_v38, %v8703_v62  ;;  %v8706_v37 = vpop.f32.mrb[6].mxu1  ;;  %v5153_v38 = vmul.f32 %v8375_v15, %v11040_v54  ;;  %v8383_v15 = vld [vmem:[%s9784_s20 + $0x81] sm:$0xff] }
 0x23d   : > { %v8707_v16 = vpop.f32.mrb[7].mxu1 }
 0x23e   : > { %v8708_v46 = vadd.f32 %v8707_v16, %v8706_v37  ;;  %v4940_v39 = vadd.f32 %v8705_v44, %v4827_v40  ;;  %v5366_v44 = vld [vmem:[#allocation4 + $0x6c] sm:$0x1] }
 0x23f   : > { %v5367_v29 = vsel %vm10951_vm14, 0, %v5366_v44  ;;  %v11142_v44 = vadd.s32 5, %v11051_v48 }
 0x240   : > { %v4943_v10 = vadd.f32 %v8708_v46, %v4830_v41  ;;  %v11075_v46 = vadd.f32 %v10930_v9, %v10998_v53  ;;  %5368 = vst [vmem:[#allocation4 + $0x6c] sm:$0x1] %v5367_v29  ;;  %v11151_v29 = vadd.f32 %v10991_v52, %v10998_v53 }
 0x241   : > { %vm5255_vm4 = vcmp.ge.s32.totalorder %v11142_v44, 0  ;;  %vm5265_vm7 = vcmp.lt.s32.totalorder %v11142_v44, 16 }
 0x252   : > { %v8855_v5 = vpop.f32.mrb[40].mxu0 }
 0x253   : > { %v8709_v28 = vpop.f32.mrb[8].mxu1  ;;  %v5053_v21 = vadd.f32 %v8855_v5, %v4940_v39  ;;  %v5044_v61 = vpop.f32.mrb[41].mxu0 }
 0x254   : > { %v8710_v35 = vpop.f32.mrb[9].mxu1  ;;  %v5045_v20 = vadd.f32 %v5044_v61, %v11006_v11  ;;  %v8856_v45 = vpop.f32.mrb[42].mxu0  ;;  %v5158_v61 = vmul.f32 %v8380_v18, %v11040_v54  ;;  %v11189_v18 = vadd.s32 6, %v11051_v48 }
 0x255   : > { %v8711_v30 = vadd.f32 %v8710_v35, %v8709_v28  ;;  %v8712_v33 = vpop.f32.mrb[10].mxu1  ;;  %v5181_v55 = vmul.f32 %v11043_v12, %v5053_v21  ;;  %v5056_v34 = vadd.f32 %v8856_v45, %v4943_v10  ;;  %v5047_v62 = vpop.f32.mrb[43].mxu0  ;;  %v11114_v28 = vadd.f32 %v10971_v19, %v10998_v53 }
 0x256   : > { %v8713_v40 = vpop.f32.mrb[11].mxu1  ;;  %v5179_v11 = vmul.f32 %v11043_v12, %v5045_v20  ;;  %v5048_v37 = vadd.f32 %v5047_v62, %v11010_v51  ;;  %v11121_v35 = vmul.f32 %v8381_v63, %v11040_v54  ;;  %v11127_v19 = vadd.s32 4, %v11051_v48 }
 0x257   : > { %v8714_v16 = vadd.f32 %v8713_v40, %v8712_v33  ;;  %v4948_v41 = vadd.f32 %v8711_v30, %v4835_v23  ;;  %v5201_v39 = vadd.f32 %v5181_v55, %v5154_v2  ;;  %v5182_v10 = vmul.f32 %v11043_v12, %v5056_v34  ;;  %v8384_v33 = vld [vmem:[%s9784_s20 + $0x91] sm:$0xff] }
 0x258   : > { %v5199_v51 = vadd.f32 %v5179_v11, %v5152_v17  ;;  %v5180_v57 = vmul.f32 %v11043_v12, %v5048_v37  ;;  %v11108_v23 = vadd.s32 2, %v11051_v48  ;;  %v11124_v30 = vmul.f32 %v8382_v27, %v11040_v54  ;;  %v8385_v11 = vld [vmem:[%s9784_s20 + $0x99] sm:$0xff] }
 0x259   : > { %v4951_v42 = vadd.f32 %v8714_v16, %v4838_v7  ;;  %9114 = vtanh.f32 %v5201_v39  ;;  %v5202_v9 = vadd.f32 %v5182_v10, %v5155_v14  ;;  %v5157_v7 = vmul.f32 %v8379_v4, %v11040_v54  ;;  %v8386_v39 = vld [vmem:[%s9784_s20 + $0xa9] sm:$0xff]  ;;  %v8387_v10 = vld [vmem:[%s9784_s20 + $0xb1] sm:$0xff] }
 0x25a   : > { %9116 = vtanh.f32 %v5199_v51  ;;  %v5200_v13 = vadd.f32 %v5180_v57, %v5153_v38  ;;  %v11132_v55 = vadd.f32 %v10981_v32, %v10998_v53  ;;  %v11136_v34 = vadd.f32 %v10983_v22, %v10998_v53  ;;  %v5398_v22 = vld [vmem:[#allocation4 + $0x74] sm:$0x1] }
 0x25b   : > { %9118 = vtanh.f32 %v5202_v9  ;;  %v11139_v40 = vmul.f32 %v8383_v15, %v11040_v54  ;;  %v11155_v51 = vadd.f32 %v10993_v8, %v10998_v53  ;;  %vm5252_vm10 = vcmp.ge.s32.totalorder %v11108_v23, 0  ;;  %v5672_v8 = vld [vmem:[#allocation4 + $0xc] sm:$0xf] }
 0x25c   : > { %9120 = vtanh.f32 %v5200_v13  ;;  %vm5262_vm9 = vcmp.lt.s32.totalorder %v11108_v23, 16  ;;  %v5399_v52 = vsel %vm10959_vm0, 0, %v5398_v22  ;;  %v11183_v13 = vmul.f32 %v8385_v11, %v11040_v54 }
 0x25d   : > { %v8859_v0 = vpop.f32.mrb[44].mxu0  ;;  %5400 = vst [vmem:[#allocation4 + $0x74] sm:$0x1] %v5399_v52  ;;  %v11186_v43 = vmul.f32 %v8386_v39, %v11040_v54  ;;  %v11192_v63 = vmul.f32 %v8387_v10, %v11040_v54  ;;  %vm5253_vm0 = vcmp.ge.s32.totalorder %v11118_v25, 0 }
 0x25e   : > { %v8715_v5 = vpop.f32.mrb[12].mxu1  ;;  %v5060_v21 = vpop.f32.mrb[45].mxu0 }
 0x25f   : > { %v8716_v2 = vpop.f32.mrb[13].mxu1  ;;  %v5061_v20 = vadd.f32 %v5060_v21, %v4948_v41  ;;  %v8860_v17 = vpop.f32.mrb[46].mxu0 }
 0x260   : > { %v8717_v45 = vadd.f32 %v8716_v2, %v8715_v5  ;;  %v8718_v14 = vpop.f32.mrb[14].mxu1  ;;  %v5063_v62 = vpop.f32.mrb[47].mxu0 }
 0x261   : > { %v8719_v38 = vpop.f32.mrb[15].mxu1  ;;  %v5183_v37 = vmul.f32 %v11043_v12, %v5061_v20  ;;  %v5064_v16 = vadd.f32 %v5063_v62, %v4951_v42 }
 0x262   : > { %v4956_v32 = vadd.f32 %v8717_v45, %v11056_v36  ;;  %v8720_v41 = vadd.f32 %v8719_v38, %v8718_v14  ;;  %v11168_v36 = vmul.f32 %v8384_v33, %v11040_v54  ;;  %v11206_v14 = vadd.s32 7, %v11051_v48 }
 0x263   : > { %v5203_v60 = vadd.f32 %v5183_v37, %v5156_v58  ;;  %v5184_v47 = vmul.f32 %v11043_v12, %v5064_v16  ;;  %v9115_v4 = vpop.eup %9114 }
 0x264   : > { %v5069_v42 = vadd.f32 %v8859_v0, %v4956_v32  ;;  %v4959_v9 = vadd.f32 %v8720_v41, %v11060_v6  ;;  %v9117_v58 = vpop.eup %9116  ;;  %v11196_v27 = vsel %vm11161_vm11, %v9115_v4, 0.0 }
 0x265   : > { %9122 = vtanh.f32 %v5203_v60  ;;  %v5204_v6 = vadd.f32 %v5184_v47, %v5157_v7  ;;  %v9119_v15 = vpop.eup %9118  ;;  %v8587_v21 = vpack.c.bf16 %v11196_v27, %v11196_v27  ;;  %v5280_v2 = vsel %vm11176_vm8, %v9117_v58, 0.0 }
 0x266   : > { %v5185_v0 = vmul.f32 %v11043_v12, %v5069_v42  ;;  %v8721_v5 = vpop.f32.mrb[16].mxu1  ;;  %v5072_v20 = vadd.f32 %v8860_v17, %v4959_v9  ;;  %v9121_v7 = vpop.eup %9120  ;;  %v8585_v33 = vpack.c.bf16 %v5280_v2, %v5280_v2  ;;  %v11210_v62 = vsel %vm11161_vm11, %v9119_v15, 0.0  ;;  %vm11221_vm11 = vmand %vm547_vm6, %vm5369_vm15 }
 0x267   : > { %v8722_v45 = vpop.f32.mrb[17].mxu1  ;;  %12223 = vst [vmem:[#allocation12_spill] sm:$0xff] %v11210_v62  ;;  %9124 = vtanh.f32 %v5204_v6  ;;  %v5481_v37 = vshrl.u32 %v8587_v21, 16  ;;  %v5484_v16 = vshll.u32 %v8587_v21, 16  ;;  %v8588_v32 = vpack.c.bf16 %v11210_v62, %v11210_v62  ;;  %vm11238_vm15 = vmand %vm5252_vm10, %vm5262_vm9  ;;  %v8388_v62 = vld [vmem:[%s9784_s20 + $0xc1] sm:$0xff] }
 0x268   : > { %v5205_v38 = vadd.f32 %v5185_v0, %v5158_v61  ;;  %v8724_v11 = vpop.f32.mrb[18].mxu1  ;;  %v5281_v17 = vsel %vm11176_vm8, %v9121_v7, 0.0  ;;  %v5464_v39 = vshrl.u32 %v8585_v33, 16  ;;  %v5467_v10 = vshll.u32 %v8585_v33, 16  ;;  %v5665_v7 = vld [vmem:[#allocation4] sm:$0xf]  ;;  %vm11229_vm8 = vmor %vm5337_vm13, %vm5461_vm12 }
 0x269   : > { %v8725_v41 = vpop.f32.mrb[19].mxu1  ;;  %v8586_v22 = vpack.c.bf16 %v5281_v17, %v5281_v17  ;;  %v11216_v52 = vpop.f32.mrb[48].mxu0  ;;  %v5483_v57 = vrot.slane %v5481_v37, 7  ;;  %v5489_v60 = vshrl.u32 %v8588_v32, 16  ;;  %v5492_v47 = vshll.u32 %v8588_v32, 16  ;;  %vm11268_vm9 = vmand %vm5253_vm0, %vm5263_vm1 }
 0x26a   : > { %9126 = vtanh.f32 %v5205_v38  ;;  %v5186_v61 = vmul.f32 %v11043_v12, %v5072_v20  ;;  %v5076_v42 = vpop.f32.mrb[49].mxu0  ;;  %v5466_v4 = vrot.slane %v5464_v39, 7  ;;  %v8723_v0 = vadd.f32 %v8722_v45, %v8721_v5  ;;  %v5676_v39 = vld [vmem:[#allocation4 + $0x14] sm:$0x1]  ;;  %vm11423_vm1 = vmand %vm5255_vm4, %vm5265_vm7 }
 0x26b   : > { %v5472_v58 = vshrl.u32 %v8586_v22, 16  ;;  %v5475_v6 = vshll.u32 %v8586_v22, 16  ;;  %v11225_v15 = vpop.f32.mrb[50].mxu0  ;;  %v5486_v21 = vor.u32 %v5484_v16, %v5483_v57  ;;  %v5487_v2 = vrot.slane %v5483_v57, 4 }
 0x26c   : > { %v5491_v33 = vrot.slane %v5489_v60, 7  ;;  %v5206_v38 = vadd.f32 %v5186_v61, %v11121_v35  ;;  %v5079_v37 = vpop.f32.mrb[51].mxu0  ;;  %v5469_v32 = vor.u32 %v5467_v10, %v5466_v4  ;;  %v5470_v17 = vrot.slane %v5466_v4, 4  ;;  %v5669_v60 = vld [vmem:[#allocation4 + $0x8] sm:$0x1] }
 0x26d   : > { %v5474_v5 = vrot.slane %v5472_v58, 7  ;;  %v8726_v16 = vadd.f32 %v8725_v41, %v8724_v11  ;;  %v5673_v22 = vsel %vm11221_vm11, %v5486_v21, %v5672_v8  ;;  %v4964_v23 = vadd.f32 %v8723_v0, %v11075_v46 }
 0x26e   : > { %v5494_v57 = vor.u32 %v5492_v47, %v5491_v33  ;;  %v5496_v35 = vrot.slane %v5491_v33, 4  ;;  %9128 = vtanh.f32 %v5206_v38  ;;  %5674 = vst [vmem:[#allocation4 + $0xc] sm:$0xf] %v5673_v22  ;;  %v5666_v61 = vsel %vm11221_vm11, %v5469_v32, %v5665_v7  ;;  %v8389_v7 = vld [vmem:[%s9784_s20 + $0xc9] sm:$0xff] }
 0x26f   : > { %v9123_v10 = vpop.eup %9122  ;;  %v5477_v4 = vor.u32 %v5475_v6, %v5474_v5  ;;  %v5479_v58 = vrot.slane %v5474_v5, 4  ;;  %5667 = vst [vmem:[#allocation4] sm:$0xf] %v5666_v61  ;;  %v4967_v8 = vadd.f32 %v8726_v16, %v11082_v3  ;;  %v5077_v3 = vadd.f32 %v5076_v42, %v4964_v23 }
 0x270   : > { %v5495_v11 = vsel %vm11229_vm8, %v5487_v2, %v5494_v57  ;;  %v5677_v41 = vsel %vm10951_vm14, %v5496_v35, %v5676_v39  ;;  %v11254_v47 = vsel %vm11238_vm15, %v9123_v10, 0.0  ;;  %v11275_v33 = vadd.f32 %v11022_v26, %v10998_v53  ;;  %v5679_v35 = vld [vmem:[#allocation4 + $0x18] sm:$0xf] }
 0x271   : > { %v9125_v21 = vpop.eup %9124  ;;  %5675 = vst.msk [vmem:[#allocation4 + $0x10] sm:$0xf] %vm547_vm6, %v5495_v11  ;;  %5678 = vst [vmem:[#allocation4 + $0x14] sm:$0x1] %v5677_v41  ;;  %v5478_v46 = vsel %vm11229_vm8, %v5470_v17, %v5477_v4  ;;  %v5670_v6 = vsel %vm10951_vm14, %v5479_v58, %v5669_v60  ;;  %v8589_v0 = vpack.c.bf16 %v11254_v47, %v11254_v47  ;;  %vm5254_vm10 = vcmp.ge.s32.totalorder %v11127_v19, 0 }
 0x272   : > { %5668 = vst.msk [vmem:[#allocation4 + $0x4] sm:$0xf] %vm547_vm6, %v5478_v46  ;;  %5671 = vst [vmem:[#allocation4 + $0x8] sm:$0x1] %v5670_v6  ;;  %v11280_v38 = vsel %vm11238_vm15, %v9125_v21, 0.0  ;;  %v5080_v32 = vadd.f32 %v5079_v37, %v4967_v8  ;;  %v11283_v25 = vmul.f32 %v8388_v62, %v11040_v54  ;;  %v11287_v42 = vadd.f32 %v11024_v31, %v10998_v53 }
 0x273   : > { %12232 = vst [vmem:[#allocation13_spill] sm:$0xff] %v11280_v38  ;;  %v5498_v39 = vshrl.u32 %v8589_v0, 16  ;;  %v8590_v26 = vpack.c.bf16 %v11280_v38, %v11280_v38  ;;  %v5187_v5 = vmul.f32 %v11043_v12, %v5077_v3  ;;  %v11298_v22 = vmul.f32 %v8389_v7, %v11040_v54  ;;  %v5683_v58 = vld [vmem:[#allocation4 + $0x20] sm:$0x1] }
 0x274   : > { %v9127_v17 = vpop.eup %9126  ;;  %v8727_v16 = vpop.f32.mrb[20].mxu1  ;;  %v5188_v37 = vmul.f32 %v11043_v12, %v5080_v32  ;;  %v11301_v53 = vadd.s32 8, %v11051_v48  ;;  %v5501_v57 = vshll.u32 %v8589_v0, 16  ;;  %vm5264_vm13 = vcmp.lt.s32.totalorder %v11127_v19, 16 }
 0x275   : > { %v11294_v45 = vsel %vm11268_vm9, %v9127_v17, 0.0  ;;  %v8728_v62 = vpop.f32.mrb[21].mxu1  ;;  %v5500_v31 = vrot.slane %v5498_v39, 7  ;;  %v5506_v60 = vshrl.u32 %v8590_v26, 16  ;;  %v5509_v4 = vshll.u32 %v8590_v26, 16  ;;  %vm11341_vm3 = vmand %vm5254_vm10, %vm5264_vm13 }
 0x276   : > { %12233 = vst [vmem:[#allocation14_spill] sm:$0xff] %v11294_v45  ;;  %v8591_v10 = vpack.c.bf16 %v11294_v45, %v11294_v45  ;;  %v8730_v61 = vpop.f32.mrb[22].mxu1  ;;  %v5207_v23 = vadd.f32 %v5187_v5, %v11124_v30  ;;  %v5208_v11 = vadd.f32 %v5188_v37, %v11139_v40  ;;  %v8729_v41 = vadd.f32 %v8728_v62, %v8727_v16  ;;  %v6584_v0 = vld [vmem:[#allocation4 + $0xc] sm:$0xe]  ;;  %v5686_v17 = vld [vmem:[#allocation4 + $0x24] sm:$0xf] }
 0x277   : > { %v5503_v8 = vor.u32 %v5501_v57, %v5500_v31  ;;  %v5504_v21 = vrot.slane %v5500_v31, 4  ;;  %v5508_v46 = vrot.slane %v5506_v60, 7  ;;  %v8731_v3 = vpop.f32.mrb[23].mxu1  ;;  %v6082_v62 = vld [vmem:[#allocation4 + $0xc] sm:$0xe]  ;;  %v8463_v57 = vrot.slane %v6584_v0, 9 }
 0x278   : > { %v5515_v6 = vshrl.u32 %v8591_v10, 16  ;;  %v9129_v7 = vpop.eup %9128  ;;  %v5518_v32 = vshll.u32 %v8591_v10, 16  ;;  %v9072_v39 = vld [vmem:[#allocation4 + $0xc] sm:$0xff]   ;;  %9130 = vtanh.f32 %v5207_v23  ;;  %v4972_v26 = vadd.f32 %v8729_v41, %v11091_v24  ;;  %v6586_v37 = vld [vmem:[#allocation4 + $0x14] sm:$0x1] }
 0x279   : > { %v6585_v45 = vld [vmem:[#allocation4 + $0x10] sm:$0xf]  ;;  %v8732_v38 = vadd.f32 %v8731_v3, %v8730_v61  ;;  %v5680_v30 = vsel %vm11221_vm11, %v5503_v8, %v5679_v35  ;;  %v5511_v40 = vor.u32 %v5509_v4, %v5508_v46  ;;  %v5513_v5 = vrot.slane %v5508_v46, 4  ;;  %6296 = vrot.lane.b32.xlu1 %v9072_v39, %s9283_s25  ;;  %v6084_v2 = vld [vmem:[#allocation4 + $0x14] sm:$0x1] }
 0x27a   : > { %v11312_v16 = vrot.slane %v5515_v6, 7  ;;  %5681 = vst [vmem:[#allocation4 + $0x18] sm:$0xf] %v5680_v30  ;;  %v11316_v31 = vsel %vm11268_vm9, %v9129_v7, 0.0  ;;  %v6634_v60 = vrot.slane %v6585_v45, 5  ;;  %v11320_v10 = vadd.s32 9, %v11051_v48 }
 0x27b   : > { %v6083_v24 = vld [vmem:[#allocation4 + $0x10] sm:$0xf]  ;;  %v5512_v35 = vsel %vm11229_vm8, %v5504_v21, %v5511_v40  ;;  %v5684_v61 = vsel %vm10951_vm14, %v5513_v5, %v5683_v58  ;;  %v6637_v23 = vrot.slane %v6586_v37, 5  ;;  %v8592_v45 = vpack.c.bf16 %v11316_v31, %v11316_v31  ;;  %v6079_v21 = vld [vmem:[#allocation4] sm:$0xe] }
 0x27c   : > { %v5520_v4 = vor.u32 %v5518_v32, %v11312_v16  ;;  %5682 = vst.msk [vmem:[#allocation4 + $0x1c] sm:$0xf] %vm547_vm6, %v5512_v35  ;;  %5685 = vst [vmem:[#allocation4 + $0x20] sm:$0x1] %v5684_v61  ;;  %v5521_v41 = vrot.slane %v11312_v16, 4  ;;  %v6635_v48 = vsel %vm9414_vm2, %v8463_v57, %v6634_v60  ;;  %v6636_v8 = vrot.slane %v6634_v60, 4 }
 0x27d   : > { %v6080_v46 = vld [vmem:[#allocation4 + $0x4] sm:$0xf]  ;;  %v8432_v6 = vrot.slane %v6082_v62, 9  ;;  %v6136_v0 = vrot.slane %v6083_v24, 5  ;;  %9132 = vtanh.f32 %v5208_v11  ;;  %v5523_v3 = vshrl.u32 %v8592_v45, 16 }
 0x27e   : > { %v5687_v58 = vsel %vm11221_vm11, %v5520_v4, %v5686_v17  ;;  %v5526_v7 = vshll.u32 %v8592_v45, 16  ;;  %v6638_v32 = vsel %vm9414_vm2, %v6636_v8, %v6637_v23  ;;  %v6139_v39 = vrot.slane %v6084_v2, 5  ;;  %v6081_v30 = vld [vmem:[#allocation4 + $0x8] sm:$0x1]  ;;  %v5690_v60 = vld [vmem:[#allocation4 + $0x2c] sm:$0x1] }
 0x27f   : > { %5688 = vst [vmem:[#allocation4 + $0x24] sm:$0xf] %v5687_v58  ;;  %v8471_v40 = vcombine.low %v6635_v48, %v6638_v32  ;;  %v6138_v5 = vrot.slane %v6136_v0, 4  ;;  %v8431_v16 = vrot.slane %v6079_v21, 9  ;;  %v6129_v37 = vrot.slane %v6080_v46, 5  ;;  %v8392_v11 = vld [vmem:[%s9784_s20 + $0xf1] sm:$0xff] }
 0x280   : > { %v5525_v57 = vrot.slane %v5523_v3, 7  ;;  %v6137_v17 = vsel %vm9414_vm2, %v8432_v6, %v6136_v0  ;;  %v5085_v62 = vadd.f32 %v11216_v52, %v4972_v26  ;;  %v4975_v24 = vadd.f32 %v8732_v38, %v11095_v49 }
 0x281   : > { %v8733_v35 = vpop.f32.mrb[24].mxu1  ;;  %6712 = vrot.lane.b32.xlu0 %v8471_v40, %s9284_s13  ;;  %v6140_v61 = vsel %vm9414_vm2, %v6138_v5, %v6139_v39  ;;  %v6130_v19 = vsel %vm9414_vm2, %v8431_v16, %v6129_v37  ;;  %v6131_v4 = vrot.slane %v6129_v37, 4  ;;  %v6132_v23 = vrot.slane %v6081_v30, 5  ;;  %v7105_v49 = vld [vmem:[#allocation4 + $0x18] sm:$0xe] }
 0x282   : > { %v8734_v2 = vpop.f32.mrb[25].mxu1  ;;  %v9131_v45 = vpop.eup %9130  ;;  %v5528_v48 = vor.u32 %v5526_v7, %v5525_v57  ;;  %v5530_v8 = vrot.slane %v5525_v57, 4  ;;  %v8440_v21 = vcombine.low %v6137_v17, %v6140_v61  ;;  %v5189_v52 = vmul.f32 %v11043_v12, %v5085_v62  ;;  %v5810_v62 = vld [vmem:[#allocation4 + $0xc] sm:$0xf] }
 0x283   : > { %v8736_v26 = vpop.f32.mrb[26].mxu1  ;;  %v11357_v38 = vsel %vm11341_vm3, %v9131_v45, 0.0  ;;  %v6133_v46 = vsel %vm9414_vm2, %v6131_v4, %v6132_v23  ;;  %v5088_v58 = vadd.f32 %v11225_v15, %v4975_v24  ;;  %v8735_v6 = vadd.f32 %v8734_v2, %v8733_v35  ;;  %v7106_v0 = vld [vmem:[#allocation4 + $0x1c] sm:$0xf]  ;;  %v7107_v3 = vld [vmem:[#allocation4 + $0x20] sm:$0x1] }
 0x284   : > { %v8737_v32 = vpop.f32.mrb[27].mxu1  ;;  %v5529_v7 = vsel %vm11229_vm8, %v5521_v41, %v5528_v48  ;;  %v5691_v39 = vsel %vm10951_vm14, %v5530_v8, %v5690_v60  ;;  %v8593_v30 = vpack.c.bf16 %v11357_v38, %v11357_v38  ;;  %6209 = vrot.lane.b32.xlu1 %v8440_v21, %s9282_s26  ;;  %v8439_v40 = vcombine.low %v6130_v19, %v6133_v46  ;;  %v5693_v35 = vld [vmem:[#allocation4 + $0x30] sm:$0xf] }
 0x285   : > { %5689 = vst.msk [vmem:[#allocation4 + $0x28] sm:$0xf] %vm547_vm6, %v5529_v7  ;;  %5692 = vst [vmem:[#allocation4 + $0x2c] sm:$0x1] %v5691_v39  ;;  %v5209_v15 = vadd.f32 %v5189_v52, %v11168_v36  ;;  %v5190_v41 = vmul.f32 %v11043_v12, %v5088_v58  ;;  %v8495_v5 = vrot.slane %v7105_v49, 9  ;;  %v7155_v16 = vrot.slane %v7106_v0, 5 }
 0x286   : > { %v5532_v37 = vshrl.u32 %v8593_v30, 16  ;;  %v5535_v57 = vshll.u32 %v8593_v30, 16  ;;  %v7158_v60 = vrot.slane %v7107_v3, 5  ;;  %v8738_v17 = vadd.f32 %v8737_v32, %v8736_v26  ;;  %v5811_v48 = vld [vmem:[#allocation4 + $0x10] sm:$0xf] }
 0x287   : > { %v9133_v24 = vpop.eup %9132  ;;  %9134 = vtanh.f32 %v5209_v15  ;;  %v5210_v61 = vadd.f32 %v5190_v41, %v11183_v13  ;;  %v7156_v36 = vsel %vm9414_vm2, %v8495_v5, %v7155_v16  ;;  %v7157_v19 = vrot.slane %v7155_v16, 4  ;;  %v8390_v8 = vld [vmem:[%s9784_s20 + $0xd9] sm:$0xff]  ;;  %v8391_v26 = vld [vmem:[%s9784_s20 + $0xe1] sm:$0xff]  ;;  %v6590_v0 = vld [vmem:[#allocation4 + $0x24] sm:$0xe] }
 0x288   : > { %v11377_v4 = vrot.slane %v5532_v37, 7  ;;  %v11381_v23 = vsel %vm11341_vm3, %v9133_v24, 0.0  ;;  %6207 = vrot.lane.b32.xlu1 %v8439_v40, %s9282_s26  ;;  %v4980_v2 = vadd.f32 %v8735_v6, %v11105_v56  ;;  %v4983_v45 = vadd.f32 %v8738_v17, %v11114_v28  ;;  %v8393_v49 = vld [vmem:[%s9784_s20 + $0xf9] sm:$0xff]  ;;  %v5812_v6 = vld [vmem:[#allocation4 + $0x14] sm:$0x1]  ;;  %s8541_s20 = sshll.u32 %s9268_s9, 3 }
 0x289   : > { %v8594_v13 = vpack.c.bf16 %v11381_v23, %v11381_v23  ;;  %9136 = vtanh.f32 %v5210_v61  ;;  %v7159_v21 = vsel %vm9414_vm2, %v7157_v19, %v7158_v60  ;;  %v5856_v52 = vshrl.u32 %v5810_v62, 16  ;;  %v9098_v40 = vld [vmem:[#allocation4 + $0xc] sm:$0xff]   ;;  %v5697_v41 = vld [vmem:[#allocation4 + $0x38] sm:$0x1]  ;;  %v9099_v19 = vld [vmem:[#allocation4] sm:$0xff]   ;;  %s12065_s22 = sadd.s32 %s8541_s20, %s8540_s17  ;;  %s9285_s17 = smov [#allocation8]  }
 0x28a   : > { %v5537_v46 = vor.u32 %v5535_v57, %v11377_v4  ;;  %v5538_v58 = vrot.slane %v11377_v4, 4  ;;  %v8503_v56 = vcombine.low %v7156_v36, %v7159_v21  ;;  %v5859_v28 = vshll.u32 %v5810_v62, 16  ;;  %s9158_s20 = sshll.u32 %s9285_s17, 4  ;;  %s9159_s20 = int_to_ptr.vmem [resolvable:$false] %s9158_s20 }
 0x28b   : > { %v5540_v3 = vshrl.u32 %v8594_v13, 16  ;;  %v5543_v32 = vshll.u32 %v8594_v13, 16  ;;  %v5858_v39 = vrot.slane %v5856_v52, 4  ;;  %v5865_v30 = vshll.u32 %v5811_v48, 16  ;;  %s9160_s0 = scalar_lea.vmem %s9159_s20, 1024 }
 0x28c   : > { %v5694_v15 = vsel %vm11221_vm11, %v5537_v46, %v5693_v35  ;;  %vm12236_vm12 = vcmask 261120   ;;  %v9073_v16 = vld [vmem:[#allocation4 + $0x24] sm:$0xff]   ;;  %v11402_v37 = vmul.f32 %v8390_v8, %v11040_v54  ;;  %v11405_v57 = vmul.f32 %v8391_v26, %v11040_v54 }
 0x28d   : > { %v11396_v7 = vpop.f32.mrb[52].mxu0  ;;  %7241 = vst.msk [vmem:[#allocation3 + $0x10] sm:$0xff] %vm12236_vm12, %v8503_v56  ;;  %v11408_v60 = vmul.f32 %v8392_v11, %v11040_v54  ;;  %5695 = vst [vmem:[#allocation4 + $0x30] sm:$0xf] %v5694_v15  ;;  %v5542_v17 = vrot.slane %v5540_v3, 7  ;;  %v9074_v24 = vld [vmem:[#allocation4 + $0x24] sm:$0xff]   ;;  %6803 = vrot.lane.b32.xlu0 %v9073_v16, %s9282_s26  ;;  %v11417_v26 = vmul.f32 %v8393_v49, %v11040_v54 }
 0x28e   : > { %v5092_v5 = vpop.f32.mrb[53].mxu0  ;;  %v5861_v35 = vrot.slane %v5859_v28, 5  ;;  %v11412_v36 = vrot.slane %v5865_v30, 5  ;;  %vm12237_vm0 = vmmov %vm12236_vm12  ;;  %v5869_v8 = vshrl.u32 %v5811_v48, 16  ;;  %v5875_v13 = vshll.u32 %v5812_v6, 16  ;;  %6300 = vrot.lane.b32.xlu1 %v9074_v24, %s9283_s25  ;;  %v9075_v54 = vld [vmem:[#allocation4 + $0x18] sm:$0xff]  }
 0x28f   : > { %v5093_v62 = vadd.f32 %v5092_v5, %v4980_v2  ;;  %v11410_v61 = vpop.f32.mrb[54].mxu0  ;;  %5800 = vst.msk [vmem:[#allocation3 + $0x18] sm:$0xff] %vm12237_vm0, %v9098_v40  ;;  %v6591_v21 = vld [vmem:[#allocation4 + $0x28] sm:$0xf]  ;;  %v8465_v52 = vrot.slane %v6590_v0, 9  ;;  %v5545_v2 = vor.u32 %v5543_v32, %v5542_v17  ;;  %v5547_v11 = vrot.slane %v5542_v17, 4  ;;  %vm12240_vm15 = vmmov %vm12237_vm0 }
 0x290   : > { %v5095_v4 = vpop.f32.mrb[55].mxu0  ;;  %5799 = vst.msk [vmem:[#allocation3] sm:$0xff] %vm12240_vm15, %v9099_v19  ;;  %vm5256_vm9 = vcmp.ge.s32.totalorder %v11189_v18, 0  ;;  %vm5266_vm10 = vcmp.lt.s32.totalorder %v11189_v18, 16  ;;  %v5862_v49 = vor.u32 %v5861_v35, %v5858_v39  ;;  %v5871_v6 = vrot.slane %v5869_v8, 4  ;;  %vm12241_vm13 = vmmov %vm12237_vm0 }
 0x291   : > { %v5191_v56 = vmul.f32 %v11043_v12, %v5093_v62  ;;  %v5096_v48 = vadd.f32 %v5095_v4, %v4983_v45  ;;  %v5877_v28 = vrot.slane %v5875_v13, 5  ;;  %v6648_v44 = vrot.slane %v6591_v21, 5  ;;  %v9135_v0 = vpop.eup %9134  ;;  %v6592_v40 = vld [vmem:[#allocation4 + $0x2c] sm:$0x1]  ;;  %6801 = vrot.lane.b32.xlu0 %v9075_v54, %s9282_s26  ;;  %v6587_v24 = vld [vmem:[#allocation4 + $0x18] sm:$0xe]  ;;  %vm11479_vm3 = vmand %vm5256_vm9, %vm5266_vm10 }
 0x292   : > { %v5546_v3 = vsel %vm11229_vm8, %v5538_v58, %v5545_v2  ;;  %v5698_v32 = vsel %vm10951_vm14, %v5547_v11, %v5697_v41  ;;  %v11441_v39 = vsel %vm11423_vm1, %v9135_v0, 0.0  ;;  %v5863_v15 = vrot.slane %v5862_v49, 4  ;;  %v6588_v35 = vld [vmem:[#allocation4 + $0x1c] sm:$0xf]  ;;  %v6589_v21 = vld [vmem:[#allocation4 + $0x20] sm:$0x1]  ;;  %vm12244_vm4 = vmmov %vm12237_vm0 }
 0x293   : > { %v5211_v45 = vadd.f32 %v5191_v56, %v11186_v43  ;;  %v5192_v30 = vmul.f32 %v11043_v12, %v5096_v48  ;;  %5696 = vst.msk [vmem:[#allocation4 + $0x34] sm:$0xf] %vm547_vm6, %v5546_v3  ;;  %5699 = vst [vmem:[#allocation4 + $0x38] sm:$0x1] %v5698_v32  ;;  %v5872_v58 = vor.u32 %v5871_v6, %v11412_v36  ;;  %v9137_v5 = vpop.eup %9136  ;;  %v6650_v62 = vrot.slane %v6648_v44, 4  ;;  %v9089_v3 = vld [vmem:[%s12190_s3 + $0x40] sm:$0xff]  }
 0x294   : > { %v6649_v41 = vsel %vm9414_vm2, %v8465_v52, %v6648_v44  ;;  %v8595_v43 = vpack.c.bf16 %v11441_v39, %v11441_v39  ;;  %v7251_v16 = vld [vmem:[#allocation3 + $0x10] sm:$0xff]  ;;  %v11452_v19 = vsel %vm11423_vm1, %v9137_v5, 0.0  ;;  %v5868_v4 = vsel %vm9465_vm5, %v5863_v15, %v11412_v36  ;;  %v5807_v54 = vld [vmem:[#allocation4] sm:$0xf]  ;;  %v5808_v0 = vld [vmem:[#allocation4 + $0x4] sm:$0xf]  ;;  %8771 = vmatprep.subr.bf16.mxu1 %v9089_v3 }
 0x295   : > { %9138 = vtanh.f32 %v5211_v45  ;;  %v5212_v17 = vadd.f32 %v5192_v30, %v11192_v63  ;;  %8877 = vmatprep.mubr.msk.bf16.mxu0 %vm12241_vm13, %v7251_v16  ;;  %v5873_v8 = vrot.slane %v5872_v58, 4  ;;  %v6651_v13 = vrot.slane %v6592_v40, 5  ;;  %v5700_v32 = vld [vmem:[#allocation4 + $0x3c] sm:$0xf]  ;;  %v5704_v45 = vld [vmem:[#allocation4 + $0x44] sm:$0x1]  ;;  %vm12247_vm15 = vmmov %vm12237_vm0 }
 0x296   : > { %v5549_v52 = vshrl.u32 %v8595_v43, 16  ;;  %v5552_v2 = vshll.u32 %v8595_v43, 16  ;;  %v8596_v63 = vpack.c.bf16 %v11452_v19, %v11452_v19  ;;  %v8464_v56 = vrot.slane %v6587_v24, 9  ;;  %v9077_v16 = vld [vmem:[#allocation4 + $0x18] sm:$0xff]   ;;  %vm12248_vm9 = vmmov %vm12237_vm0 }
 0x297   : > { %9140 = vtanh.f32 %v5212_v17  ;;  %v5878_v11 = vsel %vm9465_vm5, %v5873_v8, %v5877_v28  ;;  %v6652_v46 = vsel %vm9414_vm2, %v6650_v62, %v6651_v13  ;;  %v6641_v48 = vrot.slane %v6588_v35, 5  ;;  %v5809_v62 = vld [vmem:[#allocation4 + $0x8] sm:$0x1] }
 0x298   : > { %v5551_v49 = vrot.slane %v5549_v52, 7  ;;  %v5557_v36 = vshrl.u32 %v8596_v63, 16  ;;  %v5560_v6 = vshll.u32 %v8596_v63, 16  ;;  %v8424_v44 = vcombine.low %v5868_v4, %v5878_v11 }
 0x299   : > { %v8473_v30 = vcombine.low %v6649_v41, %v6652_v46  ;;  %v6642_v28 = vsel %vm9414_vm2, %v8464_v56, %v6641_v48  ;;  %v6643_v40 = vrot.slane %v6641_v48, 4  ;;  %v6644_v15 = vrot.slane %v6589_v21, 5  ;;  %v7108_v21 = vld [vmem:[#allocation4 + $0x24] sm:$0xe]  ;;  %v7109_v48 = vld [vmem:[#allocation4 + $0x28] sm:$0xf] }
 0x29a   : > { %v5554_v58 = vor.u32 %v5552_v2, %v5551_v49  ;;  %v5555_v5 = vrot.slane %v5551_v49, 4  ;;  %v5559_v43 = vrot.slane %v5557_v36, 7  ;;  %6049 = vrot.lane.b32.xlu1 %v8424_v44, %s9284_s13  ;;  %v8739_v17 = vpop.f32.mrb[28].mxu1  ;;  %v5832_v24 = vshrl.u32 %v5807_v54, 16 }
 0x29b   : > { %6716 = vrot.lane.b32.xlu0 %v8473_v30, %s9284_s13  ;;  %v8740_v35 = vpop.f32.mrb[29].mxu1  ;;  %v6645_v41 = vsel %vm9414_vm2, %v6643_v40, %v6644_v15  ;;  %v5835_v4 = vshll.u32 %v5807_v54, 16  ;;  %v5841_v8 = vshll.u32 %v5808_v0, 16  ;;  %v5845_v13 = vshrl.u32 %v5808_v0, 16  ;;  %v7110_v40 = vld [vmem:[#allocation4 + $0x2c] sm:$0x1] }
 0x29c   : > { %v5701_v52 = vsel %vm11221_vm11, %v5554_v58, %v5700_v32  ;;  %v5562_v2 = vor.u32 %v5560_v6, %v5559_v43  ;;  %v5564_v63 = vrot.slane %v5559_v43, 4  ;;  %v8741_v46 = vadd.f32 %v8740_v35, %v8739_v17  ;;  %v8742_v56 = vpop.f32.mrb[30].mxu1 }
 0x29d   : > { %5702 = vst [vmem:[#allocation4 + $0x3c] sm:$0xf] %v5701_v52  ;;  %v8472_v54 = vcombine.low %v6642_v28, %v6645_v41  ;;  %v5834_v49 = vrot.slane %v5832_v24, 4  ;;  %v5837_v36 = vrot.slane %v5835_v4, 5  ;;  %v11483_v44 = vrot.slane %v5841_v8, 5  ;;  %v8743_v0 = vpop.f32.mrb[31].mxu1 }
 0x29e   : > { %v5563_v3 = vsel %vm11229_vm8, %v5555_v5, %v5562_v2  ;;  %v5705_v18 = vsel %vm10951_vm14, %v5564_v63, %v5704_v45  ;;  %6298 = vrot.lane.b32.xlu1 %v9077_v16, %s9283_s25  ;;  %v4988_v32 = vadd.f32 %v8741_v46, %v11132_v55  ;;  %v5847_v30 = vrot.slane %v5845_v13, 4  ;;  %v9090_v28 = vld [vmem:[%s12190_s3] sm:$0xff]   ;;  %v9092_v55 = vld [vmem:[%s12190_s3 + $0x48] sm:$0xff]   ;;  %v6088_v63 = vld [vmem:[#allocation4 + $0x24] sm:$0xe] }
 0x29f   : > { %v9139_v6 = vpop.eup %9138  ;;  %5703 = vst.msk [vmem:[#allocation4 + $0x40] sm:$0xf] %vm547_vm6, %v5563_v3  ;;  %5706 = vst [vmem:[#allocation4 + $0x44] sm:$0x1] %v5705_v18  ;;  %6714 = vrot.lane.b32.xlu0 %v8472_v54, %s9284_s13  ;;  %v5838_v45 = vor.u32 %v5837_v36, %v5834_v49  ;;  %v5851_v58 = vshll.u32 %v5809_v62, 16  ;;  %v8496_v5 = vrot.slane %v7108_v21, 9  ;;  %8772 = vmatpush3.bf16.msra.mxu1 %v9090_v28 }
 0x2a0   : > { %v11497_v15 = vsel %vm11479_vm3, %v9139_v6, 0.0  ;;  %v5101_v17 = vadd.f32 %v11396_v7, %v4988_v32  ;;  %v5848_v24 = vor.u32 %v5847_v30, %v11483_v44  ;;  %v7162_v35 = vrot.slane %v7109_v48, 5  ;;  %v9107_v41 = vld [vmem:[#allocation4 + $0x18] sm:$0xff]   ;;  %8773 = vmatprep.subr.bf16.mxu1 %v9092_v55  ;;  %v5707_v46 = vld [vmem:[#allocation4 + $0x48] sm:$0xf] }
 0x2a1   : > { %v9141_v43 = vpop.eup %9140  ;;  %v8597_v16 = vpack.c.bf16 %v11497_v15, %v11497_v15  ;;  %v5839_v62 = vrot.slane %v5838_v45, 4  ;;  %v5853_v8 = vrot.slane %v5851_v58, 5  ;;  %v7165_v13 = vrot.slane %v7110_v40, 5  ;;  %5801 = vst.msk [vmem:[#allocation3 + $0x30] sm:$0xff] %vm12244_vm4, %v9107_v41  ;;  %v6089_v36 = vld [vmem:[#allocation4 + $0x28] sm:$0xf]  ;;  %vm12250_vm4 = vmmov %vm12237_vm0 }
 0x2a2   : > { %v11509_v4 = vsel %vm11479_vm3, %v9141_v43, 0.0  ;;  %v5193_v7 = vmul.f32 %v11043_v12, %v5101_v17  ;;  %vm5257_vm7 = vcmp.ge.s32.totalorder %v11206_v14, 0  ;;  %vm5267_vm12 = vcmp.lt.s32.totalorder %v11206_v14, 16  ;;  %v6085_v30 = vld [vmem:[#allocation4 + $0x18] sm:$0xe]  ;;  %vm12249_vm3 = vmmov %vm12237_vm0 }
 0x2a3   : > { %v5566_v21 = vshrl.u32 %v8597_v16, 16  ;;  %v5569_v52 = vshll.u32 %v8597_v16, 16  ;;  %v8598_v2 = vpack.c.bf16 %v11509_v4, %v11509_v4  ;;  %v5844_v11 = vsel %vm9465_vm5, %v5839_v62, %v11483_v44  ;;  %v9093_v40 = vld [vmem:[%s12190_s3 + $0x8] sm:$0xff]   ;;  %v5711_v28 = vld [vmem:[#allocation4 + $0x50] sm:$0x1]  ;;  %vm11568_vm1 = vmand %vm5257_vm7, %vm5267_vm12 }
 0x2a4   : > { %v5849_v48 = vrot.slane %v5848_v24, 4  ;;  %v7163_v54 = vsel %vm9414_vm2, %v8496_v5, %v7162_v35  ;;  %v7164_v49 = vrot.slane %v7162_v35, 4  ;;  %v5213_v32 = vadd.f32 %v5193_v7, %v11283_v25  ;;  %v6090_v5 = vld [vmem:[#allocation4 + $0x2c] sm:$0x1]  ;;  %v6086_v43 = vld [vmem:[#allocation4 + $0x1c] sm:$0xf]  ;;  %8774 = vmatpush3.bf16.msra.mxu1 %v9093_v40  ;;  %vm12251_vm7 = vmmov %vm12237_vm0 }
 0x2a5   : > { %v5568_v6 = vrot.slane %v5566_v21, 7  ;;  %v5574_v3 = vshrl.u32 %v8598_v2, 16  ;;  %v5577_v18 = vshll.u32 %v8598_v2, 16  ;;  %v8744_v58 = vadd.f32 %v8743_v0, %v8742_v56  ;;  %v9094_v25 = vld [vmem:[%s12190_s3 + $0x50] sm:$0xff]  }
 0x2a6   : > { %v5854_v44 = vsel %vm9465_vm5, %v5849_v48, %v5853_v8  ;;  %v7166_v45 = vsel %vm9414_vm2, %v7164_v49, %v7165_v13  ;;  %v8434_v55 = vrot.slane %v6088_v63, 9  ;;  %9142 = vtanh.f32 %v5213_v32  ;;  %v9079_v35 = vld [vmem:[#allocation4 + $0x3c] sm:$0xff]   ;;  %8775 = vmatprep.subr.bf16.mxu1 %v9094_v25  ;;  %v7111_v63 = vld [vmem:[#allocation4 + $0x30] sm:$0xe]  ;;  %v7112_v48 = vld [vmem:[#allocation4 + $0x34] sm:$0xf] }
 0x2a7   : > { %v5571_v16 = vor.u32 %v5569_v52, %v5568_v6  ;;  %v5572_v17 = vrot.slane %v5568_v6, 4  ;;  %v5576_v24 = vrot.slane %v5574_v3, 7  ;;  %v8423_v41 = vcombine.low %v5844_v11, %v5854_v44  ;;  %v6087_v13 = vld [vmem:[#allocation4 + $0x20] sm:$0x1]  ;;  %6807 = vrot.lane.b32.xlu0 %v9079_v35, %s9282_s26  ;;  %v6836_v32 = vld [vmem:[#allocation4 + $0x24] sm:$0xf] }
 0x2a8   : > { %v8504_v62 = vcombine.low %v7163_v54, %v7166_v45  ;;  %v4991_v8 = vadd.f32 %v8744_v58, %v11136_v34  ;;  %v6150_v21 = vrot.slane %v6089_v36, 5  ;;  %v9095_v56 = vld [vmem:[%s12190_s3 + $0x10] sm:$0xff]   ;;  %v6153_v7 = vrot.slane %v6090_v5, 5  ;;  %v6837_v45 = vld [vmem:[#allocation4 + $0x28] sm:$0xf] }
 0x2a9   : > { %v5708_v0 = vsel %vm11221_vm11, %v5571_v16, %v5707_v46  ;;  %v5579_v52 = vor.u32 %v5577_v18, %v5576_v24  ;;  %v5581_v2 = vrot.slane %v5576_v24, 4  ;;  %6047 = vrot.lane.b32.xlu1 %v8423_v41, %s9284_s13  ;;  %v8433_v49 = vrot.slane %v6085_v30, 9  ;;  %v7113_v46 = vld [vmem:[#allocation4 + $0x38] sm:$0x1]  ;;  %8776 = vmatpush3.bf16.msra.mxu1 %v9095_v56  ;;  %v9096_v25 = vld [vmem:[%s12190_s3 + $0x58] sm:$0xff]  }
 0x2aa   : > { %5709 = vst [vmem:[#allocation4 + $0x48] sm:$0xf] %v5708_v0  ;;  %7242 = vst.msk [vmem:[#allocation3 + $0x28] sm:$0xff] %vm12237_vm0, %v8504_v62  ;;  %v5104_v34 = vadd.f32 %v11410_v61, %v4991_v8  ;;  %v6151_v11 = vsel %vm9414_vm2, %v8434_v55, %v6150_v21  ;;  %v6152_v54 = vrot.slane %v6150_v21, 4  ;;  %v6143_v3 = vrot.slane %v6086_v43, 5  ;;  %v8745_v55 = vpop.f32.mrb[32].mxu1  ;;  %8777 = vmatprep.subr.bf16.mxu1 %v9096_v25 }
 0x2ab   : > { %v5580_v36 = vsel %vm11229_vm8, %v5572_v17, %v5579_v52  ;;  %v5712_v6 = vsel %vm10951_vm14, %v5581_v2, %v5711_v28  ;;  %v6146_v18 = vrot.slane %v6087_v13, 5  ;;  %v8497_v30 = vrot.slane %v7111_v63, 9  ;;  %v8746_v17 = vpop.f32.mrb[33].mxu1  ;;  %v9097_v62 = vld [vmem:[%s12190_s3 + $0x18] sm:$0xff]   ;;  %v9100_v2 = vld [vmem:[%s12190_s3 + $0x60] sm:$0xff]  }
 0x2ac   : > { %5710 = vst.msk [vmem:[#allocation4 + $0x4c] sm:$0xf] %vm547_vm6, %v5580_v36  ;;  %5713 = vst [vmem:[#allocation4 + $0x50] sm:$0x1] %v5712_v6  ;;  %v5194_v61 = vmul.f32 %v11043_v12, %v5104_v34  ;;  %v6154_v40 = vsel %vm9414_vm2, %v6152_v54, %v6153_v7  ;;  %v7169_v44 = vrot.slane %v7112_v48, 5  ;;  %v6144_v5 = vsel %vm9414_vm2, %v8433_v49, %v6143_v3  ;;  %v8748_v13 = vpop.f32.mrb[34].mxu1 }
 0x2ad   : > { %v8442_v58 = vcombine.low %v6151_v11, %v6154_v40  ;;  %v6145_v28 = vrot.slane %v6143_v3, 4  ;;  %v7172_v43 = vrot.slane %v7113_v46, 5  ;;  %v6882_v41 = vshrl.u32 %v6836_v32, 16  ;;  %v6838_v56 = vld [vmem:[#allocation4 + $0x2c] sm:$0x1]  ;;  %v8749_v63 = vpop.f32.mrb[35].mxu1  ;;  %8778 = vmatpush3.bf16.msra.mxu1 %v9097_v62 }
 0x2ae   : > { %v5214_v16 = vadd.f32 %v5194_v61, %v11298_v22  ;;  %v7170_v24 = vsel %vm9414_vm2, %v8497_v30, %v7169_v44  ;;  %v7171_v35 = vrot.slane %v7169_v44, 4  ;;  %v8747_v21 = vadd.f32 %v8746_v17, %v8745_v55  ;;  %v5816_v34 = vld [vmem:[#allocation4 + $0x24] sm:$0xf]  ;;  %v5817_v3 = vld [vmem:[#allocation4 + $0x28] sm:$0xf]  ;;  %8779 = vmatprep.subr.bf16.mxu1 %v9100_v2  ;;  %v9080_v44 = vld [vmem:[#allocation4 + $0x3c] sm:$0xff]  }
 0x2af   : > { %6213 = vrot.lane.b32.xlu1 %v8442_v58, %s9282_s26  ;;  %v6147_v22 = vsel %vm9414_vm2, %v6145_v28, %v6146_v18  ;;  %v6885_v0 = vshll.u32 %v6836_v32, 16  ;;  %v6891_v52 = vshll.u32 %v6837_v45, 16  ;;  %v6884_v48 = vrot.slane %v6882_v41, 4  ;;  %v5818_v28 = vld [vmem:[#allocation4 + $0x2c] sm:$0x1] }
 0x2b0   : > { %9144 = vtanh.f32 %v5214_v16  ;;  %v8441_v14 = vcombine.low %v6144_v5, %v6147_v22  ;;  %v7173_v7 = vsel %vm9414_vm2, %v7171_v35, %v7172_v43  ;;  %v9143_v11 = vpop.eup %9142  ;;  %v8750_v46 = vadd.f32 %v8749_v63, %v8748_v13  ;;  %v5714_v2 = vld [vmem:[#allocation4 + $0x54] sm:$0xf] }
 0x2b1   : > { %v7254_v54 = vld [vmem:[#allocation3 + $0x28] sm:$0xff]  ;;  %v8505_v49 = vcombine.low %v7170_v24, %v7173_v7  ;;  %v4996_v36 = vadd.f32 %v8747_v21, %v11151_v29  ;;  %v6887_v6 = vrot.slane %v6885_v0, 5  ;;  %v11583_v18 = vsel %vm11568_vm1, %v9143_v11, 0.0  ;;  %v11592_v29 = vpop.f32.mrb[56].mxu0 }
 0x2b2   : > { %8878 = vmatmul.mubr.msk.bf16.vlgmr.msra.gmra.mrb[60].mxu0 %vm12247_vm15, %v7254_v54  ;;  %v11586_v32 = vrot.slane %v6891_v52, 5  ;;  %v6895_v61 = vshrl.u32 %v6837_v45, 16  ;;  %v6901_v40 = vshll.u32 %v6838_v56, 16  ;;  %v8599_v30 = vpack.c.bf16 %v11583_v18, %v11583_v18  ;;  %v5108_v43 = vpop.f32.mrb[57].mxu0  ;;  %vm12254_vm15 = vmmov %vm12249_vm3 }
 0x2b3   : > { %6211 = vrot.lane.b32.xlu1 %v8441_v14, %s9282_s26  ;;  %7243 = vst.msk [vmem:[#allocation3 + $0x40] sm:$0xff] %vm12248_vm9, %v8505_v49  ;;  %v4999_v58 = vadd.f32 %v8750_v46, %v11155_v51  ;;  %v6888_v5 = vor.u32 %v6887_v6, %v6884_v48  ;;  %v5904_v55 = vshrl.u32 %v5816_v34, 16  ;;  %v5907_v45 = vshll.u32 %v5816_v34, 16  ;;  %v11595_v62 = vpop.f32.mrb[58].mxu0  ;;  %v9101_v49 = vld [vmem:[%s12190_s3 + $0x20] sm:$0xff]   ;;  %vm12255_vm9 = vmmov %vm12249_vm3 }
 0x2b4   : > { %v6897_v25 = vrot.slane %v6895_v61, 4  ;;  %v6903_v16 = vrot.slane %v6901_v40, 5  ;;  %v5913_v17 = vshll.u32 %v5817_v3, 16  ;;  %v5583_v24 = vshrl.u32 %v8599_v30, 16  ;;  %v5111_v21 = vpop.f32.mrb[59].mxu0  ;;  %v9104_v40 = vld [vmem:[#allocation4 + $0x24] sm:$0xff]   ;;  %8780 = vmatpush3.bf16.msra.mxu1 %v9101_v49 }
 0x2b5   : > { %v5586_v35 = vshll.u32 %v8599_v30, 16  ;;  %v5109_v41 = vadd.f32 %v5108_v43, %v4996_v36  ;;  %v6889_v22 = vrot.slane %v6888_v5, 4  ;;  %v5906_v56 = vrot.slane %v5904_v55, 4  ;;  %v6833_v61 = vld [vmem:[#allocation4 + $0x18] sm:$0xf]  ;;  %5802 = vst.msk [vmem:[#allocation3 + $0x48] sm:$0xff] %vm12250_vm4, %v9104_v40  ;;  %vm12260_vm4 = vmmov %vm12249_vm3 }
 0x2b6   : > { %v6898_v13 = vor.u32 %v6897_v25, %v11586_v32  ;;  %v5909_v0 = vrot.slane %v5907_v45, 5  ;;  %v11598_v51 = vrot.slane %v5913_v17, 5  ;;  %v11600_v52 = vrot.slane %v5583_v24, 7  ;;  %v6834_v55 = vld [vmem:[#allocation4 + $0x1c] sm:$0xf] }
 0x2b7   : > { %v5195_v14 = vmul.f32 %v11043_v12, %v5109_v41  ;;  %6304 = vrot.lane.b32.xlu1 %v9080_v44, %s9283_s25  ;;  %v5112_v7 = vadd.f32 %v5111_v21, %v4999_v58  ;;  %v6894_v63 = vsel %vm9465_vm5, %v6889_v22, %v11586_v32  ;;  %vm5258_vm10 = vcmp.ge.s32.totalorder %v11301_v53, 0  ;;  %v6600_v20 = vld [vmem:[#allocation4 + $0x4c] sm:$0xf] }
 0x2b8   : > { %vm5268_vm13 = vcmp.lt.s32.totalorder %v11301_v53, 16  ;;  %v6899_v48 = vrot.slane %v6898_v13, 4  ;;  %v5910_v34 = vor.u32 %v5909_v0, %v5906_v56  ;;  %v5917_v11 = vshrl.u32 %v5817_v3, 16 }
 0x2b9   : > { %v5923_v54 = vshll.u32 %v5818_v28, 16  ;;  %v5588_v46 = vor.u32 %v5586_v35, %v11600_v52  ;;  %v5589_v36 = vrot.slane %v11600_v52, 4  ;;  %v5215_v6 = vadd.f32 %v5195_v14, %v11402_v37  ;;  %v6835_v35 = vld [vmem:[#allocation4 + $0x20] sm:$0x1]  ;;  %v5718_v14 = vld [vmem:[#allocation4 + $0x5c] sm:$0x1]  ;;  %vm11642_vm12 = vmand %vm5258_vm10, %vm5268_vm13 }
 0x2ba   : > { %v5196_v32 = vmul.f32 %v11043_v12, %v5112_v7  ;;  %v9145_v30 = vpop.eup %9144  ;;  %v7257_v44 = vld [vmem:[#allocation3 + $0x40] sm:$0xff]  ;;  %v6904_v3 = vsel %vm9465_vm5, %v6899_v48, %v6903_v16  ;;  %v5911_v58 = vrot.slane %v5910_v34, 4  ;;  %v5919_v5 = vrot.slane %v5917_v11, 4  ;;  %v9111_v16 = vld [vmem:[#allocation4 + $0x30] sm:$0xff]   ;;  %vm12258_vm13 = vmmov %vm12249_vm3 }
 0x2bb   : > { %v5925_v28 = vrot.slane %v5923_v54, 5  ;;  %v5715_v43 = vsel %vm11221_vm11, %v5588_v46, %v5714_v2  ;;  %v11622_v37 = vsel %vm11568_vm1, %v9145_v30, 0.0  ;;  %8881 = vmatprep.mubr.msk.bf16.mxu0 %vm12249_vm3, %v7257_v44  ;;  %9146 = vtanh.f32 %v5215_v6  ;;  %5803 = vst.msk [vmem:[#allocation3 + $0x60] sm:$0xff] %vm12251_vm7, %v9111_v16  ;;  %v9081_v54 = vld [vmem:[#allocation4 + $0x30] sm:$0xff]   ;;  %v5814_v46 = vld [vmem:[#allocation4 + $0x1c] sm:$0xf] }
 0x2bc   : > { %v5216_v25 = vadd.f32 %v5196_v32, %v11405_v57  ;;  %5716 = vst [vmem:[#allocation4 + $0x54] sm:$0xf] %v5715_v43  ;;  %v8600_v45 = vpack.c.bf16 %v11622_v37, %v11622_v37  ;;  %v8488_v17 = vcombine.low %v6894_v63, %v6904_v3  ;;  %v5916_v24 = vsel %vm9465_vm5, %v5911_v58, %v11598_v51  ;;  %v5813_v57 = vld [vmem:[#allocation4 + $0x18] sm:$0xf]  ;;  %v5815_v44 = vld [vmem:[#allocation4 + $0x20] sm:$0x1] }
 0x2bd   : > { %v5920_v8 = vor.u32 %v5919_v5, %v11598_v51  ;;  %v6858_v41 = vshrl.u32 %v6833_v61, 16  ;;  %v6861_v22 = vshll.u32 %v6833_v61, 16  ;;  %v6867_v21 = vshll.u32 %v6834_v55, 16  ;;  %v8751_v61 = vpop.f32.mrb[36].mxu1 }
 0x2be   : > { %9148 = vtanh.f32 %v5216_v25  ;;  %v5591_v13 = vshrl.u32 %v8600_v45, 16  ;;  %v5594_v56 = vshll.u32 %v8600_v45, 16  ;;  %7075 = vrot.lane.b32.xlu0 %v8488_v17, %s9283_s25  ;;  %v6871_v2 = vshrl.u32 %v6834_v55, 16  ;;  %v8752_v55 = vpop.f32.mrb[37].mxu1 }
 0x2bf   : > { %v5921_v0 = vrot.slane %v5920_v8, 4  ;;  %v6860_v7 = vrot.slane %v6858_v41, 4  ;;  %v6863_v63 = vrot.slane %v6861_v22, 5  ;;  %v6869_v48 = vrot.slane %v6867_v21, 5  ;;  %v8754_v8 = vpop.f32.mrb[38].mxu1 }
 0x2c0   : > { %v6877_v34 = vshll.u32 %v6835_v35, 16  ;;  %v5593_v51 = vrot.slane %v5591_v13, 7  ;;  %v6873_v49 = vrot.slane %v6871_v2, 4  ;;  %v5880_v6 = vshrl.u32 %v5813_v57, 16  ;;  %v8755_v21 = vpop.f32.mrb[39].mxu1  ;;  %v9082_v13 = vld [vmem:[#allocation4 + $0x30] sm:$0xff]  }
 0x2c1   : > { %v5926_v11 = vsel %vm9465_vm5, %v5921_v0, %v5925_v28  ;;  %v6864_v40 = vor.u32 %v6863_v63, %v6860_v7  ;;  %v5883_v3 = vshll.u32 %v5813_v57, 16  ;;  %v8753_v16 = vadd.f32 %v8752_v55, %v8751_v61  ;;  %v7114_v7 = vld [vmem:[#allocation4 + $0x3c] sm:$0xe]  ;;  %v5721_v55 = vld [vmem:[#allocation4 + $0x60] sm:$0xf] }
 0x2c2   : > { %v8426_v32 = vcombine.low %v5916_v24, %v5926_v11  ;;  %v6879_v30 = vrot.slane %v6877_v34, 5  ;;  %v5596_v58 = vor.u32 %v5594_v56, %v5593_v51  ;;  %v5598_v5 = vrot.slane %v5593_v51, 4  ;;  %6805 = vrot.lane.b32.xlu0 %v9081_v54, %s9282_s26 }
 0x2c3   : > { %v6874_v43 = vor.u32 %v6873_v49, %v6869_v48  ;;  %v5882_v25 = vrot.slane %v5880_v6, 4  ;;  %v6865_v45 = vrot.slane %v6864_v40, 4  ;;  %v5885_v17 = vrot.slane %v5883_v3, 5  ;;  %v7115_v6 = vld [vmem:[#allocation4 + $0x40] sm:$0xf] }
 0x2c4   : > { %6053 = vrot.lane.b32.xlu1 %v8426_v32, %s9284_s13  ;;  %v5889_v24 = vshll.u32 %v5814_v46, 16  ;;  %v5597_v35 = vsel %vm11229_vm8, %v5589_v36, %v5596_v58  ;;  %v5719_v41 = vsel %vm10951_vm14, %v5598_v5, %v5718_v14  ;;  %v5893_v22 = vshrl.u32 %v5814_v46, 16  ;;  %v9102_v36 = vld [vmem:[%s12190_s3 + $0x68] sm:$0xff]   ;;  %v7116_v32 = vld [vmem:[#allocation4 + $0x44] sm:$0x1] }
 0x2c5   : > { %v6875_v53 = vrot.slane %v6874_v43, 4  ;;  %v9147_v57 = vpop.eup %9146  ;;  %5717 = vst.msk [vmem:[#allocation4 + $0x58] sm:$0xf] %vm547_vm6, %v5597_v35  ;;  %5720 = vst [vmem:[#allocation4 + $0x5c] sm:$0x1] %v5719_v41  ;;  %v5004_v56 = vadd.f32 %v8753_v16, %v11275_v33  ;;  %v6870_v0 = vsel %vm9465_vm5, %v6865_v45, %v6869_v48  ;;  %v5886_v52 = vor.u32 %v5885_v17, %v5882_v25  ;;  %v9103_v33 = vld [vmem:[%s12190_s3 + $0x28] sm:$0xff]  }
 0x2c6   : > { %v5891_v2 = vrot.slane %v5889_v24, 5  ;;  %v11662_v14 = vsel %vm11642_vm12, %v9147_v57, 0.0  ;;  %v5895_v34 = vrot.slane %v5893_v22, 4  ;;  %v5899_v51 = vshll.u32 %v5815_v44, 16  ;;  %8781 = vmatprep.subr.bf16.mxu1 %v9102_v36  ;;  %v9110_v45 = vld [vmem:[#allocation4 + $0x3c] sm:$0xff]  }
 0x2c7   : > { %v6880_v63 = vsel %vm9465_vm5, %v6875_v53, %v6879_v30  ;;  %v8601_v11 = vpack.c.bf16 %v11662_v14, %v11662_v14  ;;  %v5117_v54 = vadd.f32 %v11592_v29, %v5004_v56  ;;  %v5887_v46 = vrot.slane %v5886_v52, 4  ;;  %8782 = vmatpush3.bf16.msra.mxu1 %v9103_v33  ;;  %v6596_v53 = vld [vmem:[#allocation4 + $0x3c] sm:$0xe]  ;;  %v6091_v22 = vld [vmem:[#allocation4 + $0x30] sm:$0xe]  ;;  %5804 = vst.msk [vmem:[#allocation3 + $0x78] sm:$0xff] %vm12254_vm15, %v9110_v45  ;;  %vm12268_vm15 = vmmov %vm12249_vm3 }
 0x2c8   : > { %v9149_v48 = vpop.eup %9148  ;;  %6302 = vrot.lane.b32.xlu1 %v9082_v13, %s9283_s25  ;;  %v8487_v49 = vcombine.low %v6870_v0, %v6880_v63  ;;  %v5896_v40 = vor.u32 %v5895_v34, %v5891_v2  ;;  %v5901_v30 = vrot.slane %v5899_v51, 5  ;;  %v8498_v44 = vrot.slane %v7114_v7, 9  ;;  %v5725_v57 = vld [vmem:[#allocation4 + $0x68] sm:$0x1]  ;;  %v6597_v63 = vld [vmem:[#allocation4 + $0x40] sm:$0xf] }
 0x2c9   : > { %v11675_v61 = vsel %vm11642_vm12, %v9149_v48, 0.0  ;;  %v5600_v3 = vshrl.u32 %v8601_v11, 16  ;;  %v5603_v58 = vshll.u32 %v8601_v11, 16  ;;  %v5197_v29 = vmul.f32 %v11043_v12, %v5117_v54  ;;  %v6598_v34 = vld [vmem:[#allocation4 + $0x44] sm:$0x1]  ;;  %vm12265_vm12 = vmmov %vm12249_vm3 }
 0x2ca   : > { %v8602_v5 = vpack.c.bf16 %v11675_v61, %v11675_v61  ;;  %vm5259_vm0 = vcmp.ge.s32.totalorder %v11320_v10, 0  ;;  %vm5269_vm1 = vcmp.lt.s32.totalorder %v11320_v10, 16  ;;  %7073 = vrot.lane.b32.xlu0 %v8487_v49, %s9283_s25  ;;  %v5892_v43 = vsel %vm9465_vm5, %v5887_v46, %v5891_v2  ;;  %v6092_v11 = vld [vmem:[#allocation4 + $0x34] sm:$0xf]  ;;  %v6093_v54 = vld [vmem:[#allocation4 + $0x38] sm:$0x1] }
 0x2cb   : > { %v5897_v25 = vrot.slane %v5896_v40, 4  ;;  %v7176_v28 = vrot.slane %v7115_v6, 5  ;;  %v7179_v16 = vrot.slane %v7116_v32, 5  ;;  %v5602_v17 = vrot.slane %v5600_v3, 7  ;;  %v6593_v6 = vld [vmem:[#allocation4 + $0x30] sm:$0xe]  ;;  %vm11716_vm10 = vmand %vm5259_vm0, %vm5269_vm1 }
 0x2cc   : > { %v5608_v24 = vshrl.u32 %v8602_v5, 16  ;;  %v5611_v35 = vshll.u32 %v8602_v5, 16  ;;  %v5217_v41 = vadd.f32 %v5197_v29, %v11408_v60  ;;  %v8756_v52 = vadd.f32 %v8755_v21, %v8754_v8  ;;  %v6594_v32 = vld [vmem:[#allocation4 + $0x34] sm:$0xf]  ;;  %v5823_v45 = vld [vmem:[#allocation4 + $0x40] sm:$0xf] }
 0x2cd   : > { %v5902_v13 = vsel %vm9465_vm5, %v5897_v25, %v5901_v30  ;;  %v7177_v56 = vsel %vm9414_vm2, %v8498_v44, %v7176_v28  ;;  %v7178_v0 = vrot.slane %v7176_v28, 4  ;;  %v5605_v2 = vor.u32 %v5603_v58, %v5602_v17 }
 0x2ce   : > { %v5606_v7 = vrot.slane %v5602_v17, 4  ;;  %v5610_v36 = vrot.slane %v5608_v24, 7  ;;  %9150 = vtanh.f32 %v5217_v41  ;;  %v8425_v60 = vcombine.low %v5892_v43, %v5902_v13  ;;  %v5822_v43 = vld [vmem:[#allocation4 + $0x3c] sm:$0xf] }
 0x2cf   : > { %v7180_v51 = vsel %vm9414_vm2, %v7178_v0, %v7179_v16  ;;  %v5007_v33 = vadd.f32 %v8756_v52, %v11287_v42  ;;  %v8467_v48 = vrot.slane %v6596_v53, 9  ;;  %v5722_v8 = vsel %vm11221_vm11, %v5605_v2, %v5721_v55  ;;  %v6595_v42 = vld [vmem:[#allocation4 + $0x38] sm:$0x1]  ;;  %v5824_v53 = vld [vmem:[#allocation4 + $0x44] sm:$0x1] }
 0x2d0   : > { %v5613_v21 = vor.u32 %v5611_v35, %v5610_v36  ;;  %v5615_v49 = vrot.slane %v5610_v36, 4  ;;  %v8506_v46 = vcombine.low %v7177_v56, %v7180_v51  ;;  %5723 = vst [vmem:[#allocation4 + $0x60] sm:$0xf] %v5722_v8  ;;  %6051 = vrot.lane.b32.xlu1 %v8425_v60, %s9284_s13  ;;  %v6662_v30 = vrot.slane %v6597_v63, 5  ;;  %v6842_v52 = vld [vmem:[#allocation4 + $0x3c] sm:$0xf] }
 0x2d1   : > { %v5120_v40 = vadd.f32 %v11595_v62, %v5007_v33  ;;  %v6665_v44 = vrot.slane %v6598_v34, 5  ;;  %v8435_v3 = vrot.slane %v6091_v22, 9  ;;  %v6157_v29 = vrot.slane %v6092_v11, 5  ;;  %v9105_v22 = vld [vmem:[%s12190_s3 + $0x70] sm:$0xff]  }
 0x2d2   : > { %v5614_v58 = vsel %vm11229_vm8, %v5606_v7, %v5613_v21  ;;  %v5726_v5 = vsel %vm10951_vm14, %v5615_v49, %v5725_v57  ;;  %7244 = vst.msk [vmem:[#allocation3 + $0x58] sm:$0xff] %vm12255_vm9, %v8506_v46  ;;  %v6160_v55 = vrot.slane %v6093_v54, 5  ;;  %v6663_v25 = vsel %vm9414_vm2, %v8467_v48, %v6662_v30  ;;  %v6843_v63 = vld [vmem:[#allocation4 + $0x40] sm:$0xf]  ;;  %8783 = vmatprep.subr.bf16.mxu1 %v9105_v22  ;;  %v6844_v21 = vld [vmem:[#allocation4 + $0x44] sm:$0x1]  ;;  %vm12269_vm9 = vmmov %vm12249_vm3 }
 0x2d3   : > { %5724 = vst.msk [vmem:[#allocation4 + $0x64] sm:$0xf] %vm547_vm6, %v5614_v58  ;;  %5727 = vst [vmem:[#allocation4 + $0x68] sm:$0x1] %v5726_v5  ;;  %v5198_v62 = vmul.f32 %v11043_v12, %v5120_v40  ;;  %v6664_v28 = vrot.slane %v6662_v30, 4  ;;  %v8466_v16 = vrot.slane %v6593_v6, 9  ;;  %v6158_v17 = vsel %vm9414_vm2, %v8435_v3, %v6157_v29 }
 0x2d4   : > { %v6159_v24 = vrot.slane %v6157_v29, 4  ;;  %v6655_v35 = vrot.slane %v6594_v32, 5  ;;  %v6658_v41 = vrot.slane %v6595_v42, 5  ;;  %v5952_v56 = vshrl.u32 %v5822_v43, 16  ;;  %v9112_v49 = vld [vmem:[#allocation4 + $0x48] sm:$0xff]  }
 0x2d5   : > { %v5218_v57 = vadd.f32 %v5198_v62, %v11417_v26  ;;  %v6666_v13 = vsel %vm9414_vm2, %v6664_v28, %v6665_v44  ;;  %v5955_v0 = vshll.u32 %v5822_v43, 16  ;;  %v9106_v26 = vld [vmem:[%s12190_s3 + $0x30] sm:$0xff]   ;;  %v5961_v11 = vshll.u32 %v5823_v45, 16  ;;  %v6094_v44 = vld [vmem:[#allocation4 + $0x3c] sm:$0xe]  ;;  %5805 = vst.msk [vmem:[#allocation3 + $0x90] sm:$0xff] %vm12249_vm3, %v9112_v49 }
 0x2d6   : > { %v8475_v2 = vcombine.low %v6663_v25, %v6666_v13  ;;  %v6161_v7 = vsel %vm9414_vm2, %v6159_v24, %v6160_v55  ;;  %v6656_v36 = vsel %vm9414_vm2, %v8466_v16, %v6655_v35  ;;  %v6657_v10 = vrot.slane %v6655_v35, 4  ;;  %8784 = vmatpush3.bf16.msra.mxu1 %v9106_v26  ;;  %v6095_v29 = vld [vmem:[#allocation4 + $0x40] sm:$0xf]  ;;  %v6096_v28 = vld [vmem:[#allocation4 + $0x44] sm:$0x1]  ;;  %v9108_v13 = vld [vmem:[%s12190_s3 + $0x78] sm:$0xff]  }
 0x2d7   : > { %9152 = vtanh.f32 %v5218_v57  ;;  %v8443_v34 = vcombine.low %v6158_v17, %v6161_v7  ;;  %v5954_v60 = vrot.slane %v5952_v56, 4  ;;  %v5957_v51 = vrot.slane %v5955_v0, 5  ;;  %v5728_v35 = vld [vmem:[#allocation4 + $0x6c] sm:$0xf]  ;;  %v7117_v26 = vld [vmem:[#allocation4 + $0x48] sm:$0xe]  ;;  %8785 = vmatprep.subr.bf16.mxu1 %v9108_v13 }
 0x2d8   : > { %v9151_v33 = vpop.eup %9150  ;;  %6720 = vrot.lane.b32.xlu0 %v8475_v2, %s9284_s13  ;;  %v6659_v48 = vsel %vm9414_vm2, %v6657_v10, %v6658_v41  ;;  %v5965_v54 = vshrl.u32 %v5823_v45, 16  ;;  %v5971_v8 = vshll.u32 %v5824_v53, 16  ;;  %v6930_v30 = vshrl.u32 %v6842_v52, 16  ;;  %v6840_v13 = vld [vmem:[#allocation4 + $0x34] sm:$0xf] }
 0x2d9   : > { %v5298_v46 = vsel %vm11716_vm10, %v9151_v33, 0.0  ;;  %v7260_v6 = vld [vmem:[#allocation3 + $0x58] sm:$0xff]  ;;  %6215 = vrot.lane.b32.xlu1 %v8443_v34, %s9282_s26  ;;  %v8474_v32 = vcombine.low %v6656_v36, %v6659_v48  ;;  %v5958_v40 = vor.u32 %v5957_v51, %v5954_v60  ;;  %v5963_v42 = vrot.slane %v5961_v11, 5  ;;  %v9109_v34 = vld [vmem:[%s12190_s3 + $0x38] sm:$0xff]  }
 0x2da   : > { %v8603_v3 = vpack.c.bf16 %v5298_v46, %v5298_v46  ;;  %8882 = vmatmul.mubr.msk.bf16.gmra.mrb[64].mxu0 %vm12258_vm13, %v7260_v6  ;;  %v5967_v58 = vrot.slane %v5965_v54, 4  ;;  %v5973_v5 = vrot.slane %v5971_v8, 5  ;;  %v6932_v43 = vrot.slane %v6930_v30, 4  ;;  %v7118_v11 = vld [vmem:[#allocation4 + $0x4c] sm:$0xf]  ;;  %8786 = vmatpush3.bf16.msra.mxu1 %v9109_v34 }
 0x2db   : > { %v5959_v55 = vrot.slane %v5958_v40, 4  ;;  %v6933_v62 = vshll.u32 %v6842_v52, 16  ;;  %v6939_v25 = vshll.u32 %v6843_v63, 16  ;;  %v6943_v24 = vshrl.u32 %v6843_v63, 16  ;;  %v7119_v6 = vld [vmem:[#allocation4 + $0x50] sm:$0x1] }
 0x2dc   : > { %v5617_v16 = vshrl.u32 %v8603_v3, 16  ;;  %v5620_v45 = vshll.u32 %v8603_v3, 16  ;;  %6718 = vrot.lane.b32.xlu0 %v8474_v32, %s9284_s13  ;;  %v5968_v17 = vor.u32 %v5967_v58, %v5963_v42  ;;  %v6949_v57 = vshll.u32 %v6844_v21, 16  ;;  %v5819_v32 = vld [vmem:[#allocation4 + $0x30] sm:$0xf] }
 0x2dd   : > { %v5964_v41 = vsel %vm9465_vm5, %v5959_v55, %v5963_v42  ;;  %v6935_v53 = vrot.slane %v6933_v62, 5  ;;  %v6941_v22 = vrot.slane %v6939_v25, 5  ;;  %v6945_v52 = vrot.slane %v6943_v24, 4  ;;  %v5820_v55 = vld [vmem:[#allocation4 + $0x34] sm:$0xf] }
 0x2de   : > { %v11744_v56 = vrot.slane %v5617_v16, 7  ;;  %v5969_v0 = vrot.slane %v5968_v17, 4  ;;  %v8436_v2 = vrot.slane %v6094_v44, 9  ;;  %v6951_v36 = vrot.slane %v6949_v57, 5  ;;  %v5821_v62 = vld [vmem:[#allocation4 + $0x38] sm:$0x1] }
 0x2df   : > { %v6936_v7 = vor.u32 %v6935_v53, %v6932_v43  ;;  %v6164_v10 = vrot.slane %v6095_v29, 5  ;;  %v6167_v63 = vrot.slane %v6096_v28, 5  ;;  %v6946_v48 = vor.u32 %v6945_v52, %v6941_v22  ;;  %v6839_v28 = vld [vmem:[#allocation4 + $0x30] sm:$0xf]  ;;  %v9083_v52 = vld [vmem:[#allocation4 + $0x48] sm:$0xff]  }
 0x2e0   : > { %v5622_v60 = vor.u32 %v5620_v45, %v11744_v56  ;;  %v5623_v51 = vrot.slane %v11744_v56, 4  ;;  %v5974_v33 = vsel %vm9465_vm5, %v5969_v0, %v5973_v5  ;;  %v8499_v3 = vrot.slane %v7117_v26, 9 }
 0x2e1   : > { %v9153_v54 = vpop.eup %9152  ;;  %v8428_v8 = vcombine.low %v5964_v41, %v5974_v33  ;;  %v6937_v21 = vrot.slane %v6936_v7, 4  ;;  %v6165_v49 = vsel %vm9414_vm2, %v8436_v2, %v6164_v10  ;;  %v6166_v46 = vrot.slane %v6164_v10, 4  ;;  %v6097_v33 = vld [vmem:[#allocation4 + $0x48] sm:$0xe] }
 0x2e2   : > { %v5729_v40 = vsel %vm11221_vm11, %v5622_v60, %v5728_v35  ;;  %v5299_v30 = vsel %vm11716_vm10, %v9153_v54, 0.0  ;;  %v6947_v44 = vrot.slane %v6946_v48, 4  ;;  %v7183_v29 = vrot.slane %v7118_v11, 5  ;;  %v5732_v35 = vld [vmem:[#allocation4 + $0x74] sm:$0x1]  ;;  %vm12259_vm11 = vmmov %vm12249_vm3 }
 0x2e3   : > { %5730 = vst [vmem:[#allocation4 + $0x6c] sm:$0xf] %v5729_v40  ;;  %v8604_v42 = vpack.c.bf16 %v5299_v30, %v5299_v30  ;;  %6057 = vrot.lane.b32.xlu1 %v8428_v8, %s9284_s13  ;;  %v6942_v58 = vsel %vm9465_vm5, %v6937_v21, %v6941_v22  ;;  %v6168_v5 = vsel %vm9414_vm2, %v6166_v46, %v6167_v63  ;;  %v7186_v12 = vrot.slane %v7119_v6, 5  ;;  %v6098_v48 = vld [vmem:[#allocation4 + $0x4c] sm:$0xf]  ;;  %v9113_v11 = vld [vmem:[#allocation4 + $0x54] sm:$0xff]  }
 0x2e4   : > { %v6952_v9 = vsel %vm9465_vm5, %v6947_v44, %v6951_v36  ;;  %v8444_v43 = vcombine.low %v6165_v49, %v6168_v5  ;;  %v5928_v25 = vshrl.u32 %v5819_v32, 16  ;;  %v7184_v24 = vsel %vm9414_vm2, %v8499_v3, %v7183_v29  ;;  %v6841_v36 = vld [vmem:[#allocation4 + $0x38] sm:$0x1]  ;;  %5806 = vst.msk [vmem:[#allocation3 + $0xa8] sm:$0xff] %vm12259_vm11, %v9113_v11  ;;  %v6599_v5 = vld [vmem:[#allocation4 + $0x48] sm:$0xe] }
 0x2e5   : > { %v5625_v16 = vshrl.u32 %v8604_v42, 16  ;;  %v5628_v45 = vshll.u32 %v8604_v42, 16  ;;  %v8490_v17 = vcombine.low %v6942_v58, %v6952_v9  ;;  %v7185_v41 = vrot.slane %v7183_v29, 4  ;;  %v6099_v58 = vld [vmem:[#allocation4 + $0x50] sm:$0x1] }
 0x2e6   : > { %v5930_v53 = vrot.slane %v5928_v25, 4  ;;  %v5931_v22 = vshll.u32 %v5819_v32, 16  ;;  %v5937_v57 = vshll.u32 %v5820_v55, 16  ;;  %v5941_v2 = vshrl.u32 %v5820_v55, 16 }
 0x2e7   : > { %v5627_v0 = vrot.slane %v5625_v16, 7  ;;  %7079 = vrot.lane.b32.xlu0 %v8490_v17, %s9283_s25  ;;  %6217 = vrot.lane.b32.xlu1 %v8444_v43, %s9282_s26  ;;  %v5947_v7 = vshll.u32 %v5821_v62, 16  ;;  %v6906_v10 = vshrl.u32 %v6839_v28, 16  ;;  %v7187_v63 = vsel %vm9414_vm2, %v7185_v41, %v7186_v12  ;;  %v7120_v43 = vld [vmem:[#allocation4 + $0x54] sm:$0xe] }
 0x2e8   : > { %v5933_v26 = vrot.slane %v5931_v22, 5  ;;  %v5939_v34 = vrot.slane %v5937_v57, 5  ;;  %v6909_v60 = vshll.u32 %v6839_v28, 16  ;;  %v8507_v21 = vcombine.low %v7184_v24, %v7187_v63  ;;  %v7121_v28 = vld [vmem:[#allocation4 + $0x58] sm:$0xf] }
 0x2e9   : > { %v5630_v54 = vor.u32 %v5628_v45, %v5627_v0  ;;  %v5632_v8 = vrot.slane %v5627_v0, 4  ;;  %v5943_v49 = vrot.slane %v5941_v2, 4  ;;  %v5949_v6 = vrot.slane %v5947_v7, 5  ;;  %v6848_v41 = vld [vmem:[#allocation4 + $0x54] sm:$0xf] }
 0x2ea   : > { %v5934_v46 = vor.u32 %v5933_v26, %v5930_v53  ;;  %v6908_v32 = vrot.slane %v6906_v10, 4  ;;  %v6911_v40 = vrot.slane %v6909_v60, 5  ;;  %7245 = vst.msk [vmem:[#allocation3 + $0x70] sm:$0xff] %vm12260_vm4, %v8507_v21  ;;  %v6915_v42 = vshll.u32 %v6840_v13, 16 }
 0x2eb   : > { %v5631_v30 = vsel %vm11229_vm8, %v5623_v51, %v5630_v54  ;;  %v5733_v44 = vsel %vm10951_vm14, %v5632_v8, %v5732_v35  ;;  %6809 = vrot.lane.b32.xlu0 %v9083_v52, %s9282_s26  ;;  %v5944_v3 = vor.u32 %v5943_v49, %v5939_v34  ;;  %v6919_v56 = vshrl.u32 %v6840_v13, 16  ;;  %v6601_v51 = vld [vmem:[#allocation4 + $0x50] sm:$0x1]  ;;  %v7122_v35 = vld [vmem:[#allocation4 + $0x5c] sm:$0x1]  ;;  %v9084_v8 = vld [vmem:[#allocation4 + $0x48] sm:$0xff]  }
 0x2ec   : > { %5731 = vst.msk [vmem:[#allocation4 + $0x70] sm:$0xf] %vm547_vm6, %v5631_v30  ;;  %5734 = vst [vmem:[#allocation4 + $0x74] sm:$0x1] %v5733_v44  ;;  %v5935_v29 = vrot.slane %v5934_v46, 4  ;;  %v6912_v55 = vor.u32 %v6911_v40, %v6908_v32  ;;  %v6925_v9 = vshll.u32 %v6841_v36, 16 }
 0x2ed   : > { %v5945_v50 = vrot.slane %v5944_v3, 4  ;;  %v6917_v12 = vrot.slane %v6915_v42, 5  ;;  %v8437_v62 = vrot.slane %v6097_v33, 9  ;;  %v6171_v25 = vrot.slane %v6098_v48, 5  ;;  %vm12261_vm6 = vmmov %vm12249_vm3  ;;  %v6850_v44 = vld [vmem:[#allocation4 + $0x5c] sm:$0x1] }
 0x2ee   : > { %v5940_v16 = vsel %vm9465_vm5, %v5935_v29, %v5939_v34  ;;  %v6913_v45 = vrot.slane %v6912_v55, 4  ;;  %v6921_v17 = vrot.slane %v6919_v56, 4  ;;  %v6927_v24 = vrot.slane %v6925_v9, 5  ;;  %v6849_v34 = vld [vmem:[#allocation4 + $0x58] sm:$0xf]  ;;  %vm12262_vm14 = vmmov %vm12249_vm3 }
 0x2ef   : > { %v5950_v53 = vsel %vm9465_vm5, %v5945_v50, %v5949_v6  ;;  %v6172_v22 = vsel %vm9414_vm2, %v8437_v62, %v6171_v25  ;;  %v6173_v57 = vrot.slane %v6171_v25, 4  ;;  %v6174_v13 = vrot.slane %v6099_v58, 5  ;;  %v5825_v42 = vld [vmem:[#allocation4 + $0x48] sm:$0xf]  ;;  %v5826_v56 = vld [vmem:[#allocation4 + $0x4c] sm:$0xf]  ;;  %vm12263_vm8 = vmmov %vm12249_vm3 }
 0x2f0   : > { %v8427_v0 = vcombine.low %v5940_v16, %v5950_v53  ;;  %v6918_v52 = vsel %vm9465_vm5, %v6913_v45, %v6917_v12  ;;  %v6922_v2 = vor.u32 %v6921_v17, %v6917_v12  ;;  %v8468_v7 = vrot.slane %v6599_v5, 9  ;;  %v5827_v50 = vld [vmem:[#allocation4 + $0x50] sm:$0x1]  ;;  %v6845_v16 = vld [vmem:[#allocation4 + $0x48] sm:$0xf]  ;;  %v9085_v53 = vld [vmem:[#allocation4 + $0x54] sm:$0xff]  }
 0x2f1   : > { %v6175_v36 = vsel %vm9414_vm2, %v6173_v57, %v6174_v13  ;;  %v6669_v10 = vrot.slane %v6600_v20, 5  ;;  %v6672_v63 = vrot.slane %v6601_v51, 5  ;;  %v8500_v26 = vrot.slane %v7120_v43, 9  ;;  %v7263_v60 = vld [vmem:[#allocation3 + $0x70] sm:$0xff] }
 0x2f2   : > { %6055 = vrot.lane.b32.xlu1 %v8427_v0, %s9284_s13  ;;  %v6923_v33 = vrot.slane %v6922_v2, 4  ;;  %v8445_v48 = vcombine.low %v6172_v22, %v6175_v36  ;;  %v7190_v11 = vrot.slane %v7121_v28, 5  ;;  %v7193_v54 = vrot.slane %v7122_v35, 5  ;;  %8885 = vmatprep.mubr.msk.bf16.mxu0 %vm12261_vm6, %v7263_v60  ;;  %vm12275_vm6 = vmmov %vm12249_vm3 }
 0x2f3   : > { %v11796_v21 = vsel %vm9414_vm2, %v8468_v7, %v6669_v10  ;;  %v6671_v49 = vrot.slane %v6669_v10, 4  ;;  %v6978_v46 = vshrl.u32 %v6848_v41, 16  ;;  %v6981_v6 = vshll.u32 %v6848_v41, 16  ;;  %v6846_v41 = vld [vmem:[#allocation4 + $0x4c] sm:$0xf] }
 0x2f4   : > { %v6928_v32 = vsel %vm9465_vm5, %v6923_v33, %v6927_v24  ;;  %v7191_v40 = vsel %vm9414_vm2, %v8500_v26, %v7190_v11  ;;  %v7192_v30 = vrot.slane %v7190_v11, 4  ;;  %v6987_v3 = vshll.u32 %v6849_v34, 16  ;;  %v6847_v10 = vld [vmem:[#allocation4 + $0x50] sm:$0x1]  ;;  %v9086_v11 = vld [vmem:[#allocation4 + $0x54] sm:$0xff]  }
 0x2f5   : > { %v8489_v58 = vcombine.low %v6918_v52, %v6928_v32  ;;  %v6673_v5 = vsel %vm9414_vm2, %v6671_v49, %v6672_v63  ;;  %v6980_v29 = vrot.slane %v6978_v46, 4  ;;  %v6983_v55 = vrot.slane %v6981_v6, 5  ;;  %v11811_v63 = vpop.permute.xlu1 %6296 }
 0x2f6   : > { %6306 = vrot.lane.b32.xlu1 %v9084_v8, %s9283_s25  ;;  %v8476_v9 = vcombine.low %v11796_v21, %v6673_v5  ;;  %v7194_v20 = vsel %vm9414_vm2, %v7192_v30, %v7193_v54  ;;  %v6989_v51 = vrot.slane %v6987_v3, 5  ;;  %v6991_v43 = vshrl.u32 %v6849_v34, 16 }
 0x2f7   : > { %7077 = vrot.lane.b32.xlu0 %v8489_v58, %s9283_s25  ;;  %v8508_v12 = vcombine.low %v7191_v40, %v7194_v20  ;;  %v6984_v62 = vor.u32 %v6983_v55, %v6980_v29  ;;  %v6997_v25 = vshll.u32 %v6850_v44, 16  ;;  %v5976_v28 = vshrl.u32 %v5825_v42, 16  ;;  %v5828_v40 = vld [vmem:[#allocation4 + $0x54] sm:$0xf]  ;;  %v5829_v58 = vld [vmem:[#allocation4 + $0x58] sm:$0xf] }
 0x2f8   : > { %v6993_v45 = vrot.slane %v6991_v43, 4  ;;  %v5979_v17 = vshll.u32 %v5825_v42, 16  ;;  %v5985_v24 = vshll.u32 %v5826_v56, 16  ;;  %v5989_v35 = vshrl.u32 %v5826_v56, 16  ;;  %v6602_v43 = vld [vmem:[#allocation4 + $0x54] sm:$0xe] }
 0x2f9   : > { %7246 = vst.msk [vmem:[#allocation3 + $0x88] sm:$0xff] %vm12262_vm14, %v8508_v12  ;;  %v6985_v22 = vrot.slane %v6984_v62, 4  ;;  %v6999_v57 = vrot.slane %v6997_v25, 5  ;;  %v5978_v13 = vrot.slane %v5976_v28, 4  ;;  %v5995_v0 = vshll.u32 %v5827_v50, 16  ;;  %v11819_v5 = vpop.permute.xlu1 %6209  ;;  %vm12276_vm14 = vmmov %vm12249_vm3 }
 0x2fa   : > { %6219 = vrot.lane.b32.xlu1 %v8445_v48, %s9282_s26  ;;  %v6994_v52 = vor.u32 %v6993_v45, %v6989_v51  ;;  %v5981_v2 = vrot.slane %v5979_v17, 5  ;;  %v5987_v7 = vrot.slane %v5985_v24, 5  ;;  %v5991_v36 = vrot.slane %v5989_v35, 4  ;;  %v6603_v35 = vld [vmem:[#allocation4 + $0x58] sm:$0xf] }
 0x2fb   : > { %6811 = vrot.lane.b32.xlu0 %v9085_v53, %s9282_s26  ;;  %v6990_v26 = vsel %vm9465_vm5, %v6985_v22, %v6989_v51  ;;  %v5997_v34 = vrot.slane %v5995_v0, 5  ;;  %v6954_v60 = vshrl.u32 %v6845_v16, 16  ;;  %v6957_v33 = vshll.u32 %v6845_v16, 16  ;;  %v5830_v51 = vld [vmem:[#allocation4 + $0x5c] sm:$0x1] }
 0x2fc   : > { %v6995_v54 = vrot.slane %v6994_v52, 4  ;;  %v5982_v8 = vor.u32 %v5981_v2, %v5978_v13  ;;  %v5992_v21 = vor.u32 %v5991_v36, %v5987_v7  ;;  %v6963_v48 = vshll.u32 %v6846_v41, 16  ;;  %v6100_v16 = vld [vmem:[#allocation4 + $0x54] sm:$0xe]  ;;  %v6101_v0 = vld [vmem:[#allocation4 + $0x58] sm:$0xf] }
 0x2fd   : > { %v6956_v49 = vrot.slane %v6954_v60, 4  ;;  %v6959_v46 = vrot.slane %v6957_v33, 5  ;;  %v6967_v6 = vshrl.u32 %v6846_v41, 16  ;;  %v6973_v32 = vshll.u32 %v6847_v10, 16  ;;  %v6604_v41 = vld [vmem:[#allocation4 + $0x5c] sm:$0x1] }
 0x2fe   : > { %6308 = vrot.lane.b32.xlu1 %v9086_v11, %s9283_s25  ;;  %v7000_v30 = vsel %vm9465_vm5, %v6995_v54, %v6999_v57  ;;  %v5983_v44 = vrot.slane %v5982_v8, 4  ;;  %v5993_v3 = vrot.slane %v5992_v21, 4  ;;  %v6965_v42 = vrot.slane %v6963_v48, 5  ;;  %v6102_v10 = vld [vmem:[#allocation4 + $0x5c] sm:$0x1]  ;;  %v11831_v54 = vpop.permute.xlu1 %6207 }
 0x2ff   : > { %6722 = vrot.lane.b32.xlu0 %v8476_v9, %s9284_s13  ;;  %v8492_v29 = vcombine.low %v6990_v26, %v7000_v30  ;;  %v6960_v55 = vor.u32 %v6959_v46, %v6956_v49  ;;  %v6969_v56 = vrot.slane %v6967_v6, 4  ;;  %v6975_v20 = vrot.slane %v6973_v32, 5  ;;  %v7123_v11 = vld [vmem:[#allocation4 + $0x60] sm:$0xe]  ;;  %v7124_v46 = vld [vmem:[#allocation4 + $0x64] sm:$0xf] }
 0x300   : > { %v7266_v50 = vld [vmem:[#allocation3 + $0x88] sm:$0xff]  ;;  %v5988_v12 = vsel %vm9465_vm5, %v5983_v44, %v5987_v7  ;;  %v5998_v62 = vsel %vm9465_vm5, %v5993_v3, %v5997_v34  ;;  %v6000_v25 = vshrl.u32 %v5828_v40, 16  ;;  %v6003_v28 = vshll.u32 %v5828_v40, 16  ;;  %v6329_v3 = vld [vmem:[#allocation4 + $0x10] sm:$0xf] }
 0x301   : > { %8886 = vmatmul.mubr.msk.bf16.gmra.mrb[68].mxu0 %vm12263_vm8, %v7266_v50  ;;  %v8429_v45 = vcombine.low %v5988_v12, %v5998_v62  ;;  %v6961_v9 = vrot.slane %v6960_v55, 4  ;;  %v6970_v17 = vor.u32 %v6969_v56, %v6965_v42  ;;  %v6009_v24 = vshll.u32 %v5829_v58, 16  ;;  %v7125_v44 = vld [vmem:[#allocation4 + $0x68] sm:$0x1]  ;;  %v6330_v50 = vld [vmem:[#allocation4 + $0x14] sm:$0x1] }
 0x302   : > { %v6002_v53 = vrot.slane %v6000_v25, 4  ;;  %v6005_v22 = vrot.slane %v6003_v28, 5  ;;  %v6013_v57 = vshrl.u32 %v5829_v58, 16  ;;  %v6019_v13 = vshll.u32 %v5830_v51, 16  ;;  %v11842_v12 = vpop.permute.xlu1 %6300 }
 0x303   : > { %7083 = vrot.lane.b32.xlu0 %v8492_v29, %s9283_s25  ;;  %6059 = vrot.lane.b32.xlu1 %v8429_v45, %s9284_s13  ;;  %v6966_v52 = vsel %vm9465_vm5, %v6961_v9, %v6965_v42  ;;  %v6971_v2 = vrot.slane %v6970_v17, 4  ;;  %v6011_v7 = vrot.slane %v6009_v24, 5  ;;  %v8469_v36 = vrot.slane %v6602_v43, 9  ;;  %v6328_v45 = vld [vmem:[#allocation4 + $0xc] sm:$0xf] }
 0x304   : > { %v6006_v26 = vor.u32 %v6005_v22, %v6002_v53  ;;  %v6015_v34 = vrot.slane %v6013_v57, 4  ;;  %v6021_v60 = vrot.slane %v6019_v13, 5  ;;  %v6676_v33 = vrot.slane %v6603_v35, 5  ;;  %v6605_v9 = vld [vmem:[#allocation4 + $0x60] sm:$0xe] }
 0x305   : > { %v6976_v8 = vsel %vm9465_vm5, %v6971_v2, %v6975_v20  ;;  %v6679_v21 = vrot.slane %v6604_v41, 5  ;;  %v8438_v48 = vrot.slane %v6100_v16, 9  ;;  %v6178_v49 = vrot.slane %v6101_v0, 5  ;;  %v6606_v53 = vld [vmem:[#allocation4 + $0x64] sm:$0xf] }
 0x306   : > { %v8491_v6 = vcombine.low %v6966_v52, %v6976_v8  ;;  %v6007_v32 = vrot.slane %v6006_v26, 4  ;;  %v6016_v40 = vor.u32 %v6015_v34, %v6011_v7  ;;  %v6677_v30 = vsel %vm9414_vm2, %v8469_v36, %v6676_v33  ;;  %v6607_v22 = vld [vmem:[#allocation4 + $0x68] sm:$0x1]  ;;  %v6851_v34 = vld [vmem:[#allocation4 + $0x60] sm:$0xf] }
 0x307   : > { %v6678_v42 = vrot.slane %v6676_v33, 4  ;;  %v6179_v58 = vsel %vm9414_vm2, %v8438_v48, %v6178_v49  ;;  %v6180_v29 = vrot.slane %v6178_v49, 4  ;;  %v6181_v55 = vrot.slane %v6102_v10, 5  ;;  %v9087_v49 = vld [vmem:[#allocation4 + $0x60] sm:$0xff]  }
 0x308   : > { %7081 = vrot.lane.b32.xlu0 %v8491_v6, %s9283_s25  ;;  %v6012_v56 = vsel %vm9465_vm5, %v6007_v32, %v6011_v7  ;;  %v6017_v20 = vrot.slane %v6016_v40, 4  ;;  %v8501_v51 = vrot.slane %v7123_v11, 9  ;;  %v7197_v43 = vrot.slane %v7124_v46, 5  ;;  %v11855_v7 = vpop.permute.xlu0 %6712  ;;  %v6853_v40 = vld [vmem:[#allocation4 + $0x68] sm:$0x1] }
 0x309   : > { %v6680_v62 = vsel %vm9414_vm2, %v6678_v42, %v6679_v21  ;;  %v6182_v25 = vsel %vm9414_vm2, %v6180_v29, %v6181_v55  ;;  %v7200_v28 = vrot.slane %v7125_v44, 5  ;;  %v6362_v16 = vshll.u32 %v6329_v3, 16  ;;  %v6852_v21 = vld [vmem:[#allocation4 + $0x64] sm:$0xf]  ;;  %v7126_v29 = vld [vmem:[#allocation4 + $0x6c] sm:$0xe] }
 0x30a   : > { %v6022_v17 = vsel %vm9465_vm5, %v6017_v20, %v6021_v60  ;;  %v8477_v24 = vcombine.low %v6677_v30, %v6680_v62  ;;  %v8446_v35 = vcombine.low %v6179_v58, %v6182_v25  ;;  %v7198_v41 = vsel %vm9414_vm2, %v8501_v51, %v7197_v43 }
 0x30b   : > { %v8430_v57 = vcombine.low %v6012_v56, %v6022_v17  ;;  %v7199_v13 = vrot.slane %v7197_v43, 4  ;;  %v11852_v0 = vrot.slane %v6362_v16, 5  ;;  %v6366_v52 = vshrl.u32 %v6329_v3, 16  ;;  %v7127_v43 = vld [vmem:[#allocation4 + $0x70] sm:$0xf] }
 0x30c   : > { %6724 = vrot.lane.b32.xlu0 %v8477_v24, %s9284_s13  ;;  %v6372_v2 = vshll.u32 %v6330_v50, 16  ;;  %v6353_v36 = vshrl.u32 %v6328_v45, 16  ;;  %v6356_v10 = vshll.u32 %v6328_v45, 16  ;;  %v8470_v26 = vrot.slane %v6605_v9, 9  ;;  %v6050_v30 = vpop.permute.xlu1 %6049  ;;  %v11866_v50 = vpop.permute.xlu0 %6803  ;;  %v7128_v45 = vld [vmem:[#allocation4 + $0x74] sm:$0x1] }
 0x30d   : > { %6061 = vrot.lane.b32.xlu1 %v8430_v57, %s9284_s13  ;;  %v7201_v60 = vsel %vm9414_vm2, %v7199_v13, %v7200_v28  ;;  %v6368_v33 = vrot.slane %v6366_v52, 4  ;;  %v6683_v11 = vrot.slane %v6606_v53, 5  ;;  %v6686_v8 = vrot.slane %v6607_v22, 5  ;;  %v6854_v53 = vld [vmem:[#allocation4 + $0x6c] sm:$0xf]  ;;  %v9088_v57 = vld [vmem:[#allocation4 + $0x60] sm:$0xff]  }
 0x30e   : > { %v8509_v48 = vcombine.low %v7198_v41, %v7201_v60  ;;  %v6374_v46 = vrot.slane %v6372_v2, 5  ;;  %v6355_v6 = vrot.slane %v6353_v36, 4  ;;  %v6358_v32 = vrot.slane %v6356_v10, 5  ;;  %v6855_v2 = vld [vmem:[#allocation4 + $0x70] sm:$0xf] }
 0x30f   : > { %v6369_v44 = vor.u32 %v6368_v33, %v11852_v0  ;;  %v6684_v3 = vsel %vm9414_vm2, %v8470_v26, %v6683_v11  ;;  %v6685_v42 = vrot.slane %v6683_v11, 4  ;;  %v7002_v58 = vshrl.u32 %v6851_v34, 16  ;;  %v6856_v11 = vld [vmem:[#allocation4 + $0x74] sm:$0x1] }
 0x310   : > { %vm12264_vm7 = vcmask 523520   ;;  %7247 = vst.msk [vmem:[#allocation3 + $0xa0] sm:$0xff] %vm12265_vm12, %v8509_v48  ;;  %6813 = vrot.lane.b32.xlu0 %v9087_v49, %s9282_s26  ;;  %v6359_v55 = vor.u32 %v6358_v32, %v6355_v6  ;;  %v7005_v56 = vshll.u32 %v6851_v34, 16  ;;  %v7011_v20 = vshll.u32 %v6852_v21, 16  ;;  %v6299_v22 = vpop.permute.xlu1 %6298  ;;  %v6802_v32 = vpop.permute.xlu0 %6801 }
 0x311   : > { %6072 = vst.msk [vmem:[#allocation3 + $0x18] sm:$0xff] %vm12264_vm7, %v6050_v30  ;;  %v7015_v51 = vshrl.u32 %v6852_v21, 16  ;;  %vm12266_vm0 = vcmask 785920   ;;  %6221 = vrot.lane.b32.xlu1 %v8446_v35, %s9282_s26  ;;  %v6370_v62 = vrot.slane %v6369_v44, 4  ;;  %v6687_v25 = vsel %vm9414_vm2, %v6685_v42, %v6686_v8  ;;  %vm12270_vm10 = vmmov %vm12264_vm7 }
 0x312   : > { %6232 = vst.msk [vmem:[#allocation3 + $0x18] sm:$0xff] %vm12266_vm0, %v11819_v5  ;;  %v7004_v28 = vrot.slane %v7002_v58, 4  ;;  %v7021_v16 = vshll.u32 %v6853_v40, 16  ;;  %v6360_v9 = vrot.slane %v6359_v55, 4  ;;  %v8478_v17 = vcombine.low %v6684_v3, %v6687_v25  ;;  %vm12271_vm13 = vmmov %vm12266_vm0 }
 0x313   : > { %v7007_v24 = vrot.slane %v7005_v56, 5  ;;  %v7013_v41 = vrot.slane %v7011_v20, 5  ;;  %v6375_v13 = vsel %vm9465_vm5, %v6370_v62, %v6374_v46  ;;  %v7017_v5 = vrot.slane %v7015_v51, 4  ;;  %v6335_v20 = vld [vmem:[#allocation4 + $0x28] sm:$0xf]  ;;  %vm12273_vm11 = vmmov %vm12266_vm0 }
 0x314   : > { %v7023_v52 = vrot.slane %v7021_v16, 5  ;;  %v8502_v35 = vrot.slane %v7126_v29, 9  ;;  %vm12267_vm1 = vcmask 1048320   ;;  %v6365_v36 = vsel %vm9465_vm5, %v6360_v9, %v11852_v0  ;;  %6726 = vrot.lane.b32.xlu0 %v8478_v17, %s9284_s13  ;;  %v6334_v0 = vld [vmem:[#allocation4 + $0x24] sm:$0xf] }
 0x315   : > { %6321 = vst.msk [vmem:[#allocation3 + $0x18] sm:$0xff] %vm12267_vm1, %v6299_v22  ;;  %v7008_v10 = vor.u32 %v7007_v24, %v7004_v28  ;;  %v7204_v26 = vrot.slane %v7127_v43, 5  ;;  %v7207_v34 = vrot.slane %v7128_v45, 5  ;;  %6310 = vrot.lane.b32.xlu1 %v9088_v57, %s9283_s25  ;;  %v8455_v60 = vcombine.low %v6365_v36, %v6375_v13  ;;  %v6336_v28 = vld [vmem:[#allocation4 + $0x2c] sm:$0x1]  ;;  %vm12274_vm4 = vmmov %vm12267_vm1 }
 0x316   : > { %v7018_v33 = vor.u32 %v7017_v5, %v7013_v41  ;;  %v7026_v8 = vshrl.u32 %v6854_v53, 16  ;;  %v7029_v21 = vshll.u32 %v6854_v53, 16  ;;  %v7035_v6 = vshll.u32 %v6855_v2, 16  ;;  %v6331_v16 = vld [vmem:[#allocation4 + $0x18] sm:$0xf]  ;;  %vm12280_vm1 = vmmov %vm12249_vm3 }
 0x317   : > { %v7009_v48 = vrot.slane %v7008_v10, 4  ;;  %v7205_v49 = vsel %vm9414_vm2, %v8502_v35, %v7204_v26  ;;  %v7206_v46 = vrot.slane %v7204_v26, 4  ;;  %v7269_v40 = vld [vmem:[#allocation3 + $0xa0] sm:$0xff]  ;;  %6576 = vst.msk [vmem:[#allocation3 + $0x8] sm:$0xff] %vm12268_vm15, %v8455_v60  ;;  %v7039_v42 = vshrl.u32 %v6855_v2, 16  ;;  %v9091_v60 = vld [vmem:[#allocation4 + $0x6c] sm:$0xff]   ;;  %vm12281_vm15 = vmmov %vm12274_vm4 }
 0x318   : > { %v7019_v30 = vrot.slane %v7018_v33, 4  ;;  %v7028_v44 = vrot.slane %v7026_v8, 4  ;;  %v7031_v3 = vrot.slane %v7029_v21, 5  ;;  %8889 = vmatprep.mubr.msk.bf16.mxu0 %vm12269_vm9, %v7269_v40  ;;  %6736 = vst.msk [vmem:[#allocation3 + $0x8] sm:$0xff] %vm12270_vm10, %v11855_v7  ;;  %v7037_v55 = vrot.slane %v7035_v6, 5  ;;  %vm12282_vm9 = vmmov %vm12280_vm1 }
 0x319   : > { %v7014_v58 = vsel %vm9465_vm5, %v7009_v48, %v7013_v41  ;;  %v7208_v29 = vsel %vm9414_vm2, %v7206_v46, %v7207_v34  ;;  %v7045_v56 = vshll.u32 %v6856_v11, 16  ;;  %v7041_v25 = vrot.slane %v7039_v42, 4  ;;  %6825 = vst.msk [vmem:[#allocation3 + $0x8] sm:$0xff] %vm12271_vm13, %v6802_v32  ;;  %v6332_v5 = vld [vmem:[#allocation4 + $0x1c] sm:$0xf]  ;;  %vm12272_vm2 = vmmov %vm12264_vm7 }
 0x31a   : > { %v7024_v51 = vsel %vm9465_vm5, %v7019_v30, %v7023_v52  ;;  %v8510_v43 = vcombine.low %v7205_v49, %v7208_v29  ;;  %v7032_v62 = vor.u32 %v7031_v3, %v7028_v44  ;;  %v6401_v9 = vshrl.u32 %v6334_v0, 16  ;;  %v6333_v26 = vld [vmem:[#allocation4 + $0x20] sm:$0x1]  ;;  %v6340_v48 = vld [vmem:[#allocation4 + $0x3c] sm:$0xf]  ;;  %vm12277_vm8 = vmmov %vm12272_vm2 }
 0x31b   : > { %v8493_v7 = vcombine.low %v7014_v58, %v7024_v51  ;;  %v7047_v45 = vrot.slane %v7045_v56, 5  ;;  %v6404_v17 = vshll.u32 %v6334_v0, 16  ;;  %v7042_v24 = vor.u32 %v7041_v25, %v7037_v55  ;;  %v6048_v34 = vpop.permute.xlu1 %6047  ;;  %v6341_v3 = vld [vmem:[#allocation4 + $0x40] sm:$0xf]  ;;  %v6717_v58 = vpop.permute.xlu0 %6716  ;;  %v6342_v56 = vld [vmem:[#allocation4 + $0x44] sm:$0x1]  ;;  %vm12278_vm7 = vmmov %vm12249_vm3 }
 0x31c   : > { %7248 = vst.msk [vmem:[#allocation3 + $0xb8] sm:$0xff] %vm12249_vm3, %v8510_v43  ;;  %v7033_v1 = vrot.slane %v7032_v62, 4  ;;  %v6410_v41 = vshll.u32 %v6335_v20, 16  ;;  %v6414_v53 = vshrl.u32 %v6335_v20, 16  ;;  %v6403_v22 = vrot.slane %v6401_v9, 4  ;;  %vm12279_vm12 = vmmov %vm12272_vm2 }
 0x31d   : > { %7085 = vrot.lane.b32.xlu0 %v8493_v7, %s9283_s25  ;;  %v6406_v57 = vrot.slane %v6404_v17, 5  ;;  %v6420_v13 = vshll.u32 %v6336_v28, 16  ;;  %v6377_v52 = vshrl.u32 %v6331_v16, 16  ;;  %v7043_v2 = vrot.slane %v7042_v24, 4  ;;  %6071 = vst.msk [vmem:[#allocation3] sm:$0xff] %vm12272_vm2, %v6048_v34  ;;  %vm12283_vm10 = vmmov %vm12266_vm0 }
 0x31e   : > { %v7038_v35 = vsel %vm9465_vm5, %v7033_v1, %v7037_v55  ;;  %v6412_v36 = vrot.slane %v6410_v41, 5  ;;  %v6416_v10 = vrot.slane %v6414_v53, 4  ;;  %v6380_v21 = vshll.u32 %v6331_v16, 16  ;;  %6231 = vst.msk [vmem:[#allocation3] sm:$0xff] %vm12273_vm11, %v11831_v54  ;;  %v6337_v28 = vld [vmem:[#allocation4 + $0x30] sm:$0xf]  ;;  %vm12284_vm13 = vmmov %vm12272_vm2 }
 0x31f   : > { %v6407_v33 = vor.u32 %v6406_v57, %v6403_v22  ;;  %v6422_v11 = vrot.slane %v6420_v13, 5  ;;  %v6379_v8 = vrot.slane %v6377_v52, 4  ;;  %v7048_v49 = vsel %vm9465_vm5, %v7043_v2, %v7047_v45  ;;  %6320 = vst.msk [vmem:[#allocation3] sm:$0xff] %vm12274_vm4, %v11811_v63  ;;  %v6338_v41 = vld [vmem:[#allocation4 + $0x34] sm:$0xf]  ;;  %vm12285_vm3 = vmmov %vm12280_vm1 }
 0x320   : > { %v6417_v46 = vor.u32 %v6416_v10, %v6412_v36  ;;  %v6386_v6 = vshll.u32 %v6332_v5, 16  ;;  %v6390_v32 = vshrl.u32 %v6332_v5, 16  ;;  %v8494_v0 = vcombine.low %v7038_v35, %v7048_v49  ;;  %vm12286_vm2 = vmmov %vm12266_vm0 }
 0x321   : > { %6815 = vrot.lane.b32.xlu0 %v9091_v60, %s9282_s26  ;;  %v6408_v40 = vrot.slane %v6407_v33, 4  ;;  %v6382_v30 = vrot.slane %v6380_v21, 5  ;;  %v6396_v44 = vshll.u32 %v6333_v26, 16  ;;  %v6449_v20 = vshrl.u32 %v6340_v48, 16  ;;  %v11915_v52 = vpop.permute.xlu1 %6213  ;;  %v6343_v26 = vld [vmem:[#allocation4 + $0x48] sm:$0xf]  ;;  %v6715_v60 = vpop.permute.xlu0 %6714  ;;  %vm12287_vm11 = vmmov %vm12274_vm4 }
 0x322   : > { %v6418_v42 = vrot.slane %v6417_v46, 4  ;;  %v6388_v29 = vrot.slane %v6386_v6, 5  ;;  %v6392_v55 = vrot.slane %v6390_v32, 4  ;;  %v6452_v25 = vshll.u32 %v6340_v48, 16  ;;  %v6344_v6 = vld [vmem:[#allocation4 + $0x4c] sm:$0xf]  ;;  %vm12288_vm4 = vmmov %vm12280_vm1 }
 0x323   : > { %v7272_v51 = vld [vmem:[#allocation3 + $0xb8] sm:$0xff]  ;;  %v6413_v54 = vsel %vm9465_vm5, %v6408_v40, %v6412_v36  ;;  %v6383_v43 = vor.u32 %v6382_v30, %v6379_v8  ;;  %v6398_v62 = vrot.slane %v6396_v44, 5  ;;  %v6451_v7 = vrot.slane %v6449_v20, 4  ;;  %s12036_s26 = sand.u32 1, %s9256_s28  }
 0x324   : > { %8890 = vmatmul.mubr.msk.bf16.gmra.mrb[72].mxu0 %vm12275_vm6, %v7272_v51  ;;  %v6423_v63 = vsel %vm9465_vm5, %v6418_v42, %v6422_v11  ;;  %v6393_v16 = vor.u32 %v6392_v55, %v6388_v29  ;;  %v6458_v45 = vshll.u32 %v6341_v3, 16  ;;  %v6454_v1 = vrot.slane %v6452_v25, 5  ;;  %v6339_v36 = vld [vmem:[#allocation4 + $0x38] sm:$0x1]  ;;  %vm12289_vm6 = vmmov %vm12287_vm11 }
 0x325   : > { %7087 = vrot.lane.b32.xlu0 %v8494_v0, %s9283_s25  ;;  %v8457_v9 = vcombine.low %v6413_v54, %v6423_v63  ;;  %v6384_v17 = vrot.slane %v6383_v43, 4  ;;  %v6462_v24 = vshrl.u32 %v6341_v3, 16  ;;  %v6468_v57 = vshll.u32 %v6342_v56, 16  ;;  %v11924_v55 = vpop.permute.xlu0 %6807  ;;  %v6346_v43 = vld [vmem:[#allocation4 + $0x54] sm:$0xf]  ;;  %s12203_s25 = sshll.u32 %s12036_s26, 5 }
 0x326   : > { %v6394_v53 = vrot.slane %v6393_v16, 4  ;;  %v6460_v22 = vrot.slane %v6458_v45, 5  ;;  %v6425_v13 = vshrl.u32 %v6337_v28, 16  ;;  %v6455_v35 = vor.u32 %v6454_v1, %v6451_v7  ;;  %v6347_v7 = vld [vmem:[#allocation4 + $0x58] sm:$0xf]  ;;  %s12041_s13 = scalar_lea.vmem [#allocation8], %s12203_s25 }
 0x327   : > { %6578 = vst.msk [vmem:[#allocation3 + $0x38] sm:$0xff] %vm12276_vm14, %v8457_v9  ;;  %v6389_v5 = vsel %vm9465_vm5, %v6384_v17, %v6388_v29  ;;  %v6464_v2 = vrot.slane %v6462_v24, 4  ;;  %v6428_v10 = vshll.u32 %v6337_v28, 16  ;;  %v6470_v33 = vrot.slane %v6468_v57, 5  ;;  %vm12290_vm14 = vmmov %vm12280_vm1  ;;  %s7733_s14 = sshll.u32 %s12041_s13, 4  ;;  %s12060_s14 = int_to_ptr.vmem [resolvable:$true] %s7733_s14 }
 0x328   : > { %6738 = vst.msk [vmem:[#allocation3 + $0x38] sm:$0xff] %vm12277_vm8, %v6717_v58  ;;  %v6399_v34 = vsel %vm9465_vm5, %v6394_v53, %v6398_v62  ;;  %v6427_v11 = vrot.slane %v6425_v13, 4  ;;  %v6434_v8 = vshll.u32 %v6338_v41, 16  ;;  %v6456_v48 = vrot.slane %v6455_v35, 4  ;;  %v6345_v58 = vld [vmem:[#allocation4 + $0x50] sm:$0x1]  ;;  %v11928_v62 = vpop.permute.xlu1 %6211  ;;  %p9161_p2 = scmp.lt.s32.totalorder %s12060_s14, %s9159_s20 }
 0x329   : > { %v8456_v21 = vcombine.low %v6389_v5, %v6399_v34  ;;  %v6465_v49 = vor.u32 %v6464_v2, %v6460_v22  ;;  %v6430_v46 = vrot.slane %v6428_v10, 5  ;;  %v6438_v0 = vshrl.u32 %v6338_v41, 16  ;;  %s9154_s9 = scalar_lea.vmem %s12060_s14, 512 }
 0x32a   : > { %v6436_v32 = vrot.slane %v6434_v8, 5  ;;  %v6444_v40 = vshll.u32 %v6339_v36, 16  ;;  %v6473_v30 = vshrl.u32 %v6343_v26, 16  ;;  %v6461_v44 = vsel %vm9465_vm5, %v6456_v48, %v6460_v22  ;;  %v6348_v22 = vld [vmem:[#allocation4 + $0x5c] sm:$0x1]  ;;  %p9155_p13 = scmp.ne.s32.totalorder %s12060_s14, %s9154_s9  ;;  %p9162_p4 = scmp.lt.s32.totalorder %s9160_s0, %s9154_s9 }
 0x32b   : > { %6577 = vst.msk [vmem:[#allocation3 + $0x20] sm:$0xff] %vm12278_vm7, %v8456_v21  ;;  %v6466_v3 = vrot.slane %v6465_v49, 4  ;;  %v6431_v42 = vor.u32 %v6430_v46, %v6427_v11  ;;  %v6476_v29 = vshll.u32 %v6343_v26, 16  ;;  %v6440_v56 = vrot.slane %v6438_v0, 4  ;;  %v6350_v49 = vld [vmem:[#allocation4 + $0x64] sm:$0xf]  ;;  %vm12291_vm7 = vmmov %vm12266_vm0 }
 0x32c   : > { %6737 = vst.msk [vmem:[#allocation3 + $0x20] sm:$0xff] %vm12279_vm12, %v6715_v60  ;;  %v6446_v20 = vrot.slane %v6444_v40, 5  ;;  %v6475_v51 = vrot.slane %v6473_v30, 4  ;;  %v6482_v54 = vshll.u32 %v6344_v6, 16  ;;  %v6486_v16 = vshrl.u32 %v6344_v6, 16  ;;  %v11935_v2 = vpop.permute.xlu1 %6304  ;;  %vm12294_vm12 = vmmov %vm12277_vm8  ;;  %p9156_p0 = pnand %p9155_p13, %p9385_p3  ;;  %p9163_p5 = por %p9162_p4, %p9161_p2 }
 0x32d   : > { %6826 = vst.msk [vmem:[#allocation3 + $0x20] sm:$0xff] %vm12266_vm0, %v11866_v50  ;;  %v6471_v25 = vsel %vm9465_vm5, %v6466_v3, %v6470_v33  ;;  %v6432_v28 = vrot.slane %v6431_v42, 4  ;;  %v6478_v63 = vrot.slane %v6476_v29, 5  ;;  %v6441_v9 = vor.u32 %v6440_v56, %v6436_v32  ;;  %v6349_v60 = vld [vmem:[#allocation4 + $0x60] sm:$0xf]  ;;  %vm12296_vm0 = vmmov %vm12277_vm8 }
 0x32e   : > { %v8459_v45 = vcombine.low %v6461_v44, %v6471_v25  ;;  %v6484_v17 = vrot.slane %v6482_v54, 5  ;;  %v6492_v1 = vshll.u32 %v6345_v58, 16  ;;  %v6488_v53 = vrot.slane %v6486_v16, 4  ;;  %v6351_v44 = vld [vmem:[#allocation4 + $0x68] sm:$0x1]  ;;  %p9157_p1 = pneg %p9156_p0 }
 0x32f   : > { %v6437_v24 = vsel %vm9465_vm5, %v6432_v28, %v6436_v32  ;;  %v6479_v41 = vor.u32 %v6478_v63, %v6475_v51  ;;  %v6497_v50 = vshrl.u32 %v6346_v43, 16  ;;  %v6442_v57 = vrot.slane %v6441_v9, 4 }
 0x330   : > { %6580 = vst.msk [vmem:[#allocation3 + $0x68] sm:$0xff] %vm12280_vm1, %v8459_v45  ;;  %v6494_v13 = vrot.slane %v6492_v1, 5  ;;  %v6500_v5 = vshll.u32 %v6346_v43, 16  ;;  %v6506_v35 = vshll.u32 %v6347_v7, 16  ;;  %v6489_v10 = vor.u32 %v6488_v53, %v6484_v17  ;;  %v7076_v33 = vpop.permute.xlu0 %7075  ;;  %vm12297_vm1 = vmmov %vm12286_vm2  ;;  %p9164_p6 = pnand %p9163_p5, %p9157_p1 }
 0x331   : > { %v6480_v36 = vrot.slane %v6479_v41, 4  ;;  %v6499_v26 = vrot.slane %v6497_v50, 4  ;;  %v6510_v34 = vshrl.u32 %v6347_v7, 16  ;;  %v6447_v11 = vsel %vm9465_vm5, %v6442_v57, %v6446_v20  ;;  %7098 = vst.msk [vmem:[#allocation3 + $0x20] sm:$0xff] %vm12281_vm15, %v7076_v33  ;;  %v7252_v33 = vld [vmem:[#allocation3 + $0x18] sm:$0xff]  ;;  %vm12299_vm15 = vmmov %vm12296_vm0 }
 0x332   : > { %v6502_v8 = vrot.slane %v6500_v5, 5  ;;  %v6508_v21 = vrot.slane %v6506_v35, 5  ;;  %v6516_v48 = vshll.u32 %v6348_v22, 16  ;;  %v8458_v46 = vcombine.low %v6437_v24, %v6447_v11  ;;  %v12295_v11 = vld [vmem:[#allocation13_spill] sm:$0xff] }
 0x333   : > { %v6485_v6 = vsel %vm9465_vm5, %v6480_v36, %v6484_v17  ;;  %v6490_v32 = vrot.slane %v6489_v10, 4  ;;  %v6512_v0 = vrot.slane %v6510_v34, 4  ;;  %v6521_v3 = vshrl.u32 %v6349_v60, 16  ;;  %v7249_v34 = vld [vmem:[#allocation3] sm:$0xff] }
 0x334   : > { %v6503_v40 = vor.u32 %v6502_v8, %v6499_v26  ;;  %v6518_v30 = vrot.slane %v6516_v48, 5  ;;  %v6524_v42 = vshll.u32 %v6349_v60, 16  ;;  %6579 = vst.msk [vmem:[#allocation3 + $0x50] sm:$0xff] %vm12282_vm9, %v8458_v46  ;;  %v6530_v56 = vshll.u32 %v6350_v49, 16  ;;  %v6806_v51 = vpop.permute.xlu0 %6805  ;;  %v12292_v60 = vld [vmem:[#allocation12_spill] sm:$0xff] }
 0x335   : > { %v6495_v58 = vsel %vm9465_vm5, %v6490_v32, %v6494_v13  ;;  %v6513_v29 = vor.u32 %v6512_v0, %v6508_v21  ;;  %v6534_v20 = vshrl.u32 %v6350_v49, 16  ;;  %v6523_v25 = vrot.slane %v6521_v3, 4  ;;  %6827 = vst.msk [vmem:[#allocation3 + $0x38] sm:$0xff] %vm12283_vm10, %v6806_v51  ;;  %vm12301_vm10 = vmmov %vm12297_vm1 }
 0x336   : > { %v8460_v54 = vcombine.low %v6485_v6, %v6495_v58  ;;  %v6504_v43 = vrot.slane %v6503_v40, 4  ;;  %v6526_v28 = vrot.slane %v6524_v42, 5  ;;  %v6054_v63 = vpop.permute.xlu1 %6053  ;;  %v6532_v7 = vrot.slane %v6530_v56, 5 }
 0x337   : > { %v6514_v16 = vrot.slane %v6513_v29, 4  ;;  %v6536_v45 = vrot.slane %v6534_v20, 4  ;;  %v6540_v9 = vshll.u32 %v6351_v44, 16  ;;  %6074 = vst.msk [vmem:[#allocation3 + $0x48] sm:$0xff] %vm12284_vm13, %v6054_v63  ;;  %vm12302_vm13 = vmmov %vm12297_vm1 }
 0x338   : > { %6581 = vst.msk [vmem:[#allocation3 + $0x80] sm:$0xff] %vm12285_vm3, %v8460_v54  ;;  %v6527_v17 = vor.u32 %v6526_v28, %v6523_v25  ;;  %v6509_v1 = vsel %vm9465_vm5, %v6504_v43, %v6508_v21  ;;  %v7253_v59 = vld [vmem:[#allocation3 + $0x20] sm:$0xff]  ;;  %vm12303_vm3 = vmmov %vm12296_vm0 }
 0x339   : > { %6234 = vst.msk [vmem:[#allocation3 + $0x48] sm:$0xff] %vm12286_vm2, %v11915_v52  ;;  %v6519_v24 = vsel %vm9465_vm5, %v6514_v16, %v6518_v30  ;;  %v6537_v41 = vor.u32 %v6536_v45, %v6532_v7  ;;  %v6542_v13 = vrot.slane %v6540_v9, 5  ;;  %vm12304_vm2 = vmmov %vm12297_vm1 }
 0x33a   : > { %v8461_v53 = vcombine.low %v6509_v1, %v6519_v24  ;;  %v6528_v22 = vrot.slane %v6527_v17, 4  ;;  %v6303_v50 = vpop.permute.xlu1 %6302 }
 0x33b   : > { %v6538_v57 = vrot.slane %v6537_v41, 4  ;;  %6323 = vst.msk [vmem:[#allocation3 + $0x48] sm:$0xff] %vm12287_vm11, %v6303_v50 }
 0x33c   : > { %6582 = vst.msk [vmem:[#allocation3 + $0x98] sm:$0xff] %vm12288_vm4, %v8461_v53  ;;  %v7074_v5 = vpop.permute.xlu0 %7073  ;;  %v6533_v52 = vsel %vm9465_vm5, %v6528_v22, %v6532_v7 }
 0x33d   : > { %v6543_v35 = vsel %vm9465_vm5, %v6538_v57, %v6542_v13  ;;  %7097 = vst.msk [vmem:[#allocation3 + $0x8] sm:$0xff] %vm12289_vm6, %v7074_v5  ;;  %vm12293_vm5 = vmmov %vm12289_vm6 }
 0x33e   : > { %v8462_v36 = vcombine.low %v6533_v52, %v6543_v35  ;;  %vm12300_vm9 = vmmov %vm12293_vm5 }
 0x33f   : > { %vm12305_vm11 = vmmov %vm12293_vm5 }
 0x340   : > { %6583 = vst.msk [vmem:[#allocation3 + $0xb0] sm:$0xff] %vm12290_vm14, %v8462_v36  ;;  %vm12306_vm4 = vmmov %vm12293_vm5 }
 0x341   : > { %vm12307_vm6 = vmmov %vm12306_vm4 }
 0x342   : > { %v6052_v10 = vpop.permute.xlu1 %6051  ;;  %vm12308_vm14 = vmmov %vm12296_vm0 }
 0x343   : > { %5300 = vxpose.xlu0.b32.start [1/16] (narrow) %v11196_v27, 32  ;;  %6073 = vst.msk [vmem:[#allocation3 + $0x30] sm:$0xff] %vm12277_vm8, %v6052_v10  ;;  %vm12309_vm8 = vmmov %vm12297_vm1  ;;  %v12047_v10 = vld [vmem:[%s12192_s5] ss:$0 sm:$0xff] }
 0x344   : > { %v7250_v26 = vld [vmem:[#allocation3 + $0x8] sm:$0xff]  ;;  %6233 = vst.msk [vmem:[#allocation3 + $0x30] sm:$0xff] %vm12291_vm7, %v11928_v62  ;;  %vm12310_vm7 = vmmov %vm12306_vm4 }
 0x345   : > { %7480 = vmatprep.mubr.bf16.mxu1 %v7250_v26  ;;  %6322 = vst.msk [vmem:[#allocation3 + $0x30] sm:$0xff] %vm12293_vm5, %v11842_v12  ;;  %v12298_v12 = vld [vmem:[#allocation14_spill] sm:$0xff]  ;;  %vm12311_vm5 = vmmov %vm12296_vm0 }
 0x346   : > { %7481 = vmatmul.mubr.bf16.vlgmr.msra.gmra.mrb[40].mxu1 %v7249_v34 }
 0x347   : > { %5301 = vxpose.xlu0.b32.cont [2/16] (narrow) %v12292_v60, 32  ;;  %7488 = vmatprep.mubr.bf16.mxu1 %v7253_v59 }
 0x34a   : > { %v6721_v27 = vpop.permute.xlu0 %6720 }
 0x34b   : > { %5302 = vxpose.xlu0.b32.cont [3/16] (narrow) %v11254_v47, 32  ;;  %6740 = vst.msk [vmem:[#allocation3 + $0x68] sm:$0xff] %vm12294_vm12, %v6721_v27  ;;  %v6216_v62 = vpop.permute.xlu1 %6215  ;;  %vm12312_vm12 = vmmov %vm12297_vm1 }
 0x34e   : > { %v6719_v8 = vpop.permute.xlu0 %6718  ;;  %7489 = vmatmul.mubr.bf16.gmra.mrb[44].mxu1 %v7252_v33 }
 0x34f   : > { %5303 = vxpose.xlu0.b32.cont [4/16] (narrow) %v12295_v11, 32  ;;  %6739 = vst.msk [vmem:[#allocation3 + $0x50] sm:$0xff] %vm12296_vm0, %v6719_v8  ;;  %vm12313_vm0 = vmmov %vm12306_vm4 }
 0x350   : > { %6828 = vst.msk [vmem:[#allocation3 + $0x50] sm:$0xff] %vm12297_vm1, %v11924_v55  ;;  %vm12314_vm1 = vmmov %vm12313_vm0 }
 0x353   : > { %5304 = vxpose.xlu0.b32.cont [5/16] (narrow) %v12298_v12, 32 }
 0x355   : > { %v6058_v21 = vpop.permute.xlu1 %6057 }
 0x356   : > { %6076 = vst.msk [vmem:[#allocation3 + $0x78] sm:$0xff] %vm12299_vm15, %v6058_v21  ;;  %vm12315_vm15 = vmmov %vm12303_vm3 }
 0x357   : > { %5305 = vxpose.xlu0.b32.cont [6/16] (narrow) %v11316_v31, 32 }
 0x359   : > { %v7080_v47 = vpop.permute.xlu0 %7079  ;;  %v6218_v48 = vpop.permute.xlu1 %6217 }
 0x35a   : > { %7100 = vst.msk [vmem:[#allocation3 + $0x50] sm:$0xff] %vm12300_vm9, %v7080_v47  ;;  %vm12316_vm9 = vmmov %vm12303_vm3 }
 0x35b   : > { %5306 = vxpose.xlu0.b32.cont [7/16] (narrow) %v11357_v38, 32  ;;  %6236 = vst.msk [vmem:[#allocation3 + $0x78] sm:$0xff] %vm12301_vm10, %v6218_v48  ;;  %vm12317_vm10 = vmmov %vm12304_vm2 }
 0x35d   : > { %v6810_v49 = vpop.permute.xlu0 %6809 }
 0x35e   : > { %6829 = vst.msk [vmem:[#allocation3 + $0x68] sm:$0xff] %vm12302_vm13, %v6810_v49  ;;  %vm12318_vm13 = vmmov %vm12304_vm2 }
 0x35f   : > { %5307 = vxpose.xlu0.b32.cont [8/16] (narrow) %v11381_v23, 32 }
 0x361   : > { %v7259_v32 = vld [vmem:[#allocation3 + $0x50] sm:$0xff] }
 0x363   : > { %5308 = vxpose.xlu0.b32.cont [9/16] (narrow) %v11441_v39, 32 }
 0x364   : > { %v6056_v55 = vpop.permute.xlu1 %6055 }
 0x365   : > { %6075 = vst.msk [vmem:[#allocation3 + $0x60] sm:$0xff] %vm12303_vm3, %v6056_v55 }
 0x366   : > { %6235 = vst.msk [vmem:[#allocation3 + $0x60] sm:$0xff] %vm12304_vm2, %v6216_v62  ;;  %vm12319_vm2 = vmmov %vm12313_vm0 }
 0x367   : > { %5309 = vxpose.xlu0.b32.cont [10/16] (narrow) %v11452_v19, 32  ;;  %6324 = vst.msk [vmem:[#allocation3 + $0x60] sm:$0xff] %vm12305_vm11, %v11935_v2  ;;  %v7255_v2 = vld [vmem:[#allocation3 + $0x30] sm:$0xff]  ;;  %vm12320_vm11 = vmmov %vm12313_vm0 }
 0x368   : > { %v6307_v31 = vpop.permute.xlu1 %6306 }
 0x369   : > { %v7078_v38 = vpop.permute.xlu0 %7077  ;;  %6325 = vst.msk [vmem:[#allocation3 + $0x78] sm:$0xff] %vm12306_vm4, %v6307_v31  ;;  %vm12321_vm4 = vmmov %vm12309_vm8 }
 0x36a   : > { %7099 = vst.msk [vmem:[#allocation3 + $0x38] sm:$0xff] %vm12307_vm6, %v7078_v38  ;;  %vm12322_vm6 = vmmov %vm12313_vm0 }
 0x36b   : > { %5310 = vxpose.xlu0.b32.cont [11/16] (narrow) %v11497_v15, 32 }
 0x36c   : > { %v6220_v23 = vpop.permute.xlu1 %6219 }
 0x36d   : > { %v6812_v39 = vpop.permute.xlu0 %6811 }
 0x36f   : > { %5311 = vxpose.xlu0.b32.cont [12/16] (narrow) %v11509_v4, 32 }
 0x370   : > { %v6309_v46 = vpop.permute.xlu1 %6308  ;;  %v7264_v54 = vld [vmem:[#allocation3 + $0x78] sm:$0xff] }
 0x371   : > { %v6723_v6 = vpop.permute.xlu0 %6722  ;;  %v7256_v19 = vld [vmem:[#allocation3 + $0x38] sm:$0xff] }
 0x372   : > { %6741 = vst.msk [vmem:[#allocation3 + $0x80] sm:$0xff] %vm12308_vm14, %v6723_v6  ;;  %7496 = vmatprep.mubr.bf16.mxu1 %v7256_v19 }
 0x373   : > { %5312 = vxpose.xlu0.b32.cont [13/16] (narrow) %v11583_v18, 32  ;;  %6830 = vst.msk [vmem:[#allocation3 + $0x80] sm:$0xff] %vm12309_vm8, %v6812_v39  ;;  %7497 = vmatmul.mubr.bf16.gmra.mrb[48].mxu1 %v7255_v2  ;;  %v7258_v18 = vld [vmem:[#allocation3 + $0x48] sm:$0xff] }
 0x374   : > { %7504 = vmatprep.mubr.bf16.mxu1 %v7259_v32 }
 0x375   : > { %v7084_v15 = vpop.permute.xlu0 %7083  ;;  %v6060_v0 = vpop.permute.xlu1 %6059 }
 0x376   : > { %7102 = vst.msk [vmem:[#allocation3 + $0x80] sm:$0xff] %vm12310_vm7, %v7084_v15 }
 0x377   : > { %5313 = vxpose.xlu0.b32.cont [14/16] (narrow) %v11622_v37, 32  ;;  %6077 = vst.msk [vmem:[#allocation3 + $0x90] sm:$0xff] %vm12311_vm5, %v6060_v0 }
 0x378   : > { %6237 = vst.msk [vmem:[#allocation3 + $0x90] sm:$0xff] %vm12312_vm12, %v6220_v23 }
 0x379   : > { %6326 = vst.msk [vmem:[#allocation3 + $0x90] sm:$0xff] %vm12313_vm0, %v6309_v46 }
 0x37a   : > { %v7082_v4 = vpop.permute.xlu0 %7081 }
 0x37b   : > { %5314 = vxpose.xlu0.b32.cont [15/16] (narrow) %v11662_v14, 32  ;;  %7101 = vst.msk [vmem:[#allocation3 + $0x68] sm:$0xff] %vm12314_vm1, %v7082_v4  ;;  %7505 = vmatmul.mubr.bf16.gmra.mrb[52].mxu1 %v7258_v18  ;;  %v7261_v14 = vld [vmem:[#allocation3 + $0x60] sm:$0xff] }
 0x37d   : > { %v7265_v42 = vld [vmem:[#allocation3 + $0x80] sm:$0xff] }
 0x37e   : > { %v6725_v40 = vpop.permute.xlu0 %6724 }
 0x37f   : > { %5315 = vxpose.xlu0.b32.end [16/16] (narrow) %v11675_v61, 32  ;;  %v6062_v30 = vpop.permute.xlu1 %6061  ;;  %6742 = vst.msk [vmem:[#allocation3 + $0x98] sm:$0xff] %vm12315_vm15, %v6725_v40 }
 0x380   : > { %6078 = vst.msk [vmem:[#allocation3 + $0xa8] sm:$0xff] %vm12316_vm9, %v6062_v30  ;;  %v7267_v16 = vld [vmem:[#allocation3 + $0x90] sm:$0xff] }
 0x382   : > { %v6814_v37 = vpop.permute.xlu0 %6813  ;;  %v7262_v44 = vld [vmem:[#allocation3 + $0x68] sm:$0xff] }
 0x383   : > { %v6222_v3 = vpop.permute.xlu1 %6221  ;;  %6831 = vst.msk [vmem:[#allocation3 + $0x98] sm:$0xff] %vm12317_vm10, %v6814_v37  ;;  %7512 = vmatprep.mubr.bf16.mxu1 %v7262_v44 }
 0x384   : > { %6238 = vst.msk [vmem:[#allocation3 + $0xa8] sm:$0xff] %vm12318_vm13, %v6222_v3  ;;  %7513 = vmatmul.mubr.bf16.gmra.mrb[56].mxu1 %v7261_v14 }
 0x385   : > { %7520 = vmatprep.mubr.bf16.mxu1 %v7265_v42  ;;  %v12008_v61 = vpop.f32.mrb[60].mxu0 }
 0x386   : > { %v6727_v58 = vpop.permute.xlu0 %6726  ;;  %v7579_v56 = vpop.f32.mrb[61].mxu0 }
 0x387   : > { %v6311_v29 = vpop.permute.xlu1 %6310  ;;  %6743 = vst.msk [vmem:[#allocation3 + $0xb0] sm:$0xff] %vm12303_vm3, %v6727_v58  ;;  %v8880_v20 = vpop.f32.mrb[62].mxu0 }
 0x388   : > { %6327 = vst.msk [vmem:[#allocation3 + $0xa8] sm:$0xff] %vm12319_vm2, %v6311_v29  ;;  %v7582_v51 = vpop.f32.mrb[63].mxu0 }
 0x38c   : > { %7521 = vmatmul.mubr.bf16.gmra.mrb[60].mxu1 %v7264_v54 }
 0x38f   : > { %v7086_v43 = vpop.permute.xlu0 %7085  ;;  %v7270_v45 = vld [vmem:[#allocation3 + $0xa8] sm:$0xff] }
 0x390   : > { %7103 = vst.msk [vmem:[#allocation3 + $0x98] sm:$0xff] %vm12320_vm11, %v7086_v43 }
 0x393   : > { %v6816_v25 = vpop.permute.xlu0 %6815 }
 0x394   : > { %6832 = vst.msk [vmem:[#allocation3 + $0xb0] sm:$0xff] %vm12321_vm4, %v6816_v25 }
 0x397   : > { %v7088_v28 = vpop.permute.xlu0 %7087  ;;  %v7268_v63 = vld [vmem:[#allocation3 + $0x98] sm:$0xff] }
 0x398   : > { %7104 = vst.msk [vmem:[#allocation3 + $0xb0] sm:$0xff] %vm12322_vm6, %v7088_v28  ;;  %7528 = vmatprep.mubr.bf16.mxu1 %v7268_v63 }
 0x399   : > { %7529 = vmatmul.mubr.bf16.gmra.mrb[64].mxu1 %v7267_v16 }
 0x39f   : > { %v7271_v7 = vld [vmem:[#allocation3 + $0xb0] sm:$0xff] }
 0x3a0   : > { %7536 = vmatprep.mubr.bf16.mxu1 %v7271_v7 }
 0x3a1   : > { %7537 = vmatmul.mubr.bf16.gmra.mrb[68].mxu1 %v7270_v45 }
 0x3ad   : > { %v12015_v9 = vpop.f32.mrb[64].mxu0 }
 0x3ae   : > { %v7595_v17 = vpop.f32.mrb[65].mxu0 }
 0x3af   : > { %v12017_v1 = vpop.f32.mrb[66].mxu0 }
 0x3b0   : > { %v7598_v24 = vpop.f32.mrb[67].mxu0 }
 0x3c3   : > { %v5316_v35 = vpop.trf.xlu0 }
 0x3c4   : > { %5332 = vst [vmem:[%s12041_s13] sm:$0xff] %v5316_v35 }
 0x3c7   : > { %v5317_v15 = vpop.trf.xlu0 }
 0x3c8   : > { %5333 = vst [vmem:[%s12041_s13 + $0x8] sm:$0xff] %v5317_v15 }
 0x3cb   : > { %v5318_v44 = vpop.trf.xlu0 }
 0x3cc   : > { %5334 = vst [vmem:[%s12041_s13 + $0x10] sm:$0xff] %v5318_v44 }
 0x3cf   : > { %v5319_v29 = vpop.trf.xlu0 }
 0x3d0   : > { %5335 = vst [vmem:[%s12041_s13 + $0x18] sm:$0xff] %v5319_v29  ;;  %s12204_s13 = sshll.u32 %s12065_s22, 7 }
 0x3d1   : > { %s12075_s25 = scalar_lea.hbm %s12195_s8, %s12204_s13 }
 0x3d4   : > { %v12019_v41 = vpop.f32.mrb[68].mxu0 }
 0x3d5   : > { %v12021_v53 = vpop.f32.mrb[69].mxu0 }
 0x3d6   : > { %v12023_v22 = vpop.f32.mrb[70].mxu0 }
 0x3d7   : > { %v12025_v50 = vpop.f32.mrb[71].mxu0 }
 0x3f7   : > { %v12027_v57 = vpop.f32.mrb[72].mxu0 }
 0x3f8   : > { %v12029_v13 = vpop.f32.mrb[73].mxu0 }
 0x3f9   : > { %v12031_v5 = vpop.f32.mrb[74].mxu0 }
 0x3fa   : > { %v12033_v52 = vpop.f32.mrb[75].mxu0 }
 0x419   : > { %v8787_v36 = vpop.f32.mrb[40].mxu1 }
 0x41a   : > { %v8788_v26 = vpop.f32.mrb[41].mxu1 }
 0x41b   : > { %v8789_v34 = vadd.f32 %v8788_v26, %v8787_v36  ;;  %v8790_v60 = vpop.f32.mrb[42].mxu1 }
 0x41c   : > { %v8791_v59 = vpop.f32.mrb[43].mxu1 }
 0x41d   : > { %v7483_v27 = vadd.f32 %v8789_v34, %v12047_v10  ;;  %v8792_v33 = vadd.f32 %v8791_v59, %v8790_v60 }
 0x41f   : > { %v7486_v11 = vadd.f32 %v8792_v33, %v12047_v10  ;;  %v7580_v8 = vadd.f32 %v7579_v56, %v7483_v27 }
 0x421   : > { %v8793_v62 = vpop.f32.mrb[44].mxu1  ;;  %v7642_v12 = vmax.f32 %v7580_v8, 0.0  ;;  %v7583_v21 = vadd.f32 %v7582_v51, %v7486_v11 }
 0x422   : > { %v8794_v47 = vpop.f32.mrb[45].mxu1 }
 0x423   : > { %v8795_v48 = vadd.f32 %v8794_v47, %v8793_v62  ;;  %v8796_v49 = vpop.f32.mrb[46].mxu1  ;;  %7658 = vxpose.xlu1.b32.start [1/16] (narrow) %v7642_v12, 32  ;;  %v7643_v23 = vmax.f32 %v7583_v21, 0.0 }
 0x424   : > { %v8797_v55 = vpop.f32.mrb[47].mxu1 }
 0x425   : > { %v7491_v31 = vadd.f32 %v8795_v48, %v12047_v10  ;;  %v8798_v38 = vadd.f32 %v8797_v55, %v8796_v49 }
 0x427   : > { %v7494_v39 = vadd.f32 %v8798_v38, %v12047_v10  ;;  %7659 = vxpose.xlu1.b32.cont [2/16] (narrow) %v7643_v23, 32  ;;  %v7588_v46 = vadd.f32 %v12008_v61, %v7491_v31 }
 0x429   : > { %v7644_v6 = vmax.f32 %v7588_v46, 0.0  ;;  %v7591_v19 = vadd.f32 %v8880_v20, %v7494_v39 }
 0x42b   : > { %7660 = vxpose.xlu1.b32.cont [3/16] (narrow) %v7644_v6, 32  ;;  %v7645_v2 = vmax.f32 %v7591_v19, 0.0 }
 0x42f   : > { %7661 = vxpose.xlu1.b32.cont [4/16] (narrow) %v7645_v2, 32 }
 0x446   : > { %v8799_v32 = vpop.f32.mrb[48].mxu1 }
 0x447   : > { %v8800_v0 = vpop.f32.mrb[49].mxu1 }
 0x448   : > { %v8801_v4 = vadd.f32 %v8800_v0, %v8799_v32  ;;  %v8802_v18 = vpop.f32.mrb[50].mxu1 }
 0x449   : > { %v8803_v40 = vpop.f32.mrb[51].mxu1 }
 0x44a   : > { %v7499_v30 = vadd.f32 %v8801_v4, %v12047_v10  ;;  %v8804_v37 = vadd.f32 %v8803_v40, %v8802_v18 }
 0x44c   : > { %v7502_v3 = vadd.f32 %v8804_v37, %v12047_v10  ;;  %v7596_v14 = vadd.f32 %v7595_v17, %v7499_v30 }
 0x44e   : > { %v8805_v42 = vpop.f32.mrb[52].mxu1  ;;  %v7646_v58 = vmax.f32 %v7596_v14, 0.0  ;;  %v7599_v61 = vadd.f32 %v7598_v24, %v7502_v3 }
 0x44f   : > { %v8806_v56 = vpop.f32.mrb[53].mxu1 }
 0x450   : > { %v8807_v20 = vadd.f32 %v8806_v56, %v8805_v42  ;;  %v8808_v51 = vpop.f32.mrb[54].mxu1  ;;  %7662 = vxpose.xlu1.b32.cont [5/16] (narrow) %v7646_v58, 32  ;;  %v7647_v28 = vmax.f32 %v7599_v61, 0.0 }
 0x451   : > { %v8809_v54 = vpop.f32.mrb[55].mxu1 }
 0x452   : > { %v7507_v43 = vadd.f32 %v8807_v20, %v12047_v10  ;;  %v8810_v25 = vadd.f32 %v8809_v54, %v8808_v51 }
 0x454   : > { %v7510_v63 = vadd.f32 %v8810_v25, %v12047_v10  ;;  %7663 = vxpose.xlu1.b32.cont [6/16] (narrow) %v7647_v28, 32  ;;  %v7604_v16 = vadd.f32 %v12015_v9, %v7507_v43 }
 0x456   : > { %v7648_v7 = vmax.f32 %v7604_v16, 0.0  ;;  %v7607_v45 = vadd.f32 %v12017_v1, %v7510_v63 }
 0x457   : > { %9167 = shalt.err (!%p9164_p6)
}
 0x458   : > { %s9168_s24 = scalar_lea.hbm %s12075_s25, 512  ;;  %s9172_s17 = scalar_lea.hbm %s12195_s8, 2048 }
 0x459   : > { %p9169_p7 = scmp.ne.s32.totalorder %s12075_s25, %s9168_s24  ;;  %p9173_p11 = scmp.lt.u32.totalorder %s12075_s25, %s12195_s8 }
 0x45a   : > { %p9174_p12 = scmp.lt.u32.totalorder %s9172_s17, %s9168_s24  ;;  %p9176_p0 = scmp.lt.u32.totalorder %s9168_s24, %s12075_s25 }
 0x45b   : > { %p9170_p9 = pnand %p9169_p7, %p9385_p3 }
 0x45c   : > { %p9175_p13 = por %p9174_p12, %p9173_p11 }
 0x45d   : > { %p9171_p10 = pneg %p9170_p9 }
 0x45e   : > { %p9177_p1 = por %p9176_p0, %p9175_p13 }
 0x460   : > { %p9178_p2 = pnand %p9177_p1, %p9171_p10 }
 0x462   : > { %9181 = shalt.err (!%p9178_p2)
}
 0x463   : > { %s12205_s0 = smov 128   ;;  %s12206_s9 = smov 8   ;;  %v8811_v9 = vpop.f32.mrb[56].mxu1  ;;  %7664 = vxpose.xlu1.b32.cont [7/16] (narrow) %v7648_v7, 32  ;;  %v7649_v36 = vmax.f32 %v7607_v45, 0.0 }
 0x464   : > { %s12323_s13 = scalar_lea.sflag [#allocation9], %s12036_s26  ;;  %v8812_v17 = vpop.f32.mrb[57].mxu1  ;;  %s12325_s24 = sshll.u32 %s12065_s22, 7 }
 0x465   : > { %8896 = dma.vmem_to_hbm [thread:$0]  (%p9385_p3), %s12060_s14, 512, %s12075_s25, %s12323_s13, %s12205_s0, %s12205_s0, %s12206_s9   ;;  %v8813_v1 = vadd.f32 %v8812_v17, %v8811_v9  ;;  %v8814_v24 = vpop.f32.mrb[58].mxu1 }
 0x466   : > { %v8815_v35 = vpop.f32.mrb[59].mxu1  ;;  %s12324_s25 = sshll.u32 %s12036_s26, 5  ;;  %s12130_s20 = scalar_lea.hbm %s12194_s7, %s12325_s24 }
 0x467   : > { %v7515_v26 = vadd.f32 %v8813_v1, %v12047_v10  ;;  %v8816_v34 = vadd.f32 %v8815_v35, %v8814_v24  ;;  %7665 = vxpose.xlu1.b32.cont [8/16] (narrow) %v7649_v36, 32  ;;  %v8817_v27 = vpop.f32.mrb[60].mxu1  ;;  %s333_s14 = scalar_lea.vmem [#allocation6], %s12324_s25  ;;  %s7695_s13 = scalar_lea.sflag [#allocation7], %s12036_s26 }
 0x468   : > { %v8818_v8 = vpop.f32.mrb[61].mxu1  ;;  %s7715_s30 = sshll.u32 %s333_s14, 4  ;;  %s9288_s0 = smov [#allocation6]   ;;  %s12123_s30 = int_to_ptr.vmem [resolvable:$true] %s7715_s30 }
 0x469   : > { %v7518_v60 = vadd.f32 %v8816_v34, %v12047_v10  ;;  %v7612_v59 = vadd.f32 %v12021_v53, %v7515_v26  ;;  %v8819_v62 = vadd.f32 %v8818_v8, %v8817_v27  ;;  %v8820_v12 = vpop.f32.mrb[62].mxu1  ;;  %s9182_s25 = scalar_lea.vmem %s12123_s30, 512  ;;  %s9186_s9 = sshll.u32 %s9288_s0, 4  ;;  %s9187_s9 = int_to_ptr.vmem [resolvable:$false] %s9186_s9 }
 0x46a   : > { %v8821_v21 = vpop.f32.mrb[63].mxu1  ;;  %p9183_p4 = scmp.ne.s32.totalorder %s12123_s30, %s9182_s25  ;;  %s9188_s22 = scalar_lea.vmem %s9187_s9, 1024 }
 0x46b   : > { %v7650_v33 = vmax.f32 %v7612_v59, 0.0  ;;  %v7615_v11 = vadd.f32 %v12025_v50, %v7518_v60  ;;  %v7523_v47 = vadd.f32 %v8819_v62, %v12047_v10  ;;  %v8822_v48 = vadd.f32 %v8821_v21, %v8820_v12  ;;  %p9189_p7 = scmp.lt.s32.totalorder %s12123_s30, %s9187_s9  ;;  %p9190_p9 = scmp.lt.s32.totalorder %s9188_s22, %s9182_s25 }
 0x46c   : > { %v8823_v23 = vpop.f32.mrb[64].mxu1  ;;  %p9184_p5 = pnand %p9183_p4, %p9385_p3 }
 0x46d   : > { %7666 = vxpose.xlu1.b32.cont [9/16] (narrow) %v7650_v33, 32  ;;  %v7651_v49 = vmax.f32 %v7615_v11, 0.0  ;;  %v7526_v55 = vadd.f32 %v8822_v48, %v12047_v10  ;;  %v7620_v31 = vadd.f32 %v12019_v41, %v7523_v47  ;;  %v8824_v39 = vpop.f32.mrb[65].mxu1  ;;  %p9191_p10 = por %p9190_p9, %p9189_p7 }
 0x46e   : > { %v8825_v46 = vadd.f32 %v8824_v39, %v8823_v23  ;;  %v8826_v6 = vpop.f32.mrb[66].mxu1  ;;  %p9185_p6 = pneg %p9184_p5 }
 0x46f   : > { %v7652_v38 = vmax.f32 %v7620_v31, 0.0  ;;  %v7623_v53 = vadd.f32 %v12023_v22, %v7526_v55  ;;  %v8827_v19 = vpop.f32.mrb[67].mxu1 }
 0x470   : > { %v7531_v2 = vadd.f32 %v8825_v46, %v12047_v10  ;;  %v8828_v32 = vadd.f32 %v8827_v19, %v8826_v6  ;;  %p9192_p11 = pnand %p9191_p10, %p9185_p6 }
 0x471   : > { %7667 = vxpose.xlu1.b32.cont [10/16] (narrow) %v7651_v49, 32  ;;  %v7653_v50 = vmax.f32 %v7623_v53, 0.0 }
 0x472   : > { %v7534_v15 = vadd.f32 %v8828_v32, %v12047_v10  ;;  %v7628_v0 = vadd.f32 %v12029_v13, %v7531_v2 }
 0x474   : > { %v8829_v4 = vpop.f32.mrb[68].mxu1  ;;  %v7654_v41 = vmax.f32 %v7628_v0, 0.0  ;;  %v7631_v18 = vadd.f32 %v12033_v52, %v7534_v15 }
 0x475   : > { %7668 = vxpose.xlu1.b32.cont [11/16] (narrow) %v7652_v38, 32  ;;  %v8830_v22 = vpop.f32.mrb[69].mxu1 }
 0x476   : > { %v8831_v40 = vadd.f32 %v8830_v22, %v8829_v4  ;;  %v8832_v30 = vpop.f32.mrb[70].mxu1  ;;  %v7655_v14 = vmax.f32 %v7631_v18, 0.0 }
 0x477   : > { %v8833_v37 = vpop.f32.mrb[71].mxu1 }
 0x478   : > { %v7539_v44 = vadd.f32 %v8831_v40, %v12047_v10  ;;  %v8834_v3 = vadd.f32 %v8833_v37, %v8832_v30 }
 0x479   : > { %7669 = vxpose.xlu1.b32.cont [12/16] (narrow) %v7653_v50, 32 }
 0x47a   : > { %v7542_v42 = vadd.f32 %v8834_v3, %v12047_v10  ;;  %v7636_v13 = vadd.f32 %v12027_v57, %v7539_v44 }
 0x47c   : > { %v7656_v58 = vmax.f32 %v7636_v13, 0.0  ;;  %v7639_v61 = vadd.f32 %v12031_v5, %v7542_v42 }
 0x47d   : > { %7670 = vxpose.xlu1.b32.cont [13/16] (narrow) %v7654_v41, 32 }
 0x47e   : > { %v7657_v52 = vmax.f32 %v7639_v61, 0.0 }
 0x481   : > { %7671 = vxpose.xlu1.b32.cont [14/16] (narrow) %v7655_v14, 32 }
 0x485   : > { %7672 = vxpose.xlu1.b32.cont [15/16] (narrow) %v7656_v58, 32 }
 0x489   : > { %7673 = vxpose.xlu1.b32.end [16/16] (narrow) %v7657_v52, 32 }
 0x4cd   : > { %v7674_v29 = vpop.trf.xlu1 }
 0x4ce   : > { %7690 = vst [vmem:[%s333_s14] sm:$0xff] %v7674_v29 }
 0x4d1   : > { %v7675_v56 = vpop.trf.xlu1 }
 0x4d2   : > { %7691 = vst [vmem:[%s333_s14 + $0x8] sm:$0xff] %v7675_v56 }
 0x4d5   : > { %v7676_v10 = vpop.trf.xlu1 }
 0x4d6   : > { %7692 = vst [vmem:[%s333_s14 + $0x10] sm:$0xff] %v7676_v10 }
 0x4d9   : > { %v7677_v57 = vpop.trf.xlu1 }
 0x4da   : > { %7693 = vst [vmem:[%s333_s14 + $0x18] sm:$0xff] %v7677_v57 }
 0x4db   : > { %9195 = shalt.err (!%p9192_p11)
}
 0x4dc   : > { %s9196_s14 = scalar_lea.hbm %s12130_s20, 512  ;;  %s9200_s0 = scalar_lea.hbm %s12194_s7, 2048 }
 0x4dd   : > { %p9197_p12 = scmp.ne.s32.totalorder %s12130_s20, %s9196_s14  ;;  %p9201_p1 = scmp.lt.u32.totalorder %s12130_s20, %s12194_s7 }
 0x4de   : > { %p9202_p2 = scmp.lt.u32.totalorder %s9200_s0, %s9196_s14  ;;  %p9204_p5 = scmp.lt.u32.totalorder %s9196_s14, %s12130_s20 }
 0x4df   : > { %p9198_p13 = pnand %p9197_p12, %p9385_p3 }
 0x4e0   : > { %p9203_p4 = por %p9202_p2, %p9201_p1 }
 0x4e1   : > { %p9199_p0 = pneg %p9198_p13 }
 0x4e2   : > { %p9205_p6 = por %p9204_p5, %p9203_p4 }
 0x4e4   : > { %p9206_p7 = pnand %p9205_p6, %p9199_p0 }
 0x4e6   : > { %9209 = shalt.err (!%p9206_p7)
}
 0x4e7   : > { %s12326_s25 = smov 8   ;;  %s12327_s22 = smov 128  }
 0x4e8   : > { %8895 = dma.vmem_to_hbm [thread:$0]  (%p9385_p3), %s12123_s30, 512, %s12130_s20, %s7695_s13, %s12327_s22, %s12327_s22, %s12326_s25  }
 0x4e9 PF: > { %p8906_p9 = scmp.ge.s32.totalorder %s9280_s12, 2  ;;  %s7748_s24 = sand.u32 1, %s9252_s27  }
 0x4ea   : > { %s7749_s14 = scalar_lea.sflag [#allocation7], %s7748_s24 }
 0x4eb   : > { %p8900_p10 = pnand %p8906_p9, %p9394_p8 }
 0x4ed   : > { %9243 = dma.done.wait (!%p8900_p10), %s7749_s14, 512  }
 0x4ee   : > { %9245 = vsyncadd (!%p8900_p10), %s7749_s14, 4294966784  ;;  %s7758_s18 = scalar_lea.sflag [#allocation9], %s7748_s24 }
 0x4ef   : > { %9247 = dma.done.wait (!%p8900_p10), %s7758_s18, 512  }
 0x4f0   : > { %9249 = vsyncadd (!%p8900_p10), %s7758_s18, 4294966784  ;;  %s25_s12 = sadd.s32 1, %s9280_s12   ;;  %s12328_s27 = smov %s9256_s28 }
 0x4f1   : > { %p22_p11 = scmp.ge.s32.totalorder %s25_s12, 6   ;;  %s12329_s28 = smov %s9260_s29 }
 0x4f2   : > { %s12330_s29 = smov %s9403_s23  ;;  %s12331_s30 = smov %s9272_s10 }
 0x4f3   : > { %s12332_s9 = smov %s9276_s11  ;;  %s12333_s10 = smov %s12336_s15 }
 0x4f4   : > { %s12334_s11 = smov %s12340_s16  ;;  %24 = sbr.rel (!%p22_p11) target bundleno = 9 (0x9), region = 112 }
 0x4fb   :  { %7763 = vsyncpa [#allocation7], 1 }
 0x4fc   :  { %7765 = vsyncpa [#allocation7 + $0x1], 1 }
 0x4fd   :  { %7766 = vsyncpa [#allocation9], 1 }
 0x4fe   :  { %7768 = vsyncpa [#allocation9 + $0x1], 1 }

</bundles_post_ra>
